<compile_context>
chip_gen: v7x
topology: tpu7x:2x2x1
jax: 0.10.0
libtpu: 0.0.40
codegen_flags: <defaults>
</compile_context>

<pallas_src>
import jax
import jax.numpy as jnp
from jax.experimental import pallas as pl
from jax.experimental.pallas import tpu as pltpu

# ---------------------------------------------------------------------------
# LeNet geometry (fixed by the PyTorch module: 1 x 32 x 32 input).
# ---------------------------------------------------------------------------
IN_H = IN_W = 32
KH = KW = 5
C1_OC, C2_OC, C3_OC = 6, 16, 120
C1_OH = C1_OW = IN_H - KH + 1          # 28
P1_H = P1_W = C1_OH // 2               # 14
C2_OH = C2_OW = P1_H - KH + 1          # 10
P2_H = P2_W = C2_OH // 2               # 5
FC1_OUT, FC2_OUT = 84, 10

BT = 4                                  # images processed per grid step


# ---------------------------------------------------------------------------
# One-time (outside the hot path) weight re-layout helpers.
# ---------------------------------------------------------------------------
def _conv_row_mats(w, in_w):
    """Torch conv weight (OC, C, KH, KW) -> stacked row mats (KH, in_w*C, OW*OC).

    With one image's activation laid out as A[h, w*C + c], the stride-1 VALID
    conv output Y[oh, ow*OC + oc] equals  sum_kh A[kh:kh+OH, :] @ M[kh], where
    M[kh][wi*C + c, ow*OC + oc] = w[oc, c, kh, wi - ow] if 0 <= wi-ow < KW else 0.
    """
    oc_n, c_n, kh_n, kw_n = w.shape
    ow_n = in_w - kw_n + 1
    wi = jnp.arange(in_w)[:, None, None, None]
    c = jnp.arange(c_n)[None, :, None, None]
    ow = jnp.arange(ow_n)[None, None, :, None]
    oc = jnp.arange(oc_n)[None, None, None, :]
    kw = wi - ow
    valid = (kw >= 0) & (kw < kw_n)
    kw_c = jnp.clip(kw, 0, kw_n - 1)
    mats = []
    for kh in range(kh_n):
        vals = w[oc, c, kh, kw_c]                      # (in_w, C, OW, OC)
        mats.append(jnp.where(valid, vals, 0.0).reshape(in_w * c_n, ow_n * oc_n))
    return jnp.stack(mats, axis=0).astype(jnp.float32)


def _pool_mats(n, oc_n):
    """2x2 / stride-2 avg pool of Y[(h, w*OC+oc)] expressed as PL @ Y @ PR."""
    half = n // 2
    i = jnp.arange(half)[:, None]
    j = jnp.arange(n)[None, :]
    p_left = jnp.where((j == 2 * i) | (j == 2 * i + 1), 0.5, 0.0).astype(jnp.float32)

    wi = jnp.arange(n)[:, None, None, None]
    ci = jnp.arange(oc_n)[None, :, None, None]
    wj = jnp.arange(half)[None, None, :, None]
    cj = jnp.arange(oc_n)[None, None, None, :]
    hit = (ci == cj) & ((wi == 2 * wj) | (wi == 2 * wj + 1))
    p_right = jnp.where(hit, 0.5, 0.0).reshape(n * oc_n, half * oc_n).astype(jnp.float32)
    return p_left, p_right


def prepare_params(params):
    """Convert torch-layout LeNet params into the kernel operand tuple."""
    f32 = jnp.float32
    cw1 = _conv_row_mats(params["conv1_w"].astype(f32), IN_W)          # (5, 32, 168)
    cb1 = jnp.tile(params["conv1_b"].astype(f32), C1_OW)[None, :]      # (1, 168)
    cw2 = _conv_row_mats(params["conv2_w"].astype(f32), P1_W)          # (5, 84, 160)
    cb2 = jnp.tile(params["conv2_b"].astype(f32), C2_OW)[None, :]      # (1, 160)
    cw3 = _conv_row_mats(params["conv3_w"].astype(f32), P2_W)          # (5, 80, 120)
    cb3 = params["conv3_b"].astype(f32)[None, :]                       # (1, 120)
    pool1_l, pool1_r = _pool_mats(C1_OH, C1_OC)                        # (14,28), (168,84)
    pool2_l, pool2_r = _pool_mats(C2_OH, C2_OC)                        # (5,10),  (160,80)
    fw1 = params["fc1_w"].astype(f32).T                                # (120, 84)
    fb1 = params["fc1_b"].astype(f32)[None, :]                         # (1, 84)
    fw2 = params["fc2_w"].astype(f32).T                                # (84, 10)
    fb2 = params["fc2_b"].astype(f32)[None, :]                         # (1, 10)
    return (cw1, cb1, pool1_l, pool1_r, cw2, cb2, pool2_l, pool2_r,
            cw3, cb3, fw1, fb1, fw2, fb2)


# ---------------------------------------------------------------------------
# The fused Pallas kernel: conv1+relu+pool, conv2+relu+pool, conv3+relu,
# fc1+relu, fc2 -- all for a tile of BT images per grid step.
# ---------------------------------------------------------------------------
def _lenet_kernel(x_ref, cw1_ref, cb1_ref, pl1_ref, pr1_ref,
                  cw2_ref, cb2_ref, pl2_ref, pr2_ref,
                  cw3_ref, cb3_ref, fw1_ref, fb1_ref, fw2_ref, fb2_ref,
                  o_ref, feat_ref):
    f32 = jnp.float32

    def conv_rows(a, w_ref, b_ref, oh):
        # a: (H, W*Cin);  w_ref: (KH, W*Cin, OW*OC);  b_ref: (1, OW*OC)
        acc = jnp.dot(a[0:oh, :], w_ref[0], preferred_element_type=f32)
        for kh in range(1, KH):
            acc = acc + jnp.dot(a[kh:kh + oh, :], w_ref[kh],
                                preferred_element_type=f32)
        return jnp.maximum(acc + b_ref[...], 0.0)

    def avg_pool(y, left_ref, right_ref):
        t = jnp.dot(y, right_ref[...], preferred_element_type=f32)
        return jnp.dot(left_ref[...], t, preferred_element_type=f32)

    for b in range(BT):                                   # unrolled: BT small
        a0 = x_ref[b]                                     # (32, 32)   A[h, w]
        y1 = conv_rows(a0, cw1_ref, cb1_ref, C1_OH)       # (28, 28*6)
        a1 = avg_pool(y1, pl1_ref, pr1_ref)               # (14, 14*6)
        y2 = conv_rows(a1, cw2_ref, cb2_ref, C2_OH)       # (10, 10*16)
        a2 = avg_pool(y2, pl2_ref, pr2_ref)               # (5, 5*16)
        # conv3 has a 1x1 output: 5 row-dots give this image's 120-vector.
        f = jnp.dot(a2[0:1, :], cw3_ref[0], preferred_element_type=f32)
        for kh in range(1, KH):
            f = f + jnp.dot(a2[kh:kh + 1, :], cw3_ref[kh],
                            preferred_element_type=f32)
        feat_ref[b:b + 1, :] = f                          # (1, 120) -> scratch

    # Batched tail over the BT images of this grid step (f32 epilogue).
    h = jnp.maximum(feat_ref[...] + cb3_ref[...], 0.0)    # (BT, 120)  conv3 relu
    h = jnp.maximum(jnp.dot(h, fw1_ref[...], preferred_element_type=f32)
                    + fb1_ref[...], 0.0)                  # (BT, 84)
    o_ref[...] = (jnp.dot(h, fw2_ref[...], preferred_element_type=f32)
                  + fb2_ref[...])                         # (BT, 10)


# ---------------------------------------------------------------------------
# Wrapper
# ---------------------------------------------------------------------------
def lenet_forward(prep, x):
    """Fused LeNet forward.  x: (B, 1, 32, 32) NCHW float32 -> (B, 10)."""
    B, cin, H, W = x.shape
    assert (cin, H, W) == (1, IN_H, IN_W), "LeNet expects 1x32x32 inputs"
    x2 = x[:, 0, :, :].astype(jnp.float32)            # (B, 32, 32): A[h, w]
    grid = pl.cdiv(B, BT)
    bp = grid * BT
    if bp != B:
        x2 = jnp.pad(x2, ((0, bp - B), (0, 0), (0, 0)))

    # Weights: full-array blocks with constant index maps -> VMEM resident.
    weight_specs = [pl.BlockSpec(w.shape, (lambda i, nd=w.ndim: (0,) * nd))
                    for w in prep]

    macs_per_image = (KH * C1_OH * IN_W * (C1_OW * C1_OC)
                      + C1_OH * (C1_OW * C1_OC) * (P1_W * C1_OC)
                      + P1_H * C1_OH * (P1_W * C1_OC)
                      + KH * C2_OH * (P1_W * C1_OC) * (C2_OW * C2_OC)
                      + C2_OH * (C2_OW * C2_OC) * (P2_W * C2_OC)
                      + P2_H * C2_OH * (P2_W * C2_OC)
                      + KH * 1 * (P2_W * C2_OC) * C3_OC
                      + C3_OC * FC1_OUT + FC1_OUT * FC2_OUT)
    bytes_accessed = int(x2.size * 4 + sum(w.size * 4 for w in prep)
                         + bp * FC2_OUT * 4)

    out = pl.pallas_call(
        _lenet_kernel,
        out_shape=jax.ShapeDtypeStruct((grid, BT, FC2_OUT), jnp.float32),
        grid=(grid,),
        in_specs=[pl.BlockSpec((BT, IN_H, IN_W), lambda i: (i, 0, 0))]
                 + weight_specs,
        out_specs=pl.BlockSpec((None, BT, FC2_OUT), lambda i: (i, 0, 0)),
        scratch_shapes=[pltpu.VMEM((BT, C3_OC), jnp.float32)],
        compiler_params=pltpu.CompilerParams(
            dimension_semantics=("parallel",)),
        cost_estimate=pl.CostEstimate(flops=2 * macs_per_image * bp,
                                      transcendentals=0,
                                      bytes_accessed=bytes_accessed),
    )(x2, *prep)
    return out.reshape(bp, FC2_OUT)[:B]


# ---------------------------------------------------------------------------
# Plain-JAX reference (mirrors the PyTorch module) used only for validation.
# ---------------------------------------------------------------------------
def lenet_reference(params, x):
    hi = jax.lax.Precision.HIGHEST

    def conv(h, w, b):
        y = jax.lax.conv_general_dilated(
            h, w, window_strides=(1, 1), padding="VALID",
            dimension_numbers=("NCHW", "OIHW", "NCHW"), precision=hi)
        return jax.nn.relu(y + b[None, :, None, None])

    def pool(h):
        n, c, hh, ww = h.shape
        return h.reshape(n, c, hh // 2, 2, ww // 2, 2).mean(axis=(3, 5))

    h = pool(conv(x, params["conv1_w"], params["conv1_b"]))
    h = pool(conv(h, params["conv2_w"], params["conv2_b"]))
    h = conv(h, params["conv3_w"], params["conv3_b"])
    h = h.reshape(h.shape[0], -1)
    h = jax.nn.relu(jnp.dot(h, params["fc1_w"].T, precision=hi) + params["fc1_b"])
    return jnp.dot(h, params["fc2_w"].T, precision=hi) + params["fc2_b"]


def init_params(key):
    ks = jax.random.split(key, 10)
    scale = 0.1

    def w(k, shape):
        return scale * jax.random.normal(k, shape, dtype=jnp.float32)

    return {
        "conv1_w": w(ks[0], (6, 1, 5, 5)),
        "conv1_b": w(ks[1], (6,)),
        "conv2_w": w(ks[2], (16, 6, 5, 5)),
        "conv2_b": w(ks[3], (16,)),
        "conv3_w": w(ks[4], (120, 16, 5, 5)),
        "conv3_b": w(ks[5], (120,)),
        "fc1_w": w(ks[6], (84, 120)),    # torch nn.Linear(120, 84) weight
        "fc1_b": w(ks[7], (84,)),
        "fc2_w": w(ks[8], (10, 84)),     # torch nn.Linear(84, 10) weight
        "fc2_b": w(ks[9], (10,)),
    }


if __name__ == "__main__":
    key = jax.random.PRNGKey(0)
    k_param, k_x = jax.random.split(key)
    params = init_params(k_param)
    x = jax.random.uniform(k_x, (8, 1, 32, 32), dtype=jnp.float32)

    prep = prepare_params(params)            # one-time weight re-layout
    fwd = jax.jit(lenet_forward)
    out = jax.block_until_ready(fwd(prep, x))

    assert out.shape == (8, FC2_OUT), out.shape
    assert out.dtype == jnp.float32

    ref = lenet_reference(params, x)
    err = float(jnp.max(jnp.abs(out - ref)))
    assert err < 1e-2, f"kernel deviates from reference: max|diff|={err}"
    print("KERNEL_OK")
</pallas_src>

<mosaic_0001>
module attributes {stable_mosaic.version = 11 : i64} {
  func.func @_lenet_kernel(%arg0: i32, %arg1: memref<4x32x32xf32, #tpu.memory_space<vmem>>, %arg2: memref<5x32x168xf32, #tpu.memory_space<vmem>>, %arg3: memref<1x168xf32, #tpu.memory_space<vmem>>, %arg4: memref<14x28xf32, #tpu.memory_space<vmem>>, %arg5: memref<168x84xf32, #tpu.memory_space<vmem>>, %arg6: memref<5x84x160xf32, #tpu.memory_space<vmem>>, %arg7: memref<1x160xf32, #tpu.memory_space<vmem>>, %arg8: memref<5x10xf32, #tpu.memory_space<vmem>>, %arg9: memref<160x80xf32, #tpu.memory_space<vmem>>, %arg10: memref<5x80x120xf32, #tpu.memory_space<vmem>>, %arg11: memref<1x120xf32, #tpu.memory_space<vmem>>, %arg12: memref<120x84xf32, #tpu.memory_space<vmem>>, %arg13: memref<1x84xf32, #tpu.memory_space<vmem>>, %arg14: memref<84x10xf32, #tpu.memory_space<vmem>>, %arg15: memref<1x10xf32, #tpu.memory_space<vmem>>, %arg16: memref<1x4x10xf32, #tpu.memory_space<vmem>>, %arg17: memref<4x120xf32, #tpu.memory_space<vmem>>) attributes {dimension_semantics = [#tpu.dimension_semantics<parallel>], iteration_bounds = array<i64: 2>, scalar_prefetch = 0 : i64, scratch_operands = 1 : i64, tpu.core_type = #tpu.core_type<tc>, window_params = [{transform_indices = @transform_0, window_bounds = array<i64: 4, 32, 32>}, {pipeline_mode = #tpu.pipeline_mode<synchronous>, transform_indices = @transform_1, window_bounds = array<i64: 5, 32, 168>}, {pipeline_mode = #tpu.pipeline_mode<synchronous>, transform_indices = @transform_2, window_bounds = array<i64: 1, 168>}, {pipeline_mode = #tpu.pipeline_mode<synchronous>, transform_indices = @transform_3, window_bounds = array<i64: 14, 28>}, {pipeline_mode = #tpu.pipeline_mode<synchronous>, transform_indices = @transform_4, window_bounds = array<i64: 168, 84>}, {pipeline_mode = #tpu.pipeline_mode<synchronous>, transform_indices = @transform_5, window_bounds = array<i64: 5, 84, 160>}, {pipeline_mode = #tpu.pipeline_mode<synchronous>, transform_indices = @transform_6, window_bounds = array<i64: 1, 160>}, {pipeline_mode = #tpu.pipeline_mode<synchronous>, transform_indices = @transform_7, window_bounds = array<i64: 5, 10>}, {pipeline_mode = #tpu.pipeline_mode<synchronous>, transform_indices = @transform_8, window_bounds = array<i64: 160, 80>}, {pipeline_mode = #tpu.pipeline_mode<synchronous>, transform_indices = @transform_9, window_bounds = array<i64: 5, 80, 120>}, {pipeline_mode = #tpu.pipeline_mode<synchronous>, transform_indices = @transform_10, window_bounds = array<i64: 1, 120>}, {pipeline_mode = #tpu.pipeline_mode<synchronous>, transform_indices = @transform_11, window_bounds = array<i64: 120, 84>}, {pipeline_mode = #tpu.pipeline_mode<synchronous>, transform_indices = @transform_12, window_bounds = array<i64: 1, 84>}, {pipeline_mode = #tpu.pipeline_mode<synchronous>, transform_indices = @transform_13, window_bounds = array<i64: 84, 10>}, {pipeline_mode = #tpu.pipeline_mode<synchronous>, transform_indices = @transform_14, window_bounds = array<i64: 1, 10>}, {transform_indices = @transform_15, window_bounds = array<i64: 1, 4, 10>}]} {
    %c0 = arith.constant 0 : index
    %c0_0 = arith.constant 0 : index
    %c0_1 = arith.constant 0 : index
    %0 = vector.load %arg1[%c0, %c0_0, %c0_1] : memref<4x32x32xf32, #tpu.memory_space<vmem>>, vector<1x32x32xf32>
    %1 = vector.shape_cast %0 : vector<1x32x32xf32> to vector<32x32xf32>
    %2 = vector.extract_strided_slice %1 {offsets = [0, 0], sizes = [28, 32], strides = [1, 1]} : vector<32x32xf32> to vector<28x32xf32>
    %c0_2 = arith.constant 0 : index
    %c0_3 = arith.constant 0 : index
    %c0_4 = arith.constant 0 : index
    %3 = vector.load %arg2[%c0_2, %c0_3, %c0_4] : memref<5x32x168xf32, #tpu.memory_space<vmem>>, vector<1x32x168xf32>
    %4 = vector.shape_cast %3 : vector<1x32x168xf32> to vector<32x168xf32>
    %cst = arith.constant dense<0.000000e+00> : vector<28x168xf32>
    %5 = tpu.matmul %2, %4, %cst {dimension_numbers = #tpu.dot_dimension_numbers<[1], [0], [0], [1], [0, 0, 1, 1], [], []>} : vector<28x32xf32>, vector<32x168xf32>, vector<28x168xf32> -> vector<28x168xf32>
    %6 = vector.extract_strided_slice %1 {offsets = [1, 0], sizes = [28, 32], strides = [1, 1]} : vector<32x32xf32> to vector<28x32xf32>
    %c1 = arith.constant 1 : index
    %c0_5 = arith.constant 0 : index
    %c0_6 = arith.constant 0 : index
    %7 = vector.load %arg2[%c1, %c0_5, %c0_6] : memref<5x32x168xf32, #tpu.memory_space<vmem>>, vector<1x32x168xf32>
    %8 = vector.shape_cast %7 : vector<1x32x168xf32> to vector<32x168xf32>
    %cst_7 = arith.constant dense<0.000000e+00> : vector<28x168xf32>
    %9 = tpu.matmul %6, %8, %cst_7 {dimension_numbers = #tpu.dot_dimension_numbers<[1], [0], [0], [1], [0, 0, 1, 1], [], []>} : vector<28x32xf32>, vector<32x168xf32>, vector<28x168xf32> -> vector<28x168xf32>
    %10 = arith.addf %5, %9 : vector<28x168xf32>
    %11 = vector.extract_strided_slice %1 {offsets = [2, 0], sizes = [28, 32], strides = [1, 1]} : vector<32x32xf32> to vector<28x32xf32>
    %c2 = arith.constant 2 : index
    %c0_8 = arith.constant 0 : index
    %c0_9 = arith.constant 0 : index
    %12 = vector.load %arg2[%c2, %c0_8, %c0_9] : memref<5x32x168xf32, #tpu.memory_space<vmem>>, vector<1x32x168xf32>
    %13 = vector.shape_cast %12 : vector<1x32x168xf32> to vector<32x168xf32>
    %cst_10 = arith.constant dense<0.000000e+00> : vector<28x168xf32>
    %14 = tpu.matmul %11, %13, %cst_10 {dimension_numbers = #tpu.dot_dimension_numbers<[1], [0], [0], [1], [0, 0, 1, 1], [], []>} : vector<28x32xf32>, vector<32x168xf32>, vector<28x168xf32> -> vector<28x168xf32>
    %15 = arith.addf %10, %14 : vector<28x168xf32>
    %16 = vector.extract_strided_slice %1 {offsets = [3, 0], sizes = [28, 32], strides = [1, 1]} : vector<32x32xf32> to vector<28x32xf32>
    %c3 = arith.constant 3 : index
    %c0_11 = arith.constant 0 : index
    %c0_12 = arith.constant 0 : index
    %17 = vector.load %arg2[%c3, %c0_11, %c0_12] : memref<5x32x168xf32, #tpu.memory_space<vmem>>, vector<1x32x168xf32>
    %18 = vector.shape_cast %17 : vector<1x32x168xf32> to vector<32x168xf32>
    %cst_13 = arith.constant dense<0.000000e+00> : vector<28x168xf32>
    %19 = tpu.matmul %16, %18, %cst_13 {dimension_numbers = #tpu.dot_dimension_numbers<[1], [0], [0], [1], [0, 0, 1, 1], [], []>} : vector<28x32xf32>, vector<32x168xf32>, vector<28x168xf32> -> vector<28x168xf32>
    %20 = arith.addf %15, %19 : vector<28x168xf32>
    %21 = vector.extract_strided_slice %1 {offsets = [4, 0], sizes = [28, 32], strides = [1, 1]} : vector<32x32xf32> to vector<28x32xf32>
    %c4 = arith.constant 4 : index
    %c0_14 = arith.constant 0 : index
    %c0_15 = arith.constant 0 : index
    %22 = vector.load %arg2[%c4, %c0_14, %c0_15] : memref<5x32x168xf32, #tpu.memory_space<vmem>>, vector<1x32x168xf32>
    %23 = vector.shape_cast %22 : vector<1x32x168xf32> to vector<32x168xf32>
    %cst_16 = arith.constant dense<0.000000e+00> : vector<28x168xf32>
    %24 = tpu.matmul %21, %23, %cst_16 {dimension_numbers = #tpu.dot_dimension_numbers<[1], [0], [0], [1], [0, 0, 1, 1], [], []>} : vector<28x32xf32>, vector<32x168xf32>, vector<28x168xf32> -> vector<28x168xf32>
    %25 = arith.addf %20, %24 : vector<28x168xf32>
    %c0_17 = arith.constant 0 : index
    %c0_18 = arith.constant 0 : index
    %26 = vector.load %arg3[%c0_17, %c0_18] : memref<1x168xf32, #tpu.memory_space<vmem>>, vector<1x168xf32>
    %27 = vector.broadcast %26 : vector<1x168xf32> to vector<28x168xf32>
    %28 = arith.addf %25, %27 : vector<28x168xf32>
    %cst_19 = arith.constant 0.000000e+00 : f32
    %29 = vector.broadcast %cst_19 : f32 to vector<28x168xf32>
    %30 = arith.maximumf %28, %29 : vector<28x168xf32>
    %c0_20 = arith.constant 0 : index
    %c0_21 = arith.constant 0 : index
    %31 = vector.load %arg5[%c0_20, %c0_21] : memref<168x84xf32, #tpu.memory_space<vmem>>, vector<168x84xf32>
    %cst_22 = arith.constant dense<0.000000e+00> : vector<28x84xf32>
    %32 = tpu.matmul %30, %31, %cst_22 {dimension_numbers = #tpu.dot_dimension_numbers<[1], [0], [0], [1], [0, 0, 1, 1], [], []>} : vector<28x168xf32>, vector<168x84xf32>, vector<28x84xf32> -> vector<28x84xf32>
    %c0_23 = arith.constant 0 : index
    %c0_24 = arith.constant 0 : index
    %33 = vector.load %arg4[%c0_23, %c0_24] : memref<14x28xf32, #tpu.memory_space<vmem>>, vector<14x28xf32>
    %cst_25 = arith.constant dense<0.000000e+00> : vector<14x84xf32>
    %34 = tpu.matmul %33, %32, %cst_25 {dimension_numbers = #tpu.dot_dimension_numbers<[1], [0], [0], [1], [0, 0, 1, 1], [], []>} : vector<14x28xf32>, vector<28x84xf32>, vector<14x84xf32> -> vector<14x84xf32>
    %35 = vector.extract_strided_slice %34 {offsets = [0, 0], sizes = [10, 84], strides = [1, 1]} : vector<14x84xf32> to vector<10x84xf32>
    %c0_26 = arith.constant 0 : index
    %c0_27 = arith.constant 0 : index
    %c0_28 = arith.constant 0 : index
    %36 = vector.load %arg6[%c0_26, %c0_27, %c0_28] : memref<5x84x160xf32, #tpu.memory_space<vmem>>, vector<1x84x160xf32>
    %37 = vector.shape_cast %36 : vector<1x84x160xf32> to vector<84x160xf32>
    %cst_29 = arith.constant dense<0.000000e+00> : vector<10x160xf32>
    %38 = tpu.matmul %35, %37, %cst_29 {dimension_numbers = #tpu.dot_dimension_numbers<[1], [0], [0], [1], [0, 0, 1, 1], [], []>} : vector<10x84xf32>, vector<84x160xf32>, vector<10x160xf32> -> vector<10x160xf32>
    %39 = vector.extract_strided_slice %34 {offsets = [1, 0], sizes = [10, 84], strides = [1, 1]} : vector<14x84xf32> to vector<10x84xf32>
    %c1_30 = arith.constant 1 : index
    %c0_31 = arith.constant 0 : index
    %c0_32 = arith.constant 0 : index
    %40 = vector.load %arg6[%c1_30, %c0_31, %c0_32] : memref<5x84x160xf32, #tpu.memory_space<vmem>>, vector<1x84x160xf32>
    %41 = vector.shape_cast %40 : vector<1x84x160xf32> to vector<84x160xf32>
    %cst_33 = arith.constant dense<0.000000e+00> : vector<10x160xf32>
    %42 = tpu.matmul %39, %41, %cst_33 {dimension_numbers = #tpu.dot_dimension_numbers<[1], [0], [0], [1], [0, 0, 1, 1], [], []>} : vector<10x84xf32>, vector<84x160xf32>, vector<10x160xf32> -> vector<10x160xf32>
    %43 = arith.addf %38, %42 : vector<10x160xf32>
    %44 = vector.extract_strided_slice %34 {offsets = [2, 0], sizes = [10, 84], strides = [1, 1]} : vector<14x84xf32> to vector<10x84xf32>
    %c2_34 = arith.constant 2 : index
    %c0_35 = arith.constant 0 : index
    %c0_36 = arith.constant 0 : index
    %45 = vector.load %arg6[%c2_34, %c0_35, %c0_36] : memref<5x84x160xf32, #tpu.memory_space<vmem>>, vector<1x84x160xf32>
    %46 = vector.shape_cast %45 : vector<1x84x160xf32> to vector<84x160xf32>
    %cst_37 = arith.constant dense<0.000000e+00> : vector<10x160xf32>
    %47 = tpu.matmul %44, %46, %cst_37 {dimension_numbers = #tpu.dot_dimension_numbers<[1], [0], [0], [1], [0, 0, 1, 1], [], []>} : vector<10x84xf32>, vector<84x160xf32>, vector<10x160xf32> -> vector<10x160xf32>
    %48 = arith.addf %43, %47 : vector<10x160xf32>
    %49 = vector.extract_strided_slice %34 {offsets = [3, 0], sizes = [10, 84], strides = [1, 1]} : vector<14x84xf32> to vector<10x84xf32>
    %c3_38 = arith.constant 3 : index
    %c0_39 = arith.constant 0 : index
    %c0_40 = arith.constant 0 : index
    %50 = vector.load %arg6[%c3_38, %c0_39, %c0_40] : memref<5x84x160xf32, #tpu.memory_space<vmem>>, vector<1x84x160xf32>
    %51 = vector.shape_cast %50 : vector<1x84x160xf32> to vector<84x160xf32>
    %cst_41 = arith.constant dense<0.000000e+00> : vector<10x160xf32>
    %52 = tpu.matmul %49, %51, %cst_41 {dimension_numbers = #tpu.dot_dimension_numbers<[1], [0], [0], [1], [0, 0, 1, 1], [], []>} : vector<10x84xf32>, vector<84x160xf32>, vector<10x160xf32> -> vector<10x160xf32>
    %53 = arith.addf %48, %52 : vector<10x160xf32>
    %54 = vector.extract_strided_slice %34 {offsets = [4, 0], sizes = [10, 84], strides = [1, 1]} : vector<14x84xf32> to vector<10x84xf32>
    %c4_42 = arith.constant 4 : index
    %c0_43 = arith.constant 0 : index
    %c0_44 = arith.constant 0 : index
    %55 = vector.load %arg6[%c4_42, %c0_43, %c0_44] : memref<5x84x160xf32, #tpu.memory_space<vmem>>, vector<1x84x160xf32>
    %56 = vector.shape_cast %55 : vector<1x84x160xf32> to vector<84x160xf32>
    %cst_45 = arith.constant dense<0.000000e+00> : vector<10x160xf32>
    %57 = tpu.matmul %54, %56, %cst_45 {dimension_numbers = #tpu.dot_dimension_numbers<[1], [0], [0], [1], [0, 0, 1, 1], [], []>} : vector<10x84xf32>, vector<84x160xf32>, vector<10x160xf32> -> vector<10x160xf32>
    %58 = arith.addf %53, %57 : vector<10x160xf32>
    %c0_46 = arith.constant 0 : index
    %c0_47 = arith.constant 0 : index
    %59 = vector.load %arg7[%c0_46, %c0_47] : memref<1x160xf32, #tpu.memory_space<vmem>>, vector<1x160xf32>
    %60 = vector.broadcast %59 : vector<1x160xf32> to vector<10x160xf32>
    %61 = arith.addf %58, %60 : vector<10x160xf32>
    %cst_48 = arith.constant 0.000000e+00 : f32
    %62 = vector.broadcast %cst_48 : f32 to vector<10x160xf32>
    %63 = arith.maximumf %61, %62 : vector<10x160xf32>
    %c0_49 = arith.constant 0 : index
    %c0_50 = arith.constant 0 : index
    %64 = vector.load %arg9[%c0_49, %c0_50] : memref<160x80xf32, #tpu.memory_space<vmem>>, vector<160x80xf32>
    %cst_51 = arith.constant dense<0.000000e+00> : vector<10x80xf32>
    %65 = tpu.matmul %63, %64, %cst_51 {dimension_numbers = #tpu.dot_dimension_numbers<[1], [0], [0], [1], [0, 0, 1, 1], [], []>} : vector<10x160xf32>, vector<160x80xf32>, vector<10x80xf32> -> vector<10x80xf32>
    %c0_52 = arith.constant 0 : index
    %c0_53 = arith.constant 0 : index
    %66 = vector.load %arg8[%c0_52, %c0_53] : memref<5x10xf32, #tpu.memory_space<vmem>>, vector<5x10xf32>
    %cst_54 = arith.constant dense<0.000000e+00> : vector<5x80xf32>
    %67 = tpu.matmul %66, %65, %cst_54 {dimension_numbers = #tpu.dot_dimension_numbers<[1], [0], [0], [1], [0, 0, 1, 1], [], []>} : vector<5x10xf32>, vector<10x80xf32>, vector<5x80xf32> -> vector<5x80xf32>
    %68 = vector.extract_strided_slice %67 {offsets = [0, 0], sizes = [1, 80], strides = [1, 1]} : vector<5x80xf32> to vector<1x80xf32>
    %c0_55 = arith.constant 0 : index
    %c0_56 = arith.constant 0 : index
    %c0_57 = arith.constant 0 : index
    %69 = vector.load %arg10[%c0_55, %c0_56, %c0_57] : memref<5x80x120xf32, #tpu.memory_space<vmem>>, vector<1x80x120xf32>
    %70 = vector.shape_cast %69 : vector<1x80x120xf32> to vector<80x120xf32>
    %cst_58 = arith.constant dense<0.000000e+00> : vector<1x120xf32>
    %71 = tpu.matmul %68, %70, %cst_58 {dimension_numbers = #tpu.dot_dimension_numbers<[1], [0], [0], [1], [0, 0, 1, 1], [], []>} : vector<1x80xf32>, vector<80x120xf32>, vector<1x120xf32> -> vector<1x120xf32>
    %72 = vector.extract_strided_slice %67 {offsets = [1, 0], sizes = [1, 80], strides = [1, 1]} : vector<5x80xf32> to vector<1x80xf32>
    %c1_59 = arith.constant 1 : index
    %c0_60 = arith.constant 0 : index
    %c0_61 = arith.constant 0 : index
    %73 = vector.load %arg10[%c1_59, %c0_60, %c0_61] : memref<5x80x120xf32, #tpu.memory_space<vmem>>, vector<1x80x120xf32>
    %74 = vector.shape_cast %73 : vector<1x80x120xf32> to vector<80x120xf32>
    %cst_62 = arith.constant dense<0.000000e+00> : vector<1x120xf32>
    %75 = tpu.matmul %72, %74, %cst_62 {dimension_numbers = #tpu.dot_dimension_numbers<[1], [0], [0], [1], [0, 0, 1, 1], [], []>} : vector<1x80xf32>, vector<80x120xf32>, vector<1x120xf32> -> vector<1x120xf32>
    %76 = arith.addf %71, %75 : vector<1x120xf32>
    %77 = vector.extract_strided_slice %67 {offsets = [2, 0], sizes = [1, 80], strides = [1, 1]} : vector<5x80xf32> to vector<1x80xf32>
    %c2_63 = arith.constant 2 : index
    %c0_64 = arith.constant 0 : index
    %c0_65 = arith.constant 0 : index
    %78 = vector.load %arg10[%c2_63, %c0_64, %c0_65] : memref<5x80x120xf32, #tpu.memory_space<vmem>>, vector<1x80x120xf32>
    %79 = vector.shape_cast %78 : vector<1x80x120xf32> to vector<80x120xf32>
    %cst_66 = arith.constant dense<0.000000e+00> : vector<1x120xf32>
    %80 = tpu.matmul %77, %79, %cst_66 {dimension_numbers = #tpu.dot_dimension_numbers<[1], [0], [0], [1], [0, 0, 1, 1], [], []>} : vector<1x80xf32>, vector<80x120xf32>, vector<1x120xf32> -> vector<1x120xf32>
    %81 = arith.addf %76, %80 : vector<1x120xf32>
    %82 = vector.extract_strided_slice %67 {offsets = [3, 0], sizes = [1, 80], strides = [1, 1]} : vector<5x80xf32> to vector<1x80xf32>
    %c3_67 = arith.constant 3 : index
    %c0_68 = arith.constant 0 : index
    %c0_69 = arith.constant 0 : index
    %83 = vector.load %arg10[%c3_67, %c0_68, %c0_69] : memref<5x80x120xf32, #tpu.memory_space<vmem>>, vector<1x80x120xf32>
    %84 = vector.shape_cast %83 : vector<1x80x120xf32> to vector<80x120xf32>
    %cst_70 = arith.constant dense<0.000000e+00> : vector<1x120xf32>
    %85 = tpu.matmul %82, %84, %cst_70 {dimension_numbers = #tpu.dot_dimension_numbers<[1], [0], [0], [1], [0, 0, 1, 1], [], []>} : vector<1x80xf32>, vector<80x120xf32>, vector<1x120xf32> -> vector<1x120xf32>
    %86 = arith.addf %81, %85 : vector<1x120xf32>
    %87 = vector.extract_strided_slice %67 {offsets = [4, 0], sizes = [1, 80], strides = [1, 1]} : vector<5x80xf32> to vector<1x80xf32>
    %c4_71 = arith.constant 4 : index
    %c0_72 = arith.constant 0 : index
    %c0_73 = arith.constant 0 : index
    %88 = vector.load %arg10[%c4_71, %c0_72, %c0_73] : memref<5x80x120xf32, #tpu.memory_space<vmem>>, vector<1x80x120xf32>
    %89 = vector.shape_cast %88 : vector<1x80x120xf32> to vector<80x120xf32>
    %cst_74 = arith.constant dense<0.000000e+00> : vector<1x120xf32>
    %90 = tpu.matmul %87, %89, %cst_74 {dimension_numbers = #tpu.dot_dimension_numbers<[1], [0], [0], [1], [0, 0, 1, 1], [], []>} : vector<1x80xf32>, vector<80x120xf32>, vector<1x120xf32> -> vector<1x120xf32>
    %91 = arith.addf %86, %90 : vector<1x120xf32>
    %c0_75 = arith.constant 0 : index
    %c0_76 = arith.constant 0 : index
    %92 = vector.load %arg17[%c0_75, %c0_76] : memref<4x120xf32, #tpu.memory_space<vmem>>, vector<1x120xf32>
    tpu.vector_store %arg17[%c0_75, %c0_76], %91 {strides = array<i32>} : memref<4x120xf32, #tpu.memory_space<vmem>>, vector<1x120xf32>,
    %c1_77 = arith.constant 1 : index
    %c0_78 = arith.constant 0 : index
    %c0_79 = arith.constant 0 : index
    %93 = vector.load %arg1[%c1_77, %c0_78, %c0_79] : memref<4x32x32xf32, #tpu.memory_space<vmem>>, vector<1x32x32xf32>
    %94 = vector.shape_cast %93 : vector<1x32x32xf32> to vector<32x32xf32>
    %95 = vector.extract_strided_slice %94 {offsets = [0, 0], sizes = [28, 32], strides = [1, 1]} : vector<32x32xf32> to vector<28x32xf32>
    %c0_80 = arith.constant 0 : index
    %c0_81 = arith.constant 0 : index
    %c0_82 = arith.constant 0 : index
    %96 = vector.load %arg2[%c0_80, %c0_81, %c0_82] : memref<5x32x168xf32, #tpu.memory_space<vmem>>, vector<1x32x168xf32>
    %97 = vector.shape_cast %96 : vector<1x32x168xf32> to vector<32x168xf32>
    %cst_83 = arith.constant dense<0.000000e+00> : vector<28x168xf32>
    %98 = tpu.matmul %95, %97, %cst_83 {dimension_numbers = #tpu.dot_dimension_numbers<[1], [0], [0], [1], [0, 0, 1, 1], [], []>} : vector<28x32xf32>, vector<32x168xf32>, vector<28x168xf32> -> vector<28x168xf32>
    %99 = vector.extract_strided_slice %94 {offsets = [1, 0], sizes = [28, 32], strides = [1, 1]} : vector<32x32xf32> to vector<28x32xf32>
    %c1_84 = arith.constant 1 : index
    %c0_85 = arith.constant 0 : index
    %c0_86 = arith.constant 0 : index
    %100 = vector.load %arg2[%c1_84, %c0_85, %c0_86] : memref<5x32x168xf32, #tpu.memory_space<vmem>>, vector<1x32x168xf32>
    %101 = vector.shape_cast %100 : vector<1x32x168xf32> to vector<32x168xf32>
    %cst_87 = arith.constant dense<0.000000e+00> : vector<28x168xf32>
    %102 = tpu.matmul %99, %101, %cst_87 {dimension_numbers = #tpu.dot_dimension_numbers<[1], [0], [0], [1], [0, 0, 1, 1], [], []>} : vector<28x32xf32>, vector<32x168xf32>, vector<28x168xf32> -> vector<28x168xf32>
    %103 = arith.addf %98, %102 : vector<28x168xf32>
    %104 = vector.extract_strided_slice %94 {offsets = [2, 0], sizes = [28, 32], strides = [1, 1]} : vector<32x32xf32> to vector<28x32xf32>
    %c2_88 = arith.constant 2 : index
    %c0_89 = arith.constant 0 : index
    %c0_90 = arith.constant 0 : index
    %105 = vector.load %arg2[%c2_88, %c0_89, %c0_90] : memref<5x32x168xf32, #tpu.memory_space<vmem>>, vector<1x32x168xf32>
    %106 = vector.shape_cast %105 : vector<1x32x168xf32> to vector<32x168xf32>
    %cst_91 = arith.constant dense<0.000000e+00> : vector<28x168xf32>
    %107 = tpu.matmul %104, %106, %cst_91 {dimension_numbers = #tpu.dot_dimension_numbers<[1], [0], [0], [1], [0, 0, 1, 1], [], []>} : vector<28x32xf32>, vector<32x168xf32>, vector<28x168xf32> -> vector<28x168xf32>
    %108 = arith.addf %103, %107 : vector<28x168xf32>
    %109 = vector.extract_strided_slice %94 {offsets = [3, 0], sizes = [28, 32], strides = [1, 1]} : vector<32x32xf32> to vector<28x32xf32>
    %c3_92 = arith.constant 3 : index
    %c0_93 = arith.constant 0 : index
    %c0_94 = arith.constant 0 : index
    %110 = vector.load %arg2[%c3_92, %c0_93, %c0_94] : memref<5x32x168xf32, #tpu.memory_space<vmem>>, vector<1x32x168xf32>
    %111 = vector.shape_cast %110 : vector<1x32x168xf32> to vector<32x168xf32>
    %cst_95 = arith.constant dense<0.000000e+00> : vector<28x168xf32>
    %112 = tpu.matmul %109, %111, %cst_95 {dimension_numbers = #tpu.dot_dimension_numbers<[1], [0], [0], [1], [0, 0, 1, 1], [], []>} : vector<28x32xf32>, vector<32x168xf32>, vector<28x168xf32> -> vector<28x168xf32>
    %113 = arith.addf %108, %112 : vector<28x168xf32>
    %114 = vector.extract_strided_slice %94 {offsets = [4, 0], sizes = [28, 32], strides = [1, 1]} : vector<32x32xf32> to vector<28x32xf32>
    %c4_96 = arith.constant 4 : index
    %c0_97 = arith.constant 0 : index
    %c0_98 = arith.constant 0 : index
    %115 = vector.load %arg2[%c4_96, %c0_97, %c0_98] : memref<5x32x168xf32, #tpu.memory_space<vmem>>, vector<1x32x168xf32>
    %116 = vector.shape_cast %115 : vector<1x32x168xf32> to vector<32x168xf32>
    %cst_99 = arith.constant dense<0.000000e+00> : vector<28x168xf32>
    %117 = tpu.matmul %114, %116, %cst_99 {dimension_numbers = #tpu.dot_dimension_numbers<[1], [0], [0], [1], [0, 0, 1, 1], [], []>} : vector<28x32xf32>, vector<32x168xf32>, vector<28x168xf32> -> vector<28x168xf32>
    %118 = arith.addf %113, %117 : vector<28x168xf32>
    %c0_100 = arith.constant 0 : index
    %c0_101 = arith.constant 0 : index
    %119 = vector.load %arg3[%c0_100, %c0_101] : memref<1x168xf32, #tpu.memory_space<vmem>>, vector<1x168xf32>
    %120 = vector.broadcast %119 : vector<1x168xf32> to vector<28x168xf32>
    %121 = arith.addf %118, %120 : vector<28x168xf32>
    %cst_102 = arith.constant 0.000000e+00 : f32
    %122 = vector.broadcast %cst_102 : f32 to vector<28x168xf32>
    %123 = arith.maximumf %121, %122 : vector<28x168xf32>
    %c0_103 = arith.constant 0 : index
    %c0_104 = arith.constant 0 : index
    %124 = vector.load %arg5[%c0_103, %c0_104] : memref<168x84xf32, #tpu.memory_space<vmem>>, vector<168x84xf32>
    %cst_105 = arith.constant dense<0.000000e+00> : vector<28x84xf32>
    %125 = tpu.matmul %123, %124, %cst_105 {dimension_numbers = #tpu.dot_dimension_numbers<[1], [0], [0], [1], [0, 0, 1, 1], [], []>} : vector<28x168xf32>, vector<168x84xf32>, vector<28x84xf32> -> vector<28x84xf32>
    %c0_106 = arith.constant 0 : index
    %c0_107 = arith.constant 0 : index
    %126 = vector.load %arg4[%c0_106, %c0_107] : memref<14x28xf32, #tpu.memory_space<vmem>>, vector<14x28xf32>
    %cst_108 = arith.constant dense<0.000000e+00> : vector<14x84xf32>
    %127 = tpu.matmul %126, %125, %cst_108 {dimension_numbers = #tpu.dot_dimension_numbers<[1], [0], [0], [1], [0, 0, 1, 1], [], []>} : vector<14x28xf32>, vector<28x84xf32>, vector<14x84xf32> -> vector<14x84xf32>
    %128 = vector.extract_strided_slice %127 {offsets = [0, 0], sizes = [10, 84], strides = [1, 1]} : vector<14x84xf32> to vector<10x84xf32>
    %c0_109 = arith.constant 0 : index
    %c0_110 = arith.constant 0 : index
    %c0_111 = arith.constant 0 : index
    %129 = vector.load %arg6[%c0_109, %c0_110, %c0_111] : memref<5x84x160xf32, #tpu.memory_space<vmem>>, vector<1x84x160xf32>
    %130 = vector.shape_cast %129 : vector<1x84x160xf32> to vector<84x160xf32>
    %cst_112 = arith.constant dense<0.000000e+00> : vector<10x160xf32>
    %131 = tpu.matmul %128, %130, %cst_112 {dimension_numbers = #tpu.dot_dimension_numbers<[1], [0], [0], [1], [0, 0, 1, 1], [], []>} : vector<10x84xf32>, vector<84x160xf32>, vector<10x160xf32> -> vector<10x160xf32>
    %132 = vector.extract_strided_slice %127 {offsets = [1, 0], sizes = [10, 84], strides = [1, 1]} : vector<14x84xf32> to vector<10x84xf32>
    %c1_113 = arith.constant 1 : index
    %c0_114 = arith.constant 0 : index
    %c0_115 = arith.constant 0 : index
    %133 = vector.load %arg6[%c1_113, %c0_114, %c0_115] : memref<5x84x160xf32, #tpu.memory_space<vmem>>, vector<1x84x160xf32>
    %134 = vector.shape_cast %133 : vector<1x84x160xf32> to vector<84x160xf32>
    %cst_116 = arith.constant dense<0.000000e+00> : vector<10x160xf32>
    %135 = tpu.matmul %132, %134, %cst_116 {dimension_numbers = #tpu.dot_dimension_numbers<[1], [0], [0], [1], [0, 0, 1, 1], [], []>} : vector<10x84xf32>, vector<84x160xf32>, vector<10x160xf32> -> vector<10x160xf32>
    %136 = arith.addf %131, %135 : vector<10x160xf32>
    %137 = vector.extract_strided_slice %127 {offsets = [2, 0], sizes = [10, 84], strides = [1, 1]} : vector<14x84xf32> to vector<10x84xf32>
    %c2_117 = arith.constant 2 : index
    %c0_118 = arith.constant 0 : index
    %c0_119 = arith.constant 0 : index
    %138 = vector.load %arg6[%c2_117, %c0_118, %c0_119] : memref<5x84x160xf32, #tpu.memory_space<vmem>>, vector<1x84x160xf32>
    %139 = vector.shape_cast %138 : vector<1x84x160xf32> to vector<84x160xf32>
    %cst_120 = arith.constant dense<0.000000e+00> : vector<10x160xf32>
    %140 = tpu.matmul %137, %139, %cst_120 {dimension_numbers = #tpu.dot_dimension_numbers<[1], [0], [0], [1], [0, 0, 1, 1], [], []>} : vector<10x84xf32>, vector<84x160xf32>, vector<10x160xf32> -> vector<10x160xf32>
    %141 = arith.addf %136, %140 : vector<10x160xf32>
    %142 = vector.extract_strided_slice %127 {offsets = [3, 0], sizes = [10, 84], strides = [1, 1]} : vector<14x84xf32> to vector<10x84xf32>
    %c3_121 = arith.constant 3 : index
    %c0_122 = arith.constant 0 : index
    %c0_123 = arith.constant 0 : index
    %143 = vector.load %arg6[%c3_121, %c0_122, %c0_123] : memref<5x84x160xf32, #tpu.memory_space<vmem>>, vector<1x84x160xf32>
    %144 = vector.shape_cast %143 : vector<1x84x160xf32> to vector<84x160xf32>
    %cst_124 = arith.constant dense<0.000000e+00> : vector<10x160xf32>
    %145 = tpu.matmul %142, %144, %cst_124 {dimension_numbers = #tpu.dot_dimension_numbers<[1], [0], [0], [1], [0, 0, 1, 1], [], []>} : vector<10x84xf32>, vector<84x160xf32>, vector<10x160xf32> -> vector<10x160xf32>
    %146 = arith.addf %141, %145 : vector<10x160xf32>
    %147 = vector.extract_strided_slice %127 {offsets = [4, 0], sizes = [10, 84], strides = [1, 1]} : vector<14x84xf32> to vector<10x84xf32>
    %c4_125 = arith.constant 4 : index
    %c0_126 = arith.constant 0 : index
    %c0_127 = arith.constant 0 : index
    %148 = vector.load %arg6[%c4_125, %c0_126, %c0_127] : memref<5x84x160xf32, #tpu.memory_space<vmem>>, vector<1x84x160xf32>
    %149 = vector.shape_cast %148 : vector<1x84x160xf32> to vector<84x160xf32>
    %cst_128 = arith.constant dense<0.000000e+00> : vector<10x160xf32>
    %150 = tpu.matmul %147, %149, %cst_128 {dimension_numbers = #tpu.dot_dimension_numbers<[1], [0], [0], [1], [0, 0, 1, 1], [], []>} : vector<10x84xf32>, vector<84x160xf32>, vector<10x160xf32> -> vector<10x160xf32>
    %151 = arith.addf %146, %150 : vector<10x160xf32>
    %c0_129 = arith.constant 0 : index
    %c0_130 = arith.constant 0 : index
    %152 = vector.load %arg7[%c0_129, %c0_130] : memref<1x160xf32, #tpu.memory_space<vmem>>, vector<1x160xf32>
    %153 = vector.broadcast %152 : vector<1x160xf32> to vector<10x160xf32>
    %154 = arith.addf %151, %153 : vector<10x160xf32>
    %cst_131 = arith.constant 0.000000e+00 : f32
    %155 = vector.broadcast %cst_131 : f32 to vector<10x160xf32>
    %156 = arith.maximumf %154, %155 : vector<10x160xf32>
    %c0_132 = arith.constant 0 : index
    %c0_133 = arith.constant 0 : index
    %157 = vector.load %arg9[%c0_132, %c0_133] : memref<160x80xf32, #tpu.memory_space<vmem>>, vector<160x80xf32>
    %cst_134 = arith.constant dense<0.000000e+00> : vector<10x80xf32>
    %158 = tpu.matmul %156, %157, %cst_134 {dimension_numbers = #tpu.dot_dimension_numbers<[1], [0], [0], [1], [0, 0, 1, 1], [], []>} : vector<10x160xf32>, vector<160x80xf32>, vector<10x80xf32> -> vector<10x80xf32>
    %c0_135 = arith.constant 0 : index
    %c0_136 = arith.constant 0 : index
    %159 = vector.load %arg8[%c0_135, %c0_136] : memref<5x10xf32, #tpu.memory_space<vmem>>, vector<5x10xf32>
    %cst_137 = arith.constant dense<0.000000e+00> : vector<5x80xf32>
    %160 = tpu.matmul %159, %158, %cst_137 {dimension_numbers = #tpu.dot_dimension_numbers<[1], [0], [0], [1], [0, 0, 1, 1], [], []>} : vector<5x10xf32>, vector<10x80xf32>, vector<5x80xf32> -> vector<5x80xf32>
    %161 = vector.extract_strided_slice %160 {offsets = [0, 0], sizes = [1, 80], strides = [1, 1]} : vector<5x80xf32> to vector<1x80xf32>
    %c0_138 = arith.constant 0 : index
    %c0_139 = arith.constant 0 : index
    %c0_140 = arith.constant 0 : index
    %162 = vector.load %arg10[%c0_138, %c0_139, %c0_140] : memref<5x80x120xf32, #tpu.memory_space<vmem>>, vector<1x80x120xf32>
    %163 = vector.shape_cast %162 : vector<1x80x120xf32> to vector<80x120xf32>
    %cst_141 = arith.constant dense<0.000000e+00> : vector<1x120xf32>
    %164 = tpu.matmul %161, %163, %cst_141 {dimension_numbers = #tpu.dot_dimension_numbers<[1], [0], [0], [1], [0, 0, 1, 1], [], []>} : vector<1x80xf32>, vector<80x120xf32>, vector<1x120xf32> -> vector<1x120xf32>
    %165 = vector.extract_strided_slice %160 {offsets = [1, 0], sizes = [1, 80], strides = [1, 1]} : vector<5x80xf32> to vector<1x80xf32>
    %c1_142 = arith.constant 1 : index
    %c0_143 = arith.constant 0 : index
    %c0_144 = arith.constant 0 : index
    %166 = vector.load %arg10[%c1_142, %c0_143, %c0_144] : memref<5x80x120xf32, #tpu.memory_space<vmem>>, vector<1x80x120xf32>
    %167 = vector.shape_cast %166 : vector<1x80x120xf32> to vector<80x120xf32>
    %cst_145 = arith.constant dense<0.000000e+00> : vector<1x120xf32>
    %168 = tpu.matmul %165, %167, %cst_145 {dimension_numbers = #tpu.dot_dimension_numbers<[1], [0], [0], [1], [0, 0, 1, 1], [], []>} : vector<1x80xf32>, vector<80x120xf32>, vector<1x120xf32> -> vector<1x120xf32>
    %169 = arith.addf %164, %168 : vector<1x120xf32>
    %170 = vector.extract_strided_slice %160 {offsets = [2, 0], sizes = [1, 80], strides = [1, 1]} : vector<5x80xf32> to vector<1x80xf32>
    %c2_146 = arith.constant 2 : index
    %c0_147 = arith.constant 0 : index
    %c0_148 = arith.constant 0 : index
    %171 = vector.load %arg10[%c2_146, %c0_147, %c0_148] : memref<5x80x120xf32, #tpu.memory_space<vmem>>, vector<1x80x120xf32>
    %172 = vector.shape_cast %171 : vector<1x80x120xf32> to vector<80x120xf32>
    %cst_149 = arith.constant dense<0.000000e+00> : vector<1x120xf32>
    %173 = tpu.matmul %170, %172, %cst_149 {dimension_numbers = #tpu.dot_dimension_numbers<[1], [0], [0], [1], [0, 0, 1, 1], [], []>} : vector<1x80xf32>, vector<80x120xf32>, vector<1x120xf32> -> vector<1x120xf32>
    %174 = arith.addf %169, %173 : vector<1x120xf32>
    %175 = vector.extract_strided_slice %160 {offsets = [3, 0], sizes = [1, 80], strides = [1, 1]} : vector<5x80xf32> to vector<1x80xf32>
    %c3_150 = arith.constant 3 : index
    %c0_151 = arith.constant 0 : index
    %c0_152 = arith.constant 0 : index
    %176 = vector.load %arg10[%c3_150, %c0_151, %c0_152] : memref<5x80x120xf32, #tpu.memory_space<vmem>>, vector<1x80x120xf32>
    %177 = vector.shape_cast %176 : vector<1x80x120xf32> to vector<80x120xf32>
    %cst_153 = arith.constant dense<0.000000e+00> : vector<1x120xf32>
    %178 = tpu.matmul %175, %177, %cst_153 {dimension_numbers = #tpu.dot_dimension_numbers<[1], [0], [0], [1], [0, 0, 1, 1], [], []>} : vector<1x80xf32>, vector<80x120xf32>, vector<1x120xf32> -> vector<1x120xf32>
    %179 = arith.addf %174, %178 : vector<1x120xf32>
    %180 = vector.extract_strided_slice %160 {offsets = [4, 0], sizes = [1, 80], strides = [1, 1]} : vector<5x80xf32> to vector<1x80xf32>
    %c4_154 = arith.constant 4 : index
    %c0_155 = arith.constant 0 : index
    %c0_156 = arith.constant 0 : index
    %181 = vector.load %arg10[%c4_154, %c0_155, %c0_156] : memref<5x80x120xf32, #tpu.memory_space<vmem>>, vector<1x80x120xf32>
    %182 = vector.shape_cast %181 : vector<1x80x120xf32> to vector<80x120xf32>
    %cst_157 = arith.constant dense<0.000000e+00> : vector<1x120xf32>
    %183 = tpu.matmul %180, %182, %cst_157 {dimension_numbers = #tpu.dot_dimension_numbers<[1], [0], [0], [1], [0, 0, 1, 1], [], []>} : vector<1x80xf32>, vector<80x120xf32>, vector<1x120xf32> -> vector<1x120xf32>
    %184 = arith.addf %179, %183 : vector<1x120xf32>
    %c1_158 = arith.constant 1 : index
    %c0_159 = arith.constant 0 : index
    %185 = vector.load %arg17[%c1_158, %c0_159] : memref<4x120xf32, #tpu.memory_space<vmem>>, vector<1x120xf32>
    tpu.vector_store %arg17[%c1_158, %c0_159], %184 {strides = array<i32>} : memref<4x120xf32, #tpu.memory_space<vmem>>, vector<1x120xf32>,
    %c2_160 = arith.constant 2 : index
    %c0_161 = arith.constant 0 : index
    %c0_162 = arith.constant 0 : index
    %186 = vector.load %arg1[%c2_160, %c0_161, %c0_162] : memref<4x32x32xf32, #tpu.memory_space<vmem>>, vector<1x32x32xf32>
    %187 = vector.shape_cast %186 : vector<1x32x32xf32> to vector<32x32xf32>
    %188 = vector.extract_strided_slice %187 {offsets = [0, 0], sizes = [28, 32], strides = [1, 1]} : vector<32x32xf32> to vector<28x32xf32>
    %c0_163 = arith.constant 0 : index
    %c0_164 = arith.constant 0 : index
    %c0_165 = arith.constant 0 : index
    %189 = vector.load %arg2[%c0_163, %c0_164, %c0_165] : memref<5x32x168xf32, #tpu.memory_space<vmem>>, vector<1x32x168xf32>
    %190 = vector.shape_cast %189 : vector<1x32x168xf32> to vector<32x168xf32>
    %cst_166 = arith.constant dense<0.000000e+00> : vector<28x168xf32>
    %191 = tpu.matmul %188, %190, %cst_166 {dimension_numbers = #tpu.dot_dimension_numbers<[1], [0], [0], [1], [0, 0, 1, 1], [], []>} : vector<28x32xf32>, vector<32x168xf32>, vector<28x168xf32> -> vector<28x168xf32>
    %192 = vector.extract_strided_slice %187 {offsets = [1, 0], sizes = [28, 32], strides = [1, 1]} : vector<32x32xf32> to vector<28x32xf32>
    %c1_167 = arith.constant 1 : index
    %c0_168 = arith.constant 0 : index
    %c0_169 = arith.constant 0 : index
    %193 = vector.load %arg2[%c1_167, %c0_168, %c0_169] : memref<5x32x168xf32, #tpu.memory_space<vmem>>, vector<1x32x168xf32>
    %194 = vector.shape_cast %193 : vector<1x32x168xf32> to vector<32x168xf32>
    %cst_170 = arith.constant dense<0.000000e+00> : vector<28x168xf32>
    %195 = tpu.matmul %192, %194, %cst_170 {dimension_numbers = #tpu.dot_dimension_numbers<[1], [0], [0], [1], [0, 0, 1, 1], [], []>} : vector<28x32xf32>, vector<32x168xf32>, vector<28x168xf32> -> vector<28x168xf32>
    %196 = arith.addf %191, %195 : vector<28x168xf32>
    %197 = vector.extract_strided_slice %187 {offsets = [2, 0], sizes = [28, 32], strides = [1, 1]} : vector<32x32xf32> to vector<28x32xf32>
    %c2_171 = arith.constant 2 : index
    %c0_172 = arith.constant 0 : index
    %c0_173 = arith.constant 0 : index
    %198 = vector.load %arg2[%c2_171, %c0_172, %c0_173] : memref<5x32x168xf32, #tpu.memory_space<vmem>>, vector<1x32x168xf32>
    %199 = vector.shape_cast %198 : vector<1x32x168xf32> to vector<32x168xf32>
    %cst_174 = arith.constant dense<0.000000e+00> : vector<28x168xf32>
    %200 = tpu.matmul %197, %199, %cst_174 {dimension_numbers = #tpu.dot_dimension_numbers<[1], [0], [0], [1], [0, 0, 1, 1], [], []>} : vector<28x32xf32>, vector<32x168xf32>, vector<28x168xf32> -> vector<28x168xf32>
    %201 = arith.addf %196, %200 : vector<28x168xf32>
    %202 = vector.extract_strided_slice %187 {offsets = [3, 0], sizes = [28, 32], strides = [1, 1]} : vector<32x32xf32> to vector<28x32xf32>
    %c3_175 = arith.constant 3 : index
    %c0_176 = arith.constant 0 : index
    %c0_177 = arith.constant 0 : index
    %203 = vector.load %arg2[%c3_175, %c0_176, %c0_177] : memref<5x32x168xf32, #tpu.memory_space<vmem>>, vector<1x32x168xf32>
    %204 = vector.shape_cast %203 : vector<1x32x168xf32> to vector<32x168xf32>
    %cst_178 = arith.constant dense<0.000000e+00> : vector<28x168xf32>
    %205 = tpu.matmul %202, %204, %cst_178 {dimension_numbers = #tpu.dot_dimension_numbers<[1], [0], [0], [1], [0, 0, 1, 1], [], []>} : vector<28x32xf32>, vector<32x168xf32>, vector<28x168xf32> -> vector<28x168xf32>
    %206 = arith.addf %201, %205 : vector<28x168xf32>
    %207 = vector.extract_strided_slice %187 {offsets = [4, 0], sizes = [28, 32], strides = [1, 1]} : vector<32x32xf32> to vector<28x32xf32>
    %c4_179 = arith.constant 4 : index
    %c0_180 = arith.constant 0 : index
    %c0_181 = arith.constant 0 : index
    %208 = vector.load %arg2[%c4_179, %c0_180, %c0_181] : memref<5x32x168xf32, #tpu.memory_space<vmem>>, vector<1x32x168xf32>
    %209 = vector.shape_cast %208 : vector<1x32x168xf32> to vector<32x168xf32>
    %cst_182 = arith.constant dense<0.000000e+00> : vector<28x168xf32>
    %210 = tpu.matmul %207, %209, %cst_182 {dimension_numbers = #tpu.dot_dimension_numbers<[1], [0], [0], [1], [0, 0, 1, 1], [], []>} : vector<28x32xf32>, vector<32x168xf32>, vector<28x168xf32> -> vector<28x168xf32>
    %211 = arith.addf %206, %210 : vector<28x168xf32>
    %c0_183 = arith.constant 0 : index
    %c0_184 = arith.constant 0 : index
    %212 = vector.load %arg3[%c0_183, %c0_184] : memref<1x168xf32, #tpu.memory_space<vmem>>, vector<1x168xf32>
    %213 = vector.broadcast %212 : vector<1x168xf32> to vector<28x168xf32>
    %214 = arith.addf %211, %213 : vector<28x168xf32>
    %cst_185 = arith.constant 0.000000e+00 : f32
    %215 = vector.broadcast %cst_185 : f32 to vector<28x168xf32>
    %216 = arith.maximumf %214, %215 : vector<28x168xf32>
    %c0_186 = arith.constant 0 : index
    %c0_187 = arith.constant 0 : index
    %217 = vector.load %arg5[%c0_186, %c0_187] : memref<168x84xf32, #tpu.memory_space<vmem>>, vector<168x84xf32>
    %cst_188 = arith.constant dense<0.000000e+00> : vector<28x84xf32>
    %218 = tpu.matmul %216, %217, %cst_188 {dimension_numbers = #tpu.dot_dimension_numbers<[1], [0], [0], [1], [0, 0, 1, 1], [], []>} : vector<28x168xf32>, vector<168x84xf32>, vector<28x84xf32> -> vector<28x84xf32>
    %c0_189 = arith.constant 0 : index
    %c0_190 = arith.constant 0 : index
    %219 = vector.load %arg4[%c0_189, %c0_190] : memref<14x28xf32, #tpu.memory_space<vmem>>, vector<14x28xf32>
    %cst_191 = arith.constant dense<0.000000e+00> : vector<14x84xf32>
    %220 = tpu.matmul %219, %218, %cst_191 {dimension_numbers = #tpu.dot_dimension_numbers<[1], [0], [0], [1], [0, 0, 1, 1], [], []>} : vector<14x28xf32>, vector<28x84xf32>, vector<14x84xf32> -> vector<14x84xf32>
    %221 = vector.extract_strided_slice %220 {offsets = [0, 0], sizes = [10, 84], strides = [1, 1]} : vector<14x84xf32> to vector<10x84xf32>
    %c0_192 = arith.constant 0 : index
    %c0_193 = arith.constant 0 : index
    %c0_194 = arith.constant 0 : index
    %222 = vector.load %arg6[%c0_192, %c0_193, %c0_194] : memref<5x84x160xf32, #tpu.memory_space<vmem>>, vector<1x84x160xf32>
    %223 = vector.shape_cast %222 : vector<1x84x160xf32> to vector<84x160xf32>
    %cst_195 = arith.constant dense<0.000000e+00> : vector<10x160xf32>
    %224 = tpu.matmul %221, %223, %cst_195 {dimension_numbers = #tpu.dot_dimension_numbers<[1], [0], [0], [1], [0, 0, 1, 1], [], []>} : vector<10x84xf32>, vector<84x160xf32>, vector<10x160xf32> -> vector<10x160xf32>
    %225 = vector.extract_strided_slice %220 {offsets = [1, 0], sizes = [10, 84], strides = [1, 1]} : vector<14x84xf32> to vector<10x84xf32>
    %c1_196 = arith.constant 1 : index
    %c0_197 = arith.constant 0 : index
    %c0_198 = arith.constant 0 : index
    %226 = vector.load %arg6[%c1_196, %c0_197, %c0_198] : memref<5x84x160xf32, #tpu.memory_space<vmem>>, vector<1x84x160xf32>
    %227 = vector.shape_cast %226 : vector<1x84x160xf32> to vector<84x160xf32>
    %cst_199 = arith.constant dense<0.000000e+00> : vector<10x160xf32>
    %228 = tpu.matmul %225, %227, %cst_199 {dimension_numbers = #tpu.dot_dimension_numbers<[1], [0], [0], [1], [0, 0, 1, 1], [], []>} : vector<10x84xf32>, vector<84x160xf32>, vector<10x160xf32> -> vector<10x160xf32>
    %229 = arith.addf %224, %228 : vector<10x160xf32>
    %230 = vector.extract_strided_slice %220 {offsets = [2, 0], sizes = [10, 84], strides = [1, 1]} : vector<14x84xf32> to vector<10x84xf32>
    %c2_200 = arith.constant 2 : index
    %c0_201 = arith.constant 0 : index
    %c0_202 = arith.constant 0 : index
    %231 = vector.load %arg6[%c2_200, %c0_201, %c0_202] : memref<5x84x160xf32, #tpu.memory_space<vmem>>, vector<1x84x160xf32>
    %232 = vector.shape_cast %231 : vector<1x84x160xf32> to vector<84x160xf32>
    %cst_203 = arith.constant dense<0.000000e+00> : vector<10x160xf32>
    %233 = tpu.matmul %230, %232, %cst_203 {dimension_numbers = #tpu.dot_dimension_numbers<[1], [0], [0], [1], [0, 0, 1, 1], [], []>} : vector<10x84xf32>, vector<84x160xf32>, vector<10x160xf32> -> vector<10x160xf32>
    %234 = arith.addf %229, %233 : vector<10x160xf32>
    %235 = vector.extract_strided_slice %220 {offsets = [3, 0], sizes = [10, 84], strides = [1, 1]} : vector<14x84xf32> to vector<10x84xf32>
    %c3_204 = arith.constant 3 : index
    %c0_205 = arith.constant 0 : index
    %c0_206 = arith.constant 0 : index
    %236 = vector.load %arg6[%c3_204, %c0_205, %c0_206] : memref<5x84x160xf32, #tpu.memory_space<vmem>>, vector<1x84x160xf32>
    %237 = vector.shape_cast %236 : vector<1x84x160xf32> to vector<84x160xf32>
    %cst_207 = arith.constant dense<0.000000e+00> : vector<10x160xf32>
    %238 = tpu.matmul %235, %237, %cst_207 {dimension_numbers = #tpu.dot_dimension_numbers<[1], [0], [0], [1], [0, 0, 1, 1], [], []>} : vector<10x84xf32>, vector<84x160xf32>, vector<10x160xf32> -> vector<10x160xf32>
    %239 = arith.addf %234, %238 : vector<10x160xf32>
    %240 = vector.extract_strided_slice %220 {offsets = [4, 0], sizes = [10, 84], strides = [1, 1]} : vector<14x84xf32> to vector<10x84xf32>
    %c4_208 = arith.constant 4 : index
    %c0_209 = arith.constant 0 : index
    %c0_210 = arith.constant 0 : index
    %241 = vector.load %arg6[%c4_208, %c0_209, %c0_210] : memref<5x84x160xf32, #tpu.memory_space<vmem>>, vector<1x84x160xf32>
    %242 = vector.shape_cast %241 : vector<1x84x160xf32> to vector<84x160xf32>
    %cst_211 = arith.constant dense<0.000000e+00> : vector<10x160xf32>
    %243 = tpu.matmul %240, %242, %cst_211 {dimension_numbers = #tpu.dot_dimension_numbers<[1], [0], [0], [1], [0, 0, 1, 1], [], []>} : vector<10x84xf32>, vector<84x160xf32>, vector<10x160xf32> -> vector<10x160xf32>
    %244 = arith.addf %239, %243 : vector<10x160xf32>
    %c0_212 = arith.constant 0 : index
    %c0_213 = arith.constant 0 : index
    %245 = vector.load %arg7[%c0_212, %c0_213] : memref<1x160xf32, #tpu.memory_space<vmem>>, vector<1x160xf32>
    %246 = vector.broadcast %245 : vector<1x160xf32> to vector<10x160xf32>
    %247 = arith.addf %244, %246 : vector<10x160xf32>
    %cst_214 = arith.constant 0.000000e+00 : f32
    %248 = vector.broadcast %cst_214 : f32 to vector<10x160xf32>
    %249 = arith.maximumf %247, %248 : vector<10x160xf32>
    %c0_215 = arith.constant 0 : index
    %c0_216 = arith.constant 0 : index
    %250 = vector.load %arg9[%c0_215, %c0_216] : memref<160x80xf32, #tpu.memory_space<vmem>>, vector<160x80xf32>
    %cst_217 = arith.constant dense<0.000000e+00> : vector<10x80xf32>
    %251 = tpu.matmul %249, %250, %cst_217 {dimension_numbers = #tpu.dot_dimension_numbers<[1], [0], [0], [1], [0, 0, 1, 1], [], []>} : vector<10x160xf32>, vector<160x80xf32>, vector<10x80xf32> -> vector<10x80xf32>
    %c0_218 = arith.constant 0 : index
    %c0_219 = arith.constant 0 : index
    %252 = vector.load %arg8[%c0_218, %c0_219] : memref<5x10xf32, #tpu.memory_space<vmem>>, vector<5x10xf32>
    %cst_220 = arith.constant dense<0.000000e+00> : vector<5x80xf32>
    %253 = tpu.matmul %252, %251, %cst_220 {dimension_numbers = #tpu.dot_dimension_numbers<[1], [0], [0], [1], [0, 0, 1, 1], [], []>} : vector<5x10xf32>, vector<10x80xf32>, vector<5x80xf32> -> vector<5x80xf32>
    %254 = vector.extract_strided_slice %253 {offsets = [0, 0], sizes = [1, 80], strides = [1, 1]} : vector<5x80xf32> to vector<1x80xf32>
    %c0_221 = arith.constant 0 : index
    %c0_222 = arith.constant 0 : index
    %c0_223 = arith.constant 0 : index
    %255 = vector.load %arg10[%c0_221, %c0_222, %c0_223] : memref<5x80x120xf32, #tpu.memory_space<vmem>>, vector<1x80x120xf32>
    %256 = vector.shape_cast %255 : vector<1x80x120xf32> to vector<80x120xf32>
    %cst_224 = arith.constant dense<0.000000e+00> : vector<1x120xf32>
    %257 = tpu.matmul %254, %256, %cst_224 {dimension_numbers = #tpu.dot_dimension_numbers<[1], [0], [0], [1], [0, 0, 1, 1], [], []>} : vector<1x80xf32>, vector<80x120xf32>, vector<1x120xf32> -> vector<1x120xf32>
    %258 = vector.extract_strided_slice %253 {offsets = [1, 0], sizes = [1, 80], strides = [1, 1]} : vector<5x80xf32> to vector<1x80xf32>
    %c1_225 = arith.constant 1 : index
    %c0_226 = arith.constant 0 : index
    %c0_227 = arith.constant 0 : index
    %259 = vector.load %arg10[%c1_225, %c0_226, %c0_227] : memref<5x80x120xf32, #tpu.memory_space<vmem>>, vector<1x80x120xf32>
    %260 = vector.shape_cast %259 : vector<1x80x120xf32> to vector<80x120xf32>
    %cst_228 = arith.constant dense<0.000000e+00> : vector<1x120xf32>
    %261 = tpu.matmul %258, %260, %cst_228 {dimension_numbers = #tpu.dot_dimension_numbers<[1], [0], [0], [1], [0, 0, 1, 1], [], []>} : vector<1x80xf32>, vector<80x120xf32>, vector<1x120xf32> -> vector<1x120xf32>
    %262 = arith.addf %257, %261 : vector<1x120xf32>
    %263 = vector.extract_strided_slice %253 {offsets = [2, 0], sizes = [1, 80], strides = [1, 1]} : vector<5x80xf32> to vector<1x80xf32>
    %c2_229 = arith.constant 2 : index
    %c0_230 = arith.constant 0 : index
    %c0_231 = arith.constant 0 : index
    %264 = vector.load %arg10[%c2_229, %c0_230, %c0_231] : memref<5x80x120xf32, #tpu.memory_space<vmem>>, vector<1x80x120xf32>
    %265 = vector.shape_cast %264 : vector<1x80x120xf32> to vector<80x120xf32>
    %cst_232 = arith.constant dense<0.000000e+00> : vector<1x120xf32>
    %266 = tpu.matmul %263, %265, %cst_232 {dimension_numbers = #tpu.dot_dimension_numbers<[1], [0], [0], [1], [0, 0, 1, 1], [], []>} : vector<1x80xf32>, vector<80x120xf32>, vector<1x120xf32> -> vector<1x120xf32>
    %267 = arith.addf %262, %266 : vector<1x120xf32>
    %268 = vector.extract_strided_slice %253 {offsets = [3, 0], sizes = [1, 80], strides = [1, 1]} : vector<5x80xf32> to vector<1x80xf32>
    %c3_233 = arith.constant 3 : index
    %c0_234 = arith.constant 0 : index
    %c0_235 = arith.constant 0 : index
    %269 = vector.load %arg10[%c3_233, %c0_234, %c0_235] : memref<5x80x120xf32, #tpu.memory_space<vmem>>, vector<1x80x120xf32>
    %270 = vector.shape_cast %269 : vector<1x80x120xf32> to vector<80x120xf32>
    %cst_236 = arith.constant dense<0.000000e+00> : vector<1x120xf32>
    %271 = tpu.matmul %268, %270, %cst_236 {dimension_numbers = #tpu.dot_dimension_numbers<[1], [0], [0], [1], [0, 0, 1, 1], [], []>} : vector<1x80xf32>, vector<80x120xf32>, vector<1x120xf32> -> vector<1x120xf32>
    %272 = arith.addf %267, %271 : vector<1x120xf32>
    %273 = vector.extract_strided_slice %253 {offsets = [4, 0], sizes = [1, 80], strides = [1, 1]} : vector<5x80xf32> to vector<1x80xf32>
    %c4_237 = arith.constant 4 : index
    %c0_238 = arith.constant 0 : index
    %c0_239 = arith.constant 0 : index
    %274 = vector.load %arg10[%c4_237, %c0_238, %c0_239] : memref<5x80x120xf32, #tpu.memory_space<vmem>>, vector<1x80x120xf32>
    %275 = vector.shape_cast %274 : vector<1x80x120xf32> to vector<80x120xf32>
    %cst_240 = arith.constant dense<0.000000e+00> : vector<1x120xf32>
    %276 = tpu.matmul %273, %275, %cst_240 {dimension_numbers = #tpu.dot_dimension_numbers<[1], [0], [0], [1], [0, 0, 1, 1], [], []>} : vector<1x80xf32>, vector<80x120xf32>, vector<1x120xf32> -> vector<1x120xf32>
    %277 = arith.addf %272, %276 : vector<1x120xf32>
    %c2_241 = arith.constant 2 : index
    %c0_242 = arith.constant 0 : index
    %278 = vector.load %arg17[%c2_241, %c0_242] : memref<4x120xf32, #tpu.memory_space<vmem>>, vector<1x120xf32>
    tpu.vector_store %arg17[%c2_241, %c0_242], %277 {strides = array<i32>} : memref<4x120xf32, #tpu.memory_space<vmem>>, vector<1x120xf32>,
    %c3_243 = arith.constant 3 : index
    %c0_244 = arith.constant 0 : index
    %c0_245 = arith.constant 0 : index
    %279 = vector.load %arg1[%c3_243, %c0_244, %c0_245] : memref<4x32x32xf32, #tpu.memory_space<vmem>>, vector<1x32x32xf32>
    %280 = vector.shape_cast %279 : vector<1x32x32xf32> to vector<32x32xf32>
    %281 = vector.extract_strided_slice %280 {offsets = [0, 0], sizes = [28, 32], strides = [1, 1]} : vector<32x32xf32> to vector<28x32xf32>
    %c0_246 = arith.constant 0 : index
    %c0_247 = arith.constant 0 : index
    %c0_248 = arith.constant 0 : index
    %282 = vector.load %arg2[%c0_246, %c0_247, %c0_248] : memref<5x32x168xf32, #tpu.memory_space<vmem>>, vector<1x32x168xf32>
    %283 = vector.shape_cast %282 : vector<1x32x168xf32> to vector<32x168xf32>
    %cst_249 = arith.constant dense<0.000000e+00> : vector<28x168xf32>
    %284 = tpu.matmul %281, %283, %cst_249 {dimension_numbers = #tpu.dot_dimension_numbers<[1], [0], [0], [1], [0, 0, 1, 1], [], []>} : vector<28x32xf32>, vector<32x168xf32>, vector<28x168xf32> -> vector<28x168xf32>
    %285 = vector.extract_strided_slice %280 {offsets = [1, 0], sizes = [28, 32], strides = [1, 1]} : vector<32x32xf32> to vector<28x32xf32>
    %c1_250 = arith.constant 1 : index
    %c0_251 = arith.constant 0 : index
    %c0_252 = arith.constant 0 : index
    %286 = vector.load %arg2[%c1_250, %c0_251, %c0_252] : memref<5x32x168xf32, #tpu.memory_space<vmem>>, vector<1x32x168xf32>
    %287 = vector.shape_cast %286 : vector<1x32x168xf32> to vector<32x168xf32>
    %cst_253 = arith.constant dense<0.000000e+00> : vector<28x168xf32>
    %288 = tpu.matmul %285, %287, %cst_253 {dimension_numbers = #tpu.dot_dimension_numbers<[1], [0], [0], [1], [0, 0, 1, 1], [], []>} : vector<28x32xf32>, vector<32x168xf32>, vector<28x168xf32> -> vector<28x168xf32>
    %289 = arith.addf %284, %288 : vector<28x168xf32>
    %290 = vector.extract_strided_slice %280 {offsets = [2, 0], sizes = [28, 32], strides = [1, 1]} : vector<32x32xf32> to vector<28x32xf32>
    %c2_254 = arith.constant 2 : index
    %c0_255 = arith.constant 0 : index
    %c0_256 = arith.constant 0 : index
    %291 = vector.load %arg2[%c2_254, %c0_255, %c0_256] : memref<5x32x168xf32, #tpu.memory_space<vmem>>, vector<1x32x168xf32>
    %292 = vector.shape_cast %291 : vector<1x32x168xf32> to vector<32x168xf32>
    %cst_257 = arith.constant dense<0.000000e+00> : vector<28x168xf32>
    %293 = tpu.matmul %290, %292, %cst_257 {dimension_numbers = #tpu.dot_dimension_numbers<[1], [0], [0], [1], [0, 0, 1, 1], [], []>} : vector<28x32xf32>, vector<32x168xf32>, vector<28x168xf32> -> vector<28x168xf32>
    %294 = arith.addf %289, %293 : vector<28x168xf32>
    %295 = vector.extract_strided_slice %280 {offsets = [3, 0], sizes = [28, 32], strides = [1, 1]} : vector<32x32xf32> to vector<28x32xf32>
    %c3_258 = arith.constant 3 : index
    %c0_259 = arith.constant 0 : index
    %c0_260 = arith.constant 0 : index
    %296 = vector.load %arg2[%c3_258, %c0_259, %c0_260] : memref<5x32x168xf32, #tpu.memory_space<vmem>>, vector<1x32x168xf32>
    %297 = vector.shape_cast %296 : vector<1x32x168xf32> to vector<32x168xf32>
    %cst_261 = arith.constant dense<0.000000e+00> : vector<28x168xf32>
    %298 = tpu.matmul %295, %297, %cst_261 {dimension_numbers = #tpu.dot_dimension_numbers<[1], [0], [0], [1], [0, 0, 1, 1], [], []>} : vector<28x32xf32>, vector<32x168xf32>, vector<28x168xf32> -> vector<28x168xf32>
    %299 = arith.addf %294, %298 : vector<28x168xf32>
    %300 = vector.extract_strided_slice %280 {offsets = [4, 0], sizes = [28, 32], strides = [1, 1]} : vector<32x32xf32> to vector<28x32xf32>
    %c4_262 = arith.constant 4 : index
    %c0_263 = arith.constant 0 : index
    %c0_264 = arith.constant 0 : index
    %301 = vector.load %arg2[%c4_262, %c0_263, %c0_264] : memref<5x32x168xf32, #tpu.memory_space<vmem>>, vector<1x32x168xf32>
    %302 = vector.shape_cast %301 : vector<1x32x168xf32> to vector<32x168xf32>
    %cst_265 = arith.constant dense<0.000000e+00> : vector<28x168xf32>
    %303 = tpu.matmul %300, %302, %cst_265 {dimension_numbers = #tpu.dot_dimension_numbers<[1], [0], [0], [1], [0, 0, 1, 1], [], []>} : vector<28x32xf32>, vector<32x168xf32>, vector<28x168xf32> -> vector<28x168xf32>
    %304 = arith.addf %299, %303 : vector<28x168xf32>
    %c0_266 = arith.constant 0 : index
    %c0_267 = arith.constant 0 : index
    %305 = vector.load %arg3[%c0_266, %c0_267] : memref<1x168xf32, #tpu.memory_space<vmem>>, vector<1x168xf32>
    %306 = vector.broadcast %305 : vector<1x168xf32> to vector<28x168xf32>
    %307 = arith.addf %304, %306 : vector<28x168xf32>
    %cst_268 = arith.constant 0.000000e+00 : f32
    %308 = vector.broadcast %cst_268 : f32 to vector<28x168xf32>
    %309 = arith.maximumf %307, %308 : vector<28x168xf32>
    %c0_269 = arith.constant 0 : index
    %c0_270 = arith.constant 0 : index
    %310 = vector.load %arg5[%c0_269, %c0_270] : memref<168x84xf32, #tpu.memory_space<vmem>>, vector<168x84xf32>
    %cst_271 = arith.constant dense<0.000000e+00> : vector<28x84xf32>
    %311 = tpu.matmul %309, %310, %cst_271 {dimension_numbers = #tpu.dot_dimension_numbers<[1], [0], [0], [1], [0, 0, 1, 1], [], []>} : vector<28x168xf32>, vector<168x84xf32>, vector<28x84xf32> -> vector<28x84xf32>
    %c0_272 = arith.constant 0 : index
    %c0_273 = arith.constant 0 : index
    %312 = vector.load %arg4[%c0_272, %c0_273] : memref<14x28xf32, #tpu.memory_space<vmem>>, vector<14x28xf32>
    %cst_274 = arith.constant dense<0.000000e+00> : vector<14x84xf32>
    %313 = tpu.matmul %312, %311, %cst_274 {dimension_numbers = #tpu.dot_dimension_numbers<[1], [0], [0], [1], [0, 0, 1, 1], [], []>} : vector<14x28xf32>, vector<28x84xf32>, vector<14x84xf32> -> vector<14x84xf32>
    %314 = vector.extract_strided_slice %313 {offsets = [0, 0], sizes = [10, 84], strides = [1, 1]} : vector<14x84xf32> to vector<10x84xf32>
    %c0_275 = arith.constant 0 : index
    %c0_276 = arith.constant 0 : index
    %c0_277 = arith.constant 0 : index
    %315 = vector.load %arg6[%c0_275, %c0_276, %c0_277] : memref<5x84x160xf32, #tpu.memory_space<vmem>>, vector<1x84x160xf32>
    %316 = vector.shape_cast %315 : vector<1x84x160xf32> to vector<84x160xf32>
    %cst_278 = arith.constant dense<0.000000e+00> : vector<10x160xf32>
    %317 = tpu.matmul %314, %316, %cst_278 {dimension_numbers = #tpu.dot_dimension_numbers<[1], [0], [0], [1], [0, 0, 1, 1], [], []>} : vector<10x84xf32>, vector<84x160xf32>, vector<10x160xf32> -> vector<10x160xf32>
    %318 = vector.extract_strided_slice %313 {offsets = [1, 0], sizes = [10, 84], strides = [1, 1]} : vector<14x84xf32> to vector<10x84xf32>
    %c1_279 = arith.constant 1 : index
    %c0_280 = arith.constant 0 : index
    %c0_281 = arith.constant 0 : index
    %319 = vector.load %arg6[%c1_279, %c0_280, %c0_281] : memref<5x84x160xf32, #tpu.memory_space<vmem>>, vector<1x84x160xf32>
    %320 = vector.shape_cast %319 : vector<1x84x160xf32> to vector<84x160xf32>
    %cst_282 = arith.constant dense<0.000000e+00> : vector<10x160xf32>
    %321 = tpu.matmul %318, %320, %cst_282 {dimension_numbers = #tpu.dot_dimension_numbers<[1], [0], [0], [1], [0, 0, 1, 1], [], []>} : vector<10x84xf32>, vector<84x160xf32>, vector<10x160xf32> -> vector<10x160xf32>
    %322 = arith.addf %317, %321 : vector<10x160xf32>
    %323 = vector.extract_strided_slice %313 {offsets = [2, 0], sizes = [10, 84], strides = [1, 1]} : vector<14x84xf32> to vector<10x84xf32>
    %c2_283 = arith.constant 2 : index
    %c0_284 = arith.constant 0 : index
    %c0_285 = arith.constant 0 : index
    %324 = vector.load %arg6[%c2_283, %c0_284, %c0_285] : memref<5x84x160xf32, #tpu.memory_space<vmem>>, vector<1x84x160xf32>
    %325 = vector.shape_cast %324 : vector<1x84x160xf32> to vector<84x160xf32>
    %cst_286 = arith.constant dense<0.000000e+00> : vector<10x160xf32>
    %326 = tpu.matmul %323, %325, %cst_286 {dimension_numbers = #tpu.dot_dimension_numbers<[1], [0], [0], [1], [0, 0, 1, 1], [], []>} : vector<10x84xf32>, vector<84x160xf32>, vector<10x160xf32> -> vector<10x160xf32>
    %327 = arith.addf %322, %326 : vector<10x160xf32>
    %328 = vector.extract_strided_slice %313 {offsets = [3, 0], sizes = [10, 84], strides = [1, 1]} : vector<14x84xf32> to vector<10x84xf32>
    %c3_287 = arith.constant 3 : index
    %c0_288 = arith.constant 0 : index
    %c0_289 = arith.constant 0 : index
    %329 = vector.load %arg6[%c3_287, %c0_288, %c0_289] : memref<5x84x160xf32, #tpu.memory_space<vmem>>, vector<1x84x160xf32>
    %330 = vector.shape_cast %329 : vector<1x84x160xf32> to vector<84x160xf32>
    %cst_290 = arith.constant dense<0.000000e+00> : vector<10x160xf32>
    %331 = tpu.matmul %328, %330, %cst_290 {dimension_numbers = #tpu.dot_dimension_numbers<[1], [0], [0], [1], [0, 0, 1, 1], [], []>} : vector<10x84xf32>, vector<84x160xf32>, vector<10x160xf32> -> vector<10x160xf32>
    %332 = arith.addf %327, %331 : vector<10x160xf32>
    %333 = vector.extract_strided_slice %313 {offsets = [4, 0], sizes = [10, 84], strides = [1, 1]} : vector<14x84xf32> to vector<10x84xf32>
    %c4_291 = arith.constant 4 : index
    %c0_292 = arith.constant 0 : index
    %c0_293 = arith.constant 0 : index
    %334 = vector.load %arg6[%c4_291, %c0_292, %c0_293] : memref<5x84x160xf32, #tpu.memory_space<vmem>>, vector<1x84x160xf32>
    %335 = vector.shape_cast %334 : vector<1x84x160xf32> to vector<84x160xf32>
    %cst_294 = arith.constant dense<0.000000e+00> : vector<10x160xf32>
    %336 = tpu.matmul %333, %335, %cst_294 {dimension_numbers = #tpu.dot_dimension_numbers<[1], [0], [0], [1], [0, 0, 1, 1], [], []>} : vector<10x84xf32>, vector<84x160xf32>, vector<10x160xf32> -> vector<10x160xf32>
    %337 = arith.addf %332, %336 : vector<10x160xf32>
    %c0_295 = arith.constant 0 : index
    %c0_296 = arith.constant 0 : index
    %338 = vector.load %arg7[%c0_295, %c0_296] : memref<1x160xf32, #tpu.memory_space<vmem>>, vector<1x160xf32>
    %339 = vector.broadcast %338 : vector<1x160xf32> to vector<10x160xf32>
    %340 = arith.addf %337, %339 : vector<10x160xf32>
    %cst_297 = arith.constant 0.000000e+00 : f32
    %341 = vector.broadcast %cst_297 : f32 to vector<10x160xf32>
    %342 = arith.maximumf %340, %341 : vector<10x160xf32>
    %c0_298 = arith.constant 0 : index
    %c0_299 = arith.constant 0 : index
    %343 = vector.load %arg9[%c0_298, %c0_299] : memref<160x80xf32, #tpu.memory_space<vmem>>, vector<160x80xf32>
    %cst_300 = arith.constant dense<0.000000e+00> : vector<10x80xf32>
    %344 = tpu.matmul %342, %343, %cst_300 {dimension_numbers = #tpu.dot_dimension_numbers<[1], [0], [0], [1], [0, 0, 1, 1], [], []>} : vector<10x160xf32>, vector<160x80xf32>, vector<10x80xf32> -> vector<10x80xf32>
    %c0_301 = arith.constant 0 : index
    %c0_302 = arith.constant 0 : index
    %345 = vector.load %arg8[%c0_301, %c0_302] : memref<5x10xf32, #tpu.memory_space<vmem>>, vector<5x10xf32>
    %cst_303 = arith.constant dense<0.000000e+00> : vector<5x80xf32>
    %346 = tpu.matmul %345, %344, %cst_303 {dimension_numbers = #tpu.dot_dimension_numbers<[1], [0], [0], [1], [0, 0, 1, 1], [], []>} : vector<5x10xf32>, vector<10x80xf32>, vector<5x80xf32> -> vector<5x80xf32>
    %347 = vector.extract_strided_slice %346 {offsets = [0, 0], sizes = [1, 80], strides = [1, 1]} : vector<5x80xf32> to vector<1x80xf32>
    %c0_304 = arith.constant 0 : index
    %c0_305 = arith.constant 0 : index
    %c0_306 = arith.constant 0 : index
    %348 = vector.load %arg10[%c0_304, %c0_305, %c0_306] : memref<5x80x120xf32, #tpu.memory_space<vmem>>, vector<1x80x120xf32>
    %349 = vector.shape_cast %348 : vector<1x80x120xf32> to vector<80x120xf32>
    %cst_307 = arith.constant dense<0.000000e+00> : vector<1x120xf32>
    %350 = tpu.matmul %347, %349, %cst_307 {dimension_numbers = #tpu.dot_dimension_numbers<[1], [0], [0], [1], [0, 0, 1, 1], [], []>} : vector<1x80xf32>, vector<80x120xf32>, vector<1x120xf32> -> vector<1x120xf32>
    %351 = vector.extract_strided_slice %346 {offsets = [1, 0], sizes = [1, 80], strides = [1, 1]} : vector<5x80xf32> to vector<1x80xf32>
    %c1_308 = arith.constant 1 : index
    %c0_309 = arith.constant 0 : index
    %c0_310 = arith.constant 0 : index
    %352 = vector.load %arg10[%c1_308, %c0_309, %c0_310] : memref<5x80x120xf32, #tpu.memory_space<vmem>>, vector<1x80x120xf32>
    %353 = vector.shape_cast %352 : vector<1x80x120xf32> to vector<80x120xf32>
    %cst_311 = arith.constant dense<0.000000e+00> : vector<1x120xf32>
    %354 = tpu.matmul %351, %353, %cst_311 {dimension_numbers = #tpu.dot_dimension_numbers<[1], [0], [0], [1], [0, 0, 1, 1], [], []>} : vector<1x80xf32>, vector<80x120xf32>, vector<1x120xf32> -> vector<1x120xf32>
    %355 = arith.addf %350, %354 : vector<1x120xf32>
    %356 = vector.extract_strided_slice %346 {offsets = [2, 0], sizes = [1, 80], strides = [1, 1]} : vector<5x80xf32> to vector<1x80xf32>
    %c2_312 = arith.constant 2 : index
    %c0_313 = arith.constant 0 : index
    %c0_314 = arith.constant 0 : index
    %357 = vector.load %arg10[%c2_312, %c0_313, %c0_314] : memref<5x80x120xf32, #tpu.memory_space<vmem>>, vector<1x80x120xf32>
    %358 = vector.shape_cast %357 : vector<1x80x120xf32> to vector<80x120xf32>
    %cst_315 = arith.constant dense<0.000000e+00> : vector<1x120xf32>
    %359 = tpu.matmul %356, %358, %cst_315 {dimension_numbers = #tpu.dot_dimension_numbers<[1], [0], [0], [1], [0, 0, 1, 1], [], []>} : vector<1x80xf32>, vector<80x120xf32>, vector<1x120xf32> -> vector<1x120xf32>
    %360 = arith.addf %355, %359 : vector<1x120xf32>
    %361 = vector.extract_strided_slice %346 {offsets = [3, 0], sizes = [1, 80], strides = [1, 1]} : vector<5x80xf32> to vector<1x80xf32>
    %c3_316 = arith.constant 3 : index
    %c0_317 = arith.constant 0 : index
    %c0_318 = arith.constant 0 : index
    %362 = vector.load %arg10[%c3_316, %c0_317, %c0_318] : memref<5x80x120xf32, #tpu.memory_space<vmem>>, vector<1x80x120xf32>
    %363 = vector.shape_cast %362 : vector<1x80x120xf32> to vector<80x120xf32>
    %cst_319 = arith.constant dense<0.000000e+00> : vector<1x120xf32>
    %364 = tpu.matmul %361, %363, %cst_319 {dimension_numbers = #tpu.dot_dimension_numbers<[1], [0], [0], [1], [0, 0, 1, 1], [], []>} : vector<1x80xf32>, vector<80x120xf32>, vector<1x120xf32> -> vector<1x120xf32>
    %365 = arith.addf %360, %364 : vector<1x120xf32>
    %366 = vector.extract_strided_slice %346 {offsets = [4, 0], sizes = [1, 80], strides = [1, 1]} : vector<5x80xf32> to vector<1x80xf32>
    %c4_320 = arith.constant 4 : index
    %c0_321 = arith.constant 0 : index
    %c0_322 = arith.constant 0 : index
    %367 = vector.load %arg10[%c4_320, %c0_321, %c0_322] : memref<5x80x120xf32, #tpu.memory_space<vmem>>, vector<1x80x120xf32>
    %368 = vector.shape_cast %367 : vector<1x80x120xf32> to vector<80x120xf32>
    %cst_323 = arith.constant dense<0.000000e+00> : vector<1x120xf32>
    %369 = tpu.matmul %366, %368, %cst_323 {dimension_numbers = #tpu.dot_dimension_numbers<[1], [0], [0], [1], [0, 0, 1, 1], [], []>} : vector<1x80xf32>, vector<80x120xf32>, vector<1x120xf32> -> vector<1x120xf32>
    %370 = arith.addf %365, %369 : vector<1x120xf32>
    %c3_324 = arith.constant 3 : index
    %c0_325 = arith.constant 0 : index
    %371 = vector.load %arg17[%c3_324, %c0_325] : memref<4x120xf32, #tpu.memory_space<vmem>>, vector<1x120xf32>
    tpu.vector_store %arg17[%c3_324, %c0_325], %370 {strides = array<i32>} : memref<4x120xf32, #tpu.memory_space<vmem>>, vector<1x120xf32>,
    %c0_326 = arith.constant 0 : index
    %c0_327 = arith.constant 0 : index
    %372 = vector.load %arg17[%c0_326, %c0_327] : memref<4x120xf32, #tpu.memory_space<vmem>>, vector<4x120xf32>
    %c0_328 = arith.constant 0 : index
    %c0_329 = arith.constant 0 : index
    %373 = vector.load %arg11[%c0_328, %c0_329] : memref<1x120xf32, #tpu.memory_space<vmem>>, vector<1x120xf32>
    %374 = vector.broadcast %373 : vector<1x120xf32> to vector<4x120xf32>
    %375 = arith.addf %372, %374 : vector<4x120xf32>
    %cst_330 = arith.constant 0.000000e+00 : f32
    %376 = vector.broadcast %cst_330 : f32 to vector<4x120xf32>
    %377 = arith.maximumf %375, %376 : vector<4x120xf32>
    %c0_331 = arith.constant 0 : index
    %c0_332 = arith.constant 0 : index
    %378 = vector.load %arg12[%c0_331, %c0_332] : memref<120x84xf32, #tpu.memory_space<vmem>>, vector<120x84xf32>
    %cst_333 = arith.constant dense<0.000000e+00> : vector<4x84xf32>
    %379 = tpu.matmul %377, %378, %cst_333 {dimension_numbers = #tpu.dot_dimension_numbers<[1], [0], [0], [1], [0, 0, 1, 1], [], []>} : vector<4x120xf32>, vector<120x84xf32>, vector<4x84xf32> -> vector<4x84xf32>
    %c0_334 = arith.constant 0 : index
    %c0_335 = arith.constant 0 : index
    %380 = vector.load %arg13[%c0_334, %c0_335] : memref<1x84xf32, #tpu.memory_space<vmem>>, vector<1x84xf32>
    %381 = vector.broadcast %380 : vector<1x84xf32> to vector<4x84xf32>
    %382 = arith.addf %379, %381 : vector<4x84xf32>
    %cst_336 = arith.constant 0.000000e+00 : f32
    %383 = vector.broadcast %cst_336 : f32 to vector<4x84xf32>
    %384 = arith.maximumf %382, %383 : vector<4x84xf32>
    %c0_337 = arith.constant 0 : index
    %c0_338 = arith.constant 0 : index
    %385 = vector.load %arg14[%c0_337, %c0_338] : memref<84x10xf32, #tpu.memory_space<vmem>>, vector<84x10xf32>
    %cst_339 = arith.constant dense<0.000000e+00> : vector<4x10xf32>
    %386 = tpu.matmul %384, %385, %cst_339 {dimension_numbers = #tpu.dot_dimension_numbers<[1], [0], [0], [1], [0, 0, 1, 1], [], []>} : vector<4x84xf32>, vector<84x10xf32>, vector<4x10xf32> -> vector<4x10xf32>
    %c0_340 = arith.constant 0 : index
    %c0_341 = arith.constant 0 : index
    %387 = vector.load %arg15[%c0_340, %c0_341] : memref<1x10xf32, #tpu.memory_space<vmem>>, vector<1x10xf32>
    %388 = vector.broadcast %387 : vector<1x10xf32> to vector<4x10xf32>
    %389 = arith.addf %386, %388 : vector<4x10xf32>
    %c0_342 = arith.constant 0 : index
    %c0_343 = arith.constant 0 : index
    %c0_344 = arith.constant 0 : index
    %390 = vector.load %arg16[%c0_342, %c0_343, %c0_344] : memref<1x4x10xf32, #tpu.memory_space<vmem>>, vector<1x4x10xf32>
    %391 = vector.shape_cast %390 : vector<1x4x10xf32> to vector<4x10xf32>
    %392 = vector.shape_cast %389 : vector<4x10xf32> to vector<1x4x10xf32>
    tpu.vector_store %arg16[%c0_342, %c0_343, %c0_344], %392 {strides = array<i32>} : memref<1x4x10xf32, #tpu.memory_space<vmem>>, vector<1x4x10xf32>,
    return
  }
  func.func @transform_0(%arg0: i32) -> (i32, i32, i32) {
    %c0_i32 = arith.constant 0 : i32
    %c0_i32_0 = arith.constant 0 : i32
    %c0_i32_1 = arith.constant 0 : i32
    return %arg0, %c0_i32, %c0_i32_0 : i32, i32, i32
  }
  func.func @transform_1(%arg0: i32) -> (i32, i32, i32) {
    %c0_i32 = arith.constant 0 : i32
    %c0_i32_0 = arith.constant 0 : i32
    %c0_i32_1 = arith.constant 0 : i32
    %c0_i32_2 = arith.constant 0 : i32
    return %c0_i32, %c0_i32_0, %c0_i32_1 : i32, i32, i32
  }
  func.func @transform_2(%arg0: i32) -> (i32, i32) {
    %c0_i32 = arith.constant 0 : i32
    %c0_i32_0 = arith.constant 0 : i32
    %c0_i32_1 = arith.constant 0 : i32
    return %c0_i32, %c0_i32_0 : i32, i32
  }
  func.func @transform_3(%arg0: i32) -> (i32, i32) {
    %c0_i32 = arith.constant 0 : i32
    %c0_i32_0 = arith.constant 0 : i32
    %c0_i32_1 = arith.constant 0 : i32
    return %c0_i32, %c0_i32_0 : i32, i32
  }
  func.func @transform_4(%arg0: i32) -> (i32, i32) {
    %c0_i32 = arith.constant 0 : i32
    %c0_i32_0 = arith.constant 0 : i32
    %c0_i32_1 = arith.constant 0 : i32
    return %c0_i32, %c0_i32_0 : i32, i32
  }
  func.func @transform_5(%arg0: i32) -> (i32, i32, i32) {
    %c0_i32 = arith.constant 0 : i32
    %c0_i32_0 = arith.constant 0 : i32
    %c0_i32_1 = arith.constant 0 : i32
    %c0_i32_2 = arith.constant 0 : i32
    return %c0_i32, %c0_i32_0, %c0_i32_1 : i32, i32, i32
  }
  func.func @transform_6(%arg0: i32) -> (i32, i32) {
    %c0_i32 = arith.constant 0 : i32
    %c0_i32_0 = arith.constant 0 : i32
    %c0_i32_1 = arith.constant 0 : i32
    return %c0_i32, %c0_i32_0 : i32, i32
  }
  func.func @transform_7(%arg0: i32) -> (i32, i32) {
    %c0_i32 = arith.constant 0 : i32
    %c0_i32_0 = arith.constant 0 : i32
    %c0_i32_1 = arith.constant 0 : i32
    return %c0_i32, %c0_i32_0 : i32, i32
  }
  func.func @transform_8(%arg0: i32) -> (i32, i32) {
    %c0_i32 = arith.constant 0 : i32
    %c0_i32_0 = arith.constant 0 : i32
    %c0_i32_1 = arith.constant 0 : i32
    return %c0_i32, %c0_i32_0 : i32, i32
  }
  func.func @transform_9(%arg0: i32) -> (i32, i32, i32) {
    %c0_i32 = arith.constant 0 : i32
    %c0_i32_0 = arith.constant 0 : i32
    %c0_i32_1 = arith.constant 0 : i32
    %c0_i32_2 = arith.constant 0 : i32
    return %c0_i32, %c0_i32_0, %c0_i32_1 : i32, i32, i32
  }
  func.func @transform_10(%arg0: i32) -> (i32, i32) {
    %c0_i32 = arith.constant 0 : i32
    %c0_i32_0 = arith.constant 0 : i32
    %c0_i32_1 = arith.constant 0 : i32
    return %c0_i32, %c0_i32_0 : i32, i32
  }
  func.func @transform_11(%arg0: i32) -> (i32, i32) {
    %c0_i32 = arith.constant 0 : i32
    %c0_i32_0 = arith.constant 0 : i32
    %c0_i32_1 = arith.constant 0 : i32
    return %c0_i32, %c0_i32_0 : i32, i32
  }
  func.func @transform_12(%arg0: i32) -> (i32, i32) {
    %c0_i32 = arith.constant 0 : i32
    %c0_i32_0 = arith.constant 0 : i32
    %c0_i32_1 = arith.constant 0 : i32
    return %c0_i32, %c0_i32_0 : i32, i32
  }
  func.func @transform_13(%arg0: i32) -> (i32, i32) {
    %c0_i32 = arith.constant 0 : i32
    %c0_i32_0 = arith.constant 0 : i32
    %c0_i32_1 = arith.constant 0 : i32
    return %c0_i32, %c0_i32_0 : i32, i32
  }
  func.func @transform_14(%arg0: i32) -> (i32, i32) {
    %c0_i32 = arith.constant 0 : i32
    %c0_i32_0 = arith.constant 0 : i32
    %c0_i32_1 = arith.constant 0 : i32
    return %c0_i32, %c0_i32_0 : i32, i32
  }
  func.func @transform_15(%arg0: i32) -> (i32, i32, i32) {
    %c0_i32 = arith.constant 0 : i32
    %c0_i32_0 = arith.constant 0 : i32
    %c0_i32_1 = arith.constant 0 : i32
    return %arg0, %c0_i32, %c0_i32_0 : i32, i32, i32
  }
}

</mosaic_0001>

<bundles_post_ra>
// kernel: lenet_forward.1
= control target key start
LH: loop header
LB: loop body
LE: loop exit
PB: predicated region body
PF: predicated region fallthrough
CT: control target
= control target key end

     0   :  { %s16457_s0 = inlined_call_operand.vmem [shape: f32[8,32,32], index: 0, kind: input, shape index: {}]   ;;  %s16458_s1 = inlined_call_operand.vmem [shape: f32[5,32,168], index: 1, kind: input, shape index: {}]   ;;  %s16459_s2 = inlined_call_operand.vmem [shape: f32[1,168], index: 2, kind: input, shape index: {}]   ;;  %s16460_s3 = inlined_call_operand.vmem [shape: f32[14,28], index: 3, kind: input, shape index: {}]   ;;  %s16461_s4 = inlined_call_operand.vmem [shape: f32[168,84], index: 4, kind: input, shape index: {}]   ;;  %s16462_s5 = inlined_call_operand.vmem [shape: f32[5,84,160], index: 5, kind: input, shape index: {}]   ;;  %s16463_s6 = inlined_call_operand.vmem [shape: f32[1,160], index: 6, kind: input, shape index: {}]   ;;  %s16464_s7 = inlined_call_operand.vmem [shape: f32[5,10], index: 7, kind: input, shape index: {}]   ;;  %s16465_s8 = inlined_call_operand.vmem [shape: f32[160,80], index: 8, kind: input, shape index: {}]   ;;  %s16466_s9 = inlined_call_operand.vmem [shape: f32[5,80,120], index: 9, kind: input, shape index: {}]   ;;  %s16467_s10 = inlined_call_operand.vmem [shape: f32[1,120], index: 10, kind: input, shape index: {}]   ;;  %s16468_s11 = inlined_call_operand.vmem [shape: f32[120,84], index: 11, kind: input, shape index: {}]   ;;  %s16469_s12 = inlined_call_operand.vmem [shape: f32[1,84], index: 12, kind: input, shape index: {}]   ;;  %s16470_s13 = inlined_call_operand.vmem [shape: f32[84,10], index: 13, kind: input, shape index: {}]   ;;  %s16471_s14 = inlined_call_operand.vmem [shape: f32[1,10], index: 14, kind: input, shape index: {}]   ;;  %s16472_s15 = inlined_call_operand.hbm [shape: f32[2,4,10], index: 15, kind: output, shape index: {}]  }
   0x1   :  { %16479 = sst [smem:[#allocation12_spill]] %s16457_s0 }
   0x2   :  { %20 = vsyncpa [#allocation4], 0 }
   0x3   :  { %22 = vsyncpa [#allocation4 + $0x1], 0  ;;  %s12198_s18 = smov 0   ;;  %s12200_s19 = smov 0  }
   0x4   :  { %s12202_s20 = smov 0   ;;  %s12204_s21 = smov 0  }
   0x5 LB: > { %16480 = sst [smem:[#allocation6_spill]] %s12099_s18  ;;  %s12219_s22 = sadd.s32 4294967295, %s12111_s21   ;;  %s12111_s21 = sphi %s12204_s21, %s16496_s21   ;;  %s12107_s20 = sphi %s12202_s20, %s16498_s20   ;;  %s12103_s19 = sphi %s12200_s19, %s16500_s19   ;;  %s12099_s18 = sphi %s12198_s18, %s16499_s18  }
   0x6   : > { %16481 = sst [smem:[#allocation7_spill]] %s12107_s20  ;;  %s8821_s23 = sadd.s32 4294967294, %s12111_s21  }
   0x7   : > { %16482 = sst [smem:[#allocation8_spill]] %s12111_s21  ;;  %s12223_s24 = sadd.s32 1, %s12111_s21  }
   0x8   : > { %16483 = sst [smem:[#allocation9_spill]] %s12223_s24  ;;  %s355_s25 = sadd.s32 1, %s12107_s20 }
   0x9   : > { %s352_s26 = ssub.s32 %s12111_s21, %s12223_s24  ;;  %p365_p0 = scmp.ne.s32.totalorder %s12107_s20, %s12103_s19 }
   0xa   : > { %p353_p1 = scmp.eq.s32.totalorder %s352_s26, 0  ;;  %p366_p2 = scmp.eq.s32.totalorder %s12219_s22, 1 }
   0xb   : > { %p371_p3 = scmp.ne.s32.totalorder %s12103_s19, %s12099_s18  ;;  %p372_p4 = scmp.eq.s32.totalorder %s8821_s23, 1 }
   0xc   : > { %s12234_s27 = scalar_select %p353_p1, %s12107_s20, %s355_s25  }
   0xd   : > { %p12236_p5 = por %p366_p2, %p365_p0  ;;  %p12240_p6 = por %p372_p4, %p371_p3 }
   0xe   : > { %16484 = sst [smem:[#allocation10_spill]] %s12234_s27  ;;  %p8824_p7 = scmp.ge.s32.totalorder %s12111_s21, 1 }
   0xf   : > { %s16486_s29 = scalar_select %p12240_p6, 1, 0 }
  0x10   : > { %p442_p8 = scmp.lt.s32.totalorder %s12111_s21, 3 }
  0x11   : > { %16487 = sst [smem:[#allocation11_spill]] %s16486_s29 }
  0x12   : > { %p443_p9 = pnand %p8824_p7, %p442_p8 }
  0x13   : > { %v8830_v0 = vld [vmem:[%s16458_s1 + $0x48] sm:$0xff] (!%p443_p9)  ;;  %v8832_v1 = vld [vmem:[%s16458_s1 + $0x58] sm:$0xff] (!%p443_p9)  ;;  %v8829_v2 = vld [vmem:[%s16458_s1 + $0x40] sm:$0xff] (!%p443_p9)  ;;  %s8826_s27 = sshll.u32 (!%p443_p9), %s12219_s22, 2  ;;  %v12113_v7 = vmov (!%p443_p9), 0.0   ;;  %v12114_v15 = vmov (!%p443_p9), 0.0|0.0  }
  0x14   : > { %446 = sbr.rel (%p443_p9) target bundleno = 6178 (0x1822), region = 80  ;;  %v10590_v3 = vpack.c.bf16 (!%p443_p9), %v8832_v1, %v8830_v0  ;;  %v8831_v4 = vld [vmem:[%s16458_s1 + $0x50] sm:$0xff] (!%p443_p9)  ;;  %v8834_v5 = vld [vmem:[%s16458_s1 + $0x68] sm:$0xff] (!%p443_p9)  ;;  %v8836_v6 = vld [vmem:[%s16458_s1 + $0x78] sm:$0xff] (!%p443_p9)  ;;  %604 = vmatprep.mubr.f32.mxu0 (!%p443_p9), %v12113_v7  ;;  %p492_p10 = scmp.lt.s32.totalorder (!%p443_p9), %s8826_s27, 7  ;;  %10630 = vmatprep.subr.bf16.mxu1 (!%p443_p9), %v12114_v15  ;;  %vm523_vm0 = vcmask (!%p443_p9), 1046528  }
  0x15   : > { %v10592_v8 = vpack.c.bf16 (!%p443_p9), %v8831_v4, %v8829_v2  ;;  %v10594_v9 = vpack.c.bf16 (!%p443_p9), %v8836_v6, %v8834_v5  ;;  %v8833_v10 = vld [vmem:[%s16458_s1 + $0x60] sm:$0xff] (!%p443_p9)  ;;  %v8835_v11 = vld [vmem:[%s16458_s1 + $0x70] sm:$0xff] (!%p443_p9)  ;;  %v503_v12 = vld [vmem:[%s16458_s1 + $0x8] sm:$0xff] (!%p443_p9)  ;;  %s16488_s0 = sld [smem:[#allocation12_spill]] (!%p443_p9)  ;;  %vm531_vm1 = vcmask (!%p443_p9), 261120   ;;  %vm979_vm2 = vcmask (!%p443_p9), 1043456  }
  0x16   : > { %10591 = vmatprep.subr.bf16.mxu0 (!%p443_p9), %v10590_v3  ;;  %v505_v13 = vld [vmem:[%s16458_s1 + $0x18] sm:$0xff] (!%p443_p9)  ;;  %v10596_v14 = vpack.c.bf16 (!%p443_p9), %v8835_v11, %v8833_v10  ;;  %v502_v17 = vld [vmem:[%s16458_s1] sm:$0xff] (!%p443_p9)  ;;  %v504_v18 = vld [vmem:[%s16458_s1 + $0x10] sm:$0xff] (!%p443_p9)  ;;  %vm735_vm3 = vcmask (!%p443_p9), 1045504   ;;  %vm857_vm4 = vcmask (!%p443_p9), 1044480   ;;  %vm1141_vm5 = vcmask (!%p443_p9), 326656  }
  0x17   : > { %10593 = vmatpush1.bf16.msra.mxu0 (!%p443_p9), %v10592_v8  ;;  %v10598_v16 = vpack.c.bf16 (!%p443_p9), %v505_v13, %v503_v12  ;;  %v507_v19 = vld [vmem:[%s16458_s1 + $0x28] sm:$0xff] (!%p443_p9)  ;;  %v509_v20 = vld [vmem:[%s16458_s1 + $0x38] sm:$0xff] (!%p443_p9)  ;;  %v10600_v27 = vpack.c.bf16 (!%p443_p9), %v504_v18, %v502_v17  ;;  %v506_v30 = vld [vmem:[%s16458_s1 + $0x20] sm:$0xff] (!%p443_p9)  ;;  %vm1241_vm6 = vcmask (!%p443_p9), 228352   ;;  %vm12115_vm7 = vmmov (!%p443_p9), 1   ;;  %s488_s18 = sand.u32 (!%p443_p9), 1, %s12103_s19  }
  0x18   : > { %10595 = vmatprep.subr.bf16.mxu0 (!%p443_p9), %v10594_v9  ;;  %v10602_v29 = vpack.c.bf16 (!%p443_p9), %v509_v20, %v507_v19  ;;  %v508_v31 = vld [vmem:[%s16458_s1 + $0x30] sm:$0xff] (!%p443_p9)  ;;  %v8846_v33 = vld [vmem:[%s16458_s1 + $0x88] sm:$0xff] (!%p443_p9)  ;;  %v8848_v34 = vld [vmem:[%s16458_s1 + $0x98] sm:$0xff] (!%p443_p9)  ;;  %vm1376_vm9 = vcmask (!%p443_p9), 687104   ;;  %vm12116_vm10 = vmmov (!%p443_p9), 0   ;;  %vm2028_vm11 = vcmask (!%p443_p9), 1041408  }
  0x19   : > { %v10604_v37 = vpack.c.bf16 (!%p443_p9), %v508_v31, %v506_v30  ;;  %v10606_v38 = vpack.c.bf16 (!%p443_p9), %v8848_v34, %v8846_v33  ;;  %v1120_v39 = vld [vmem:[%s16461_s4] sm:$0xff] (!%p443_p9)  ;;  %v1121_v41 = vld [vmem:[%s16461_s4 + $0x8] sm:$0xff] (!%p443_p9)  ;;  %v1122_v46 = vld [vmem:[%s16461_s4 + $0x10] sm:$0xff] (!%p443_p9)  ;;  %vm2024_vm13 = vcmask (!%p443_p9), 80896   ;;  %vm2125_vm14 = vcmask (!%p443_p9), 654336   ;;  %s8825_s25 = sshll.u32 (!%p443_p9), %s488_s18, 2 }
  0x1a   : > { %v1123_v47 = vld [vmem:[%s16461_s4 + $0x18] sm:$0xff] (!%p443_p9)  ;;  %v10631_v48 = vpack.c.bf16 (!%p443_p9), %v1121_v41, %v1120_v39  ;;  %v1124_v53 = vld [vmem:[%s16461_s4 + $0x20] sm:$0xff] (!%p443_p9)  ;;  %v1125_v54 = vld [vmem:[%s16461_s4 + $0x28] sm:$0xff] (!%p443_p9)  ;;  %vm2525_vm15 = vcmask (!%p443_p9), 974848   ;;  %s9712_s16 = sshll.u32 (!%p443_p9), %s12219_s22, 6  ;;  %s12117_s22 = smov (!%p443_p9), [#allocation3]  }
  0x1b   : > { %s16502_s27 = smov (!%p492_p10, %s8826_s27), 7  ;;  %10597 = vmatpush1.bf16.msra.mxu0 %v10596_v14  ;;  %v10634_v52 = vpack.c.bf16 %v1123_v47, %v1122_v46  ;;  %v8845_v55 = vld [vmem:[%s16458_s1 + $0x80] sm:$0xff]  ;;  %v8847_v56 = vld [vmem:[%s16458_s1 + $0x90] sm:$0xff]  ;;  %v8850_v57 = vld [vmem:[%s16458_s1 + $0xa8] sm:$0xff]  ;;  %v10637_v59 = vpack.c.bf16 %v1125_v54, %v1124_v53  ;;  %s16415_s23 = scalar_lea.hbm %s16472_s15, %s9712_s16 }
  0x1c   : > { %s9715_s30 = sshll.u32 %s16502_s27, 5  ;;  %10599 = vmatprep.subr.bf16.mxu0 %v10598_v16  ;;  %10632 = vmatpush1.bf16.msra.mxu1 %v10631_v48  ;;  %v8852_v58 = vld [vmem:[%s16458_s1 + $0xb8] sm:$0xff]  ;;  %v10608_v60 = vpack.c.bf16 %v8847_v56, %v8845_v55  ;;  %v1126_v61 = vld [vmem:[%s16461_s4 + $0x30] sm:$0xff]  ;;  %v8849_v0 = vld [vmem:[%s16458_s1 + $0xa0] sm:$0xff]  ;;  %s12053_s24 = sshll.u32 %s12117_s22, 4  ;;  %s12054_s24 = int_to_ptr.vmem [resolvable:$false] %s12053_s24 }
  0x1d   : > { %s12288_s29 = scalar_lea.vmem %s16488_s0, %s9715_s30  ;;  %10633 = vmatprep.subr.bf16.mxu1 %v12114_v15  ;;  %v1127_v62 = vld [vmem:[%s16461_s4 + $0x38] sm:$0xff]  ;;  %v10610_v63 = vpack.c.bf16 %v8852_v58, %v8850_v57  ;;  %v8851_v1 = vld [vmem:[%s16458_s1 + $0xb0] sm:$0xff]  ;;  %v8858_v2 = vld [vmem:[%s16458_s1 + $0xc8] sm:$0xff]  ;;  %s490_s0 = scalar_lea.vmem [#allocation3], %s8825_s25 }
  0x1e   : > { %v12297_v21 = vld [vmem:[%s12288_s29] sm:$0xff]  ;;  %v12300_v22 = vld [vmem:[%s12288_s29 + $0x8] sm:$0xff]  ;;  %v12303_v23 = vld [vmem:[%s12288_s29 + $0x10] sm:$0xff]  ;;  %v10640_v4 = vpack.c.bf16 %v1127_v62, %v1126_v61  ;;  %v10612_v5 = vpack.c.bf16 %v8851_v1, %v8849_v0  ;;  %s8762_s21 = sshll.u32 %s490_s0, 4  ;;  %s12055_s25 = scalar_lea.vmem %s12054_s24, 128  ;;  %s16417_s21 = int_to_ptr.vmem [resolvable:$true] %s8762_s21 }
  0x1f   : > { %v524_v24 = vrot.slane %v12297_v21, 1  ;;  %v525_v25 = vrot.slane %v12300_v22, 1  ;;  %v527_v26 = vrot.slane %v12303_v23, 1  ;;  %v12309_v28 = vld [vmem:[%s12288_s29 + $0x18] sm:$0xff]  ;;  %v980_v40 = vrot.slane %v12297_v21, 4  ;;  %v1128_v6 = vld [vmem:[%s16461_s4 + $0x40] sm:$0xff]  ;;  %vm12569_vm8 = vmpackc.low %vm979_vm2, %vm12115_vm7  ;;  %p12056_p0 = scmp.lt.s32.totalorder %s16417_s21, %s12054_s24 }
  0x20   : > { %v529_v36 = vrot.slane %v12309_v28, 1  ;;  %v981_v43 = vrot.slane %v12300_v22, 4  ;;  %v983_v44 = vrot.slane %v12303_v23, 4  ;;  %v985_v45 = vrot.slane %v12309_v28, 4  ;;  %10635 = vmatpush1.bf16.msra.mxu1 %v10634_v52  ;;  %v8860_v3 = vld [vmem:[%s16458_s1 + $0xd8] sm:$0xff]  ;;  %v1129_v8 = vld [vmem:[%s16461_s4 + $0x48] sm:$0xff]  ;;  %vm13262_vm12 = vmpackc.low %vm2028_vm11, %vm12115_vm7 }
  0x21   : > { %v526_v32 = vsel %vm523_vm0, %v524_v24, %v525_v25  ;;  %v528_v35 = vsel %vm523_vm0, %v525_v25, %v527_v26  ;;  %10636 = vmatprep.subr.bf16.mxu1 %v12114_v15  ;;  %v10614_v9 = vpack.c.bf16 %v8860_v3, %v8858_v2  ;;  %v10643_v10 = vpack.c.bf16 %v1129_v8, %v1128_v6  ;;  %v1130_v11 = vld [vmem:[%s16461_s4 + $0x50] sm:$0xff]  ;;  %v1131_v12 = vld [vmem:[%s16461_s4 + $0x58] sm:$0xff]  ;;  %v1132_v17 = vld [vmem:[%s16461_s4 + $0x60] sm:$0xff]  ;;  %s12049_s20 = scalar_lea.vmem %s16417_s21, 64 }
  0x22   : > { %8837 = vmatmul.mubr.msk.f32.vlgmr.msra.gmra.mrb[0].mxu0 %vm531_vm1, %v526_v32  ;;  %v530_v42 = vsel %vm523_vm0, %v527_v26, %v529_v36  ;;  %v12348_v49 = vsel %vm979_vm2, %v980_v40, %v981_v43  ;;  %v12351_v50 = vsel %vm979_vm2, %v981_v43, %v983_v44  ;;  %v12356_v51 = vsel %vm979_vm2, %v983_v44, %v985_v45  ;;  %v1133_v18 = vld [vmem:[%s16461_s4 + $0x68] sm:$0xff]  ;;  %v8857_v19 = vld [vmem:[%s16458_s1 + $0xc0] sm:$0xff]  ;;  %v8859_v20 = vld [vmem:[%s16458_s1 + $0xd0] sm:$0xff]  ;;  %p12050_p11 = scmp.ne.s32.totalorder %s16417_s21, %s12049_s20  ;;  %p12057_p1 = scmp.lt.s32.totalorder %s12055_s25, %s12049_s20 }
  0x23   : > { %610 = vmatprep.mubr.f32.mxu0 %v12113_v7  ;;  %10601 = vmatpush1.bf16.msra.mxu0 %v10600_v27  ;;  %v10646_v13 = vpack.c.bf16 %v1131_v12, %v1130_v11  ;;  %v736_v14 = vrot.slane %v12297_v21, 2  ;;  %v737_v16 = vrot.slane %v12300_v22, 2  ;;  %v8862_v24 = vld [vmem:[%s16458_s1 + $0xe8] sm:$0xff]  ;;  %v8864_v25 = vld [vmem:[%s16458_s1 + $0xf8] sm:$0xff]  ;;  %v10649_v26 = vpack.c.bf16 %v1133_v18, %v1132_v17  ;;  %v1134_v31 = vld [vmem:[%s16461_s4 + $0x70] sm:$0xff] }
  0x24   : > { %10603 = vmatprep.subr.bf16.mxu0 %v10602_v29  ;;  %10638 = vmatpush1.bf16.msra.mxu1 %v10637_v59  ;;  %v739_v29 = vrot.slane %v12303_v23, 2  ;;  %v10616_v30 = vpack.c.bf16 %v8859_v20, %v8857_v19  ;;  %v1135_v32 = vld [vmem:[%s16461_s4 + $0x78] sm:$0xff]  ;;  %v10618_v33 = vpack.c.bf16 %v8864_v25, %v8862_v24  ;;  %v8861_v34 = vld [vmem:[%s16458_s1 + $0xe0] sm:$0xff]  ;;  %v741_v40 = vrot.slane %v12309_v28, 2  ;;  %v1137_v43 = vld [vmem:[%s16461_s4 + $0x88] sm:$0xff]  ;;  %p12051_p12 = pnand %p12050_p11, %p12236_p5  ;;  %p12058_p2 = por %p12057_p1, %p12056_p0 }
  0x25   : > { %10639 = vmatprep.subr.bf16.mxu1 %v12114_v15  ;;  %v738_v27 = vsel %vm735_vm3, %v736_v14, %v737_v16  ;;  %v858_v48 = vrot.slane %v12297_v21, 3  ;;  %v859_v52 = vrot.slane %v12300_v22, 3  ;;  %v8869_v53 = vld [vmem:[%s16458_s1 + $0x100] sm:$0xff]  ;;  %v8871_v54 = vld [vmem:[%s16458_s1 + $0x110] sm:$0xff]  ;;  %v8874_v55 = vld [vmem:[%s16458_s1 + $0x128] sm:$0xff]  ;;  %v861_v56 = vrot.slane %v12303_v23, 3 }
  0x26   : > { %8838 = vmatmul.mubr.msk.f32.gmra.mrb[2].mxu0 %vm531_vm1, %v528_v35  ;;  %v8863_v35 = vld [vmem:[%s16458_s1 + $0xf0] sm:$0xff]  ;;  %v740_v39 = vsel %vm735_vm3, %v737_v16, %v739_v29  ;;  %v742_v47 = vsel %vm735_vm3, %v739_v29, %v741_v40  ;;  %v10624_v57 = vpack.c.bf16 %v8871_v54, %v8869_v53  ;;  %v8873_v59 = vld [vmem:[%s16458_s1 + $0x120] sm:$0xff]  ;;  %v863_v62 = vrot.slane %v12309_v28, 3  ;;  %v1139_v0 = vld [vmem:[%s16461_s4 + $0x98] sm:$0xff]  ;;  %p12052_p13 = pneg %p12051_p12 }
  0x27   : > { %616 = vmatprep.mubr.f32.mxu0 %v12113_v7  ;;  %10605 = vmatpush1.bf16.msra.mxu0 %v10604_v37  ;;  %v8872_v37 = vld [vmem:[%s16458_s1 + $0x118] sm:$0xff]  ;;  %v10620_v41 = vpack.c.bf16 %v8863_v35, %v8861_v34  ;;  %v862_v61 = vsel %vm857_vm4, %v859_v52, %v861_v56  ;;  %v1092_v2 = vld [vmem:[%s16459_s2] sm:$0x3] }
  0x28   : > { %10607 = vmatprep.subr.bf16.mxu0 %v10606_v38  ;;  %10641 = vmatpush1.bf16.msra.mxu1 %v10640_v4  ;;  %v10652_v38 = vpack.c.bf16 %v1135_v32, %v1134_v31  ;;  %p12059_p3 = pnand %p12058_p2, %p12052_p13 }
  0x29   : > { %10642 = vmatprep.subr.bf16.mxu1 %v12114_v15 }
  0x2a   : > { %8839 = vmatmul.mubr.msk.f32.gmra.mrb[4].mxu0 %vm531_vm1, %v530_v42  ;;  %v1136_v42 = vld [vmem:[%s16461_s4 + $0x80] sm:$0xff] }
  0x2b   : > { %622 = vmatprep.mubr.f32.mxu0 %v12113_v7  ;;  %v10655_v46 = vpack.c.bf16 %v1137_v43, %v1136_v42 }
  0x2c   : > { %10644 = vmatpush1.bf16.msra.mxu1 %v10643_v10 }
  0x2d   : > { %10645 = vmatprep.subr.bf16.mxu1 %v12114_v15 }
  0x2e   : > { %8840 = vmatmul.mubr.msk.f32.gmra.mrb[6].mxu0 %vm531_vm1, %v529_v36  ;;  %v8870_v36 = vld [vmem:[%s16458_s1 + $0x108] sm:$0xff] }
  0x2f   : > { %701 = vmatprep.mubr.f32.mxu0 %v12113_v7  ;;  %v10622_v44 = vpack.c.bf16 %v8872_v37, %v8870_v36  ;;  %v1239_v36 = vld [vmem:[%s16460_s3] sm:$0xff] }
  0x30   : > { %10647 = vmatpush1.bf16.msra.mxu1 %v10646_v13 }
  0x31   : > { %10648 = vmatprep.subr.bf16.mxu1 %v12114_v15 }
  0x32   : > { %8841 = vmatmul.mubr.msk.f32.vlgmr.msra.gmra.mrb[0].mxu0 %vm531_vm1, %v12297_v21  ;;  %v8876_v21 = vld [vmem:[%s16458_s1 + $0x138] sm:$0xff] }
  0x33   : > { %707 = vmatprep.mubr.f32.mxu0 %v12113_v7  ;;  %10609 = vmatpush1.bf16.msra.mxu0 %v10608_v60  ;;  %v10626_v58 = vpack.c.bf16 %v8876_v21, %v8874_v55  ;;  %v8875_v60 = vld [vmem:[%s16458_s1 + $0x130] sm:$0xff]  ;;  %v8890_v21 = vld [vmem:[%s16462_s5 + $0xc0] sm:$0xff] }
  0x34   : > { %10611 = vmatprep.subr.bf16.mxu0 %v10610_v63  ;;  %10650 = vmatpush1.bf16.msra.mxu1 %v10649_v26  ;;  %v864_v63 = vsel %vm857_vm4, %v861_v56, %v863_v62  ;;  %v8888_v55 = vld [vmem:[%s16462_s5 + $0xb0] sm:$0xff]  ;;  %v8895_v56 = vld [vmem:[%s16462_s5 + $0xe8] sm:$0xff] }
  0x35   : > { %10651 = vmatprep.subr.bf16.mxu1 %v12114_v15 }
  0x36   : > { %8842 = vmatmul.mubr.msk.f32.gmra.mrb[2].mxu0 %vm531_vm1, %v12300_v22  ;;  %v860_v22 = vsel %vm857_vm4, %v858_v48, %v859_v52  ;;  %v7360_v48 = vld [vmem:[%s16462_s5 + $0x18] sm:$0xff] }
  0x37   : > { %713 = vmatprep.mubr.f32.mxu0 %v12113_v7  ;;  %10613 = vmatpush1.bf16.msra.mxu0 %v10612_v5 }
  0x38   : > { %10615 = vmatprep.subr.bf16.mxu0 %v10614_v9  ;;  %10653 = vmatpush1.bf16.msra.mxu1 %v10652_v38 }
  0x39   : > { %10654 = vmatprep.subr.bf16.mxu1 %v12114_v15 }
  0x3a   : > { %8843 = vmatmul.mubr.msk.f32.gmra.mrb[4].mxu0 %vm531_vm1, %v12303_v23  ;;  %v10628_v23 = vpack.c.bf16 %v8875_v60, %v8873_v59  ;;  %v8892_v60 = vld [vmem:[%s16462_s5 + $0xd0] sm:$0xff] }
  0x3b   : > { %719 = vmatprep.mubr.f32.mxu0 %v12113_v7 }
  0x3c   : > { %10656 = vmatpush1.bf16.msra.mxu1 %v10655_v46  ;;  %v8891_v46 = vld [vmem:[%s16462_s5 + $0xc8] sm:$0xff] }
  0x3d   : > { %10657 = vmatprep.subr.bf16.mxu1 %v12114_v15 }
  0x3e   : > { %8844 = vmatmul.mubr.msk.f32.gmra.mrb[6].mxu0 %vm531_vm1, %v12309_v28  ;;  %v1094_v28 = vlaneseq }
  0x3f   : > { %815 = vmatprep.mubr.f32.mxu0 %v12113_v7 }
  0x40   : > { %v1095_v1 = vshrl.u32 %v1094_v28, 7  ;;  %v8903_v28 = vld [vmem:[%s16462_s5 + $0x128] sm:$0xff] }
  0x42   : > { %8853 = vmatmul.mubr.msk.f32.vlgmr.msra.gmra.mrb[0].mxu0 %vm531_vm1, %v738_v27  ;;  %v12549_v3 = vsub.s32 1, %v1095_v1 }
  0x43   : > { %821 = vmatprep.mubr.f32.mxu0 %v12113_v7  ;;  %10617 = vmatpush1.bf16.msra.mxu0 %v10616_v30 }
  0x44   : > { %10619 = vmatprep.subr.bf16.mxu0 %v10618_v33  ;;  %v1101_v5 = vrot.slane %v1092_v2, %v12549_v3 }
  0x46   : > { %8854 = vmatmul.mubr.msk.f32.gmra.mrb[2].mxu0 %vm531_vm1, %v740_v39 }
  0x47   : > { %827 = vmatprep.mubr.f32.mxu0 %v12113_v7  ;;  %10621 = vmatpush1.bf16.msra.mxu0 %v10620_v41 }
  0x48   : > { %10623 = vmatprep.subr.bf16.mxu0 %v10622_v44  ;;  %v8889_v44 = vld [vmem:[%s16462_s5 + $0xb8] sm:$0xff] }
  0x49   : > { %v10670_v54 = vpack.c.bf16 %v8891_v46, %v8889_v44  ;;  %v1936_v46 = vld [vmem:[%s16465_s8 + $0x70] sm:$0xff] }
  0x4a   : > { %8855 = vmatmul.mubr.msk.f32.gmra.mrb[4].mxu0 %vm531_vm1, %v742_v47 }
  0x4b   : > { %833 = vmatprep.mubr.f32.mxu0 %v12113_v7 }
  0x4e   : > { %8856 = vmatmul.mubr.msk.f32.gmra.mrb[6].mxu0 %vm531_vm1, %v741_v40 }
  0x4f   : > { %937 = vmatprep.mubr.f32.mxu0 %v12113_v7 }
  0x52   : > { %8865 = vmatmul.mubr.msk.f32.vlgmr.msra.gmra.mrb[0].mxu0 %vm531_vm1, %v860_v22  ;;  %v8893_v22 = vld [vmem:[%s16462_s5 + $0xd8] sm:$0xff] }
  0x53   : > { %943 = vmatprep.mubr.f32.mxu0 %v12113_v7  ;;  %10625 = vmatpush1.bf16.msra.mxu0 %v10624_v57  ;;  %v1240_v57 = vld [vmem:[%s16460_s3 + $0x8] sm:$0x3f]  ;;  %v10674_v59 = vpack.c.bf16 %v8895_v56, %v8893_v22  ;;  %v1333_v56 = vld [vmem:[%s16462_s5 + $0x38] sm:$0xff] }
  0x54   : > { %10627 = vmatprep.subr.bf16.mxu0 %v10626_v58  ;;  %v10672_v58 = vpack.c.bf16 %v8890_v21, %v8888_v55  ;;  %v1331_v22 = vld [vmem:[%s16462_s5 + $0x28] sm:$0xff] }
  0x56   : > { %8866 = vmatmul.mubr.msk.f32.gmra.mrb[2].mxu0 %vm531_vm1, %v862_v61  ;;  %v8894_v61 = vld [vmem:[%s16462_s5 + $0xe0] sm:$0xff] }
  0x57   : > { %949 = vmatprep.mubr.f32.mxu0 %v12113_v7  ;;  %10629 = vmatpush1.bf16.msra.mxu0 %v10628_v23  ;;  %v8899_v23 = vld [vmem:[%s16462_s5 + $0x108] sm:$0xff] }
  0x58   : > { %10770 = vmatprep.subr.bf16.mxu0 %v12114_v15 }
  0x5a   : > { %8867 = vmatmul.mubr.msk.f32.gmra.mrb[4].mxu0 %vm531_vm1, %v864_v63  ;;  %v10676_v63 = vpack.c.bf16 %v8894_v61, %v8892_v60 }
  0x5b   : > { %955 = vmatprep.mubr.f32.mxu0 %v12113_v7 }
  0x5e   : > { %8868 = vmatmul.mubr.msk.f32.gmra.mrb[6].mxu0 %vm531_vm1, %v863_v62  ;;  %v8897_v62 = vld [vmem:[%s16462_s5 + $0xf8] sm:$0xff] }
  0x5f   : > { %1059 = vmatprep.mubr.f32.mxu0 %v12113_v7 }
  0x62   : > { %8877 = vmatmul.mubr.msk.f32.vlgmr.msra.gmra.mrb[0].mxu0 %vm531_vm1, %v12348_v49  ;;  %v1138_v49 = vld [vmem:[%s16461_s4 + $0x90] sm:$0xff] }
  0x63   : > { %1065 = vmatprep.mubr.f32.mxu0 %v12113_v7 }
  0x66   : > { %8878 = vmatmul.mubr.msk.f32.gmra.mrb[2].mxu0 %vm531_vm1, %v12351_v50  ;;  %v10658_v50 = vpack.c.bf16 %v1139_v0, %v1138_v49  ;;  %v10678_v49 = vpack.c.bf16 %v8899_v23, %v8897_v62  ;;  %v8896_v0 = vld [vmem:[%s16462_s5 + $0xf0] sm:$0xff] }
  0x67   : > { %1071 = vmatprep.mubr.f32.mxu0 %v12113_v7 }
  0x68   : > { %10659 = vmatpush1.bf16.msra.mxu1 %v10658_v50  ;;  %v8898_v50 = vld [vmem:[%s16462_s5 + $0x100] sm:$0xff] }
  0x69   : > { %1194 = vmatprep.subr.mxu1 %v12113_v7 }
  0x6a   : > { %8879 = vmatmul.mubr.msk.f32.gmra.mrb[4].mxu0 %vm531_vm1, %v12356_v51  ;;  %v1140_v51 = vld [vmem:[%s16461_s4 + $0xa0] sm:$0xff] }
  0x6b   : > { %1077 = vmatprep.mubr.f32.mxu0 %v12113_v7 }
  0x6c   : > { %1195 = vmatpush1.msra.mxu1 %v1140_v51  ;;  %v8901_v51 = vld [vmem:[%s16462_s5 + $0x118] sm:$0xff] }
  0x6e   : > { %8880 = vmatmul.mubr.msk.f32.gmra.mrb[6].mxu0 %vm531_vm1, %v985_v45  ;;  %v12544_v45 = vsub.s32 0, %v1095_v1  ;;  %v10680_v1 = vpack.c.bf16 %v8898_v50, %v8896_v0  ;;  %v10694_v0 = vpack.c.bf16 %v1333_v56, %v1331_v22  ;;  %v1330_v50 = vld [vmem:[%s16462_s5 + $0x20] sm:$0xff] }
  0x70   : > { %v1097_v4 = vrot.slane %v1092_v2, %v12544_v45  ;;  %v10682_v2 = vpack.c.bf16 %v8903_v28, %v8901_v51  ;;  %v1332_v51 = vld [vmem:[%s16462_s5 + $0x30] sm:$0xff] }
 0x135   : > { %v1061_v6 = vpop.f32.mrb[0].mxu0 }
 0x136   : > { %v1104_v8 = vadd.f32 %v1097_v4, %v1061_v6  ;;  %v1063_v9 = vpop.f32.mrb[1].mxu0  ;;  %v8905_v6 = vld [vmem:[%s16462_s5 + $0x138] sm:$0xff] }
 0x137   : > { %v1105_v10 = vadd.f32 %v1101_v5, %v1063_v9 }
 0x138   : > { %v1112_v13 = vmax.f32 %v1104_v8, 0.0  ;;  %v8907_v8 = vld [vmem:[%s16462_s5 + $0x148] sm:$0xff] }
 0x139   : > { %v1113_v11 = vmax.f32 %v1105_v10, 0.0  ;;  %v1067_v12 = vpop.f32.mrb[2].mxu0  ;;  %v10686_v10 = vpack.c.bf16 %v8907_v8, %v8905_v6  ;;  %v10696_v8 = vpack.c.bf16 %v1332_v51, %v1330_v50  ;;  %v8936_v50 = vld [vmem:[%s16462_s5 + $0x1f0] sm:$0xff] }
 0x13a   : > { %v1106_v14 = vadd.f32 %v1097_v4, %v1067_v12  ;;  %v1069_v16 = vpop.f32.mrb[3].mxu0  ;;  %v8906_v12 = vld [vmem:[%s16462_s5 + $0x140] sm:$0xff] }
 0x13b   : > { %v1107_v17 = vadd.f32 %v1101_v5, %v1069_v16  ;;  %8881 = vmatprep.mubr.msk.f32.mxu1 %vm1141_vm5, %v1113_v11  ;;  %v8904_v11 = vld [vmem:[%s16462_s5 + $0x130] sm:$0xff]  ;;  %v1327_v16 = vld [vmem:[%s16462_s5 + $0x8] sm:$0xff] }
 0x13c   : > { %1219 = vmatmul.mubr.f32.vlgmr.msra.gmra.mrb[0].mxu1 %v1112_v13  ;;  %v1114_v20 = vmax.f32 %v1106_v14, 0.0  ;;  %v10688_v13 = vpack.c.bf16 %v8906_v12, %v8904_v11  ;;  %v8909_v14 = vld [vmem:[%s16462_s5 + $0x158] sm:$0xf]  ;;  %v1336_v11 = vld [vmem:[%s16462_s5 + $0x50] sm:$0xff]  ;;  %v1339_v12 = vld [vmem:[%s16462_s5 + $0x68] sm:$0xff] }
 0x13d   : > { %v1115_v18 = vmax.f32 %v1107_v17, 0.0  ;;  %v1073_v19 = vpop.f32.mrb[4].mxu0  ;;  %v1329_v17 = vld [vmem:[%s16462_s5 + $0x18] sm:$0xff] }
 0x13e   : > { %v1108_v24 = vadd.f32 %v1097_v4, %v1073_v19  ;;  %v1075_v25 = vpop.f32.mrb[5].mxu0  ;;  %v10690_v19 = vpack.c.bf16 %v1329_v17, %v1327_v16  ;;  %v1338_v17 = vld [vmem:[%s16462_s5 + $0x60] sm:$0xff] }
 0x13f   : > { %v1109_v26 = vadd.f32 %v1101_v5, %v1075_v25  ;;  %8882 = vmatprep.mubr.msk.f32.mxu1 %vm1141_vm5, %v1115_v18  ;;  %v8908_v18 = vld [vmem:[%s16462_s5 + $0x150] sm:$0xf] }
 0x140   : > { %1224 = vmatmul.mubr.f32.gmra.mrb[2].mxu1 %v1114_v20  ;;  %v1116_v30 = vmax.f32 %v1108_v24, 0.0  ;;  %v1922_v20 = vld [vmem:[%s16465_s8] sm:$0xff]  ;;  %v1923_v24 = vld [vmem:[%s16465_s8 + $0x8] sm:$0xff]  ;;  %v1924_v25 = vld [vmem:[%s16465_s8 + $0x10] sm:$0xff] }
 0x141   : > { %v1117_v27 = vmax.f32 %v1109_v26, 0.0  ;;  %v1079_v29 = vpop.f32.mrb[6].mxu0  ;;  %v10771_v26 = vpack.c.bf16 %v1923_v24, %v1922_v20  ;;  %v1345_v20 = vld [vmem:[%s16462_s5 + $0x98] sm:$0xff] }
 0x142   : > { %v1110_v31 = vadd.f32 %v1097_v4, %v1079_v29  ;;  %v1081_v32 = vpop.f32.mrb[7].mxu0  ;;  %v8900_v4 = vld [vmem:[%s16462_s5 + $0x110] sm:$0xff] }
 0x143   : > { %v1111_v33 = vadd.f32 %v1101_v5, %v1081_v32  ;;  %8883 = vmatprep.mubr.msk.f32.mxu1 %vm1141_vm5, %v1117_v27  ;;  %v8902_v5 = vld [vmem:[%s16462_s5 + $0x120] sm:$0xff]  ;;  %v1925_v27 = vld [vmem:[%s16465_s8 + $0x18] sm:$0xff]  ;;  %10772 = vmatpush1.bf16.msra.mxu0 %v10771_v26 }
 0x144   : > { %1229 = vmatmul.mubr.f32.gmra.mrb[4].mxu1 %v1116_v30  ;;  %v1118_v35 = vmax.f32 %v1110_v31, 0.0  ;;  %v10684_v9 = vpack.c.bf16 %v8902_v5, %v8900_v4  ;;  %v10774_v29 = vpack.c.bf16 %v1925_v27, %v1924_v25  ;;  %10773 = vmatprep.subr.bf16.mxu0 %v12114_v15  ;;  %v1926_v30 = vld [vmem:[%s16465_s8 + $0x20] sm:$0xff]  ;;  %v1927_v31 = vld [vmem:[%s16465_s8 + $0x28] sm:$0xff]  ;;  %v1344_v27 = vld [vmem:[%s16462_s5 + $0x90] sm:$0xff] }
 0x145   : > { %v1119_v34 = vmax.f32 %v1111_v33, 0.0  ;;  %v10777_v32 = vpack.c.bf16 %v1927_v31, %v1926_v30  ;;  %v1928_v33 = vld [vmem:[%s16465_s8 + $0x30] sm:$0xff]  ;;  %v1342_v26 = vld [vmem:[%s16462_s5 + $0x80] sm:$0xff]  ;;  %v1347_v30 = vld [vmem:[%s16462_s5 + $0xa8] sm:$0xf] }
 0x146   : > { %v8919_v31 = vld [vmem:[%s16462_s5 + $0x168] sm:$0xff] }
 0x147   : > { %8884 = vmatprep.mubr.msk.f32.mxu1 %vm1141_vm5, %v1119_v34  ;;  %10775 = vmatpush1.bf16.msra.mxu0 %v10774_v29  ;;  %v1929_v34 = vld [vmem:[%s16465_s8 + $0x38] sm:$0xff]  ;;  %v10708_v29 = vpack.c.bf16 %v1344_v27, %v1342_v26  ;;  %v8952_v26 = vld [vmem:[%s16462_s5 + $0x250] sm:$0xff]  ;;  %v8954_v27 = vld [vmem:[%s16462_s5 + $0x260] sm:$0xff] }
 0x148   : > { %1234 = vmatmul.mubr.f32.gmra.mrb[6].mxu1 %v1118_v35  ;;  %10776 = vmatprep.subr.bf16.mxu0 %v12114_v15  ;;  %v10780_v35 = vpack.c.bf16 %v1929_v34, %v1928_v33  ;;  %v8918_v33 = vld [vmem:[%s16462_s5 + $0x160] sm:$0xff]  ;;  %v8920_v34 = vld [vmem:[%s16462_s5 + $0x170] sm:$0xff] }
 0x149   : > { %10008 = vmatprep.mubr.msk.f32.mxu1 %vm1241_vm6, %v1239_v36  ;;  %v1930_v36 = vld [vmem:[%s16465_s8 + $0x40] sm:$0xff] }
 0x14b   : > { %10778 = vmatpush1.bf16.msra.mxu0 %v10777_v32  ;;  %v8921_v32 = vld [vmem:[%s16462_s5 + $0x178] sm:$0xff] }
 0x14c   : > { %10779 = vmatprep.subr.bf16.mxu0 %v12114_v15 }
 0x14f   : > { %10781 = vmatpush1.bf16.msra.mxu0 %v10780_v35  ;;  %v8923_v35 = vld [vmem:[%s16462_s5 + $0x188] sm:$0xff] }
 0x150   : > { %10782 = vmatprep.subr.bf16.mxu0 %v12114_v15 }
 0x20f   : > { %v1220_v37 = vpop.f32.mrb[0].mxu1 }
 0x210   : > { %v1222_v38 = vpop.f32.mrb[1].mxu1 }
 0x213   : > { %v1225_v39 = vpop.f32.mrb[2].mxu1 }
 0x214   : > { %v10660_v40 = vpack.c.bf16 %v1225_v39, %v1220_v37  ;;  %v1227_v41 = vpop.f32.mrb[3].mxu1  ;;  %v1931_v37 = vld [vmem:[%s16465_s8 + $0x48] sm:$0xff]  ;;  %v1932_v39 = vld [vmem:[%s16465_s8 + $0x50] sm:$0xff] }
 0x215   : > { %v10783_v38 = vpack.c.bf16 %v1931_v37, %v1930_v36  ;;  %v8925_v36 = vld [vmem:[%s16462_s5 + $0x198] sm:$0xff]  ;;  %v1346_v37 = vld [vmem:[%s16462_s5 + $0xa0] sm:$0xf] }
 0x216   : > { %10661 = vmatprep.subr.bf16.mxu1 %v10660_v40 }
 0x217   : > { %v1230_v42 = vpop.f32.mrb[4].mxu1  ;;  %10663 = vmatpush3.bf16.msra.mxu1 %v10660_v40  ;;  %v1933_v40 = vld [vmem:[%s16465_s8 + $0x58] sm:$0xff]  ;;  %10784 = vmatpush1.bf16.msra.mxu0 %v10783_v38  ;;  %v10710_v38 = vpack.c.bf16 %v8921_v32, %v8919_v31  ;;  %v8956_v32 = vld [vmem:[%s16462_s5 + $0x270] sm:$0xff] }
 0x218   : > { %v1232_v43 = vpop.f32.mrb[5].mxu1  ;;  %v10786_v41 = vpack.c.bf16 %v1933_v40, %v1932_v39  ;;  %10785 = vmatprep.subr.bf16.mxu0 %v12114_v15  ;;  %v10712_v39 = vpack.c.bf16 %v8920_v34, %v8918_v33  ;;  %v10714_v40 = vpack.c.bf16 %v8925_v36, %v8923_v35  ;;  %v8958_v33 = vld [vmem:[%s16462_s5 + $0x280] sm:$0xff]  ;;  %v8961_v34 = vld [vmem:[%s16462_s5 + $0x298] sm:$0xff] }
 0x219   : > { %v1935_v43 = vld [vmem:[%s16465_s8 + $0x68] sm:$0xff]  ;;  %v10744_v35 = vpack.c.bf16 %v8958_v33, %v8956_v32  ;;  %v9055_v32 = vld [vmem:[%s16458_s1 + $0x70] sm:$0xff]  ;;  %v13063_v33 = vld [vmem:[%s12288_s29 + $0x20] sm:$0xff] }
 0x21b   : > { %v1235_v47 = vpop.f32.mrb[6].mxu1  ;;  %10787 = vmatpush1.bf16.msra.mxu0 %v10786_v41  ;;  %v8922_v41 = vld [vmem:[%s16462_s5 + $0x180] sm:$0xff] }
 0x21c   : > { %v10664_v52 = vpack.c.bf16 %v1235_v47, %v1230_v42  ;;  %v1237_v53 = vpop.f32.mrb[7].mxu1  ;;  %v1934_v42 = vld [vmem:[%s16465_s8 + $0x60] sm:$0xff]  ;;  %10788 = vmatprep.subr.bf16.mxu0 %v12114_v15  ;;  %v1937_v47 = vld [vmem:[%s16465_s8 + $0x78] sm:$0xff] }
 0x21d   : > { %v10789_v44 = vpack.c.bf16 %v1935_v43, %v1934_v42  ;;  %v1326_v53 = vld [vmem:[%s16462_s5] sm:$0xff]  ;;  %v8924_v42 = vld [vmem:[%s16462_s5 + $0x190] sm:$0xff]  ;;  %v8927_v43 = vld [vmem:[%s16462_s5 + $0x1a8] sm:$0xff] }
 0x21e   : > { %10666 = vmatprep.subr.msk.bf16.mxu1 %vm12569_vm8, %v10664_v52 }
 0x21f   : > { %10669 = vmatpush3.bf16.msk.msra.mxu1 %vm12569_vm8, %v10664_v52  ;;  %10790 = vmatpush1.bf16.msra.mxu0 %v10789_v44  ;;  %v10792_v52 = vpack.c.bf16 %v1937_v47, %v1936_v46  ;;  %v8929_v44 = vld [vmem:[%s16462_s5 + $0x1b8] sm:$0xff]  ;;  %v10716_v46 = vpack.c.bf16 %v8924_v42, %v8922_v41  ;;  %v8971_v41 = vld [vmem:[%s16462_s5 + $0x2c8] sm:$0xff] }
 0x220   : > { %10671 = vmatprep.subr.bf16.mxu1 %v10670_v54  ;;  %v1328_v54 = vld [vmem:[%s16462_s5 + $0x10] sm:$0xff]  ;;  %10791 = vmatprep.subr.bf16.mxu0 %v12114_v15  ;;  %v10718_v47 = vpack.c.bf16 %v8929_v44, %v8927_v43  ;;  %v8973_v42 = vld [vmem:[%s16462_s5 + $0x2d8] sm:$0xff]  ;;  %v8970_v43 = vld [vmem:[%s16462_s5 + $0x2c0] sm:$0xff] }
 0x221   : > { %v10692_v21 = vpack.c.bf16 %v1328_v54, %v1326_v53  ;;  %v8928_v53 = vld [vmem:[%s16462_s5 + $0x1b0] sm:$0xff]  ;;  %v8931_v54 = vld [vmem:[%s16462_s5 + $0x1c8] sm:$0xff] }
 0x222   : > { %10009 = vmatmul.mubr.msk.f32.vlgmr.msra.gmra.mrb[8].mxu1 %vm1241_vm6, %v1240_v57  ;;  %v8972_v44 = vld [vmem:[%s16462_s5 + $0x2d0] sm:$0xff] }
 0x223   : > { %10673 = vmatpush1.bf16.msra.mxu1 %v10672_v58  ;;  %1451 = vmatprep.mubr.f32.mxu1 %v12113_v7 }
 0x224   : > { %10675 = vmatprep.subr.bf16.mxu1 %v10674_v59  ;;  %10793 = vmatpush1.bf16.msra.mxu0 %v10792_v52  ;;  %v8926_v52 = vld [vmem:[%s16462_s5 + $0x1a0] sm:$0xff] }
 0x225   : > { %10794 = vmatprep.subr.bf16.mxu0 %v12114_v15  ;;  %v10720_v22 = vpack.c.bf16 %v8928_v53, %v8926_v52  ;;  %v8964_v52 = vld [vmem:[%s16462_s5 + $0x2b0] sm:$0xf]  ;;  %v10750_v53 = vpack.c.bf16 %v8973_v42, %v8971_v41 }
 0x227   : > { %10677 = vmatpush1.bf16.msra.mxu1 %v10676_v63 }
 0x228   : > { %10679 = vmatprep.subr.bf16.mxu1 %v10678_v49 }
 0x22b   : > { %10681 = vmatpush1.bf16.msra.mxu1 %v10680_v1  ;;  %v1335_v1 = vld [vmem:[%s16462_s5 + $0x48] sm:$0xff] }
 0x22c   : > { %10683 = vmatprep.subr.bf16.mxu1 %v10682_v2  ;;  %v1337_v2 = vld [vmem:[%s16462_s5 + $0x58] sm:$0xff] }
 0x22f   : > { %10685 = vmatpush1.bf16.msra.mxu1 %v10684_v9  ;;  %v10698_v9 = vpack.c.bf16 %v1337_v2, %v1335_v1  ;;  %v8945_v1 = vld [vmem:[%s16462_s5 + $0x218] sm:$0xff]  ;;  %v8947_v2 = vld [vmem:[%s16462_s5 + $0x228] sm:$0xff] }
 0x230   : > { %10687 = vmatprep.subr.bf16.mxu1 %v10686_v10  ;;  %v1334_v10 = vld [vmem:[%s16462_s5 + $0x40] sm:$0xff] }
 0x233   : > { %10689 = vmatpush1.bf16.msra.mxu1 %v10688_v13  ;;  %v1341_v13 = vld [vmem:[%s16462_s5 + $0x78] sm:$0xff] }
 0x234   : > { %8910 = vmatprep.subr.msk.mxu1 %vm979_vm2, %v8909_v14  ;;  %v10700_v14 = vpack.c.bf16 %v1336_v11, %v1334_v10  ;;  %v10702_v16 = vpack.c.bf16 %v1341_v13, %v1339_v12  ;;  %v8949_v10 = vld [vmem:[%s16462_s5 + $0x238] sm:$0xff]  ;;  %v8951_v11 = vld [vmem:[%s16462_s5 + $0x248] sm:$0xff]  ;;  %v8938_v12 = vld [vmem:[%s16462_s5 + $0x200] sm:$0xf]  ;;  %v10730_v13 = vpack.c.bf16 %v8947_v2, %v8945_v1 }
 0x235   : > { %v8984_v1 = vld [vmem:[%s16462_s5 + $0x330] sm:$0xff]  ;;  %v8987_v2 = vld [vmem:[%s16462_s5 + $0x348] sm:$0xff] }
 0x237   : > { %8911 = vmatpush1.msk.msra.mxu1 %vm979_vm2, %v8908_v18  ;;  %v1340_v18 = vld [vmem:[%s16462_s5 + $0x70] sm:$0xff] }
 0x238   : > { %10691 = vmatprep.subr.bf16.mxu1 %v10690_v19  ;;  %v1343_v19 = vld [vmem:[%s16462_s5 + $0x88] sm:$0xff]  ;;  %v10704_v24 = vpack.c.bf16 %v1340_v18, %v1338_v17  ;;  %v8948_v17 = vld [vmem:[%s16462_s5 + $0x230] sm:$0xff]  ;;  %v8950_v18 = vld [vmem:[%s16462_s5 + $0x240] sm:$0xff] }
 0x239   : > { %v10706_v25 = vpack.c.bf16 %v1345_v20, %v1343_v19  ;;  %v8953_v19 = vld [vmem:[%s16462_s5 + $0x258] sm:$0xff]  ;;  %v8955_v20 = vld [vmem:[%s16462_s5 + $0x268] sm:$0xff] }
 0x2f5   : > { %v12711_v55 = vpop.f32.mrb[8].mxu1 }
 0x2f6   : > { %v1374_v57 = vrot.slane %v12711_v55, 1  ;;  %v1575_v58 = vrot.slane %v12711_v55, 2  ;;  %v1692_v59 = vrot.slane %v12711_v55, 3  ;;  %v1809_v60 = vrot.slane %v12711_v55, 4  ;;  %v1317_v61 = vpop.f32.mrb[9].mxu1 }
 0x2f7   : > { %v1373_v62 = vrot.slane %v1317_v61, 1  ;;  %v1574_v23 = vrot.slane %v1317_v61, 2  ;;  %v1691_v63 = vrot.slane %v1317_v61, 3  ;;  %v1808_v49 = vrot.slane %v1317_v61, 4 }
 0x2f9   : > { %v1375_v28 = vsel %vm523_vm0, %v1373_v62, %v1374_v57  ;;  %v12740_v4 = vsel %vm735_vm3, %v1574_v23, %v1575_v58  ;;  %v12745_v5 = vsel %vm857_vm4, %v1691_v63, %v1692_v59  ;;  %v12750_v6 = vsel %vm979_vm2, %v1808_v49, %v1809_v60  ;;  %v8935_v62 = vld [vmem:[%s16462_s5 + $0x1e8] sm:$0xff]  ;;  %v8937_v23 = vld [vmem:[%s16462_s5 + $0x1f8] sm:$0xff] }
 0x2fa   : > { %8912 = vmatmul.mubr.msk.f32.vlgmr.msra.gmra.mrb[10].mxu1 %vm1376_vm9, %v1375_v28  ;;  %v10726_v49 = vpack.c.bf16 %v8937_v23, %v8935_v62  ;;  %v8939_v28 = vld [vmem:[%s16462_s5 + $0x208] sm:$0xf] }
 0x2fb   : > { %10693 = vmatpush1.bf16.msra.mxu1 %v10692_v21  ;;  %1457 = vmatprep.mubr.f32.mxu1 %v12113_v7  ;;  %v8933_v21 = vld [vmem:[%s16462_s5 + $0x1d8] sm:$0xff] }
 0x2fc   : > { %10695 = vmatprep.subr.bf16.mxu1 %v10694_v0  ;;  %v10722_v56 = vpack.c.bf16 %v8933_v21, %v8931_v54  ;;  %v8934_v0 = vld [vmem:[%s16462_s5 + $0x1e0] sm:$0xff]  ;;  %v10752_v54 = vpack.c.bf16 %v8972_v44, %v8970_v43 }
 0x2fd   : > { %v10728_v51 = vpack.c.bf16 %v8936_v50, %v8934_v0  ;;  %v8983_v0 = vld [vmem:[%s16462_s5 + $0x328] sm:$0xff] }
 0x2fe   : > { %8913 = vmatmul.mubr.msk.f32.gmra.mrb[12].mxu1 %vm1376_vm9, %v1374_v57  ;;  %v8930_v57 = vld [vmem:[%s16462_s5 + $0x1c0] sm:$0xff] }
 0x2ff   : > { %10697 = vmatpush1.bf16.msra.mxu1 %v10696_v8  ;;  %1538 = vmatprep.mubr.f32.mxu1 %v12113_v7  ;;  %v8944_v8 = vld [vmem:[%s16462_s5 + $0x210] sm:$0xff] }
 0x300   : > { %10699 = vmatprep.subr.bf16.mxu1 %v10698_v9  ;;  %v8946_v9 = vld [vmem:[%s16462_s5 + $0x220] sm:$0xff] }
 0x303   : > { %10701 = vmatpush1.bf16.msra.mxu1 %v10700_v14  ;;  %v10732_v14 = vpack.c.bf16 %v8946_v9, %v8944_v8 }
 0x304   : > { %10703 = vmatprep.subr.bf16.mxu1 %v10702_v16  ;;  %v10734_v16 = vpack.c.bf16 %v8951_v11, %v8949_v10  ;;  %v8986_v10 = vld [vmem:[%s16462_s5 + $0x340] sm:$0xff]  ;;  %v8988_v11 = vld [vmem:[%s16462_s5 + $0x350] sm:$0xff] }
 0x307   : > { %10705 = vmatpush1.bf16.msra.mxu1 %v10704_v24  ;;  %v10736_v24 = vpack.c.bf16 %v8950_v18, %v8948_v17  ;;  %v1939_v17 = vld [vmem:[%s16465_s8 + $0x88] sm:$0xff] }
 0x308   : > { %10707 = vmatprep.subr.bf16.mxu1 %v10706_v25  ;;  %v10738_v25 = vpack.c.bf16 %v8955_v20, %v8953_v19  ;;  %v9050_v19 = vld [vmem:[%s16458_s1 + $0x48] sm:$0xff]  ;;  %v9052_v20 = vld [vmem:[%s16458_s1 + $0x58] sm:$0xff] }
 0x30b   : > { %10709 = vmatpush1.bf16.msra.mxu1 %v10708_v29  ;;  %v8957_v29 = vld [vmem:[%s16462_s5 + $0x278] sm:$0xff] }
 0x30c   : > { %8914 = vmatprep.subr.msk.mxu1 %vm979_vm2, %v1347_v30  ;;  %v10740_v30 = vpack.c.bf16 %v8954_v27, %v8952_v26  ;;  %v9051_v26 = vld [vmem:[%s16458_s1 + $0x50] sm:$0xff]  ;;  %v9054_v27 = vld [vmem:[%s16458_s1 + $0x68] sm:$0xff] }
 0x30f   : > { %8915 = vmatpush1.msk.msra.mxu1 %vm979_vm2, %v1346_v37  ;;  %v8960_v37 = vld [vmem:[%s16462_s5 + $0x290] sm:$0xff] }
 0x310   : > { %8916 = vmatmul.mubr.msk.f32.vlgmr.msra.gmra.mrb[10].mxu1 %vm1376_vm9, %v1317_v61  ;;  %10711 = vmatprep.subr.bf16.mxu1 %v10710_v38  ;;  %v8932_v61 = vld [vmem:[%s16462_s5 + $0x1d0] sm:$0xff]  ;;  %v8962_v38 = vld [vmem:[%s16462_s5 + $0x2a0] sm:$0xff] }
 0x311   : > { %10713 = vmatpush1.bf16.msra.mxu1 %v10712_v39  ;;  %1544 = vmatprep.mubr.f32.mxu1 %v12113_v7  ;;  %v10724_v63 = vpack.c.bf16 %v8932_v61, %v8930_v57  ;;  %v10748_v39 = vpack.c.bf16 %v8962_v38, %v8960_v37  ;;  %v8979_v57 = vld [vmem:[%s16462_s5 + $0x308] sm:$0xff]  ;;  %v8981_v61 = vld [vmem:[%s16462_s5 + $0x318] sm:$0xff]  ;;  %v1902_v38 = vld [vmem:[%s16463_s6] sm:$0x3] }
 0x312   : > { %10715 = vmatprep.subr.bf16.mxu1 %v10714_v40  ;;  %v8965_v40 = vld [vmem:[%s16462_s5 + $0x2b8] sm:$0xf]  ;;  %v10758_v23 = vpack.c.bf16 %v8981_v61, %v8979_v57  ;;  %v13081_v57 = vld [vmem:[%s12288_s29 + $0x30] sm:$0xff] }
 0x313   : > { %v2555_v61 = vrot.slane %v13081_v57, 1 }
 0x314   : > { %8917 = vmatmul.mubr.msk.f32.gmra.mrb[12].mxu1 %vm1376_vm9, %v12711_v55  ;;  %v1940_v55 = vld [vmem:[%s16465_s8 + $0x90] sm:$0xff] }
 0x315   : > { %10717 = vmatpush1.bf16.msra.mxu1 %v10716_v46  ;;  %1651 = vmatprep.mubr.f32.mxu1 %v12113_v7  ;;  %v8975_v46 = vld [vmem:[%s16462_s5 + $0x2e8] sm:$0xff] }
 0x316   : > { %10719 = vmatprep.subr.bf16.mxu1 %v10718_v47  ;;  %v8977_v47 = vld [vmem:[%s16462_s5 + $0x2f8] sm:$0xff] }
 0x317   : > { %v10754_v21 = vpack.c.bf16 %v8977_v47, %v8975_v46 }
 0x319   : > { %10721 = vmatpush1.bf16.msra.mxu1 %v10720_v22  ;;  %v8974_v22 = vld [vmem:[%s16462_s5 + $0x2e0] sm:$0xff] }
 0x31a   : > { %10723 = vmatprep.subr.bf16.mxu1 %v10722_v56  ;;  %v8976_v56 = vld [vmem:[%s16462_s5 + $0x2f0] sm:$0xff] }
 0x31b   : > { %v10756_v62 = vpack.c.bf16 %v8976_v56, %v8974_v22 }
 0x31d   : > { %10725 = vmatpush1.bf16.msra.mxu1 %v10724_v63  ;;  %v8978_v63 = vld [vmem:[%s16462_s5 + $0x300] sm:$0xff] }
 0x31e   : > { %10727 = vmatprep.subr.bf16.mxu1 %v10726_v49  ;;  %v8980_v49 = vld [vmem:[%s16462_s5 + $0x310] sm:$0xff] }
 0x31f   : > { %v10760_v50 = vpack.c.bf16 %v8980_v49, %v8978_v63  ;;  %v2533_v49 = vld [vmem:[%s16458_s1 + $0x8] sm:$0xff] }
 0x321   : > { %10729 = vmatpush1.bf16.msra.mxu1 %v10728_v51 }
 0x322   : > { %8940 = vmatprep.subr.msk.mxu1 %vm979_vm2, %v8939_v28  ;;  %v8982_v28 = vld [vmem:[%s16462_s5 + $0x320] sm:$0xff] }
 0x323   : > { %v10764_v8 = vpack.c.bf16 %v8984_v1, %v8982_v28 }
 0x325   : > { %8941 = vmatpush1.msk.msra.mxu1 %vm979_vm2, %v8938_v12  ;;  %v10768_v12 = vpack.c.bf16 %v8988_v11, %v8986_v10  ;;  %v2538_v10 = vld [vmem:[%s16458_s1 + $0x30] sm:$0xff] }
 0x326   : > { %8942 = vmatmul.mubr.msk.f32.vlgmr.msra.gmra.mrb[10].mxu1 %vm1376_vm9, %v12740_v4  ;;  %10731 = vmatprep.subr.bf16.mxu1 %v10730_v13  ;;  %v8959_v4 = vld [vmem:[%s16462_s5 + $0x288] sm:$0xff] }
 0x327   : > { %10733 = vmatpush1.bf16.msra.mxu1 %v10732_v14  ;;  %1657 = vmatprep.mubr.f32.mxu1 %v12113_v7  ;;  %v10742_v31 = vpack.c.bf16 %v8959_v4, %v8957_v29  ;;  %v8991_v13 = vld [vmem:[%s16462_s5 + $0x368] sm:$0xf]  ;;  %v8990_v14 = vld [vmem:[%s16462_s5 + $0x360] sm:$0xf]  ;;  %v9056_v29 = vld [vmem:[%s16458_s1 + $0x78] sm:$0xff] }
 0x328   : > { %10735 = vmatprep.subr.bf16.mxu1 %v10734_v16  ;;  %v1938_v16 = vld [vmem:[%s16465_s8 + $0x80] sm:$0xff] }
 0x329   : > { %v10795_v18 = vpack.c.bf16 %v1939_v17, %v1938_v16  ;;  %v9067_v17 = vld [vmem:[%s16458_s1 + $0x90] sm:$0xff] }
 0x32a   : > { %8943 = vmatmul.mubr.msk.f32.gmra.mrb[12].mxu1 %vm1376_vm9, %v1575_v58  ;;  %v8963_v58 = vld [vmem:[%s16462_s5 + $0x2a8] sm:$0xff] }
 0x32b   : > { %10737 = vmatpush1.bf16.msra.mxu1 %v10736_v24  ;;  %1768 = vmatprep.mubr.f32.mxu1 %v12113_v7  ;;  %v10746_v36 = vpack.c.bf16 %v8963_v58, %v8961_v34  ;;  %v9049_v24 = vld [vmem:[%s16458_s1 + $0x40] sm:$0xff]  ;;  %v13066_v34 = vld [vmem:[%s12288_s29 + $0x28] sm:$0xff] }
 0x32c   : > { %10739 = vmatprep.subr.bf16.mxu1 %v10738_v25  ;;  %10796 = vmatpush1.bf16.msra.mxu0 %v10795_v18  ;;  %v10879_v25 = vpack.c.bf16 %v9052_v20, %v9050_v19  ;;  %v10881_v4 = vpack.c.bf16 %v9051_v26, %v9049_v24  ;;  %v9070_v18 = vld [vmem:[%s16458_s1 + $0xa8] sm:$0xff]  ;;  %v9069_v19 = vld [vmem:[%s16458_s1 + $0xa0] sm:$0xff]  ;;  %v9071_v20 = vld [vmem:[%s16458_s1 + $0xb0] sm:$0xff] }
 0x32d   : > { %10797 = vmatprep.subr.bf16.mxu0 %v12114_v15  ;;  %v9078_v24 = vld [vmem:[%s16458_s1 + $0xc8] sm:$0xff]  ;;  %v10901_v26 = vpack.c.bf16 %v9071_v20, %v9069_v19 }
 0x32e   : > { %v9003_v19 = vld [vmem:[%s16466_s9 + $0x68] sm:$0xff] }
 0x32f   : > { %10741 = vmatpush1.bf16.msra.mxu1 %v10740_v30  ;;  %v10883_v30 = vpack.c.bf16 %v9056_v29, %v9054_v27  ;;  %v3004_v29 = vrot.slane %v13081_v57, 4 }
 0x330   : > { %10743 = vmatprep.subr.bf16.mxu1 %v10742_v31  ;;  %v9053_v31 = vld [vmem:[%s16458_s1 + $0x60] sm:$0xff] }
 0x331   : > { %v10885_v58 = vpack.c.bf16 %v9055_v32, %v9053_v31  ;;  %v2761_v31 = vrot.slane %v13063_v33, 2  ;;  %v2762_v32 = vrot.slane %v13066_v34, 2 }
 0x333   : > { %10745 = vmatpush1.bf16.msra.mxu1 %v10744_v35  ;;  %v2552_v35 = vrot.slane %v13063_v33, 1 }
 0x334   : > { %10747 = vmatprep.subr.bf16.mxu1 %v10746_v36  ;;  %v2553_v36 = vrot.slane %v13066_v34, 1 }
 0x336   : > { %v2554_v37 = vsel %vm523_vm0, %v2552_v35, %v2553_v36  ;;  %v9079_v35 = vld [vmem:[%s16458_s1 + $0xd0] sm:$0xff] }
 0x337   : > { %10749 = vmatpush1.bf16.msra.mxu1 %v10748_v39  ;;  %v1907_v39 = vrot.slane %v1902_v38, %v12544_v45 }
 0x338   : > { %8966 = vmatprep.subr.msk.mxu1 %vm979_vm2, %v8965_v40  ;;  %v1911_v40 = vrot.slane %v1902_v38, %v12549_v3  ;;  %v2763_v38 = vsel %vm735_vm3, %v2761_v31, %v2762_v32  ;;  %v9009_v31 = vld [vmem:[%s16466_s9 + $0x98] sm:$0xff] }
 0x33b   : > { %8967 = vmatpush1.msk.msra.mxu1 %vm979_vm2, %v8964_v52 }
 0x33c   : > { %8968 = vmatmul.mubr.msk.f32.vlgmr.msra.gmra.mrb[10].mxu1 %vm1376_vm9, %v12745_v5  ;;  %10751 = vmatprep.subr.bf16.mxu1 %v10750_v53  ;;  %v8985_v5 = vld [vmem:[%s16462_s5 + $0x338] sm:$0xff] }
 0x33d   : > { %10753 = vmatpush1.bf16.msra.mxu1 %v10752_v54  ;;  %1774 = vmatprep.mubr.f32.mxu1 %v12113_v7  ;;  %v10762_v51 = vpack.c.bf16 %v8985_v5, %v8983_v0  ;;  %v2535_v0 = vld [vmem:[%s16458_s1 + $0x18] sm:$0xff] }
 0x33e   : > { %10755 = vmatprep.subr.bf16.mxu1 %v10754_v21  ;;  %v10887_v5 = vpack.c.bf16 %v2535_v0, %v2533_v49  ;;  %v9096_v49 = vld [vmem:[%s16458_s1 + $0x138] sm:$0xff] }
 0x340   : > { %8969 = vmatmul.mubr.msk.f32.gmra.mrb[12].mxu1 %vm1376_vm9, %v1692_v59  ;;  %v8989_v59 = vld [vmem:[%s16462_s5 + $0x358] sm:$0xff] }
 0x341   : > { %10757 = vmatpush1.bf16.msra.mxu1 %v10756_v62  ;;  %1885 = vmatprep.mubr.f32.mxu1 %v12113_v7  ;;  %v10766_v9 = vpack.c.bf16 %v8989_v59, %v8987_v2  ;;  %v2556_v62 = vsel %vm523_vm0, %v2553_v36, %v2555_v61  ;;  %v2537_v2 = vld [vmem:[%s16458_s1 + $0x28] sm:$0xff]  ;;  %v2539_v59 = vld [vmem:[%s16458_s1 + $0x38] sm:$0xff] }
 0x342   : > { %10759 = vmatprep.subr.bf16.mxu1 %v10758_v23  ;;  %v13087_v23 = vld [vmem:[%s12288_s29 + $0x38] sm:$0xff]  ;;  %v9082_v36 = vld [vmem:[%s16458_s1 + $0xe8] sm:$0xff] }
 0x343   : > { %v2557_v63 = vrot.slane %v13087_v23, 1 }
 0x345   : > { %10761 = vmatpush1.bf16.msra.mxu1 %v10760_v50  ;;  %v2532_v50 = vld [vmem:[%s16458_s1] sm:$0xff]  ;;  %v2558_v28 = vsel %vm523_vm0, %v2555_v61, %v2557_v63 }
 0x346   : > { %10763 = vmatprep.subr.bf16.mxu1 %v10762_v51  ;;  %v2534_v51 = vld [vmem:[%s16458_s1 + $0x10] sm:$0xff]  ;;  %v9089_v61 = vld [vmem:[%s16458_s1 + $0x100] sm:$0xff] }
 0x347   : > { %v10889_v1 = vpack.c.bf16 %v2534_v51, %v2532_v50 }
 0x349   : > { %10765 = vmatpush1.bf16.msra.mxu1 %v10764_v8  ;;  %v10891_v8 = vpack.c.bf16 %v2539_v59, %v2537_v2  ;;  %v2886_v59 = vrot.slane %v13087_v23, 3 }
 0x34a   : > { %10767 = vmatprep.subr.bf16.mxu1 %v10766_v9  ;;  %v2536_v9 = vld [vmem:[%s16458_s1 + $0x20] sm:$0xff] }
 0x34b   : > { %v10893_v11 = vpack.c.bf16 %v2538_v10, %v2536_v9  ;;  %v3001_v10 = vrot.slane %v13063_v33, 4 }
 0x34d   : > { %10769 = vmatpush1.bf16.msra.mxu1 %v10768_v12  ;;  %v9066_v12 = vld [vmem:[%s16458_s1 + $0x88] sm:$0xff] }
 0x34e   : > { %8992 = vmatprep.subr.msk.mxu1 %vm979_vm2, %v8991_v13  ;;  %v9068_v13 = vld [vmem:[%s16458_s1 + $0x98] sm:$0xff] }
 0x34f   : > { %v10895_v16 = vpack.c.bf16 %v9068_v13, %v9066_v12 }
 0x351   : > { %8993 = vmatpush1.msk.msra.mxu1 %vm979_vm2, %v8990_v14  ;;  %v9065_v14 = vld [vmem:[%s16458_s1 + $0x80] sm:$0xff] }
 0x352   : > { %8994 = vmatmul.mubr.msk.f32.vlgmr.msra.gmra.mrb[10].mxu1 %vm1376_vm9, %v12750_v6  ;;  %10880 = vmatprep.subr.bf16.mxu1 %v10879_v25  ;;  %v9080_v25 = vld [vmem:[%s16458_s1 + $0xd8] sm:$0xff] }
 0x353   : > { %1891 = vmatprep.mubr.f32.mxu1 %v12113_v7  ;;  %10882 = vmatpush1.bf16.msra.mxu1 %v10881_v4  ;;  %v10903_v27 = vpack.c.bf16 %v9080_v25, %v9078_v24  ;;  %v3006_v4 = vrot.slane %v13087_v23, 4  ;;  %v9004_v24 = vld [vmem:[%s16466_s9 + $0x70] sm:$0xff]  ;;  %v9005_v25 = vld [vmem:[%s16466_s9 + $0x78] sm:$0xff] }
 0x354   : > { %10884 = vmatprep.subr.bf16.mxu1 %v10883_v30 }
 0x355   : > { %v13164_v30 = vsel %vm979_vm2, %v3004_v29, %v3006_v4 }
 0x356   : > { %8995 = vmatmul.mubr.msk.f32.gmra.mrb[12].mxu1 %vm1376_vm9, %v1809_v60  ;;  %v1941_v60 = vld [vmem:[%s16465_s8 + $0x98] sm:$0xff] }
 0x357   : > { %2631 = vmatprep.mubr.f32.mxu1 %v12113_v7  ;;  %v10798_v6 = vpack.c.bf16 %v1941_v60, %v1940_v55  ;;  %10886 = vmatpush1.bf16.msra.mxu1 %v10885_v58  ;;  %v9072_v55 = vld [vmem:[%s16458_s1 + $0xb8] sm:$0xff]  ;;  %v10897_v60 = vpack.c.bf16 %v9067_v17, %v9065_v14  ;;  %v9077_v58 = vld [vmem:[%s16458_s1 + $0xc0] sm:$0xff] }
 0x358   : > { %10888 = vmatprep.subr.bf16.mxu1 %v10887_v5  ;;  %v2884_v5 = vrot.slane %v13081_v57, 3  ;;  %v9001_v17 = vld [vmem:[%s16466_s9 + $0x58] sm:$0xff] }
 0x359   : > { %10799 = vmatpush1.bf16.msra.mxu0 %v10798_v6  ;;  %v10899_v6 = vpack.c.bf16 %v9072_v55, %v9070_v18  ;;  %v2023_v55 = vld [vmem:[%s16464_s7] sm:$0x1f] }
 0x35a   : > { %10800 = vmatprep.subr.bf16.mxu0 %v12114_v15  ;;  %9057 = vmatmul.mubr.msk.f32.vlgmr.msra.gmra.mrb[14].mxu1 %vm531_vm1, %v2554_v37  ;;  %v9084_v37 = vld [vmem:[%s16458_s1 + $0xf8] sm:$0xff]  ;;  %v2887_v9 = vsel %vm857_vm4, %v2884_v5, %v2886_v59 }
 0x35b   : > { %2637 = vmatprep.mubr.f32.mxu1 %v12113_v7  ;;  %10890 = vmatpush1.bf16.msra.mxu1 %v10889_v1  ;;  %v9095_v1 = vld [vmem:[%s16458_s1 + $0x130] sm:$0xff] }
 0x35c   : > { %10892 = vmatprep.subr.bf16.mxu1 %v10891_v8 }
 0x35e   : > { %9058 = vmatmul.mubr.msk.f32.gmra.mrb[16].mxu1 %vm531_vm1, %v2556_v62  ;;  %v9091_v62 = vld [vmem:[%s16458_s1 + $0x110] sm:$0xff] }
 0x35f   : > { %2643 = vmatprep.mubr.f32.mxu1 %v12113_v7  ;;  %10894 = vmatpush1.bf16.msra.mxu1 %v10893_v11  ;;  %v10913_v50 = vpack.c.bf16 %v9091_v62, %v9089_v61  ;;  %v3002_v11 = vrot.slane %v13066_v34, 4  ;;  %v2108_v62 = vld [vmem:[%s16466_s9 + $0x30] sm:$0xff] }
 0x360   : > { %10896 = vmatprep.subr.bf16.mxu1 %v10895_v16  ;;  %v9000_v16 = vld [vmem:[%s16466_s9 + $0x50] sm:$0xff] }
 0x361   : > { %v3003_v12 = vsel %vm979_vm2, %v3001_v10, %v3002_v11  ;;  %v3005_v13 = vsel %vm979_vm2, %v3002_v11, %v3004_v29  ;;  %v9007_v29 = vld [vmem:[%s16466_s9 + $0x88] sm:$0xff] }
 0x362   : > { %9059 = vmatmul.mubr.msk.f32.gmra.mrb[18].mxu1 %vm531_vm1, %v2558_v28  ;;  %v9093_v28 = vld [vmem:[%s16458_s1 + $0x120] sm:$0xff]  ;;  %v9017_v10 = vld [vmem:[%s16466_s9 + $0xc8] sm:$0xff] }
 0x363   : > { %2649 = vmatprep.mubr.f32.mxu1 %v12113_v7  ;;  %v10917_v8 = vpack.c.bf16 %v9095_v1, %v9093_v28  ;;  %v9013_v28 = vld [vmem:[%s16466_s9 + $0xa8] sm:$0xff] }
 0x366   : > { %9060 = vmatmul.mubr.msk.f32.gmra.mrb[20].mxu1 %vm531_vm1, %v2557_v63  ;;  %v9094_v63 = vld [vmem:[%s16458_s1 + $0x128] sm:$0xff] }
 0x367   : > { %2728 = vmatprep.mubr.f32.mxu1 %v12113_v7  ;;  %v10915_v51 = vpack.c.bf16 %v9096_v49, %v9094_v63  ;;  %v2109_v63 = vld [vmem:[%s16466_s9 + $0x38] sm:$0xff] }
 0x368   : > { %v10829_v49 = vpack.c.bf16 %v2109_v63, %v2108_v62  ;;  %v3113_v62 = vld [vmem:[%s16459_s2] sm:$0x3] }
 0x36a   : > { %9061 = vmatmul.mubr.msk.f32.vlgmr.msra.gmra.mrb[14].mxu1 %vm531_vm1, %v13063_v33 }
 0x36b   : > { %2734 = vmatprep.mubr.f32.mxu1 %v12113_v7  ;;  %10898 = vmatpush1.bf16.msra.mxu1 %v10897_v60  ;;  %v10805_v60 = vpack.c.bf16 %v9001_v17, %v9000_v16  ;;  %v9023_v17 = vld [vmem:[%s16466_s9 + $0xf0] sm:$0xff] }
 0x36c   : > { %10900 = vmatprep.subr.bf16.mxu1 %v10899_v6  ;;  %v9002_v6 = vld [vmem:[%s16466_s9 + $0x60] sm:$0xff] }
 0x36d   : > { %v10808_v20 = vpack.c.bf16 %v9003_v19, %v9002_v6  ;;  %v9026_v6 = vld [vmem:[%s16466_s9 + $0x108] sm:$0xff] }
 0x36e   : > { %9062 = vmatmul.mubr.msk.f32.gmra.mrb[16].mxu1 %vm531_vm1, %v13066_v34 }
 0x36f   : > { %2740 = vmatprep.mubr.f32.mxu1 %v12113_v7  ;;  %10902 = vmatpush1.bf16.msra.mxu1 %v10901_v26  ;;  %v10811_v26 = vpack.c.bf16 %v9005_v25, %v9004_v24  ;;  %v9028_v24 = vld [vmem:[%s16466_s9 + $0x118] sm:$0xff] }
 0x370   : > { %10904 = vmatprep.subr.bf16.mxu1 %v10903_v27  ;;  %v9006_v27 = vld [vmem:[%s16466_s9 + $0x80] sm:$0xff] }
 0x372   : > { %9063 = vmatmul.mubr.msk.f32.gmra.mrb[18].mxu1 %vm531_vm1, %v13081_v57 }
 0x373   : > { %2746 = vmatprep.mubr.f32.mxu1 %v12113_v7 }
 0x376   : > { %9064 = vmatmul.mubr.msk.f32.gmra.mrb[20].mxu1 %vm531_vm1, %v13087_v23 }
 0x377   : > { %2840 = vmatprep.mubr.f32.mxu1 %v12113_v7 }
 0x37a   : > { %9073 = vmatmul.mubr.msk.f32.vlgmr.msra.gmra.mrb[14].mxu1 %vm531_vm1, %v2763_v38 }
 0x37b   : > { %2846 = vmatprep.mubr.f32.mxu1 %v12113_v7 }
 0x425   : > { %v1887_v41 = vpop.f32.mrb[10].mxu1 }
 0x426   : > { %v1914_v42 = vadd.f32 %v1907_v39, %v1887_v41  ;;  %v1889_v43 = vpop.f32.mrb[11].mxu1  ;;  %v10907_v41 = vpack.c.bf16 %v9084_v37, %v9082_v36 }
 0x427   : > { %v1915_v44 = vadd.f32 %v1911_v40, %v1889_v43  ;;  %v9083_v43 = vld [vmem:[%s16458_s1 + $0xf0] sm:$0xff] }
 0x428   : > { %v1918_v52 = vmax.f32 %v1914_v42, 0.0  ;;  %v9081_v42 = vld [vmem:[%s16458_s1 + $0xe0] sm:$0xff] }
 0x429   : > { %v1919_v46 = vmax.f32 %v1915_v44, 0.0  ;;  %v1893_v47 = vpop.f32.mrb[12].mxu1  ;;  %v9090_v44 = vld [vmem:[%s16458_s1 + $0x108] sm:$0xff] }
 0x42a   : > { %v1916_v53 = vadd.f32 %v1907_v39, %v1893_v47  ;;  %v1895_v54 = vpop.f32.mrb[13].mxu1  ;;  %v2764_v39 = vrot.slane %v13081_v57, 2 }
 0x42b   : > { %v1917_v21 = vadd.f32 %v1911_v40, %v1895_v54  ;;  %8996 = vmatprep.mubr.msk.f32.mxu0 %vm531_vm1, %v1919_v46  ;;  %v10905_v40 = vpack.c.bf16 %v9079_v35, %v9077_v58  ;;  %v9092_v46 = vld [vmem:[%s16458_s1 + $0x118] sm:$0xff] }
 0x42c   : > { %2013 = vmatmul.mubr.f32.vlgmr.msra.gmra.mrb[8].mxu0 %v1918_v52  ;;  %v1920_v56 = vmax.f32 %v1916_v53, 0.0  ;;  %v2765_v47 = vsel %vm735_vm3, %v2762_v32, %v2764_v39  ;;  %v2766_v52 = vrot.slane %v13087_v23, 2  ;;  %v10909_v53 = vpack.c.bf16 %v9083_v43, %v9081_v42  ;;  %v2102_v42 = vld [vmem:[%s16466_s9] sm:$0xff]  ;;  %v2103_v43 = vld [vmem:[%s16466_s9 + $0x8] sm:$0xff] }
 0x42d   : > { %v1921_v22 = vmax.f32 %v1917_v21, 0.0  ;;  %10906 = vmatpush1.bf16.msra.mxu1 %v10905_v40  ;;  %v10911_v54 = vpack.c.bf16 %v9092_v46, %v9090_v44  ;;  %v10820_v46 = vpack.c.bf16 %v2103_v43, %v2102_v42  ;;  %v9035_v42 = vld [vmem:[%s16466_s9 + $0x148] sm:$0xff] }
 0x42e   : > { %10908 = vmatprep.subr.bf16.mxu1 %v10907_v41  ;;  %9074 = vmatmul.mubr.msk.f32.gmra.mrb[16].mxu1 %vm531_vm1, %v2765_v47  ;;  %v2767_v21 = vsel %vm735_vm3, %v2764_v39, %v2766_v52 }
 0x42f   : > { %8997 = vmatprep.mubr.msk.f32.mxu0 %vm531_vm1, %v1921_v22  ;;  %2852 = vmatprep.mubr.f32.mxu1 %v12113_v7  ;;  %v2881_v22 = vrot.slane %v13063_v33, 3 }
 0x430   : > { %2018 = vmatmul.mubr.f32.gmra.mrb[10].mxu0 %v1920_v56  ;;  %v2882_v56 = vrot.slane %v13066_v34, 3 }
 0x431   : > { %10015 = vmatprep.mubr.msk.f32.mxu0 %vm12116_vm10, %v12113_v7  ;;  %10910 = vmatpush1.bf16.msra.mxu1 %v10909_v53  ;;  %v2104_v53 = vld [vmem:[%s16466_s9 + $0x10] sm:$0xff] }
 0x432   : > { %10912 = vmatprep.subr.bf16.mxu1 %v10911_v54  ;;  %9075 = vmatmul.mubr.msk.f32.gmra.mrb[18].mxu1 %vm531_vm1, %v2767_v21  ;;  %v2883_v0 = vsel %vm857_vm4, %v2881_v22, %v2882_v56  ;;  %v2885_v2 = vsel %vm857_vm4, %v2882_v56, %v2884_v5  ;;  %v2105_v54 = vld [vmem:[%s16466_s9 + $0x18] sm:$0xff]  ;;  %v2106_v22 = vld [vmem:[%s16466_s9 + $0x20] sm:$0xff]  ;;  %v2107_v56 = vld [vmem:[%s16466_s9 + $0x28] sm:$0xff] }
 0x433   : > { %2858 = vmatprep.mubr.f32.mxu1 %v12113_v7  ;;  %v10823_v21 = vpack.c.bf16 %v2105_v54, %v2104_v53  ;;  %v10826_v61 = vpack.c.bf16 %v2107_v56, %v2106_v22  ;;  %v2111_v5 = vld [vmem:[%s16466_s9 + $0x48] sm:$0xff]  ;;  %v9038_v54 = vld [vmem:[%s16466_s9 + $0x160] sm:$0xff]  ;;  %v9040_v56 = vld [vmem:[%s16466_s9 + $0x170] sm:$0xff] }
 0x436   : > { %9076 = vmatmul.mubr.msk.f32.gmra.mrb[20].mxu1 %vm531_vm1, %v2766_v52 }
 0x437   : > { %2960 = vmatprep.mubr.f32.mxu1 %v12113_v7 }
 0x43a   : > { %9085 = vmatmul.mubr.msk.f32.vlgmr.msra.gmra.mrb[14].mxu1 %vm531_vm1, %v2883_v0  ;;  %v2110_v0 = vld [vmem:[%s16466_s9 + $0x40] sm:$0xff] }
 0x43b   : > { %2966 = vmatprep.mubr.f32.mxu1 %v12113_v7  ;;  %10914 = vmatpush1.bf16.msra.mxu1 %v10913_v50  ;;  %v10832_v50 = vpack.c.bf16 %v2111_v5, %v2110_v0  ;;  %v9043_v0 = vld [vmem:[%s16466_s9 + $0x188] sm:$0xff]  ;;  %v13486_v5 = vrot.slane %v3113_v62, %v12549_v3 }
 0x43c   : > { %10916 = vmatprep.subr.bf16.mxu1 %v10915_v51  ;;  %v9012_v51 = vld [vmem:[%s16466_s9 + $0xa0] sm:$0xff] }
 0x43d   : > { %v10835_v1 = vpack.c.bf16 %v9013_v28, %v9012_v51  ;;  %v3141_v51 = vld [vmem:[%s16461_s4] sm:$0xff]  ;;  %v3142_v28 = vld [vmem:[%s16461_s4 + $0x8] sm:$0xff] }
 0x43e   : > { %9086 = vmatmul.mubr.msk.f32.gmra.mrb[16].mxu1 %vm531_vm1, %v2885_v2  ;;  %v9014_v2 = vld [vmem:[%s16466_s9 + $0xb0] sm:$0xff] }
 0x43f   : > { %2972 = vmatprep.mubr.f32.mxu1 %v12113_v7  ;;  %10918 = vmatpush1.bf16.msra.mxu1 %v10917_v8 }
 0x442   : > { %9087 = vmatmul.mubr.msk.f32.gmra.mrb[18].mxu1 %vm531_vm1, %v2887_v9  ;;  %v9016_v9 = vld [vmem:[%s16466_s9 + $0xc0] sm:$0xff] }
 0x443   : > { %2978 = vmatprep.mubr.f32.mxu1 %v12113_v7  ;;  %v10841_v11 = vpack.c.bf16 %v9017_v10, %v9016_v9  ;;  %v3144_v9 = vld [vmem:[%s16461_s4 + $0x18] sm:$0xff] }
 0x446   : > { %9088 = vmatmul.mubr.msk.f32.gmra.mrb[20].mxu1 %vm531_vm1, %v2886_v59  ;;  %v9015_v59 = vld [vmem:[%s16466_s9 + $0xb8] sm:$0xff] }
 0x447   : > { %3080 = vmatprep.mubr.f32.mxu1 %v12113_v7  ;;  %v10838_v8 = vpack.c.bf16 %v9015_v59, %v9014_v2  ;;  %v10920_v2 = vpack.c.bf16 %v3142_v28, %v3141_v51  ;;  %v9109_v28 = vld [vmem:[%s16462_s5 + $0xb8] sm:$0xff] }
 0x44a   : > { %9097 = vmatmul.mubr.msk.f32.vlgmr.msra.gmra.mrb[14].mxu1 %vm531_vm1, %v3003_v12  ;;  %v9018_v12 = vld [vmem:[%s16466_s9 + $0xd0] sm:$0xff] }
 0x44b   : > { %3086 = vmatprep.mubr.f32.mxu1 %v12113_v7 }
 0x44e   : > { %9098 = vmatmul.mubr.msk.f32.gmra.mrb[16].mxu1 %vm531_vm1, %v3005_v13  ;;  %v9019_v13 = vld [vmem:[%s16466_s9 + $0xd8] sm:$0xff] }
 0x44f   : > { %3092 = vmatprep.mubr.f32.mxu1 %v12113_v7 }
 0x452   : > { %9099 = vmatmul.mubr.msk.f32.gmra.mrb[18].mxu1 %vm531_vm1, %v13164_v30  ;;  %v9008_v30 = vld [vmem:[%s16466_s9 + $0x90] sm:$0xff] }
 0x453   : > { %3098 = vmatprep.mubr.f32.mxu1 %v12113_v7  ;;  %v10817_v32 = vpack.c.bf16 %v9009_v31, %v9008_v30  ;;  %v9032_v30 = vld [vmem:[%s16466_s9 + $0x138] sm:$0xff] }
 0x456   : > { %9100 = vmatmul.mubr.msk.f32.gmra.mrb[20].mxu1 %vm531_vm1, %v3006_v4  ;;  %v10814_v4 = vpack.c.bf16 %v9007_v29, %v9006_v27  ;;  %v9030_v27 = vld [vmem:[%s16466_s9 + $0x128] sm:$0xff] }
 0x4ff   : > { %v2014_v33 = vpop.f32.mrb[8].mxu0 }
 0x500   : > { %v2016_v34 = vpop.f32.mrb[9].mxu0 }
 0x501   : > { %v9020_v34 = vld [vmem:[%s16466_s9 + $0xe0] sm:$0xff] }
 0x503   : > { %v2019_v14 = vpop.f32.mrb[10].mxu0 }
 0x504   : > { %v10801_v23 = vpack.c.bf16 %v2019_v14, %v2014_v33  ;;  %v2021_v18 = vpop.f32.mrb[11].mxu0  ;;  %v10844_v33 = vpack.c.bf16 %v9019_v13, %v9018_v12  ;;  %v9021_v14 = vld [vmem:[%s16466_s9 + $0xe8] sm:$0xff]  ;;  %v3147_v13 = vld [vmem:[%s16461_s4 + $0x30] sm:$0xff] }
 0x505   : > { %v10847_v16 = vpack.c.bf16 %v9021_v14, %v9020_v34  ;;  %v3149_v14 = vld [vmem:[%s16461_s4 + $0x40] sm:$0xff] }
 0x506   : > { %10803 = vmatpush3.bf16.msk.msra.mxu0 %vm13262_vm12, %v10801_v23  ;;  %v9024_v23 = vld [vmem:[%s16466_s9 + $0xf8] sm:$0xff] }
 0x507   : > { %10804 = vmatprep.subr.bf16.mxu0 %v12114_v15  ;;  %v10850_v18 = vpack.c.bf16 %v9024_v23, %v9023_v17  ;;  %v3151_v23 = vld [vmem:[%s16461_s4 + $0x50] sm:$0xff] }
 0x509   : > { %10016 = vmatmul.mubr.msk.f32.vlgmr.msra.gmra.mrb[12].mxu0 %vm2024_vm13, %v2023_v55 }
 0x50a   : > { %10806 = vmatpush3.bf16.msra.mxu0 %v10805_v60  ;;  %10038 = vmatprep.mubr.msk.f32.mxu0 %vm12116_vm10, %v12113_v7  ;;  %v9025_v60 = vld [vmem:[%s16466_s9 + $0x100] sm:$0xff] }
 0x50b   : > { %10807 = vmatprep.subr.bf16.mxu0 %v12114_v15  ;;  %v10853_v19 = vpack.c.bf16 %v9026_v6, %v9025_v60  ;;  %v3153_v60 = vld [vmem:[%s16461_s4 + $0x60] sm:$0xff]  ;;  %v3154_v6 = vld [vmem:[%s16461_s4 + $0x68] sm:$0xff] }
 0x50e   : > { %10809 = vmatpush3.bf16.msra.mxu0 %v10808_v20  ;;  %v9027_v20 = vld [vmem:[%s16466_s9 + $0x110] sm:$0xff] }
 0x50f   : > { %10810 = vmatprep.subr.bf16.mxu0 %v12114_v15  ;;  %v10856_v25 = vpack.c.bf16 %v9028_v24, %v9027_v20  ;;  %v3155_v20 = vld [vmem:[%s16461_s4 + $0x70] sm:$0xff]  ;;  %v3156_v24 = vld [vmem:[%s16461_s4 + $0x78] sm:$0xff] }
 0x512   : > { %10812 = vmatpush3.bf16.msra.mxu0 %v10811_v26  ;;  %v9029_v26 = vld [vmem:[%s16466_s9 + $0x120] sm:$0xff] }
 0x513   : > { %10813 = vmatprep.subr.bf16.mxu0 %v12114_v15  ;;  %v10859_v29 = vpack.c.bf16 %v9030_v27, %v9029_v26  ;;  %v3157_v26 = vld [vmem:[%s16461_s4 + $0x80] sm:$0xff]  ;;  %v3158_v27 = vld [vmem:[%s16461_s4 + $0x88] sm:$0xff] }
 0x516   : > { %10815 = vmatpush3.bf16.msra.mxu0 %v10814_v4  ;;  %v9031_v4 = vld [vmem:[%s16466_s9 + $0x130] sm:$0xff] }
 0x517   : > { %10816 = vmatprep.subr.bf16.mxu0 %v12114_v15  ;;  %v10862_v31 = vpack.c.bf16 %v9032_v30, %v9031_v4  ;;  %v3159_v4 = vld [vmem:[%s16461_s4 + $0x90] sm:$0xff]  ;;  %v3160_v30 = vld [vmem:[%s16461_s4 + $0x98] sm:$0xff] }
 0x51a   : > { %10818 = vmatpush3.bf16.msra.mxu0 %v10817_v32  ;;  %v9034_v32 = vld [vmem:[%s16466_s9 + $0x140] sm:$0xff] }
 0x51b   : > { %10819 = vmatprep.subr.bf16.mxu0 %v12114_v15  ;;  %v10865_v43 = vpack.c.bf16 %v9035_v42, %v9034_v32  ;;  %v10947_v32 = vpack.c.bf16 %v3160_v30, %v3159_v4 }
 0x51d   : > { %v13310_v58 = vpop.f32.mrb[14].mxu1 }
 0x51e   : > { %v13312_v35 = vpop.f32.mrb[15].mxu1 }
 0x521   : > { %v13314_v36 = vpop.f32.mrb[16].mxu1 }
 0x522   : > { %v13316_v37 = vpop.f32.mrb[17].mxu1 }
 0x525   : > { %v13318_v38 = vpop.f32.mrb[18].mxu1 }
 0x526   : > { %v13320_v39 = vpop.f32.mrb[19].mxu1 }
 0x529   : > { %v13322_v40 = vpop.f32.mrb[20].mxu1 }
 0x52a   : > { %v13324_v41 = vpop.f32.mrb[21].mxu1 }
 0x5dc   : > { %v13332_v44 = vpop.f32.mrb[12].mxu0 }
 0x5dd   : > { %v2124_v47 = vrot.slane %v13332_v44, 1  ;;  %v10017_v52 = vpop.f32.mrb[13].mxu0  ;;  %v2281_v55 = vrot.slane %v13332_v44, 2  ;;  %v2451_v59 = vrot.slane %v13332_v44, 4 }
 0x5de   : > { %v9037_v52 = vld [vmem:[%s16466_s9 + $0x158] sm:$0xff] }
 0x5df   : > { %10039 = vmatmul.mubr.msk.f32.vlgmr.msra.gmra.mrb[14].mxu0 %vm2125_vm14, %v2124_v47  ;;  %v9036_v47 = vld [vmem:[%s16466_s9 + $0x150] sm:$0xff] }
 0x5e0   : > { %10821 = vmatpush3.bf16.msra.mxu0 %v10820_v46  ;;  %10061 = vmatprep.mubr.msk.f32.mxu0 %vm12116_vm10, %v12113_v7  ;;  %v2366_v46 = vrot.slane %v13332_v44, 3  ;;  %v10868_v53 = vpack.c.bf16 %v9037_v52, %v9036_v47 }
 0x5e1   : > { %10822 = vmatprep.subr.bf16.mxu0 %v12114_v15 }
 0x5e4   : > { %10824 = vmatpush3.bf16.msra.mxu0 %v10823_v21  ;;  %v9039_v21 = vld [vmem:[%s16466_s9 + $0x168] sm:$0xff] }
 0x5e5   : > { %10825 = vmatprep.subr.bf16.mxu0 %v12114_v15  ;;  %v10871_v22 = vpack.c.bf16 %v9039_v21, %v9038_v54  ;;  %v3130_v54 = vadd.f32 %v13486_v5, %v13320_v39 }
 0x5e7   : > { %v3138_v21 = vmax.f32 %v3130_v54, 0.0  ;;  %v3936_v54 = vld [vmem:[%s16465_s8] sm:$0xff] }
 0x5e8   : > { %10827 = vmatpush3.bf16.msra.mxu0 %v10826_v61  ;;  %v9041_v61 = vld [vmem:[%s16466_s9 + $0x178] sm:$0xff] }
 0x5e9   : > { %10828 = vmatprep.subr.bf16.mxu0 %v12114_v15  ;;  %v10874_v63 = vpack.c.bf16 %v9041_v61, %v9040_v56 }
 0x5ec   : > { %10830 = vmatpush3.bf16.msra.mxu0 %v10829_v49  ;;  %v9042_v49 = vld [vmem:[%s16466_s9 + $0x180] sm:$0xff] }
 0x5ed   : > { %10831 = vmatprep.subr.bf16.mxu0 %v12114_v15 }
 0x5f0   : > { %10833 = vmatpush3.bf16.msra.mxu0 %v10832_v50  ;;  %v10877_v50 = vpack.c.bf16 %v9043_v0, %v9042_v49 }
 0x5f1   : > { %10834 = vmatprep.subr.bf16.mxu0 %v12114_v15 }
 0x5f3   : > { %10062 = vmatmul.mubr.msk.f32.vlgmr.msra.gmra.mrb[14].mxu0 %vm2125_vm14, %v13332_v44  ;;  %v3145_v44 = vld [vmem:[%s16461_s4 + $0x20] sm:$0xff] }
 0x5f4   : > { %10836 = vmatpush3.bf16.msra.mxu0 %v10835_v1  ;;  %10084 = vmatprep.mubr.msk.f32.mxu0 %vm12116_vm10, %v12113_v7  ;;  %v3126_v1 = vadd.f32 %v13486_v5, %v13312_v35 }
 0x5f5   : > { %10837 = vmatprep.subr.bf16.mxu0 %v12114_v15 }
 0x5f6   : > { %v3134_v10 = vmax.f32 %v3126_v1, 0.0  ;;  %v9111_v1 = vld [vmem:[%s16462_s5 + $0xc8] sm:$0xff] }
 0x5f8   : > { %10839 = vmatpush3.bf16.msra.mxu0 %v10838_v8  ;;  %v3143_v8 = vld [vmem:[%s16461_s4 + $0x10] sm:$0xff] }
 0x5f9   : > { %10840 = vmatprep.subr.bf16.mxu0 %v12114_v15  ;;  %v10923_v35 = vpack.c.bf16 %v3144_v9, %v3143_v8  ;;  %v10959_v9 = vpack.c.bf16 %v9111_v1, %v9109_v28  ;;  %v3949_v28 = vld [vmem:[%s16465_s8 + $0x68] sm:$0xff] }
 0x5fc   : > { %10842 = vmatpush3.bf16.msra.mxu0 %v10841_v11  ;;  %v3146_v11 = vld [vmem:[%s16461_s4 + $0x28] sm:$0xff] }
 0x5fd   : > { %10843 = vmatprep.subr.bf16.mxu0 %v12114_v15  ;;  %v10926_v12 = vpack.c.bf16 %v3146_v11, %v3145_v44  ;;  %v9113_v44 = vld [vmem:[%s16462_s5 + $0xd8] sm:$0xff]  ;;  %v9115_v11 = vld [vmem:[%s16462_s5 + $0xe8] sm:$0xff] }
 0x600   : > { %10845 = vmatpush3.bf16.msra.mxu0 %v10844_v33  ;;  %v3148_v33 = vld [vmem:[%s16461_s4 + $0x38] sm:$0xff] }
 0x601   : > { %10846 = vmatprep.subr.bf16.mxu0 %v12114_v15  ;;  %v10929_v34 = vpack.c.bf16 %v3148_v33, %v3147_v13  ;;  %v10963_v33 = vpack.c.bf16 %v9115_v11, %v9113_v44  ;;  %v3350_v11 = vld [vmem:[%s16462_s5 + $0x28] sm:$0xff] }
 0x604   : > { %10848 = vmatpush3.bf16.msra.mxu0 %v10847_v16  ;;  %v3150_v16 = vld [vmem:[%s16461_s4 + $0x48] sm:$0xff] }
 0x605   : > { %10849 = vmatprep.subr.bf16.mxu0 %v12114_v15  ;;  %v10932_v17 = vpack.c.bf16 %v3150_v16, %v3149_v14  ;;  %v9114_v14 = vld [vmem:[%s16462_s5 + $0xe0] sm:$0xff]  ;;  %v9117_v16 = vld [vmem:[%s16462_s5 + $0xf8] sm:$0xff] }
 0x607   : > { %10085 = vmatmul.mubr.msk.f32.vlgmr.msra.gmra.mrb[14].mxu0 %vm2125_vm14, %v2281_v55 }
 0x608   : > { %10851 = vmatpush3.bf16.msra.mxu0 %v10850_v18  ;;  %10107 = vmatprep.mubr.msk.f32.mxu0 %vm12116_vm10, %v12113_v7  ;;  %v3152_v18 = vld [vmem:[%s16461_s4 + $0x58] sm:$0xff] }
 0x609   : > { %10852 = vmatprep.subr.bf16.mxu0 %v12114_v15  ;;  %v10935_v55 = vpack.c.bf16 %v3152_v18, %v3151_v23 }
 0x60c   : > { %10854 = vmatpush3.bf16.msra.mxu0 %v10853_v19  ;;  %v10938_v19 = vpack.c.bf16 %v3154_v6, %v3153_v60  ;;  %v9118_v60 = vld [vmem:[%s16462_s5 + $0x100] sm:$0xff]  ;;  %v9121_v6 = vld [vmem:[%s16462_s5 + $0x118] sm:$0xff] }
 0x60d   : > { %10855 = vmatprep.subr.bf16.mxu0 %v12114_v15 }
 0x610   : > { %10857 = vmatpush3.bf16.msra.mxu0 %v10856_v25  ;;  %v10941_v25 = vpack.c.bf16 %v3156_v24, %v3155_v20 }
 0x611   : > { %10858 = vmatprep.subr.bf16.mxu0 %v12114_v15 }
 0x614   : > { %10860 = vmatpush3.bf16.msra.mxu0 %v10859_v29  ;;  %v10944_v29 = vpack.c.bf16 %v3158_v27, %v3157_v26  ;;  %v9122_v26 = vld [vmem:[%s16462_s5 + $0x120] sm:$0xff]  ;;  %v9125_v27 = vld [vmem:[%s16462_s5 + $0x138] sm:$0xff] }
 0x615   : > { %10861 = vmatprep.subr.bf16.mxu0 %v12114_v15 }
 0x618   : > { %10863 = vmatpush3.bf16.msra.mxu0 %v10862_v31  ;;  %v3118_v31 = vrot.slane %v3113_v62, %v12544_v45 }
 0x619   : > { %10864 = vmatprep.subr.bf16.mxu0 %v12114_v15 }
 0x61a   : > { %v3125_v42 = vadd.f32 %v3118_v31, %v13310_v58  ;;  %v3127_v52 = vadd.f32 %v3118_v31, %v13314_v36  ;;  %v3131_v56 = vadd.f32 %v3118_v31, %v13322_v40 }
 0x61b   : > { %10108 = vmatmul.mubr.msk.f32.vlgmr.msra.gmra.mrb[14].mxu0 %vm2125_vm14, %v2366_v46  ;;  %v3161_v46 = vld [vmem:[%s16461_s4 + $0xa0] sm:$0xff] }
 0x61c   : > { %10866 = vmatpush3.bf16.msra.mxu0 %v10865_v43  ;;  %10130 = vmatprep.mubr.msk.f32.mxu0 %vm12116_vm10, %v12113_v7  ;;  %v3128_v43 = vadd.f32 %v13486_v5, %v13316_v37  ;;  %v3133_v47 = vmax.f32 %v3125_v42, 0.0  ;;  %v3135_v58 = vmax.f32 %v3127_v52, 0.0  ;;  %v3129_v37 = vadd.f32 %v3118_v31, %v13318_v38  ;;  %v3259_v38 = vld [vmem:[%s16460_s3] sm:$0xff]  ;;  %v9124_v31 = vld [vmem:[%s16462_s5 + $0x130] sm:$0xff] }
 0x61d   : > { %10867 = vmatprep.subr.bf16.mxu0 %v12114_v15  ;;  %v3139_v61 = vmax.f32 %v3131_v56, 0.0  ;;  %10141 = vmatprep.mubr.msk.f32.mxu1 %vm1241_vm6, %v3259_v38  ;;  %v9128_v52 = vld [vmem:[%s16462_s5 + $0x150] sm:$0xf]  ;;  %v3940_v56 = vld [vmem:[%s16465_s8 + $0x20] sm:$0xff] }
 0x61e   : > { %v3137_v36 = vmax.f32 %v3129_v37, 0.0  ;;  %v3938_v37 = vld [vmem:[%s16465_s8 + $0x10] sm:$0xff] }
 0x61f   : > { %v3942_v38 = vld [vmem:[%s16465_s8 + $0x30] sm:$0xff] }
 0x620   : > { %10869 = vmatpush3.bf16.msra.mxu0 %v10868_v53  ;;  %v3136_v53 = vmax.f32 %v3128_v43, 0.0  ;;  %v9129_v43 = vld [vmem:[%s16462_s5 + $0x158] sm:$0xf] }
 0x621   : > { %10870 = vmatprep.subr.bf16.mxu0 %v12114_v15 }
 0x624   : > { %10872 = vmatpush3.bf16.msra.mxu0 %v10871_v22  ;;  %v3132_v22 = vadd.f32 %v13486_v5, %v13324_v41 }
 0x625   : > { %10873 = vmatprep.subr.bf16.mxu0 %v12114_v15 }
 0x626   : > { %v3140_v39 = vmax.f32 %v3132_v22, 0.0  ;;  %v3939_v22 = vld [vmem:[%s16465_s8 + $0x18] sm:$0xff] }
 0x628   : > { %10875 = vmatpush3.bf16.msra.mxu0 %v10874_v63 }
 0x629   : > { %10876 = vmatprep.subr.bf16.mxu0 %v12114_v15 }
 0x62c   : > { %10878 = vmatpush3.bf16.msra.mxu0 %v10877_v50 }
 0x62d   : > { %10919 = vmatprep.subr.bf16.mxu0 %v12114_v15 }
 0x62f   : > { %10131 = vmatmul.mubr.msk.f32.vlgmr.msra.gmra.mrb[14].mxu0 %vm2125_vm14, %v2451_v59 }
 0x630   : > { %10921 = vmatpush1.bf16.msra.mxu0 %v10920_v2  ;;  %9101 = vmatprep.mubr.msk.f32.mxu0 %vm1141_vm5, %v3134_v10  ;;  %v9108_v10 = vld [vmem:[%s16462_s5 + $0xb0] sm:$0xff] }
 0x631   : > { %10922 = vmatprep.subr.bf16.mxu0 %v12114_v15 }
 0x634   : > { %10924 = vmatpush1.bf16.msra.mxu0 %v10923_v35  ;;  %v9110_v35 = vld [vmem:[%s16462_s5 + $0xc0] sm:$0xff] }
 0x635   : > { %10925 = vmatprep.subr.bf16.mxu0 %v12114_v15  ;;  %v10961_v13 = vpack.c.bf16 %v9110_v35, %v9108_v10  ;;  %v3347_v10 = vld [vmem:[%s16462_s5 + $0x10] sm:$0xff] }
 0x638   : > { %10927 = vmatpush1.bf16.msra.mxu0 %v10926_v12  ;;  %v3260_v12 = vld [vmem:[%s16460_s3 + $0x8] sm:$0x3f] }
 0x639   : > { %10928 = vmatprep.subr.bf16.mxu0 %v12114_v15 }
 0x63c   : > { %10930 = vmatpush1.bf16.msra.mxu0 %v10929_v34  ;;  %v9112_v34 = vld [vmem:[%s16462_s5 + $0xd0] sm:$0xff] }
 0x63d   : > { %10931 = vmatprep.subr.bf16.mxu0 %v12114_v15  ;;  %v10965_v23 = vpack.c.bf16 %v9114_v14, %v9112_v34 }
 0x640   : > { %10933 = vmatpush1.bf16.msra.mxu0 %v10932_v17  ;;  %v9119_v17 = vld [vmem:[%s16462_s5 + $0x108] sm:$0xff] }
 0x641   : > { %10934 = vmatprep.subr.bf16.mxu0 %v12114_v15  ;;  %v10967_v18 = vpack.c.bf16 %v9119_v17, %v9117_v16 }
 0x644   : > { %10936 = vmatpush1.bf16.msra.mxu0 %v10935_v55  ;;  %v9116_v55 = vld [vmem:[%s16462_s5 + $0xf0] sm:$0xff] }
 0x645   : > { %10937 = vmatprep.subr.bf16.mxu0 %v12114_v15  ;;  %v10969_v20 = vpack.c.bf16 %v9118_v60, %v9116_v55 }
 0x648   : > { %10939 = vmatpush1.bf16.msra.mxu0 %v10938_v19  ;;  %v9123_v19 = vld [vmem:[%s16462_s5 + $0x128] sm:$0xff] }
 0x649   : > { %10940 = vmatprep.subr.bf16.mxu0 %v12114_v15  ;;  %v10971_v24 = vpack.c.bf16 %v9123_v19, %v9121_v6  ;;  %v3349_v6 = vld [vmem:[%s16462_s5 + $0x20] sm:$0xff]  ;;  %v3351_v19 = vld [vmem:[%s16462_s5 + $0x30] sm:$0xff] }
 0x64c   : > { %10942 = vmatpush1.bf16.msra.mxu0 %v10941_v25  ;;  %v9120_v25 = vld [vmem:[%s16462_s5 + $0x110] sm:$0xff] }
 0x64d   : > { %10943 = vmatprep.subr.bf16.mxu0 %v12114_v15  ;;  %v10973_v4 = vpack.c.bf16 %v9122_v26, %v9120_v25  ;;  %v3356_v25 = vld [vmem:[%s16462_s5 + $0x58] sm:$0xff] }
 0x650   : > { %10945 = vmatpush1.bf16.msra.mxu0 %v10944_v29  ;;  %v9127_v29 = vld [vmem:[%s16462_s5 + $0x148] sm:$0xff] }
 0x651   : > { %10946 = vmatprep.subr.bf16.mxu0 %v12114_v15  ;;  %v10975_v30 = vpack.c.bf16 %v9127_v29, %v9125_v27 }
 0x654   : > { %10948 = vmatpush1.bf16.msra.mxu0 %v10947_v32  ;;  %v9126_v32 = vld [vmem:[%s16462_s5 + $0x140] sm:$0xff] }
 0x655   : > { %3214 = vmatprep.subr.mxu0 %v12113_v7  ;;  %v10977_v42 = vpack.c.bf16 %v9126_v32, %v9124_v31  ;;  %v3353_v31 = vld [vmem:[%s16462_s5 + $0x40] sm:$0xff]  ;;  %v3355_v32 = vld [vmem:[%s16462_s5 + $0x50] sm:$0xff] }
 0x658   : > { %3215 = vmatpush1.msra.mxu0 %v3161_v46  ;;  %v3346_v46 = vld [vmem:[%s16462_s5 + $0x8] sm:$0xff] }
 0x659   : > { %3239 = vmatmul.mubr.f32.vlgmr.msra.gmra.mrb[16].mxu0 %v3133_v47  ;;  %11059 = vmatprep.subr.bf16.mxu0 %v12114_v15  ;;  %v3348_v47 = vld [vmem:[%s16462_s5 + $0x18] sm:$0xff] }
 0x65a   : > { %9102 = vmatprep.mubr.msk.f32.mxu0 %vm1141_vm5, %v3136_v53  ;;  %v10979_v53 = vpack.c.bf16 %v3348_v47, %v3346_v46  ;;  %v10989_v46 = vpack.c.bf16 %v3355_v32, %v3353_v31  ;;  %v9166_v31 = vld [vmem:[%s16462_s5 + $0x220] sm:$0xff]  ;;  %v9169_v32 = vld [vmem:[%s16462_s5 + $0x238] sm:$0xff] }
 0x65d   : > { %3244 = vmatmul.mubr.f32.gmra.mrb[18].mxu0 %v3135_v58  ;;  %v3937_v58 = vld [vmem:[%s16465_s8 + $0x8] sm:$0xff] }
 0x65e   : > { %9103 = vmatprep.mubr.msk.f32.mxu0 %vm1141_vm5, %v3138_v21  ;;  %v11060_v21 = vpack.c.bf16 %v3937_v58, %v3936_v54  ;;  %v3362_v54 = vld [vmem:[%s16462_s5 + $0x88] sm:$0xff]  ;;  %v3364_v58 = vld [vmem:[%s16462_s5 + $0x98] sm:$0xff] }
 0x660   : > { %11061 = vmatpush1.bf16.msra.mxu0 %v11060_v21  ;;  %v10995_v21 = vpack.c.bf16 %v3364_v58, %v3362_v54  ;;  %v9170_v54 = vld [vmem:[%s16462_s5 + $0x240] sm:$0xff]  ;;  %v9173_v58 = vld [vmem:[%s16462_s5 + $0x258] sm:$0xff] }
 0x661   : > { %3249 = vmatmul.mubr.f32.gmra.mrb[20].mxu0 %v3137_v36  ;;  %v11063_v36 = vpack.c.bf16 %v3939_v22, %v3938_v37  ;;  %11062 = vmatprep.subr.bf16.mxu0 %v12114_v15  ;;  %v3361_v22 = vld [vmem:[%s16462_s5 + $0x80] sm:$0xff] }
 0x662   : > { %9104 = vmatprep.mubr.msk.f32.mxu0 %vm1141_vm5, %v3140_v39  ;;  %v3941_v39 = vld [vmem:[%s16465_s8 + $0x28] sm:$0xff] }
 0x664   : > { %11064 = vmatpush1.bf16.msra.mxu0 %v11063_v36  ;;  %v3363_v36 = vld [vmem:[%s16462_s5 + $0x90] sm:$0xff] }
 0x665   : > { %3254 = vmatmul.mubr.f32.gmra.mrb[22].mxu0 %v3139_v61  ;;  %v11066_v61 = vpack.c.bf16 %v3941_v39, %v3940_v56  ;;  %11065 = vmatprep.subr.bf16.mxu0 %v12114_v15  ;;  %v10997_v56 = vpack.c.bf16 %v3363_v36, %v3361_v22  ;;  %v3366_v39 = vld [vmem:[%s16462_s5 + $0xa8] sm:$0xf]  ;;  %v9172_v36 = vld [vmem:[%s16462_s5 + $0x250] sm:$0xff] }
 0x668   : > { %11067 = vmatpush1.bf16.msra.mxu0 %v11066_v61  ;;  %v9139_v61 = vld [vmem:[%s16462_s5 + $0x168] sm:$0xff] }
 0x669   : > { %11068 = vmatprep.subr.bf16.mxu0 %v12114_v15 }
 0x702   : > { %v2520_v41 = vpop.f32.mrb[14].mxu0 }
 0x703   : > { %2526 = vst.msk [vmem:[#allocation2] sm:$0x1] %vm2525_vm15, %v2520_v41  ;;  %v10132_v62 = vpop.f32.mrb[15].mxu0  ;;  %v3943_v41 = vld [vmem:[%s16465_s8 + $0x38] sm:$0xff] }
 0x704   : > { %v11069_v62 = vpack.c.bf16 %v3943_v41, %v3942_v38  ;;  %v9141_v38 = vld [vmem:[%s16462_s5 + $0x178] sm:$0xff]  ;;  %v9138_v41 = vld [vmem:[%s16462_s5 + $0x160] sm:$0xff] }
 0x706   : > { %11070 = vmatpush1.bf16.msra.mxu0 %v11069_v62  ;;  %v9140_v62 = vld [vmem:[%s16462_s5 + $0x170] sm:$0xff] }
 0x707   : > { %11071 = vmatprep.subr.bf16.mxu0 %v12114_v15 }
 0x72c   : > { %v3240_v63 = vpop.f32.mrb[16].mxu0 }
 0x72d   : > { %v3242_v49 = vpop.f32.mrb[17].mxu0 }
 0x72e   : > { %v3945_v49 = vld [vmem:[%s16465_s8 + $0x48] sm:$0xff] }
 0x730   : > { %v3245_v40 = vpop.f32.mrb[18].mxu0 }
 0x731   : > { %v10949_v0 = vpack.c.bf16 %v3245_v40, %v3240_v63  ;;  %v3247_v5 = vpop.f32.mrb[19].mxu0  ;;  %v3944_v63 = vld [vmem:[%s16465_s8 + $0x40] sm:$0xff] }
 0x732   : > { %v11072_v40 = vpack.c.bf16 %v3945_v49, %v3944_v63  ;;  %v3947_v5 = vld [vmem:[%s16465_s8 + $0x58] sm:$0xff]  ;;  %v9143_v63 = vld [vmem:[%s16462_s5 + $0x188] sm:$0xff] }
 0x733   : > { %10950 = vmatprep.subr.bf16.mxu1 %v10949_v0  ;;  %v9145_v49 = vld [vmem:[%s16462_s5 + $0x198] sm:$0xff] }
 0x734   : > { %v3250_v50 = vpop.f32.mrb[20].mxu0  ;;  %10952 = vmatpush3.bf16.msra.mxu1 %v10949_v0  ;;  %v3946_v0 = vld [vmem:[%s16465_s8 + $0x50] sm:$0xff]  ;;  %11073 = vmatpush1.bf16.msra.mxu0 %v11072_v40  ;;  %v3365_v40 = vld [vmem:[%s16462_s5 + $0xa0] sm:$0xf] }
 0x735   : > { %v3252_v51 = vpop.f32.mrb[21].mxu0  ;;  %11074 = vmatprep.subr.bf16.mxu0 %v12114_v15 }
 0x736   : > { %v3948_v51 = vld [vmem:[%s16465_s8 + $0x60] sm:$0xff] }
 0x737   : > { %v11078_v1 = vpack.c.bf16 %v3949_v28, %v3948_v51  ;;  %v9142_v51 = vld [vmem:[%s16462_s5 + $0x180] sm:$0xff]  ;;  %v9144_v28 = vld [vmem:[%s16462_s5 + $0x190] sm:$0xff] }
 0x738   : > { %v3255_v2 = vpop.f32.mrb[22].mxu0 }
 0x739   : > { %v10953_v59 = vpack.c.bf16 %v3255_v2, %v3250_v50  ;;  %v3257_v8 = vpop.f32.mrb[23].mxu0  ;;  %v11075_v50 = vpack.c.bf16 %v3947_v5, %v3946_v0  ;;  %v3950_v2 = vld [vmem:[%s16465_s8 + $0x70] sm:$0xff]  ;;  %v10999_v0 = vpack.c.bf16 %v9141_v38, %v9139_v61  ;;  %v11001_v5 = vpack.c.bf16 %v9140_v62, %v9138_v41  ;;  %v9178_v62 = vld [vmem:[%s16462_s5 + $0x280] sm:$0xff] }
 0x73a   : > { %v9176_v41 = vld [vmem:[%s16462_s5 + $0x270] sm:$0xff] }
 0x73b   : > { %10955 = vmatprep.subr.msk.bf16.mxu1 %vm12569_vm8, %v10953_v59  ;;  %11076 = vmatpush1.bf16.msra.mxu0 %v11075_v50  ;;  %v11003_v50 = vpack.c.bf16 %v9145_v49, %v9143_v63  ;;  %v9181_v63 = vld [vmem:[%s16462_s5 + $0x298] sm:$0xff]  ;;  %v11033_v49 = vpack.c.bf16 %v9178_v62, %v9176_v41  ;;  %v9273_v41 = vld [vmem:[%s16458_s1 + $0x60] sm:$0xff]  ;;  %v9275_v62 = vld [vmem:[%s16458_s1 + $0x70] sm:$0xff] }
 0x73c   : > { %10958 = vmatpush3.bf16.msk.msra.mxu1 %vm12569_vm8, %v10953_v59  ;;  %11077 = vmatprep.subr.bf16.mxu0 %v12114_v15  ;;  %v3951_v59 = vld [vmem:[%s16465_s8 + $0x78] sm:$0xff] }
 0x73d   : > { %10960 = vmatprep.subr.bf16.mxu1 %v10959_v9  ;;  %v11081_v8 = vpack.c.bf16 %v3951_v59, %v3950_v2  ;;  %v3345_v9 = vld [vmem:[%s16462_s5] sm:$0xff]  ;;  %v9149_v2 = vld [vmem:[%s16462_s5 + $0x1b8] sm:$0xff]  ;;  %v11005_v59 = vpack.c.bf16 %v9144_v28, %v9142_v51  ;;  %v9191_v28 = vld [vmem:[%s16462_s5 + $0x2c8] sm:$0xff] }
 0x73e   : > { %v10981_v44 = vpack.c.bf16 %v3347_v10, %v3345_v9  ;;  %v9146_v9 = vld [vmem:[%s16462_s5 + $0x1a0] sm:$0xff]  ;;  %v9148_v10 = vld [vmem:[%s16462_s5 + $0x1b0] sm:$0xff]  ;;  %v9185_v51 = vld [vmem:[%s16462_s5 + $0x2b8] sm:$0xf] }
 0x73f   : > { %10142 = vmatmul.mubr.msk.f32.vlgmr.msra.gmra.mrb[22].mxu1 %vm1241_vm6, %v3260_v12  ;;  %11079 = vmatpush1.bf16.msra.mxu0 %v11078_v1  ;;  %v3352_v12 = vld [vmem:[%s16462_s5 + $0x38] sm:$0xff]  ;;  %v9147_v1 = vld [vmem:[%s16462_s5 + $0x1a8] sm:$0xff] }
 0x740   : > { %10962 = vmatpush1.bf16.msra.mxu1 %v10961_v13  ;;  %3468 = vmatprep.mubr.f32.mxu1 %v12113_v7  ;;  %v10983_v60 = vpack.c.bf16 %v3352_v12, %v3350_v11  ;;  %v9153_v11 = vld [vmem:[%s16462_s5 + $0x1d8] sm:$0xff]  ;;  %v11009_v12 = vpack.c.bf16 %v9148_v10, %v9146_v9  ;;  %v9184_v10 = vld [vmem:[%s16462_s5 + $0x2b0] sm:$0xf] }
 0x741   : > { %10964 = vmatprep.subr.bf16.mxu1 %v10963_v33  ;;  %11080 = vmatprep.subr.bf16.mxu0 %v12114_v15  ;;  %v9197_v9 = vld [vmem:[%s16462_s5 + $0x2f8] sm:$0xff] }
 0x743   : > { %11082 = vmatpush1.bf16.msra.mxu0 %v11081_v8  ;;  %v11007_v8 = vpack.c.bf16 %v9149_v2, %v9147_v1  ;;  %v9193_v1 = vld [vmem:[%s16462_s5 + $0x2d8] sm:$0xff]  ;;  %v9190_v2 = vld [vmem:[%s16462_s5 + $0x2c0] sm:$0xff] }
 0x744   : > { %10966 = vmatpush1.bf16.msra.mxu1 %v10965_v23  ;;  %11083 = vmatprep.subr.bf16.mxu0 %v12114_v15 }
 0x745   : > { %10968 = vmatprep.subr.bf16.mxu1 %v10967_v18 }
 0x748   : > { %10970 = vmatpush1.bf16.msra.mxu1 %v10969_v20 }
 0x749   : > { %10972 = vmatprep.subr.bf16.mxu1 %v10971_v24  ;;  %v3354_v24 = vld [vmem:[%s16462_s5 + $0x48] sm:$0xff] }
 0x74c   : > { %10974 = vmatpush1.bf16.msra.mxu1 %v10973_v4  ;;  %v10985_v4 = vpack.c.bf16 %v3351_v19, %v3349_v6  ;;  %v9154_v6 = vld [vmem:[%s16462_s5 + $0x1e0] sm:$0xff]  ;;  %v9156_v19 = vld [vmem:[%s16462_s5 + $0x1f0] sm:$0xff] }
 0x74d   : > { %10976 = vmatprep.subr.bf16.mxu1 %v10975_v30  ;;  %v10987_v30 = vpack.c.bf16 %v3356_v25, %v3354_v24  ;;  %v9159_v24 = vld [vmem:[%s16462_s5 + $0x208] sm:$0xf]  ;;  %v9165_v25 = vld [vmem:[%s16462_s5 + $0x218] sm:$0xff] }
 0x750   : > { %10978 = vmatpush1.bf16.msra.mxu1 %v10977_v42  ;;  %v3358_v42 = vld [vmem:[%s16462_s5 + $0x68] sm:$0xff] }
 0x751   : > { %9130 = vmatprep.subr.msk.mxu1 %vm979_vm2, %v9129_v43  ;;  %v3360_v43 = vld [vmem:[%s16462_s5 + $0x78] sm:$0xff] }
 0x752   : > { %v10991_v47 = vpack.c.bf16 %v3360_v43, %v3358_v42  ;;  %v9171_v42 = vld [vmem:[%s16462_s5 + $0x248] sm:$0xff]  ;;  %v9158_v43 = vld [vmem:[%s16462_s5 + $0x200] sm:$0xf] }
 0x754   : > { %9131 = vmatpush1.msk.msra.mxu1 %vm979_vm2, %v9128_v52  ;;  %v3357_v52 = vld [vmem:[%s16462_s5 + $0x60] sm:$0xff] }
 0x755   : > { %10980 = vmatprep.subr.bf16.mxu1 %v10979_v53  ;;  %v3359_v53 = vld [vmem:[%s16462_s5 + $0x70] sm:$0xff] }
 0x756   : > { %v10993_v37 = vpack.c.bf16 %v3359_v53, %v3357_v52  ;;  %v11023_v52 = vpack.c.bf16 %v9171_v42, %v9169_v32  ;;  %v9168_v53 = vld [vmem:[%s16462_s5 + $0x230] sm:$0xff]  ;;  %v9206_v42 = vld [vmem:[%s16462_s5 + $0x340] sm:$0xff] }
 0x812   : > { %v13732_v35 = vpop.f32.mrb[22].mxu1 }
 0x813   : > { %v3392_v13 = vrot.slane %v13732_v35, 1  ;;  %v3591_v33 = vrot.slane %v13732_v35, 2  ;;  %v3707_v34 = vrot.slane %v13732_v35, 3  ;;  %v3823_v14 = vrot.slane %v13732_v35, 4  ;;  %v3336_v16 = vpop.f32.mrb[23].mxu1 }
 0x814   : > { %v3391_v17 = vrot.slane %v3336_v16, 1  ;;  %v3590_v23 = vrot.slane %v3336_v16, 2  ;;  %v3706_v18 = vrot.slane %v3336_v16, 3  ;;  %v3822_v55 = vrot.slane %v3336_v16, 4 }
 0x816   : > { %v3393_v20 = vsel %vm523_vm0, %v3391_v17, %v3392_v13  ;;  %v13761_v26 = vsel %vm735_vm3, %v3590_v23, %v3591_v33  ;;  %v13766_v27 = vsel %vm857_vm4, %v3706_v18, %v3707_v34  ;;  %v13771_v29 = vsel %vm979_vm2, %v3822_v55, %v3823_v14  ;;  %v9152_v17 = vld [vmem:[%s16462_s5 + $0x1d0] sm:$0xff]  ;;  %v9155_v23 = vld [vmem:[%s16462_s5 + $0x1e8] sm:$0xff]  ;;  %v9157_v18 = vld [vmem:[%s16462_s5 + $0x1f8] sm:$0xff] }
 0x817   : > { %9132 = vmatmul.mubr.msk.f32.vlgmr.msra.gmra.mrb[24].mxu1 %vm1376_vm9, %v3393_v20  ;;  %v11017_v20 = vpack.c.bf16 %v9156_v19, %v9154_v6  ;;  %v9200_v6 = vld [vmem:[%s16462_s5 + $0x310] sm:$0xff]  ;;  %v9203_v19 = vld [vmem:[%s16462_s5 + $0x328] sm:$0xff] }
 0x818   : > { %10982 = vmatpush1.bf16.msra.mxu1 %v10981_v44  ;;  %3474 = vmatprep.mubr.f32.mxu1 %v12113_v7  ;;  %v9151_v44 = vld [vmem:[%s16462_s5 + $0x1c8] sm:$0xff] }
 0x819   : > { %10984 = vmatprep.subr.bf16.mxu1 %v10983_v60  ;;  %v11015_v60 = vpack.c.bf16 %v9157_v18, %v9155_v23  ;;  %v9201_v23 = vld [vmem:[%s16462_s5 + $0x318] sm:$0xff] }
 0x81b   : > { %9133 = vmatmul.mubr.msk.f32.gmra.mrb[26].mxu1 %vm1376_vm9, %v3392_v13  ;;  %v11011_v13 = vpack.c.bf16 %v9153_v11, %v9151_v44  ;;  %v11039_v44 = vpack.c.bf16 %v9193_v1, %v9191_v28 }
 0x81c   : > { %10986 = vmatpush1.bf16.msra.mxu1 %v10985_v4  ;;  %3555 = vmatprep.mubr.f32.mxu1 %v12113_v7  ;;  %v9167_v4 = vld [vmem:[%s16462_s5 + $0x228] sm:$0xff] }
 0x81d   : > { %10988 = vmatprep.subr.bf16.mxu1 %v10987_v30  ;;  %v9164_v30 = vld [vmem:[%s16462_s5 + $0x210] sm:$0xff] }
 0x820   : > { %10990 = vmatpush1.bf16.msra.mxu1 %v10989_v46  ;;  %v11019_v46 = vpack.c.bf16 %v9167_v4, %v9165_v25  ;;  %v9202_v25 = vld [vmem:[%s16462_s5 + $0x320] sm:$0xff]  ;;  %v9204_v4 = vld [vmem:[%s16462_s5 + $0x330] sm:$0xff] }
 0x821   : > { %10992 = vmatprep.subr.bf16.mxu1 %v10991_v47  ;;  %v11021_v47 = vpack.c.bf16 %v9166_v31, %v9164_v30  ;;  %v9207_v30 = vld [vmem:[%s16462_s5 + $0x348] sm:$0xff]  ;;  %v11053_v31 = vpack.c.bf16 %v9204_v4, %v9202_v25  ;;  %v4540_v25 = vld [vmem:[%s16458_s1 + $0x10] sm:$0xff] }
 0x824   : > { %10994 = vmatpush1.bf16.msra.mxu1 %v10993_v37  ;;  %v9175_v37 = vld [vmem:[%s16462_s5 + $0x268] sm:$0xff] }
 0x825   : > { %10996 = vmatprep.subr.bf16.mxu1 %v10995_v21  ;;  %v11025_v21 = vpack.c.bf16 %v9170_v54, %v9168_v53  ;;  %v11027_v22 = vpack.c.bf16 %v9175_v37, %v9173_v58  ;;  %v3952_v53 = vld [vmem:[%s16465_s8 + $0x80] sm:$0xff]  ;;  %v3953_v54 = vld [vmem:[%s16465_s8 + $0x88] sm:$0xff] }
 0x826   : > { %v11084_v58 = vpack.c.bf16 %v3953_v54, %v3952_v53  ;;  %v9270_v37 = vld [vmem:[%s16458_s1 + $0x48] sm:$0xff]  ;;  %v9285_v53 = vld [vmem:[%s16458_s1 + $0x80] sm:$0xff] }
 0x828   : > { %10998 = vmatpush1.bf16.msra.mxu1 %v10997_v56  ;;  %v9174_v56 = vld [vmem:[%s16462_s5 + $0x260] sm:$0xff]  ;;  %11085 = vmatpush1.bf16.msra.mxu0 %v11084_v58  ;;  %v9287_v58 = vld [vmem:[%s16458_s1 + $0x90] sm:$0xff] }
 0x829   : > { %9134 = vmatprep.subr.msk.mxu1 %vm979_vm2, %v3366_v39  ;;  %v9177_v39 = vld [vmem:[%s16462_s5 + $0x278] sm:$0xff]  ;;  %v11029_v61 = vpack.c.bf16 %v9174_v56, %v9172_v36  ;;  %11086 = vmatprep.subr.bf16.mxu0 %v12114_v15  ;;  %v9271_v56 = vld [vmem:[%s16458_s1 + $0x50] sm:$0xff] }
 0x82c   : > { %9135 = vmatpush1.msk.msra.mxu1 %vm979_vm2, %v3365_v40 }
 0x82d   : > { %9136 = vmatmul.mubr.msk.f32.vlgmr.msra.gmra.mrb[24].mxu1 %vm1376_vm9, %v3336_v16  ;;  %11000 = vmatprep.subr.bf16.mxu1 %v10999_v0  ;;  %v9150_v16 = vld [vmem:[%s16462_s5 + $0x1c0] sm:$0xff]  ;;  %v9180_v0 = vld [vmem:[%s16462_s5 + $0x290] sm:$0xff] }
 0x82e   : > { %11002 = vmatpush1.bf16.msra.mxu1 %v11001_v5  ;;  %3561 = vmatprep.mubr.f32.mxu1 %v12113_v7  ;;  %v11013_v55 = vpack.c.bf16 %v9152_v17, %v9150_v16  ;;  %v9182_v5 = vld [vmem:[%s16462_s5 + $0x2a0] sm:$0xff]  ;;  %v9196_v16 = vld [vmem:[%s16462_s5 + $0x2f0] sm:$0xff]  ;;  %v9199_v17 = vld [vmem:[%s16462_s5 + $0x308] sm:$0xff] }
 0x82f   : > { %11004 = vmatprep.subr.bf16.mxu1 %v11003_v50  ;;  %v11037_v50 = vpack.c.bf16 %v9182_v5, %v9180_v0 }
 0x831   : > { %9137 = vmatmul.mubr.msk.f32.gmra.mrb[26].mxu1 %vm1376_vm9, %v13732_v35  ;;  %v3954_v35 = vld [vmem:[%s16465_s8 + $0x90] sm:$0xff] }
 0x832   : > { %11006 = vmatpush1.bf16.msra.mxu1 %v11005_v59  ;;  %3667 = vmatprep.mubr.f32.mxu1 %v12113_v7  ;;  %v9192_v59 = vld [vmem:[%s16462_s5 + $0x2d0] sm:$0xff] }
 0x833   : > { %11008 = vmatprep.subr.bf16.mxu1 %v11007_v8  ;;  %v9195_v8 = vld [vmem:[%s16462_s5 + $0x2e8] sm:$0xff]  ;;  %v11041_v11 = vpack.c.bf16 %v9192_v59, %v9190_v2 }
 0x836   : > { %11010 = vmatpush1.bf16.msra.mxu1 %v11009_v12  ;;  %v11043_v12 = vpack.c.bf16 %v9197_v9, %v9195_v8 }
 0x837   : > { %11012 = vmatprep.subr.bf16.mxu1 %v11011_v13  ;;  %v9194_v13 = vld [vmem:[%s16462_s5 + $0x2e0] sm:$0xff] }
 0x838   : > { %v11045_v18 = vpack.c.bf16 %v9196_v16, %v9194_v13 }
 0x83a   : > { %11014 = vmatpush1.bf16.msra.mxu1 %v11013_v55  ;;  %v11047_v55 = vpack.c.bf16 %v9201_v23, %v9199_v17  ;;  %v14104_v23 = vld [vmem:[%s12288_s29 + $0x50] sm:$0xff] }
 0x83b   : > { %11016 = vmatprep.subr.bf16.mxu1 %v11015_v60  ;;  %v9198_v60 = vld [vmem:[%s16462_s5 + $0x300] sm:$0xff] }
 0x83e   : > { %11018 = vmatpush1.bf16.msra.mxu1 %v11017_v20  ;;  %v11049_v20 = vpack.c.bf16 %v9200_v6, %v9198_v60  ;;  %v14110_v60 = vld [vmem:[%s12288_s29 + $0x58] sm:$0xff] }
 0x83f   : > { %9160 = vmatprep.subr.msk.mxu1 %vm979_vm2, %v9159_v24  ;;  %v4563_v6 = vrot.slane %v14110_v60, 1 }
 0x842   : > { %9161 = vmatpush1.msk.msra.mxu1 %vm979_vm2, %v9158_v43  ;;  %v9208_v43 = vld [vmem:[%s16462_s5 + $0x350] sm:$0xff] }
 0x843   : > { %9162 = vmatmul.mubr.msk.f32.vlgmr.msra.gmra.mrb[24].mxu1 %vm1376_vm9, %v13761_v26  ;;  %11020 = vmatprep.subr.bf16.mxu1 %v11019_v46  ;;  %v9179_v26 = vld [vmem:[%s16462_s5 + $0x288] sm:$0xff]  ;;  %v11057_v46 = vpack.c.bf16 %v9208_v43, %v9206_v42  ;;  %v4542_v42 = vld [vmem:[%s16458_s1 + $0x20] sm:$0xff]  ;;  %v4544_v43 = vld [vmem:[%s16458_s1 + $0x30] sm:$0xff] }
 0x844   : > { %11022 = vmatpush1.bf16.msra.mxu1 %v11021_v47  ;;  %3673 = vmatprep.mubr.f32.mxu1 %v12113_v7  ;;  %v11031_v38 = vpack.c.bf16 %v9179_v26, %v9177_v39  ;;  %v9211_v47 = vld [vmem:[%s16462_s5 + $0x368] sm:$0xf]  ;;  %v9276_v26 = vld [vmem:[%s16458_s1 + $0x78] sm:$0xff] }
 0x845   : > { %11024 = vmatprep.subr.bf16.mxu1 %v11023_v52  ;;  %v9210_v52 = vld [vmem:[%s16462_s5 + $0x360] sm:$0xf]  ;;  %v9274_v39 = vld [vmem:[%s16458_s1 + $0x68] sm:$0xff] }
 0x847   : > { %9163 = vmatmul.mubr.msk.f32.gmra.mrb[26].mxu1 %vm1376_vm9, %v3591_v33  ;;  %v9183_v33 = vld [vmem:[%s16462_s5 + $0x2a8] sm:$0xff] }
 0x848   : > { %11026 = vmatpush1.bf16.msra.mxu1 %v11025_v21  ;;  %3783 = vmatprep.mubr.f32.mxu1 %v12113_v7  ;;  %v11035_v40 = vpack.c.bf16 %v9183_v33, %v9181_v63  ;;  %v9272_v21 = vld [vmem:[%s16458_s1 + $0x58] sm:$0xff]  ;;  %v14084_v63 = vld [vmem:[%s12288_s29 + $0x40] sm:$0xff]  ;;  %v14087_v33 = vld [vmem:[%s12288_s29 + $0x48] sm:$0xff] }
 0x849   : > { %11028 = vmatprep.subr.bf16.mxu1 %v11027_v22  ;;  %v9269_v22 = vld [vmem:[%s16458_s1 + $0x40] sm:$0xff]  ;;  %v11168_v36 = vpack.c.bf16 %v9272_v21, %v9270_v37  ;;  %v4559_v0 = vrot.slane %v14087_v33, 1 }
 0x84a   : > { %v9289_v21 = vld [vmem:[%s16458_s1 + $0xa0] sm:$0xff] }
 0x84c   : > { %11030 = vmatpush1.bf16.msra.mxu1 %v11029_v61  ;;  %v11170_v61 = vpack.c.bf16 %v9271_v56, %v9269_v22  ;;  %v9291_v22 = vld [vmem:[%s16458_s1 + $0xb0] sm:$0xff]  ;;  %v9300_v56 = vld [vmem:[%s16458_s1 + $0xd8] sm:$0xff] }
 0x84d   : > { %11032 = vmatprep.subr.bf16.mxu1 %v11031_v38  ;;  %v11172_v38 = vpack.c.bf16 %v9276_v26, %v9274_v39  ;;  %v11190_v39 = vpack.c.bf16 %v9291_v22, %v9289_v21  ;;  %v9223_v21 = vld [vmem:[%s16466_s9 + $0x68] sm:$0xff] }
 0x850   : > { %11034 = vmatpush1.bf16.msra.mxu1 %v11033_v49  ;;  %v11174_v49 = vpack.c.bf16 %v9275_v62, %v9273_v41  ;;  %v4767_v62 = vrot.slane %v14084_v63, 2 }
 0x851   : > { %11036 = vmatprep.subr.bf16.mxu1 %v11035_v40  ;;  %v4558_v40 = vrot.slane %v14084_v63, 1 }
 0x853   : > { %v4560_v5 = vsel %vm523_vm0, %v4558_v40, %v4559_v0  ;;  %v9297_v40 = vld [vmem:[%s16458_s1 + $0xc0] sm:$0xff] }
 0x854   : > { %11038 = vmatpush1.bf16.msra.mxu1 %v11037_v50  ;;  %v3916_v50 = vld [vmem:[%s16463_s6] sm:$0x3] }
 0x855   : > { %9186 = vmatprep.subr.msk.mxu1 %vm979_vm2, %v9185_v51  ;;  %v3921_v51 = vrot.slane %v3916_v50, %v12544_v45  ;;  %v3925_v28 = vrot.slane %v3916_v50, %v12549_v3  ;;  %v9304_v50 = vld [vmem:[%s16458_s1 + $0xf8] sm:$0xff] }
 0x858   : > { %9187 = vmatpush1.msk.msra.mxu1 %vm979_vm2, %v9184_v10 }
 0x859   : > { %9188 = vmatmul.mubr.msk.f32.vlgmr.msra.gmra.mrb[24].mxu1 %vm1376_vm9, %v13766_v27  ;;  %11040 = vmatprep.subr.bf16.mxu1 %v11039_v44  ;;  %v9205_v27 = vld [vmem:[%s16462_s5 + $0x338] sm:$0xff] }
 0x85a   : > { %11042 = vmatpush1.bf16.msra.mxu1 %v11041_v11  ;;  %3789 = vmatprep.mubr.f32.mxu1 %v12113_v7  ;;  %v11051_v24 = vpack.c.bf16 %v9205_v27, %v9203_v19  ;;  %v4539_v19 = vld [vmem:[%s16458_s1 + $0x8] sm:$0xff]  ;;  %v4541_v27 = vld [vmem:[%s16458_s1 + $0x18] sm:$0xff] }
 0x85b   : > { %11044 = vmatprep.subr.bf16.mxu1 %v11043_v12 }
 0x85d   : > { %9189 = vmatmul.mubr.msk.f32.gmra.mrb[26].mxu1 %vm1376_vm9, %v3707_v34  ;;  %v9209_v34 = vld [vmem:[%s16462_s5 + $0x358] sm:$0xff] }
 0x85e   : > { %11046 = vmatpush1.bf16.msra.mxu1 %v11045_v18  ;;  %3899 = vmatprep.mubr.f32.mxu1 %v12113_v7  ;;  %v11055_v32 = vpack.c.bf16 %v9209_v34, %v9207_v30  ;;  %v4561_v18 = vrot.slane %v14104_v23, 1  ;;  %v4543_v34 = vld [vmem:[%s16458_s1 + $0x28] sm:$0xff] }
 0x85f   : > { %11048 = vmatprep.subr.bf16.mxu1 %v11047_v55 }
 0x860   : > { %v4562_v55 = vsel %vm523_vm0, %v4559_v0, %v4561_v18  ;;  %v4564_v4 = vsel %vm523_vm0, %v4561_v18, %v4563_v6  ;;  %v9299_v0 = vld [vmem:[%s16458_s1 + $0xd0] sm:$0xff]  ;;  %v4888_v18 = vrot.slane %v14087_v33, 3 }
 0x862   : > { %11050 = vmatpush1.bf16.msra.mxu1 %v11049_v20  ;;  %v11176_v20 = vpack.c.bf16 %v4541_v27, %v4539_v19  ;;  %v9314_v19 = vld [vmem:[%s16458_s1 + $0x128] sm:$0xff]  ;;  %v9316_v27 = vld [vmem:[%s16458_s1 + $0x138] sm:$0xff] }
 0x863   : > { %11052 = vmatprep.subr.bf16.mxu1 %v11051_v24  ;;  %v4538_v24 = vld [vmem:[%s16458_s1] sm:$0xff] }
 0x864   : > { %v11178_v30 = vpack.c.bf16 %v4540_v25, %v4538_v24  ;;  %v4890_v24 = vrot.slane %v14104_v23, 3 }
 0x866   : > { %11054 = vmatpush1.bf16.msra.mxu1 %v11053_v31  ;;  %v4545_v31 = vld [vmem:[%s16458_s1 + $0x38] sm:$0xff] }
 0x867   : > { %11056 = vmatprep.subr.bf16.mxu1 %v11055_v32  ;;  %v11180_v32 = vpack.c.bf16 %v4545_v31, %v4543_v34  ;;  %v9315_v34 = vld [vmem:[%s16458_s1 + $0x130] sm:$0xff]  ;;  %v4891_v31 = vsel %vm857_vm4, %v4888_v18, %v4890_v24 }
 0x86a   : > { %11058 = vmatpush1.bf16.msra.mxu1 %v11057_v46  ;;  %v11182_v46 = vpack.c.bf16 %v4544_v43, %v4542_v42 }
 0x86b   : > { %9212 = vmatprep.subr.msk.mxu1 %vm979_vm2, %v9211_v47  ;;  %v9286_v47 = vld [vmem:[%s16458_s1 + $0x88] sm:$0xff] }
 0x86e   : > { %9213 = vmatpush1.msk.msra.mxu1 %vm979_vm2, %v9210_v52  ;;  %v9288_v52 = vld [vmem:[%s16458_s1 + $0x98] sm:$0xff] }
 0x86f   : > { %9214 = vmatmul.mubr.msk.f32.vlgmr.msra.gmra.mrb[24].mxu1 %vm1376_vm9, %v13771_v29  ;;  %11169 = vmatprep.subr.bf16.mxu1 %v11168_v36  ;;  %v11184_v54 = vpack.c.bf16 %v9288_v52, %v9286_v47  ;;  %v9298_v36 = vld [vmem:[%s16458_s1 + $0xc8] sm:$0xff]  ;;  %v5008_v47 = vrot.slane %v14087_v33, 4 }
 0x870   : > { %3905 = vmatprep.mubr.f32.mxu1 %v12113_v7  ;;  %11171 = vmatpush1.bf16.msra.mxu1 %v11170_v61  ;;  %v11192_v26 = vpack.c.bf16 %v9300_v56, %v9298_v36  ;;  %v5010_v61 = vrot.slane %v14104_v23, 4  ;;  %v9224_v36 = vld [vmem:[%s16466_s9 + $0x70] sm:$0xff]  ;;  %v9225_v56 = vld [vmem:[%s16466_s9 + $0x78] sm:$0xff] }
 0x871   : > { %11173 = vmatprep.subr.bf16.mxu1 %v11172_v38  ;;  %v5012_v38 = vrot.slane %v14110_v60, 4 }
 0x873   : > { %9215 = vmatmul.mubr.msk.f32.gmra.mrb[26].mxu1 %vm1376_vm9, %v3823_v14  ;;  %v3955_v14 = vld [vmem:[%s16465_s8 + $0x98] sm:$0xff]  ;;  %v14185_v41 = vsel %vm979_vm2, %v5010_v61, %v5012_v38 }
 0x874   : > { %4637 = vmatprep.mubr.f32.mxu1 %v12113_v7  ;;  %v11087_v29 = vpack.c.bf16 %v3955_v14, %v3954_v35  ;;  %11175 = vmatpush1.bf16.msra.mxu1 %v11174_v49  ;;  %v9290_v35 = vld [vmem:[%s16458_s1 + $0xa8] sm:$0xff]  ;;  %v9292_v14 = vld [vmem:[%s16458_s1 + $0xb8] sm:$0xff]  ;;  %v4768_v49 = vrot.slane %v14087_v33, 2 }
 0x875   : > { %11177 = vmatprep.subr.bf16.mxu1 %v11176_v20  ;;  %v11188_v37 = vpack.c.bf16 %v9292_v14, %v9290_v35 }
 0x876   : > { %11088 = vmatpush1.bf16.msra.mxu0 %v11087_v29  ;;  %v11186_v29 = vpack.c.bf16 %v9287_v58, %v9285_v53  ;;  %v5011_v53 = vsel %vm979_vm2, %v5008_v47, %v5010_v61  ;;  %v9221_v58 = vld [vmem:[%s16466_s9 + $0x58] sm:$0xff]  ;;  %v9227_v61 = vld [vmem:[%s16466_s9 + $0x88] sm:$0xff] }
 0x877   : > { %11089 = vmatprep.subr.bf16.mxu0 %v12114_v15  ;;  %9277 = vmatmul.mubr.msk.f32.vlgmr.msra.gmra.mrb[28].mxu1 %vm531_vm1, %v4560_v5  ;;  %v9302_v5 = vld [vmem:[%s16458_s1 + $0xe8] sm:$0xff] }
 0x878   : > { %4643 = vmatprep.mubr.f32.mxu1 %v12113_v7  ;;  %11179 = vmatpush1.bf16.msra.mxu1 %v11178_v30  ;;  %v9313_v30 = vld [vmem:[%s16458_s1 + $0x120] sm:$0xff] }
 0x879   : > { %11181 = vmatprep.subr.bf16.mxu1 %v11180_v32  ;;  %v4892_v32 = vrot.slane %v14110_v60, 3  ;;  %v11206_v42 = vpack.c.bf16 %v9315_v34, %v9313_v30  ;;  %v9233_v30 = vld [vmem:[%s16466_s9 + $0xa8] sm:$0xff] }
 0x87b   : > { %9278 = vmatmul.mubr.msk.f32.gmra.mrb[30].mxu1 %vm531_vm1, %v4562_v55  ;;  %v9309_v55 = vld [vmem:[%s16458_s1 + $0x100] sm:$0xff]  ;;  %v4893_v43 = vsel %vm857_vm4, %v4890_v24, %v4892_v32  ;;  %v4123_v24 = vld [vmem:[%s16466_s9 + $0x48] sm:$0xff] }
 0x87c   : > { %4649 = vmatprep.mubr.f32.mxu1 %v12113_v7  ;;  %11183 = vmatpush1.bf16.msra.mxu1 %v11182_v46  ;;  %v5007_v46 = vrot.slane %v14084_v63, 4 }
 0x87d   : > { %11185 = vmatprep.subr.bf16.mxu1 %v11184_v54 }
 0x87e   : > { %v5009_v52 = vsel %vm979_vm2, %v5007_v46, %v5008_v47  ;;  %v9237_v46 = vld [vmem:[%s16466_s9 + $0xc8] sm:$0xff] }
 0x87f   : > { %9279 = vmatmul.mubr.msk.f32.gmra.mrb[32].mxu1 %vm531_vm1, %v4564_v4  ;;  %v11204_v4 = vpack.c.bf16 %v9316_v27, %v9314_v19  ;;  %v4121_v19 = vld [vmem:[%s16466_s9 + $0x38] sm:$0xff] }
 0x880   : > { %4655 = vmatprep.mubr.f32.mxu1 %v12113_v7 }
 0x883   : > { %9280 = vmatmul.mubr.msk.f32.gmra.mrb[34].mxu1 %vm531_vm1, %v4563_v6  ;;  %v9311_v6 = vld [vmem:[%s16458_s1 + $0x110] sm:$0xff] }
 0x884   : > { %4734 = vmatprep.mubr.f32.mxu1 %v12113_v7  ;;  %v11202_v25 = vpack.c.bf16 %v9311_v6, %v9309_v55  ;;  %v4120_v6 = vld [vmem:[%s16466_s9 + $0x30] sm:$0xff] }
 0x885   : > { %v11118_v27 = vpack.c.bf16 %v4121_v19, %v4120_v6  ;;  %v5119_v6 = vld [vmem:[%s16459_s2] sm:$0x3] }
 0x887   : > { %9281 = vmatmul.mubr.msk.f32.vlgmr.msra.gmra.mrb[28].mxu1 %vm531_vm1, %v14084_v63 }
 0x888   : > { %4740 = vmatprep.mubr.f32.mxu1 %v12113_v7  ;;  %11187 = vmatpush1.bf16.msra.mxu1 %v11186_v29 }
 0x889   : > { %11189 = vmatprep.subr.bf16.mxu1 %v11188_v37  ;;  %v9222_v37 = vld [vmem:[%s16466_s9 + $0x60] sm:$0xff] }
 0x88a   : > { %v11097_v22 = vpack.c.bf16 %v9223_v21, %v9222_v37  ;;  %v9246_v37 = vld [vmem:[%s16466_s9 + $0x108] sm:$0xff] }
 0x88b   : > { %9282 = vmatmul.mubr.msk.f32.gmra.mrb[30].mxu1 %vm531_vm1, %v14087_v33 }
 0x88c   : > { %4746 = vmatprep.mubr.f32.mxu1 %v12113_v7  ;;  %11191 = vmatpush1.bf16.msra.mxu1 %v11190_v39  ;;  %v11100_v39 = vpack.c.bf16 %v9225_v56, %v9224_v36  ;;  %v9248_v36 = vld [vmem:[%s16466_s9 + $0x118] sm:$0xff] }
 0x88d   : > { %11193 = vmatprep.subr.bf16.mxu1 %v11192_v26  ;;  %v9226_v26 = vld [vmem:[%s16466_s9 + $0x80] sm:$0xff] }
 0x88f   : > { %9283 = vmatmul.mubr.msk.f32.gmra.mrb[32].mxu1 %vm531_vm1, %v14104_v23 }
 0x890   : > { %4752 = vmatprep.mubr.f32.mxu1 %v12113_v7 }
 0x893   : > { %9284 = vmatmul.mubr.msk.f32.gmra.mrb[34].mxu1 %vm531_vm1, %v14110_v60 }
 0x894   : > { %4846 = vmatprep.mubr.f32.mxu1 %v12113_v7 }
 0x942   : > { %v3901_v1 = vpop.f32.mrb[24].mxu1 }
 0x943   : > { %v3928_v2 = vadd.f32 %v3921_v51, %v3901_v1  ;;  %v3903_v59 = vpop.f32.mrb[25].mxu1  ;;  %v11194_v1 = vpack.c.bf16 %v9299_v0, %v9297_v40 }
 0x944   : > { %v3929_v8 = vadd.f32 %v3925_v28, %v3903_v59  ;;  %v9301_v59 = vld [vmem:[%s16458_s1 + $0xe0] sm:$0xff] }
 0x945   : > { %v3932_v44 = vmax.f32 %v3928_v2, 0.0  ;;  %v11196_v2 = vpack.c.bf16 %v9304_v50, %v9302_v5 }
 0x946   : > { %v3933_v9 = vmax.f32 %v3929_v8, 0.0  ;;  %v3907_v10 = vpop.f32.mrb[26].mxu1  ;;  %v9303_v8 = vld [vmem:[%s16458_s1 + $0xf0] sm:$0xff] }
 0x947   : > { %v3930_v11 = vadd.f32 %v3921_v51, %v3907_v10  ;;  %v3909_v12 = vpop.f32.mrb[27].mxu1  ;;  %v4769_v51 = vsel %vm735_vm3, %v4767_v62, %v4768_v49  ;;  %v9312_v10 = vld [vmem:[%s16458_s1 + $0x118] sm:$0xff] }
 0x948   : > { %v3931_v13 = vadd.f32 %v3925_v28, %v3909_v12  ;;  %9216 = vmatprep.mubr.msk.f32.mxu0 %vm531_vm1, %v3933_v9  ;;  %v4770_v28 = vrot.slane %v14104_v23, 2  ;;  %v9310_v9 = vld [vmem:[%s16458_s1 + $0x108] sm:$0xff]  ;;  %9293 = vmatmul.mubr.msk.f32.vlgmr.msra.gmra.mrb[28].mxu1 %vm531_vm1, %v4769_v51  ;;  %v11198_v12 = vpack.c.bf16 %v9303_v8, %v9301_v59  ;;  %v9220_v23 = vld [vmem:[%s16466_s9 + $0x50] sm:$0xff]  ;;  %v9229_v62 = vld [vmem:[%s16466_s9 + $0x98] sm:$0xff] }
 0x949   : > { %4027 = vmatmul.mubr.f32.vlgmr.msra.gmra.mrb[24].mxu0 %v3932_v44  ;;  %v3934_v17 = vmax.f32 %v3930_v11, 0.0  ;;  %4852 = vmatprep.mubr.f32.mxu1 %v12113_v7  ;;  %v4772_v11 = vrot.slane %v14110_v60, 2  ;;  %v4037_v60 = vld [vmem:[%s16464_s7] sm:$0x1f]  ;;  %v11094_v29 = vpack.c.bf16 %v9221_v58, %v9220_v23  ;;  %v4115_v8 = vld [vmem:[%s16466_s9 + $0x8] sm:$0xff]  ;;  %v9243_v58 = vld [vmem:[%s16466_s9 + $0xf0] sm:$0xff] }
 0x94a   : > { %v3935_v16 = vmax.f32 %v3931_v13, 0.0  ;;  %v4771_v44 = vsel %vm735_vm3, %v4768_v49, %v4770_v28  ;;  %11195 = vmatpush1.bf16.msra.mxu1 %v11194_v1  ;;  %v11200_v13 = vpack.c.bf16 %v9312_v10, %v9310_v9  ;;  %v4114_v59 = vld [vmem:[%s16466_s9] sm:$0xff] }
 0x94b   : > { %11197 = vmatprep.subr.bf16.mxu1 %v11196_v2  ;;  %v11109_v10 = vpack.c.bf16 %v4115_v8, %v4114_v59  ;;  %v9255_v59 = vld [vmem:[%s16466_s9 + $0x148] sm:$0xff] }
 0x94c   : > { %9217 = vmatprep.mubr.msk.f32.mxu0 %vm531_vm1, %v3935_v16  ;;  %9294 = vmatmul.mubr.msk.f32.gmra.mrb[30].mxu1 %vm531_vm1, %v4771_v44  ;;  %v4773_v16 = vsel %vm735_vm3, %v4770_v28, %v4772_v11 }
 0x94d   : > { %4032 = vmatmul.mubr.f32.gmra.mrb[26].mxu0 %v3934_v17  ;;  %4858 = vmatprep.mubr.f32.mxu1 %v12113_v7  ;;  %v4887_v17 = vrot.slane %v14084_v63, 3 }
 0x94e   : > { %10148 = vmatprep.mubr.msk.f32.mxu0 %vm12116_vm10, %v12113_v7  ;;  %11199 = vmatpush1.bf16.msra.mxu1 %v11198_v12  ;;  %v4116_v12 = vld [vmem:[%s16466_s9 + $0x10] sm:$0xff] }
 0x94f   : > { %11201 = vmatprep.subr.bf16.mxu1 %v11200_v13  ;;  %v4889_v20 = vsel %vm857_vm4, %v4887_v17, %v4888_v18  ;;  %v4117_v13 = vld [vmem:[%s16466_s9 + $0x18] sm:$0xff]  ;;  %v4118_v17 = vld [vmem:[%s16466_s9 + $0x20] sm:$0xff]  ;;  %v4119_v18 = vld [vmem:[%s16466_s9 + $0x28] sm:$0xff] }
 0x950   : > { %9295 = vmatmul.mubr.msk.f32.gmra.mrb[32].mxu1 %vm531_vm1, %v4773_v16  ;;  %v11112_v16 = vpack.c.bf16 %v4117_v13, %v4116_v12  ;;  %v11115_v55 = vpack.c.bf16 %v4119_v18, %v4118_v17  ;;  %v9258_v13 = vld [vmem:[%s16466_s9 + $0x160] sm:$0xff]  ;;  %v9260_v18 = vld [vmem:[%s16466_s9 + $0x170] sm:$0xff] }
 0x951   : > { %4864 = vmatprep.mubr.f32.mxu1 %v12113_v7 }
 0x954   : > { %9296 = vmatmul.mubr.msk.f32.gmra.mrb[34].mxu1 %vm531_vm1, %v4772_v11 }
 0x955   : > { %4966 = vmatprep.mubr.f32.mxu1 %v12113_v7 }
 0x958   : > { %9305 = vmatmul.mubr.msk.f32.vlgmr.msra.gmra.mrb[28].mxu1 %vm531_vm1, %v4889_v20  ;;  %v4122_v20 = vld [vmem:[%s16466_s9 + $0x40] sm:$0xff] }
 0x959   : > { %4972 = vmatprep.mubr.f32.mxu1 %v12113_v7  ;;  %11203 = vmatpush1.bf16.msra.mxu1 %v11202_v25  ;;  %v11121_v25 = vpack.c.bf16 %v4123_v24, %v4122_v20  ;;  %v9263_v20 = vld [vmem:[%s16466_s9 + $0x188] sm:$0xff]  ;;  %v14502_v24 = vrot.slane %v5119_v6, %v12549_v3 }
 0x95a   : > { %11205 = vmatprep.subr.bf16.mxu1 %v11204_v4  ;;  %v9232_v4 = vld [vmem:[%s16466_s9 + $0xa0] sm:$0xff] }
 0x95b   : > { %v11124_v34 = vpack.c.bf16 %v9233_v30, %v9232_v4  ;;  %v5147_v4 = vld [vmem:[%s16461_s4] sm:$0xff]  ;;  %v5148_v30 = vld [vmem:[%s16461_s4 + $0x8] sm:$0xff] }
 0x95c   : > { %9306 = vmatmul.mubr.msk.f32.gmra.mrb[30].mxu1 %vm531_vm1, %v4891_v31  ;;  %v9234_v31 = vld [vmem:[%s16466_s9 + $0xb0] sm:$0xff] }
 0x95d   : > { %4978 = vmatprep.mubr.f32.mxu1 %v12113_v7  ;;  %11207 = vmatpush1.bf16.msra.mxu1 %v11206_v42 }
 0x960   : > { %9307 = vmatmul.mubr.msk.f32.gmra.mrb[32].mxu1 %vm531_vm1, %v4893_v43  ;;  %v9236_v43 = vld [vmem:[%s16466_s9 + $0xc0] sm:$0xff] }
 0x961   : > { %4984 = vmatprep.mubr.f32.mxu1 %v12113_v7  ;;  %v11130_v47 = vpack.c.bf16 %v9237_v46, %v9236_v43  ;;  %v5150_v43 = vld [vmem:[%s16461_s4 + $0x18] sm:$0xff] }
 0x964   : > { %9308 = vmatmul.mubr.msk.f32.gmra.mrb[34].mxu1 %vm531_vm1, %v4892_v32  ;;  %v9235_v32 = vld [vmem:[%s16466_s9 + $0xb8] sm:$0xff] }
 0x965   : > { %5086 = vmatprep.mubr.f32.mxu1 %v12113_v7  ;;  %v11127_v42 = vpack.c.bf16 %v9235_v32, %v9234_v31  ;;  %v11209_v31 = vpack.c.bf16 %v5148_v30, %v5147_v4  ;;  %v9332_v30 = vld [vmem:[%s16462_s5 + $0xd0] sm:$0xff] }
 0x968   : > { %9317 = vmatmul.mubr.msk.f32.vlgmr.msra.gmra.mrb[28].mxu1 %vm531_vm1, %v5009_v52  ;;  %v9238_v52 = vld [vmem:[%s16466_s9 + $0xd0] sm:$0xff] }
 0x969   : > { %5092 = vmatprep.mubr.f32.mxu1 %v12113_v7 }
 0x96c   : > { %9318 = vmatmul.mubr.msk.f32.gmra.mrb[30].mxu1 %vm531_vm1, %v5011_v53  ;;  %v9239_v53 = vld [vmem:[%s16466_s9 + $0xd8] sm:$0xff] }
 0x96d   : > { %5098 = vmatprep.mubr.f32.mxu1 %v12113_v7 }
 0x970   : > { %9319 = vmatmul.mubr.msk.f32.gmra.mrb[32].mxu1 %vm531_vm1, %v14185_v41  ;;  %v9228_v41 = vld [vmem:[%s16466_s9 + $0x90] sm:$0xff] }
 0x971   : > { %5104 = vmatprep.mubr.f32.mxu1 %v12113_v7  ;;  %v11106_v49 = vpack.c.bf16 %v9229_v62, %v9228_v41  ;;  %v9252_v41 = vld [vmem:[%s16466_s9 + $0x138] sm:$0xff] }
 0x974   : > { %9320 = vmatmul.mubr.msk.f32.gmra.mrb[34].mxu1 %vm531_vm1, %v5012_v38  ;;  %v11103_v38 = vpack.c.bf16 %v9227_v61, %v9226_v26  ;;  %v9250_v26 = vld [vmem:[%s16466_s9 + $0x128] sm:$0xff] }
 0xa1c   : > { %v4028_v63 = vpop.f32.mrb[24].mxu0 }
 0xa1d   : > { %v4030_v33 = vpop.f32.mrb[25].mxu0 }
 0xa1e   : > { %v9240_v33 = vld [vmem:[%s16466_s9 + $0xe0] sm:$0xff] }
 0xa20   : > { %v4033_v54 = vpop.f32.mrb[26].mxu0 }
 0xa21   : > { %v11090_v35 = vpack.c.bf16 %v4033_v54, %v4028_v63  ;;  %v4035_v14 = vpop.f32.mrb[27].mxu0  ;;  %v11133_v63 = vpack.c.bf16 %v9239_v53, %v9238_v52  ;;  %v9241_v54 = vld [vmem:[%s16466_s9 + $0xe8] sm:$0xff]  ;;  %v5153_v53 = vld [vmem:[%s16461_s4 + $0x30] sm:$0xff] }
 0xa22   : > { %v11136_v23 = vpack.c.bf16 %v9241_v54, %v9240_v33  ;;  %v5155_v54 = vld [vmem:[%s16461_s4 + $0x40] sm:$0xff] }
 0xa23   : > { %11092 = vmatpush3.bf16.msk.msra.mxu0 %vm13262_vm12, %v11090_v35  ;;  %v9244_v35 = vld [vmem:[%s16466_s9 + $0xf8] sm:$0xff] }
 0xa24   : > { %11093 = vmatprep.subr.bf16.mxu0 %v12114_v15  ;;  %v11139_v14 = vpack.c.bf16 %v9244_v35, %v9243_v58  ;;  %v5157_v35 = vld [vmem:[%s16461_s4 + $0x50] sm:$0xff] }
 0xa26   : > { %10149 = vmatmul.mubr.msk.f32.vlgmr.msra.gmra.mrb[28].mxu0 %vm2024_vm13, %v4037_v60 }
 0xa27   : > { %11095 = vmatpush3.bf16.msra.mxu0 %v11094_v29  ;;  %10171 = vmatprep.mubr.msk.f32.mxu0 %vm12116_vm10, %v12113_v7  ;;  %v9245_v29 = vld [vmem:[%s16466_s9 + $0x100] sm:$0xff] }
 0xa28   : > { %11096 = vmatprep.subr.bf16.mxu0 %v12114_v15  ;;  %v11142_v21 = vpack.c.bf16 %v9246_v37, %v9245_v29  ;;  %v5159_v29 = vld [vmem:[%s16461_s4 + $0x60] sm:$0xff]  ;;  %v5160_v37 = vld [vmem:[%s16461_s4 + $0x68] sm:$0xff] }
 0xa2b   : > { %11098 = vmatpush3.bf16.msra.mxu0 %v11097_v22  ;;  %v9247_v22 = vld [vmem:[%s16466_s9 + $0x110] sm:$0xff] }
 0xa2c   : > { %11099 = vmatprep.subr.bf16.mxu0 %v12114_v15  ;;  %v11145_v56 = vpack.c.bf16 %v9248_v36, %v9247_v22  ;;  %v5161_v22 = vld [vmem:[%s16461_s4 + $0x70] sm:$0xff]  ;;  %v5162_v36 = vld [vmem:[%s16461_s4 + $0x78] sm:$0xff] }
 0xa2f   : > { %11101 = vmatpush3.bf16.msra.mxu0 %v11100_v39  ;;  %v9249_v39 = vld [vmem:[%s16466_s9 + $0x120] sm:$0xff] }
 0xa30   : > { %11102 = vmatprep.subr.bf16.mxu0 %v12114_v15  ;;  %v11148_v61 = vpack.c.bf16 %v9250_v26, %v9249_v39  ;;  %v5163_v39 = vld [vmem:[%s16461_s4 + $0x80] sm:$0xff]  ;;  %v5164_v26 = vld [vmem:[%s16461_s4 + $0x88] sm:$0xff] }
 0xa33   : > { %11104 = vmatpush3.bf16.msra.mxu0 %v11103_v38  ;;  %v9251_v38 = vld [vmem:[%s16466_s9 + $0x130] sm:$0xff] }
 0xa34   : > { %11105 = vmatprep.subr.bf16.mxu0 %v12114_v15  ;;  %v11151_v62 = vpack.c.bf16 %v9252_v41, %v9251_v38  ;;  %v5165_v38 = vld [vmem:[%s16461_s4 + $0x90] sm:$0xff]  ;;  %v5166_v41 = vld [vmem:[%s16461_s4 + $0x98] sm:$0xff] }
 0xa37   : > { %11107 = vmatpush3.bf16.msra.mxu0 %v11106_v49  ;;  %v9254_v49 = vld [vmem:[%s16466_s9 + $0x140] sm:$0xff] }
 0xa38   : > { %11108 = vmatprep.subr.bf16.mxu0 %v12114_v15  ;;  %v11154_v8 = vpack.c.bf16 %v9255_v59, %v9254_v49  ;;  %v11236_v49 = vpack.c.bf16 %v5166_v41, %v5165_v38 }
 0xa3b   : > { %v14326_v40 = vpop.f32.mrb[28].mxu1 }
 0xa3c   : > { %v14328_v0 = vpop.f32.mrb[29].mxu1 }
 0xa3f   : > { %v14330_v5 = vpop.f32.mrb[30].mxu1 }
 0xa40   : > { %v14332_v50 = vpop.f32.mrb[31].mxu1 }
 0xa43   : > { %v14334_v51 = vpop.f32.mrb[32].mxu1 }
 0xa44   : > { %v14336_v28 = vpop.f32.mrb[33].mxu1 }
 0xa47   : > { %v14338_v1 = vpop.f32.mrb[34].mxu1 }
 0xa48   : > { %v14340_v2 = vpop.f32.mrb[35].mxu1 }
 0xaf9   : > { %v14348_v9 = vpop.f32.mrb[28].mxu0 }
 0xafa   : > { %v4135_v44 = vrot.slane %v14348_v9, 1  ;;  %v10150_v11 = vpop.f32.mrb[29].mxu0  ;;  %v4290_v60 = vrot.slane %v14348_v9, 2  ;;  %v4458_v32 = vrot.slane %v14348_v9, 4 }
 0xafb   : > { %v9257_v11 = vld [vmem:[%s16466_s9 + $0x158] sm:$0xff] }
 0xafc   : > { %10172 = vmatmul.mubr.msk.f32.vlgmr.msra.gmra.mrb[30].mxu0 %vm2125_vm14, %v4135_v44  ;;  %v9256_v44 = vld [vmem:[%s16466_s9 + $0x150] sm:$0xff] }
 0xafd   : > { %11110 = vmatpush3.bf16.msra.mxu0 %v11109_v10  ;;  %10194 = vmatprep.mubr.msk.f32.mxu0 %vm12116_vm10, %v12113_v7  ;;  %v4374_v10 = vrot.slane %v14348_v9, 3  ;;  %v11157_v12 = vpack.c.bf16 %v9257_v11, %v9256_v44 }
 0xafe   : > { %11111 = vmatprep.subr.bf16.mxu0 %v12114_v15 }
 0xb01   : > { %11113 = vmatpush3.bf16.msra.mxu0 %v11112_v16  ;;  %v9259_v16 = vld [vmem:[%s16466_s9 + $0x168] sm:$0xff] }
 0xb02   : > { %11114 = vmatprep.subr.bf16.mxu0 %v12114_v15  ;;  %v11160_v17 = vpack.c.bf16 %v9259_v16, %v9258_v13  ;;  %v5136_v13 = vadd.f32 %v14502_v24, %v14336_v28 }
 0xb04   : > { %v5144_v16 = vmax.f32 %v5136_v13, 0.0  ;;  %v5942_v13 = vld [vmem:[%s16465_s8] sm:$0xff] }
 0xb05   : > { %11116 = vmatpush3.bf16.msra.mxu0 %v11115_v55  ;;  %v9261_v55 = vld [vmem:[%s16466_s9 + $0x178] sm:$0xff] }
 0xb06   : > { %11117 = vmatprep.subr.bf16.mxu0 %v12114_v15  ;;  %v11163_v19 = vpack.c.bf16 %v9261_v55, %v9260_v18 }
 0xb09   : > { %11119 = vmatpush3.bf16.msra.mxu0 %v11118_v27  ;;  %v9262_v27 = vld [vmem:[%s16466_s9 + $0x180] sm:$0xff] }
 0xb0a   : > { %11120 = vmatprep.subr.bf16.mxu0 %v12114_v15 }
 0xb0d   : > { %11122 = vmatpush3.bf16.msra.mxu0 %v11121_v25  ;;  %v11166_v25 = vpack.c.bf16 %v9263_v20, %v9262_v27  ;;  %v9330_v27 = vld [vmem:[%s16462_s5 + $0xc0] sm:$0xff]  ;;  %v9333_v20 = vld [vmem:[%s16462_s5 + $0xd8] sm:$0xff] }
 0xb0e   : > { %11123 = vmatprep.subr.bf16.mxu0 %v12114_v15 }
 0xb10   : > { %10195 = vmatmul.mubr.msk.f32.vlgmr.msra.gmra.mrb[30].mxu0 %vm2125_vm14, %v14348_v9  ;;  %v5151_v9 = vld [vmem:[%s16461_s4 + $0x20] sm:$0xff] }
 0xb11   : > { %11125 = vmatpush3.bf16.msra.mxu0 %v11124_v34  ;;  %10217 = vmatprep.mubr.msk.f32.mxu0 %vm12116_vm10, %v12113_v7  ;;  %v5132_v34 = vadd.f32 %v14502_v24, %v14328_v0 }
 0xb12   : > { %11126 = vmatprep.subr.bf16.mxu0 %v12114_v15 }
 0xb13   : > { %v5140_v46 = vmax.f32 %v5132_v34, 0.0  ;;  %v9334_v34 = vld [vmem:[%s16462_s5 + $0xe0] sm:$0xff] }
 0xb15   : > { %11128 = vmatpush3.bf16.msra.mxu0 %v11127_v42  ;;  %v5149_v42 = vld [vmem:[%s16461_s4 + $0x10] sm:$0xff] }
 0xb16   : > { %11129 = vmatprep.subr.bf16.mxu0 %v12114_v15  ;;  %v11212_v0 = vpack.c.bf16 %v5150_v43, %v5149_v42  ;;  %v11254_v42 = vpack.c.bf16 %v9334_v34, %v9332_v30  ;;  %v5955_v30 = vld [vmem:[%s16465_s8 + $0x68] sm:$0xff] }
 0xb19   : > { %11131 = vmatpush3.bf16.msra.mxu0 %v11130_v47  ;;  %v5152_v47 = vld [vmem:[%s16461_s4 + $0x28] sm:$0xff] }
 0xb1a   : > { %11132 = vmatprep.subr.bf16.mxu0 %v12114_v15  ;;  %v11215_v52 = vpack.c.bf16 %v5152_v47, %v5151_v9  ;;  %v9341_v9 = vld [vmem:[%s16462_s5 + $0x118] sm:$0xff]  ;;  %v9343_v47 = vld [vmem:[%s16462_s5 + $0x128] sm:$0xff] }
 0xb1d   : > { %11134 = vmatpush3.bf16.msra.mxu0 %v11133_v63  ;;  %v5154_v63 = vld [vmem:[%s16461_s4 + $0x38] sm:$0xff] }
 0xb1e   : > { %11135 = vmatprep.subr.bf16.mxu0 %v12114_v15  ;;  %v11218_v33 = vpack.c.bf16 %v5154_v63, %v5153_v53  ;;  %v11260_v53 = vpack.c.bf16 %v9343_v47, %v9341_v9  ;;  %v9340_v63 = vld [vmem:[%s16462_s5 + $0x110] sm:$0xff]  ;;  %v5356_v47 = vld [vmem:[%s16462_s5 + $0x28] sm:$0xff] }
 0xb21   : > { %11137 = vmatpush3.bf16.msra.mxu0 %v11136_v23  ;;  %v5156_v23 = vld [vmem:[%s16461_s4 + $0x48] sm:$0xff] }
 0xb22   : > { %11138 = vmatprep.subr.bf16.mxu0 %v12114_v15  ;;  %v11221_v58 = vpack.c.bf16 %v5156_v23, %v5155_v54  ;;  %v9345_v54 = vld [vmem:[%s16462_s5 + $0x138] sm:$0xff]  ;;  %v9347_v23 = vld [vmem:[%s16462_s5 + $0x148] sm:$0xff] }
 0xb24   : > { %10218 = vmatmul.mubr.msk.f32.vlgmr.msra.gmra.mrb[30].mxu0 %vm2125_vm14, %v4290_v60 }
 0xb25   : > { %11140 = vmatpush3.bf16.msra.mxu0 %v11139_v14  ;;  %10240 = vmatprep.mubr.msk.f32.mxu0 %vm12116_vm10, %v12113_v7  ;;  %v5158_v14 = vld [vmem:[%s16461_s4 + $0x58] sm:$0xff] }
 0xb26   : > { %11141 = vmatprep.subr.bf16.mxu0 %v12114_v15  ;;  %v11224_v60 = vpack.c.bf16 %v5158_v14, %v5157_v35  ;;  %v11264_v35 = vpack.c.bf16 %v9347_v23, %v9345_v54  ;;  %v9344_v14 = vld [vmem:[%s16462_s5 + $0x130] sm:$0xff] }
 0xb29   : > { %11143 = vmatpush3.bf16.msra.mxu0 %v11142_v21  ;;  %v11227_v21 = vpack.c.bf16 %v5160_v37, %v5159_v29 }
 0xb2a   : > { %11144 = vmatprep.subr.bf16.mxu0 %v12114_v15 }
 0xb2d   : > { %11146 = vmatpush3.bf16.msra.mxu0 %v11145_v56  ;;  %v11230_v56 = vpack.c.bf16 %v5162_v36, %v5161_v22 }
 0xb2e   : > { %11147 = vmatprep.subr.bf16.mxu0 %v12114_v15 }
 0xb31   : > { %11149 = vmatpush3.bf16.msra.mxu0 %v11148_v61  ;;  %v11233_v61 = vpack.c.bf16 %v5164_v26, %v5163_v39 }
 0xb32   : > { %11150 = vmatprep.subr.bf16.mxu0 %v12114_v15 }
 0xb35   : > { %11152 = vmatpush3.bf16.msra.mxu0 %v11151_v62  ;;  %v5124_v62 = vrot.slane %v5119_v6, %v12544_v45  ;;  %v9328_v6 = vld [vmem:[%s16462_s5 + $0xb0] sm:$0xff] }
 0xb36   : > { %11153 = vmatprep.subr.bf16.mxu0 %v12114_v15 }
 0xb37   : > { %v5131_v59 = vadd.f32 %v5124_v62, %v14326_v40  ;;  %v5133_v11 = vadd.f32 %v5124_v62, %v14330_v5  ;;  %v5137_v5 = vadd.f32 %v5124_v62, %v14338_v1  ;;  %v9331_v1 = vld [vmem:[%s16462_s5 + $0xc8] sm:$0xff] }
 0xb38   : > { %10241 = vmatmul.mubr.msk.f32.vlgmr.msra.gmra.mrb[30].mxu0 %vm2125_vm14, %v4374_v10  ;;  %v5167_v10 = vld [vmem:[%s16461_s4 + $0xa0] sm:$0xff] }
 0xb39   : > { %11155 = vmatpush3.bf16.msra.mxu0 %v11154_v8  ;;  %10263 = vmatprep.mubr.msk.f32.mxu0 %vm12116_vm10, %v12113_v7  ;;  %v5134_v8 = vadd.f32 %v14502_v24, %v14332_v50  ;;  %v5139_v44 = vmax.f32 %v5131_v59, 0.0  ;;  %v5141_v40 = vmax.f32 %v5133_v11, 0.0  ;;  %v5135_v50 = vadd.f32 %v5124_v62, %v14334_v51  ;;  %v5265_v51 = vld [vmem:[%s16460_s3] sm:$0xff]  ;;  %v5266_v59 = vld [vmem:[%s16460_s3 + $0x8] sm:$0x3f] }
 0xb3a   : > { %11156 = vmatprep.subr.bf16.mxu0 %v12114_v15  ;;  %v5145_v28 = vmax.f32 %v5137_v5, 0.0  ;;  %10274 = vmatprep.mubr.msk.f32.mxu1 %vm1241_vm6, %v5265_v51  ;;  %v9348_v11 = vld [vmem:[%s16462_s5 + $0x150] sm:$0xf]  ;;  %v5946_v5 = vld [vmem:[%s16465_s8 + $0x20] sm:$0xff] }
 0xb3b   : > { %v5143_v18 = vmax.f32 %v5135_v50, 0.0  ;;  %v5944_v50 = vld [vmem:[%s16465_s8 + $0x10] sm:$0xff] }
 0xb3c   : > { %v5948_v51 = vld [vmem:[%s16465_s8 + $0x30] sm:$0xff] }
 0xb3d   : > { %11158 = vmatpush3.bf16.msra.mxu0 %v11157_v12  ;;  %v5142_v12 = vmax.f32 %v5134_v8, 0.0  ;;  %v9349_v8 = vld [vmem:[%s16462_s5 + $0x158] sm:$0xf] }
 0xb3e   : > { %11159 = vmatprep.subr.bf16.mxu0 %v12114_v15 }
 0xb41   : > { %11161 = vmatpush3.bf16.msra.mxu0 %v11160_v17  ;;  %v5138_v17 = vadd.f32 %v14502_v24, %v14340_v2  ;;  %v9329_v2 = vld [vmem:[%s16462_s5 + $0xb8] sm:$0xff]  ;;  %v9335_v24 = vld [vmem:[%s16462_s5 + $0xe8] sm:$0xff] }
 0xb42   : > { %11162 = vmatprep.subr.bf16.mxu0 %v12114_v15  ;;  %v11252_v4 = vpack.c.bf16 %v9335_v24, %v9333_v20  ;;  %v5952_v20 = vld [vmem:[%s16465_s8 + $0x50] sm:$0xff]  ;;  %v5953_v24 = vld [vmem:[%s16465_s8 + $0x58] sm:$0xff] }
 0xb43   : > { %v5146_v55 = vmax.f32 %v5138_v17, 0.0  ;;  %v5945_v17 = vld [vmem:[%s16465_s8 + $0x18] sm:$0xff] }
 0xb45   : > { %11164 = vmatpush3.bf16.msra.mxu0 %v11163_v19  ;;  %v11248_v19 = vpack.c.bf16 %v9331_v1, %v9329_v2  ;;  %v5949_v2 = vld [vmem:[%s16465_s8 + $0x38] sm:$0xff] }
 0xb46   : > { %11165 = vmatprep.subr.bf16.mxu0 %v12114_v15  ;;  %v11358_v1 = vpack.c.bf16 %v5949_v2, %v5948_v51  ;;  %v9361_v51 = vld [vmem:[%s16462_s5 + $0x178] sm:$0xff]  ;;  %v9358_v2 = vld [vmem:[%s16462_s5 + $0x160] sm:$0xff] }
 0xb49   : > { %11167 = vmatpush3.bf16.msra.mxu0 %v11166_v25  ;;  %v11250_v25 = vpack.c.bf16 %v9330_v27, %v9328_v6  ;;  %v5950_v6 = vld [vmem:[%s16465_s8 + $0x40] sm:$0xff] }
 0xb4a   : > { %11208 = vmatprep.subr.bf16.mxu0 %v12114_v15 }
 0xb4c   : > { %10264 = vmatmul.mubr.msk.f32.vlgmr.msra.gmra.mrb[30].mxu0 %vm2125_vm14, %v4458_v32  ;;  %v9339_v32 = vld [vmem:[%s16462_s5 + $0x108] sm:$0xff] }
 0xb4d   : > { %11210 = vmatpush1.bf16.msra.mxu0 %v11209_v31  ;;  %9321 = vmatprep.mubr.msk.f32.mxu0 %vm1141_vm5, %v5140_v46  ;;  %v9337_v31 = vld [vmem:[%s16462_s5 + $0xf8] sm:$0xff]  ;;  %v9336_v46 = vld [vmem:[%s16462_s5 + $0xf0] sm:$0xff] }
 0xb4e   : > { %11211 = vmatprep.subr.bf16.mxu0 %v12114_v15  ;;  %v11256_v43 = vpack.c.bf16 %v9339_v32, %v9337_v31  ;;  %v5956_v31 = vld [vmem:[%s16465_s8 + $0x70] sm:$0xff]  ;;  %v5957_v32 = vld [vmem:[%s16465_s8 + $0x78] sm:$0xff] }
 0xb51   : > { %11213 = vmatpush1.bf16.msra.mxu0 %v11212_v0  ;;  %v9338_v0 = vld [vmem:[%s16462_s5 + $0x100] sm:$0xff] }
 0xb52   : > { %11214 = vmatprep.subr.bf16.mxu0 %v12114_v15 }
 0xb55   : > { %11216 = vmatpush1.bf16.msra.mxu0 %v11215_v52  ;;  %v11258_v52 = vpack.c.bf16 %v9338_v0, %v9336_v46  ;;  %v5353_v46 = vld [vmem:[%s16462_s5 + $0x10] sm:$0xff] }
 0xb56   : > { %11217 = vmatprep.subr.bf16.mxu0 %v12114_v15 }
 0xb59   : > { %11219 = vmatpush1.bf16.msra.mxu0 %v11218_v33  ;;  %v9342_v33 = vld [vmem:[%s16462_s5 + $0x120] sm:$0xff] }
 0xb5a   : > { %11220 = vmatprep.subr.bf16.mxu0 %v12114_v15 }
 0xb5d   : > { %11222 = vmatpush1.bf16.msra.mxu0 %v11221_v58  ;;  %v11262_v58 = vpack.c.bf16 %v9342_v33, %v9340_v63 }
 0xb5e   : > { %11223 = vmatprep.subr.bf16.mxu0 %v12114_v15 }
 0xb61   : > { %11225 = vmatpush1.bf16.msra.mxu0 %v11224_v60  ;;  %v9346_v60 = vld [vmem:[%s16462_s5 + $0x140] sm:$0xff] }
 0xb62   : > { %11226 = vmatprep.subr.bf16.mxu0 %v12114_v15  ;;  %v11266_v29 = vpack.c.bf16 %v9346_v60, %v9344_v14 }
 0xb65   : > { %11228 = vmatpush1.bf16.msra.mxu0 %v11227_v21 }
 0xb66   : > { %11229 = vmatprep.subr.bf16.mxu0 %v12114_v15 }
 0xb69   : > { %11231 = vmatpush1.bf16.msra.mxu0 %v11230_v56 }
 0xb6a   : > { %11232 = vmatprep.subr.bf16.mxu0 %v12114_v15 }
 0xb6d   : > { %11234 = vmatpush1.bf16.msra.mxu0 %v11233_v61 }
 0xb6e   : > { %11235 = vmatprep.subr.bf16.mxu0 %v12114_v15 }
 0xb71   : > { %11237 = vmatpush1.bf16.msra.mxu0 %v11236_v49 }
 0xb72   : > { %5220 = vmatprep.subr.mxu0 %v12113_v7 }
 0xb75   : > { %5221 = vmatpush1.msra.mxu0 %v5167_v10  ;;  %v5352_v10 = vld [vmem:[%s16462_s5 + $0x8] sm:$0xff] }
 0xb76   : > { %5245 = vmatmul.mubr.f32.vlgmr.msra.gmra.mrb[32].mxu0 %v5139_v44  ;;  %11249 = vmatprep.subr.bf16.mxu0 %v11248_v19  ;;  %v5354_v44 = vld [vmem:[%s16462_s5 + $0x18] sm:$0xff]  ;;  %v5951_v19 = vld [vmem:[%s16465_s8 + $0x48] sm:$0xff] }
 0xb77   : > { %9322 = vmatprep.mubr.msk.f32.mxu0 %vm1141_vm5, %v5142_v12  ;;  %11251 = vmatpush1.bf16.msra.mxu0 %v11250_v25  ;;  %v11268_v12 = vpack.c.bf16 %v5354_v44, %v5352_v10  ;;  %v11361_v27 = vpack.c.bf16 %v5951_v19, %v5950_v6  ;;  %v11364_v25 = vpack.c.bf16 %v5953_v24, %v5952_v20  ;;  %v9363_v6 = vld [vmem:[%s16462_s5 + $0x188] sm:$0xff]  ;;  %v9365_v19 = vld [vmem:[%s16462_s5 + $0x198] sm:$0xff] }
 0xb78   : > { %11253 = vmatprep.subr.bf16.mxu0 %v11252_v4  ;;  %v5954_v4 = vld [vmem:[%s16465_s8 + $0x60] sm:$0xff] }
 0xb79   : > { %v11367_v34 = vpack.c.bf16 %v5955_v30, %v5954_v4  ;;  %v9362_v4 = vld [vmem:[%s16462_s5 + $0x180] sm:$0xff]  ;;  %v9364_v30 = vld [vmem:[%s16462_s5 + $0x190] sm:$0xff] }
 0xb7a   : > { %5250 = vmatmul.mubr.f32.gmra.mrb[34].mxu0 %v5141_v40  ;;  %v5943_v40 = vld [vmem:[%s16465_s8 + $0x8] sm:$0xff] }
 0xb7b   : > { %9323 = vmatprep.mubr.msk.f32.mxu0 %vm1141_vm5, %v5144_v16  ;;  %11255 = vmatpush1.bf16.msra.mxu0 %v11254_v42  ;;  %v11349_v16 = vpack.c.bf16 %v5943_v40, %v5942_v13  ;;  %v11370_v42 = vpack.c.bf16 %v5957_v32, %v5956_v31  ;;  %v5368_v13 = vld [vmem:[%s16462_s5 + $0x88] sm:$0xff]  ;;  %v5370_v40 = vld [vmem:[%s16462_s5 + $0x98] sm:$0xff]  ;;  %v11294_v32 = vpack.c.bf16 %v9364_v30, %v9362_v4 }
 0xb7c   : > { %11257 = vmatprep.subr.bf16.mxu0 %v11256_v43  ;;  %v5351_v43 = vld [vmem:[%s16462_s5] sm:$0xff]  ;;  %v9369_v31 = vld [vmem:[%s16462_s5 + $0x1b8] sm:$0xff]  ;;  %v9411_v30 = vld [vmem:[%s16462_s5 + $0x2c8] sm:$0xff] }
 0xb7d   : > { %v11270_v9 = vpack.c.bf16 %v5353_v46, %v5351_v43  ;;  %v9366_v43 = vld [vmem:[%s16462_s5 + $0x1a0] sm:$0xff]  ;;  %v9368_v46 = vld [vmem:[%s16462_s5 + $0x1b0] sm:$0xff]  ;;  %v9405_v4 = vld [vmem:[%s16462_s5 + $0x2b8] sm:$0xf] }
 0xb7e   : > { %5255 = vmatmul.mubr.f32.gmra.mrb[36].mxu0 %v5143_v18  ;;  %v11352_v18 = vpack.c.bf16 %v5945_v17, %v5944_v50  ;;  %v5367_v17 = vld [vmem:[%s16462_s5 + $0x80] sm:$0xff] }
 0xb7f   : > { %9324 = vmatprep.mubr.msk.f32.mxu0 %vm1141_vm5, %v5146_v55  ;;  %11259 = vmatpush1.bf16.msra.mxu0 %v11258_v52  ;;  %v5947_v55 = vld [vmem:[%s16465_s8 + $0x28] sm:$0xff]  ;;  %v5358_v52 = vld [vmem:[%s16462_s5 + $0x38] sm:$0xff] }
 0xb80   : > { %11261 = vmatprep.subr.bf16.mxu0 %v11260_v53 }
 0xb82   : > { %5260 = vmatmul.mubr.f32.gmra.mrb[38].mxu0 %v5145_v28  ;;  %v11355_v28 = vpack.c.bf16 %v5947_v55, %v5946_v5  ;;  %v5372_v55 = vld [vmem:[%s16462_s5 + $0xa8] sm:$0xf] }
 0xb83   : > { %5474 = vmatprep.mubr.f32.mxu0 %v12113_v7  ;;  %11263 = vmatpush1.bf16.msra.mxu0 %v11262_v58 }
 0xb84   : > { %11265 = vmatprep.subr.bf16.mxu0 %v11264_v35 }
 0xb87   : > { %11267 = vmatpush1.bf16.msra.mxu0 %v11266_v29  ;;  %v11272_v29 = vpack.c.bf16 %v5358_v52, %v5356_v47  ;;  %v9373_v47 = vld [vmem:[%s16462_s5 + $0x1d8] sm:$0xff]  ;;  %v11298_v52 = vpack.c.bf16 %v9368_v46, %v9366_v43  ;;  %v9404_v46 = vld [vmem:[%s16462_s5 + $0x2b0] sm:$0xf] }
 0xb88   : > { %9350 = vmatprep.subr.msk.mxu0 %vm979_vm2, %v9349_v8  ;;  %v5366_v8 = vld [vmem:[%s16462_s5 + $0x78] sm:$0xff] }
 0xb89   : > { %v9417_v43 = vld [vmem:[%s16462_s5 + $0x2f8] sm:$0xff] }
 0xb8b   : > { %9351 = vmatpush1.msk.msra.mxu0 %vm979_vm2, %v9348_v11  ;;  %v5363_v11 = vld [vmem:[%s16462_s5 + $0x60] sm:$0xff] }
 0xb8c   : > { %11269 = vmatprep.subr.bf16.mxu0 %v11268_v12  ;;  %v5365_v12 = vld [vmem:[%s16462_s5 + $0x70] sm:$0xff] }
 0xb8d   : > { %v11282_v50 = vpack.c.bf16 %v5365_v12, %v5363_v11  ;;  %v9388_v12 = vld [vmem:[%s16462_s5 + $0x230] sm:$0xff] }
 0xc1f   : > { %v4527_v37 = vpop.f32.mrb[30].mxu0 }
 0xc20   : > { %4532 = vst.msk [vmem:[#allocation2 + $0x1] sm:$0x1] %vm2525_vm15, %v4527_v37  ;;  %v10265_v21 = vpop.f32.mrb[31].mxu0  ;;  %v5355_v37 = vld [vmem:[%s16462_s5 + $0x20] sm:$0xff] }
 0xc21   : > { %v5357_v21 = vld [vmem:[%s16462_s5 + $0x30] sm:$0xff] }
 0xc49   : > { %v5246_v22 = vpop.f32.mrb[32].mxu0 }
 0xc4a   : > { %v5248_v36 = vpop.f32.mrb[33].mxu0 }
 0xc4b   : > { %v5360_v36 = vld [vmem:[%s16462_s5 + $0x48] sm:$0xff] }
 0xc4d   : > { %v5251_v56 = vpop.f32.mrb[34].mxu0 }
 0xc4e   : > { %v11238_v39 = vpack.c.bf16 %v5251_v56, %v5246_v22  ;;  %v5253_v26 = vpop.f32.mrb[35].mxu0  ;;  %v5362_v56 = vld [vmem:[%s16462_s5 + $0x58] sm:$0xff] }
 0xc50   : > { %11239 = vmatprep.subr.bf16.mxu1 %v11238_v39 }
 0xc51   : > { %v5256_v61 = vpop.f32.mrb[36].mxu0  ;;  %11241 = vmatpush3.bf16.msra.mxu1 %v11238_v39 }
 0xc52   : > { %v5258_v38 = vpop.f32.mrb[37].mxu0 }
 0xc53   : > { %v11274_v38 = vpack.c.bf16 %v5357_v21, %v5355_v37  ;;  %v9374_v37 = vld [vmem:[%s16462_s5 + $0x1e0] sm:$0xff]  ;;  %v9376_v21 = vld [vmem:[%s16462_s5 + $0x1f0] sm:$0xff] }
 0xc55   : > { %v5261_v41 = vpop.f32.mrb[38].mxu0 }
 0xc56   : > { %v11242_v62 = vpack.c.bf16 %v5261_v41, %v5256_v61  ;;  %v5263_v49 = vpop.f32.mrb[39].mxu0  ;;  %v11276_v41 = vpack.c.bf16 %v5362_v56, %v5360_v36  ;;  %v9379_v36 = vld [vmem:[%s16462_s5 + $0x208] sm:$0xf]  ;;  %v9385_v56 = vld [vmem:[%s16462_s5 + $0x218] sm:$0xff] }
 0xc57   : > { %v5361_v49 = vld [vmem:[%s16462_s5 + $0x50] sm:$0xff] }
 0xc58   : > { %11244 = vmatprep.subr.msk.bf16.mxu1 %vm12569_vm8, %v11242_v62 }
 0xc59   : > { %11247 = vmatpush3.bf16.msk.msra.mxu1 %vm12569_vm8, %v11242_v62  ;;  %v5359_v62 = vld [vmem:[%s16462_s5 + $0x40] sm:$0xff] }
 0xc5a   : > { %11348 = vmatprep.subr.bf16.mxu1 %v12114_v15  ;;  %v11278_v10 = vpack.c.bf16 %v5361_v49, %v5359_v62  ;;  %v9386_v62 = vld [vmem:[%s16462_s5 + $0x220] sm:$0xff]  ;;  %v9389_v49 = vld [vmem:[%s16462_s5 + $0x238] sm:$0xff] }
 0xc5c   : > { %10275 = vmatmul.mubr.msk.f32.vlgmr.msra.gmra.mrb[36].mxu1 %vm1241_vm6, %v5266_v59  ;;  %v5364_v59 = vld [vmem:[%s16462_s5 + $0x68] sm:$0xff] }
 0xc5d   : > { %11350 = vmatpush1.bf16.msra.mxu1 %v11349_v16  ;;  %v11280_v44 = vpack.c.bf16 %v5366_v8, %v5364_v59  ;;  %v11284_v16 = vpack.c.bf16 %v5370_v40, %v5368_v13  ;;  %v9391_v59 = vld [vmem:[%s16462_s5 + $0x248] sm:$0xff]  ;;  %v9378_v8 = vld [vmem:[%s16462_s5 + $0x200] sm:$0xf]  ;;  %v9393_v40 = vld [vmem:[%s16462_s5 + $0x258] sm:$0xff] }
 0xc5e   : > { %11351 = vmatprep.subr.bf16.mxu1 %v12114_v15  ;;  %v11312_v11 = vpack.c.bf16 %v9391_v59, %v9389_v49  ;;  %v9390_v13 = vld [vmem:[%s16462_s5 + $0x240] sm:$0xff] }
 0xc5f   : > { %v9426_v59 = vld [vmem:[%s16462_s5 + $0x340] sm:$0xff] }
 0xc61   : > { %11353 = vmatpush1.bf16.msra.mxu1 %v11352_v18  ;;  %v5369_v18 = vld [vmem:[%s16462_s5 + $0x90] sm:$0xff] }
 0xc62   : > { %11354 = vmatprep.subr.bf16.mxu1 %v12114_v15  ;;  %v11286_v5 = vpack.c.bf16 %v5369_v18, %v5367_v17  ;;  %v9392_v18 = vld [vmem:[%s16462_s5 + $0x250] sm:$0xff] }
 0xc65   : > { %11356 = vmatpush1.bf16.msra.mxu1 %v11355_v28  ;;  %v9359_v28 = vld [vmem:[%s16462_s5 + $0x168] sm:$0xff] }
 0xc66   : > { %11357 = vmatprep.subr.bf16.mxu1 %v12114_v15  ;;  %v11288_v20 = vpack.c.bf16 %v9361_v51, %v9359_v28 }
 0xc69   : > { %11359 = vmatpush1.bf16.msra.mxu1 %v11358_v1  ;;  %v9360_v1 = vld [vmem:[%s16462_s5 + $0x170] sm:$0xff] }
 0xc6a   : > { %11360 = vmatprep.subr.bf16.mxu1 %v12114_v15  ;;  %v11290_v24 = vpack.c.bf16 %v9360_v1, %v9358_v2  ;;  %v9396_v2 = vld [vmem:[%s16462_s5 + $0x270] sm:$0xff]  ;;  %v9398_v1 = vld [vmem:[%s16462_s5 + $0x280] sm:$0xff] }
 0xc6d   : > { %11362 = vmatpush1.bf16.msra.mxu1 %v11361_v27  ;;  %v5371_v27 = vld [vmem:[%s16462_s5 + $0xa0] sm:$0xf] }
 0xc6e   : > { %11363 = vmatprep.subr.bf16.mxu1 %v12114_v15 }
 0xc71   : > { %11365 = vmatpush1.bf16.msra.mxu1 %v11364_v25  ;;  %v11292_v25 = vpack.c.bf16 %v9365_v19, %v9363_v6  ;;  %v9401_v6 = vld [vmem:[%s16462_s5 + $0x298] sm:$0xff]  ;;  %v11322_v19 = vpack.c.bf16 %v9398_v1, %v9396_v2  ;;  %v9493_v2 = vld [vmem:[%s16458_s1 + $0x60] sm:$0xff]  ;;  %v9495_v1 = vld [vmem:[%s16458_s1 + $0x70] sm:$0xff] }
 0xc72   : > { %11366 = vmatprep.subr.bf16.mxu1 %v12114_v15 }
 0xc75   : > { %11368 = vmatpush1.bf16.msra.mxu1 %v11367_v34  ;;  %v9367_v34 = vld [vmem:[%s16462_s5 + $0x1a8] sm:$0xff] }
 0xc76   : > { %11369 = vmatprep.subr.bf16.mxu1 %v12114_v15 }
 0xc79   : > { %11371 = vmatpush1.bf16.msra.mxu1 %v11370_v42  ;;  %v11296_v42 = vpack.c.bf16 %v9369_v31, %v9367_v34  ;;  %v9413_v34 = vld [vmem:[%s16462_s5 + $0x2d8] sm:$0xff]  ;;  %v9410_v31 = vld [vmem:[%s16462_s5 + $0x2c0] sm:$0xff] }
 0xc7a   : > { %11372 = vmatprep.subr.bf16.mxu1 %v12114_v15 }
 0xd2f   : > { %v14748_v0 = vpop.f32.mrb[36].mxu1 }
 0xd30   : > { %v5398_v53 = vrot.slane %v14748_v0, 1  ;;  %v5597_v63 = vrot.slane %v14748_v0, 2  ;;  %v5713_v33 = vrot.slane %v14748_v0, 3  ;;  %v5829_v54 = vrot.slane %v14748_v0, 4  ;;  %v5342_v23 = vpop.f32.mrb[37].mxu1 }
 0xd31   : > { %v5397_v58 = vrot.slane %v5342_v23, 1  ;;  %v5596_v35 = vrot.slane %v5342_v23, 2  ;;  %v5712_v14 = vrot.slane %v5342_v23, 3  ;;  %v5828_v60 = vrot.slane %v5342_v23, 4 }
 0xd33   : > { %v5399_v22 = vsel %vm523_vm0, %v5397_v58, %v5398_v53  ;;  %v14777_v39 = vsel %vm735_vm3, %v5596_v35, %v5597_v63  ;;  %v14782_v26 = vsel %vm857_vm4, %v5712_v14, %v5713_v33  ;;  %v14787_v61 = vsel %vm979_vm2, %v5828_v60, %v5829_v54  ;;  %v9372_v58 = vld [vmem:[%s16462_s5 + $0x1d0] sm:$0xff]  ;;  %v9375_v35 = vld [vmem:[%s16462_s5 + $0x1e8] sm:$0xff]  ;;  %v9377_v14 = vld [vmem:[%s16462_s5 + $0x1f8] sm:$0xff] }
 0xd34   : > { %9352 = vmatmul.mubr.msk.f32.vlgmr.msra.gmra.mrb[40].mxu0 %vm1376_vm9, %v5399_v22  ;;  %v11306_v22 = vpack.c.bf16 %v9376_v21, %v9374_v37  ;;  %v9420_v37 = vld [vmem:[%s16462_s5 + $0x310] sm:$0xff]  ;;  %v9423_v21 = vld [vmem:[%s16462_s5 + $0x328] sm:$0xff] }
 0xd35   : > { %11271 = vmatpush1.bf16.msra.mxu0 %v11270_v9  ;;  %5480 = vmatprep.mubr.f32.mxu0 %v12113_v7  ;;  %v9371_v9 = vld [vmem:[%s16462_s5 + $0x1c8] sm:$0xff] }
 0xd36   : > { %11273 = vmatprep.subr.bf16.mxu0 %v11272_v29  ;;  %v11304_v29 = vpack.c.bf16 %v9377_v14, %v9375_v35  ;;  %v9421_v35 = vld [vmem:[%s16462_s5 + $0x318] sm:$0xff] }
 0xd38   : > { %9353 = vmatmul.mubr.msk.f32.gmra.mrb[42].mxu0 %vm1376_vm9, %v5398_v53  ;;  %v11300_v53 = vpack.c.bf16 %v9373_v47, %v9371_v9  ;;  %v11328_v9 = vpack.c.bf16 %v9413_v34, %v9411_v30 }
 0xd39   : > { %11275 = vmatpush1.bf16.msra.mxu0 %v11274_v38  ;;  %5561 = vmatprep.mubr.f32.mxu0 %v12113_v7  ;;  %v9387_v38 = vld [vmem:[%s16462_s5 + $0x228] sm:$0xff] }
 0xd3a   : > { %11277 = vmatprep.subr.bf16.mxu0 %v11276_v41  ;;  %v9384_v41 = vld [vmem:[%s16462_s5 + $0x210] sm:$0xff] }
 0xd3d   : > { %11279 = vmatpush1.bf16.msra.mxu0 %v11278_v10  ;;  %v11308_v10 = vpack.c.bf16 %v9387_v38, %v9385_v56  ;;  %v9422_v56 = vld [vmem:[%s16462_s5 + $0x320] sm:$0xff]  ;;  %v9424_v38 = vld [vmem:[%s16462_s5 + $0x330] sm:$0xff] }
 0xd3e   : > { %11281 = vmatprep.subr.bf16.mxu0 %v11280_v44  ;;  %v11310_v44 = vpack.c.bf16 %v9386_v62, %v9384_v41  ;;  %v9427_v41 = vld [vmem:[%s16462_s5 + $0x348] sm:$0xff]  ;;  %v11342_v62 = vpack.c.bf16 %v9424_v38, %v9422_v56  ;;  %v6546_v56 = vld [vmem:[%s16458_s1 + $0x10] sm:$0xff] }
 0xd41   : > { %11283 = vmatpush1.bf16.msra.mxu0 %v11282_v50  ;;  %v9395_v50 = vld [vmem:[%s16462_s5 + $0x268] sm:$0xff] }
 0xd42   : > { %11285 = vmatprep.subr.bf16.mxu0 %v11284_v16  ;;  %v11314_v16 = vpack.c.bf16 %v9390_v13, %v9388_v12  ;;  %v11316_v17 = vpack.c.bf16 %v9395_v50, %v9393_v40  ;;  %v5958_v12 = vld [vmem:[%s16465_s8 + $0x80] sm:$0xff]  ;;  %v5959_v13 = vld [vmem:[%s16465_s8 + $0x88] sm:$0xff] }
 0xd43   : > { %v11373_v40 = vpack.c.bf16 %v5959_v13, %v5958_v12  ;;  %v9490_v50 = vld [vmem:[%s16458_s1 + $0x48] sm:$0xff]  ;;  %v9505_v12 = vld [vmem:[%s16458_s1 + $0x80] sm:$0xff] }
 0xd45   : > { %11287 = vmatpush1.bf16.msra.mxu0 %v11286_v5  ;;  %v9394_v5 = vld [vmem:[%s16462_s5 + $0x260] sm:$0xff]  ;;  %11374 = vmatpush1.bf16.msra.mxu1 %v11373_v40  ;;  %v9507_v40 = vld [vmem:[%s16458_s1 + $0x90] sm:$0xff] }
 0xd46   : > { %9354 = vmatprep.subr.msk.mxu0 %vm979_vm2, %v5372_v55  ;;  %v9397_v55 = vld [vmem:[%s16462_s5 + $0x278] sm:$0xff]  ;;  %v11318_v28 = vpack.c.bf16 %v9394_v5, %v9392_v18  ;;  %11375 = vmatprep.subr.bf16.mxu1 %v12114_v15  ;;  %v9491_v5 = vld [vmem:[%s16458_s1 + $0x50] sm:$0xff] }
 0xd49   : > { %9355 = vmatpush1.msk.msra.mxu0 %vm979_vm2, %v5371_v27 }
 0xd4a   : > { %9356 = vmatmul.mubr.msk.f32.vlgmr.msra.gmra.mrb[40].mxu0 %vm1376_vm9, %v5342_v23  ;;  %11289 = vmatprep.subr.bf16.mxu0 %v11288_v20  ;;  %v9370_v23 = vld [vmem:[%s16462_s5 + $0x1c0] sm:$0xff]  ;;  %v9400_v20 = vld [vmem:[%s16462_s5 + $0x290] sm:$0xff] }
 0xd4b   : > { %11291 = vmatpush1.bf16.msra.mxu0 %v11290_v24  ;;  %5567 = vmatprep.mubr.f32.mxu0 %v12113_v7  ;;  %v11302_v60 = vpack.c.bf16 %v9372_v58, %v9370_v23  ;;  %v9402_v24 = vld [vmem:[%s16462_s5 + $0x2a0] sm:$0xff]  ;;  %v9416_v23 = vld [vmem:[%s16462_s5 + $0x2f0] sm:$0xff]  ;;  %v9419_v58 = vld [vmem:[%s16462_s5 + $0x308] sm:$0xff] }
 0xd4c   : > { %11293 = vmatprep.subr.bf16.mxu0 %v11292_v25  ;;  %v11326_v25 = vpack.c.bf16 %v9402_v24, %v9400_v20 }
 0xd4e   : > { %9357 = vmatmul.mubr.msk.f32.gmra.mrb[42].mxu0 %vm1376_vm9, %v14748_v0  ;;  %v5960_v0 = vld [vmem:[%s16465_s8 + $0x90] sm:$0xff] }
 0xd4f   : > { %11295 = vmatpush1.bf16.msra.mxu0 %v11294_v32  ;;  %5673 = vmatprep.mubr.f32.mxu0 %v12113_v7  ;;  %v9412_v32 = vld [vmem:[%s16462_s5 + $0x2d0] sm:$0xff] }
 0xd50   : > { %11297 = vmatprep.subr.bf16.mxu0 %v11296_v42  ;;  %v9415_v42 = vld [vmem:[%s16462_s5 + $0x2e8] sm:$0xff]  ;;  %v11330_v47 = vpack.c.bf16 %v9412_v32, %v9410_v31 }
 0xd53   : > { %11299 = vmatpush1.bf16.msra.mxu0 %v11298_v52  ;;  %v11332_v52 = vpack.c.bf16 %v9417_v43, %v9415_v42 }
 0xd54   : > { %11301 = vmatprep.subr.bf16.mxu0 %v11300_v53  ;;  %v9414_v53 = vld [vmem:[%s16462_s5 + $0x2e0] sm:$0xff] }
 0xd55   : > { %v11334_v14 = vpack.c.bf16 %v9416_v23, %v9414_v53 }
 0xd57   : > { %11303 = vmatpush1.bf16.msra.mxu0 %v11302_v60  ;;  %v11336_v60 = vpack.c.bf16 %v9421_v35, %v9419_v58  ;;  %v15120_v35 = vld [vmem:[%s12288_s29 + $0x70] sm:$0xff] }
 0xd58   : > { %11305 = vmatprep.subr.bf16.mxu0 %v11304_v29  ;;  %v9418_v29 = vld [vmem:[%s16462_s5 + $0x300] sm:$0xff] }
 0xd5b   : > { %11307 = vmatpush1.bf16.msra.mxu0 %v11306_v22  ;;  %v11338_v22 = vpack.c.bf16 %v9420_v37, %v9418_v29  ;;  %v15126_v29 = vld [vmem:[%s12288_s29 + $0x78] sm:$0xff] }
 0xd5c   : > { %9380 = vmatprep.subr.msk.mxu0 %vm979_vm2, %v9379_v36  ;;  %v6569_v37 = vrot.slane %v15126_v29, 1 }
 0xd5f   : > { %9381 = vmatpush1.msk.msra.mxu0 %vm979_vm2, %v9378_v8  ;;  %v9428_v8 = vld [vmem:[%s16462_s5 + $0x350] sm:$0xff] }
 0xd60   : > { %9382 = vmatmul.mubr.msk.f32.vlgmr.msra.gmra.mrb[40].mxu0 %vm1376_vm9, %v14777_v39  ;;  %11309 = vmatprep.subr.bf16.mxu0 %v11308_v10  ;;  %v9399_v39 = vld [vmem:[%s16462_s5 + $0x288] sm:$0xff]  ;;  %v11346_v10 = vpack.c.bf16 %v9428_v8, %v9426_v59  ;;  %v6548_v59 = vld [vmem:[%s16458_s1 + $0x20] sm:$0xff]  ;;  %v6550_v8 = vld [vmem:[%s16458_s1 + $0x30] sm:$0xff] }
 0xd61   : > { %11311 = vmatpush1.bf16.msra.mxu0 %v11310_v44  ;;  %5679 = vmatprep.mubr.f32.mxu0 %v12113_v7  ;;  %v11320_v51 = vpack.c.bf16 %v9399_v39, %v9397_v55  ;;  %v9431_v44 = vld [vmem:[%s16462_s5 + $0x368] sm:$0xf]  ;;  %v9496_v39 = vld [vmem:[%s16458_s1 + $0x78] sm:$0xff] }
 0xd62   : > { %11313 = vmatprep.subr.bf16.mxu0 %v11312_v11  ;;  %v9430_v11 = vld [vmem:[%s16462_s5 + $0x360] sm:$0xf]  ;;  %v9494_v55 = vld [vmem:[%s16458_s1 + $0x68] sm:$0xff] }
 0xd64   : > { %9383 = vmatmul.mubr.msk.f32.gmra.mrb[42].mxu0 %vm1376_vm9, %v5597_v63  ;;  %v9403_v63 = vld [vmem:[%s16462_s5 + $0x2a8] sm:$0xff] }
 0xd65   : > { %11315 = vmatpush1.bf16.msra.mxu0 %v11314_v16  ;;  %5789 = vmatprep.mubr.f32.mxu0 %v12113_v7  ;;  %v11324_v27 = vpack.c.bf16 %v9403_v63, %v9401_v6  ;;  %v9492_v16 = vld [vmem:[%s16458_s1 + $0x58] sm:$0xff]  ;;  %v15100_v6 = vld [vmem:[%s12288_s29 + $0x60] sm:$0xff]  ;;  %v15103_v63 = vld [vmem:[%s12288_s29 + $0x68] sm:$0xff]  ;;  %s8749_s29 = scalar_lea.sflag [#allocation4], %s488_s18 }
 0xd66   : > { %11317 = vmatprep.subr.bf16.mxu0 %v11316_v17  ;;  %v9489_v17 = vld [vmem:[%s16458_s1 + $0x40] sm:$0xff]  ;;  %v11457_v18 = vpack.c.bf16 %v9492_v16, %v9490_v50  ;;  %v6565_v20 = vrot.slane %v15103_v63, 1 }
 0xd67   : > { %v9509_v16 = vld [vmem:[%s16458_s1 + $0xa0] sm:$0xff] }
 0xd69   : > { %11319 = vmatpush1.bf16.msra.mxu0 %v11318_v28  ;;  %v11459_v28 = vpack.c.bf16 %v9491_v5, %v9489_v17  ;;  %v9511_v17 = vld [vmem:[%s16458_s1 + $0xb0] sm:$0xff]  ;;  %v9520_v5 = vld [vmem:[%s16458_s1 + $0xd8] sm:$0xff] }
 0xd6a   : > { %11321 = vmatprep.subr.bf16.mxu0 %v11320_v51  ;;  %v11461_v51 = vpack.c.bf16 %v9496_v39, %v9494_v55  ;;  %v11479_v55 = vpack.c.bf16 %v9511_v17, %v9509_v16  ;;  %v9443_v16 = vld [vmem:[%s16466_s9 + $0x68] sm:$0xff] }
 0xd6d   : > { %11323 = vmatpush1.bf16.msra.mxu0 %v11322_v19  ;;  %v11463_v19 = vpack.c.bf16 %v9495_v1, %v9493_v2  ;;  %v6773_v1 = vrot.slane %v15100_v6, 2 }
 0xd6e   : > { %11325 = vmatprep.subr.bf16.mxu0 %v11324_v27  ;;  %v6564_v27 = vrot.slane %v15100_v6, 1 }
 0xd70   : > { %v6566_v24 = vsel %vm523_vm0, %v6564_v27, %v6565_v20  ;;  %v9517_v27 = vld [vmem:[%s16458_s1 + $0xc0] sm:$0xff] }
 0xd71   : > { %11327 = vmatpush1.bf16.msra.mxu0 %v11326_v25  ;;  %v5922_v25 = vld [vmem:[%s16463_s6] sm:$0x3] }
 0xd72   : > { %9406 = vmatprep.subr.msk.mxu0 %vm979_vm2, %v9405_v4  ;;  %v5927_v4 = vrot.slane %v5922_v25, %v12544_v45  ;;  %v5931_v30 = vrot.slane %v5922_v25, %v12549_v3  ;;  %v9524_v25 = vld [vmem:[%s16458_s1 + $0xf8] sm:$0xff] }
 0xd75   : > { %9407 = vmatpush1.msk.msra.mxu0 %vm979_vm2, %v9404_v46 }
 0xd76   : > { %9408 = vmatmul.mubr.msk.f32.vlgmr.msra.gmra.mrb[40].mxu0 %vm1376_vm9, %v14782_v26  ;;  %11329 = vmatprep.subr.bf16.mxu0 %v11328_v9  ;;  %v9425_v26 = vld [vmem:[%s16462_s5 + $0x338] sm:$0xff] }
 0xd77   : > { %11331 = vmatpush1.bf16.msra.mxu0 %v11330_v47  ;;  %5795 = vmatprep.mubr.f32.mxu0 %v12113_v7  ;;  %v11340_v36 = vpack.c.bf16 %v9425_v26, %v9423_v21  ;;  %v6545_v21 = vld [vmem:[%s16458_s1 + $0x8] sm:$0xff]  ;;  %v6547_v26 = vld [vmem:[%s16458_s1 + $0x18] sm:$0xff] }
 0xd78   : > { %11333 = vmatprep.subr.bf16.mxu0 %v11332_v52 }
 0xd7a   : > { %9409 = vmatmul.mubr.msk.f32.gmra.mrb[42].mxu0 %vm1376_vm9, %v5713_v33  ;;  %v9429_v33 = vld [vmem:[%s16462_s5 + $0x358] sm:$0xff] }
 0xd7b   : > { %11335 = vmatpush1.bf16.msra.mxu0 %v11334_v14  ;;  %5905 = vmatprep.mubr.f32.mxu0 %v12113_v7  ;;  %v11344_v49 = vpack.c.bf16 %v9429_v33, %v9427_v41  ;;  %v6567_v14 = vrot.slane %v15120_v35, 1  ;;  %v6549_v33 = vld [vmem:[%s16458_s1 + $0x28] sm:$0xff] }
 0xd7c   : > { %11337 = vmatprep.subr.bf16.mxu0 %v11336_v60 }
 0xd7d   : > { %v6568_v60 = vsel %vm523_vm0, %v6565_v20, %v6567_v14  ;;  %v6570_v38 = vsel %vm523_vm0, %v6567_v14, %v6569_v37  ;;  %v9519_v20 = vld [vmem:[%s16458_s1 + $0xd0] sm:$0xff]  ;;  %v6894_v14 = vrot.slane %v15103_v63, 3 }
 0xd7f   : > { %11339 = vmatpush1.bf16.msra.mxu0 %v11338_v22  ;;  %v11465_v22 = vpack.c.bf16 %v6547_v26, %v6545_v21  ;;  %v9534_v21 = vld [vmem:[%s16458_s1 + $0x128] sm:$0xff]  ;;  %v9536_v26 = vld [vmem:[%s16458_s1 + $0x138] sm:$0xff] }
 0xd80   : > { %11341 = vmatprep.subr.bf16.mxu0 %v11340_v36  ;;  %v6544_v36 = vld [vmem:[%s16458_s1] sm:$0xff] }
 0xd81   : > { %v11467_v41 = vpack.c.bf16 %v6546_v56, %v6544_v36  ;;  %v6896_v36 = vrot.slane %v15120_v35, 3 }
 0xd83   : > { %11343 = vmatpush1.bf16.msra.mxu0 %v11342_v62  ;;  %v6551_v62 = vld [vmem:[%s16458_s1 + $0x38] sm:$0xff] }
 0xd84   : > { %11345 = vmatprep.subr.bf16.mxu0 %v11344_v49  ;;  %v11469_v49 = vpack.c.bf16 %v6551_v62, %v6549_v33  ;;  %v9535_v33 = vld [vmem:[%s16458_s1 + $0x130] sm:$0xff]  ;;  %v6897_v62 = vsel %vm857_vm4, %v6894_v14, %v6896_v36 }
 0xd87   : > { %11347 = vmatpush1.bf16.msra.mxu0 %v11346_v10  ;;  %v11471_v10 = vpack.c.bf16 %v6550_v8, %v6548_v59 }
 0xd88   : > { %9432 = vmatprep.subr.msk.mxu0 %vm979_vm2, %v9431_v44  ;;  %v9506_v44 = vld [vmem:[%s16458_s1 + $0x88] sm:$0xff] }
 0xd8b   : > { %9433 = vmatpush1.msk.msra.mxu0 %vm979_vm2, %v9430_v11  ;;  %v9508_v11 = vld [vmem:[%s16458_s1 + $0x98] sm:$0xff] }
 0xd8c   : > { %9434 = vmatmul.mubr.msk.f32.vlgmr.msra.gmra.mrb[40].mxu0 %vm1376_vm9, %v14787_v61  ;;  %11458 = vmatprep.subr.bf16.mxu0 %v11457_v18  ;;  %v11473_v13 = vpack.c.bf16 %v9508_v11, %v9506_v44  ;;  %v9518_v18 = vld [vmem:[%s16458_s1 + $0xc8] sm:$0xff]  ;;  %v7014_v44 = vrot.slane %v15103_v63, 4 }
 0xd8d   : > { %5911 = vmatprep.mubr.f32.mxu0 %v12113_v7  ;;  %11460 = vmatpush1.bf16.msra.mxu0 %v11459_v28  ;;  %v11481_v39 = vpack.c.bf16 %v9520_v5, %v9518_v18  ;;  %v7016_v28 = vrot.slane %v15120_v35, 4  ;;  %v9444_v18 = vld [vmem:[%s16466_s9 + $0x70] sm:$0xff]  ;;  %v9445_v5 = vld [vmem:[%s16466_s9 + $0x78] sm:$0xff] }
 0xd8e   : > { %11462 = vmatprep.subr.bf16.mxu0 %v11461_v51  ;;  %v7018_v51 = vrot.slane %v15126_v29, 4 }
 0xd90   : > { %9435 = vmatmul.mubr.msk.f32.gmra.mrb[42].mxu0 %vm1376_vm9, %v5829_v54  ;;  %v5961_v54 = vld [vmem:[%s16465_s8 + $0x98] sm:$0xff]  ;;  %v15201_v2 = vsel %vm979_vm2, %v7016_v28, %v7018_v51 }
 0xd91   : > { %6643 = vmatprep.mubr.f32.mxu0 %v12113_v7  ;;  %v11376_v61 = vpack.c.bf16 %v5961_v54, %v5960_v0  ;;  %11464 = vmatpush1.bf16.msra.mxu0 %v11463_v19  ;;  %v9510_v0 = vld [vmem:[%s16458_s1 + $0xa8] sm:$0xff]  ;;  %v9512_v54 = vld [vmem:[%s16458_s1 + $0xb8] sm:$0xff]  ;;  %v6774_v19 = vrot.slane %v15103_v63, 2 }
 0xd92   : > { %11466 = vmatprep.subr.bf16.mxu0 %v11465_v22  ;;  %v11477_v50 = vpack.c.bf16 %v9512_v54, %v9510_v0 }
 0xd93   : > { %11377 = vmatpush1.bf16.msra.mxu1 %v11376_v61  ;;  %v11475_v61 = vpack.c.bf16 %v9507_v40, %v9505_v12  ;;  %v7017_v12 = vsel %vm979_vm2, %v7014_v44, %v7016_v28  ;;  %v9441_v40 = vld [vmem:[%s16466_s9 + $0x58] sm:$0xff]  ;;  %v9447_v28 = vld [vmem:[%s16466_s9 + $0x88] sm:$0xff] }
 0xd94   : > { %11378 = vmatprep.subr.bf16.mxu1 %v12114_v15  ;;  %9497 = vmatmul.mubr.msk.f32.vlgmr.msra.gmra.mrb[44].mxu0 %vm531_vm1, %v6566_v24  ;;  %v9522_v24 = vld [vmem:[%s16458_s1 + $0xe8] sm:$0xff] }
 0xd95   : > { %6649 = vmatprep.mubr.f32.mxu0 %v12113_v7  ;;  %11468 = vmatpush1.bf16.msra.mxu0 %v11467_v41  ;;  %v9533_v41 = vld [vmem:[%s16458_s1 + $0x120] sm:$0xff] }
 0xd96   : > { %11470 = vmatprep.subr.bf16.mxu0 %v11469_v49  ;;  %v6898_v49 = vrot.slane %v15126_v29, 3  ;;  %v11495_v59 = vpack.c.bf16 %v9535_v33, %v9533_v41  ;;  %v9453_v41 = vld [vmem:[%s16466_s9 + $0xa8] sm:$0xff] }
 0xd98   : > { %9498 = vmatmul.mubr.msk.f32.gmra.mrb[46].mxu0 %vm531_vm1, %v6568_v60  ;;  %v9529_v60 = vld [vmem:[%s16458_s1 + $0x100] sm:$0xff]  ;;  %v6899_v8 = vsel %vm857_vm4, %v6896_v36, %v6898_v49  ;;  %v6129_v36 = vld [vmem:[%s16466_s9 + $0x48] sm:$0xff] }
 0xd99   : > { %6655 = vmatprep.mubr.f32.mxu0 %v12113_v7  ;;  %11472 = vmatpush1.bf16.msra.mxu0 %v11471_v10  ;;  %v7013_v10 = vrot.slane %v15100_v6, 4 }
 0xd9a   : > { %11474 = vmatprep.subr.bf16.mxu0 %v11473_v13 }
 0xd9b   : > { %v7015_v11 = vsel %vm979_vm2, %v7013_v10, %v7014_v44  ;;  %v9457_v10 = vld [vmem:[%s16466_s9 + $0xc8] sm:$0xff] }
 0xd9c   : > { %9499 = vmatmul.mubr.msk.f32.gmra.mrb[48].mxu0 %vm531_vm1, %v6570_v38  ;;  %v11493_v38 = vpack.c.bf16 %v9536_v26, %v9534_v21  ;;  %v6127_v21 = vld [vmem:[%s16466_s9 + $0x38] sm:$0xff] }
 0xd9d   : > { %6661 = vmatprep.mubr.f32.mxu0 %v12113_v7 }
 0xda0   : > { %9500 = vmatmul.mubr.msk.f32.gmra.mrb[50].mxu0 %vm531_vm1, %v6569_v37  ;;  %v9531_v37 = vld [vmem:[%s16458_s1 + $0x110] sm:$0xff] }
 0xda1   : > { %6740 = vmatprep.mubr.f32.mxu0 %v12113_v7  ;;  %v11491_v56 = vpack.c.bf16 %v9531_v37, %v9529_v60  ;;  %v6126_v37 = vld [vmem:[%s16466_s9 + $0x30] sm:$0xff] }
 0xda2   : > { %v11407_v26 = vpack.c.bf16 %v6127_v21, %v6126_v37  ;;  %v7125_v37 = vld [vmem:[%s16459_s2] sm:$0x3] }
 0xda4   : > { %9501 = vmatmul.mubr.msk.f32.vlgmr.msra.gmra.mrb[44].mxu0 %vm531_vm1, %v15100_v6 }
 0xda5   : > { %6746 = vmatprep.mubr.f32.mxu0 %v12113_v7  ;;  %11476 = vmatpush1.bf16.msra.mxu0 %v11475_v61 }
 0xda6   : > { %11478 = vmatprep.subr.bf16.mxu0 %v11477_v50  ;;  %v9442_v50 = vld [vmem:[%s16466_s9 + $0x60] sm:$0xff] }
 0xda7   : > { %v11386_v17 = vpack.c.bf16 %v9443_v16, %v9442_v50  ;;  %v9466_v50 = vld [vmem:[%s16466_s9 + $0x108] sm:$0xff] }
 0xda8   : > { %9502 = vmatmul.mubr.msk.f32.gmra.mrb[46].mxu0 %vm531_vm1, %v15103_v63 }
 0xda9   : > { %6752 = vmatprep.mubr.f32.mxu0 %v12113_v7  ;;  %11480 = vmatpush1.bf16.msra.mxu0 %v11479_v55  ;;  %v11389_v55 = vpack.c.bf16 %v9445_v5, %v9444_v18  ;;  %v9468_v18 = vld [vmem:[%s16466_s9 + $0x118] sm:$0xff] }
 0xdaa   : > { %11482 = vmatprep.subr.bf16.mxu0 %v11481_v39  ;;  %v9446_v39 = vld [vmem:[%s16466_s9 + $0x80] sm:$0xff] }
 0xdac   : > { %9503 = vmatmul.mubr.msk.f32.gmra.mrb[48].mxu0 %vm531_vm1, %v15120_v35 }
 0xdad   : > { %6758 = vmatprep.mubr.f32.mxu0 %v12113_v7 }
 0xdb0   : > { %9504 = vmatmul.mubr.msk.f32.gmra.mrb[50].mxu0 %vm531_vm1, %v15126_v29 }
 0xdb1   : > { %6852 = vmatprep.mubr.f32.mxu0 %v12113_v7 }
 0xe5f   : > { %v5907_v34 = vpop.f32.mrb[40].mxu0 }
 0xe60   : > { %v5934_v31 = vadd.f32 %v5927_v4, %v5907_v34  ;;  %v5909_v32 = vpop.f32.mrb[41].mxu0  ;;  %v11483_v34 = vpack.c.bf16 %v9519_v20, %v9517_v27 }
 0xe61   : > { %v5935_v42 = vadd.f32 %v5931_v30, %v5909_v32  ;;  %v9521_v32 = vld [vmem:[%s16458_s1 + $0xe0] sm:$0xff] }
 0xe62   : > { %v5938_v9 = vmax.f32 %v5934_v31, 0.0  ;;  %v11485_v31 = vpack.c.bf16 %v9524_v25, %v9522_v24 }
 0xe63   : > { %v5939_v43 = vmax.f32 %v5935_v42, 0.0  ;;  %v5913_v46 = vpop.f32.mrb[42].mxu0  ;;  %v9523_v42 = vld [vmem:[%s16458_s1 + $0xf0] sm:$0xff] }
 0xe64   : > { %v5936_v47 = vadd.f32 %v5927_v4, %v5913_v46  ;;  %v5915_v52 = vpop.f32.mrb[43].mxu0  ;;  %v6775_v4 = vsel %vm735_vm3, %v6773_v1, %v6774_v19  ;;  %v9532_v46 = vld [vmem:[%s16458_s1 + $0x118] sm:$0xff] }
 0xe65   : > { %v5937_v53 = vadd.f32 %v5931_v30, %v5915_v52  ;;  %9436 = vmatprep.mubr.msk.f32.mxu1 %vm531_vm1, %v5939_v43  ;;  %v6776_v30 = vrot.slane %v15120_v35, 2  ;;  %v9530_v43 = vld [vmem:[%s16458_s1 + $0x108] sm:$0xff]  ;;  %9513 = vmatmul.mubr.msk.f32.vlgmr.msra.gmra.mrb[44].mxu0 %vm531_vm1, %v6775_v4  ;;  %v11487_v52 = vpack.c.bf16 %v9523_v42, %v9521_v32  ;;  %v9440_v35 = vld [vmem:[%s16466_s9 + $0x50] sm:$0xff]  ;;  %v9449_v1 = vld [vmem:[%s16466_s9 + $0x98] sm:$0xff] }
 0xe66   : > { %6033 = vmatmul.mubr.f32.vlgmr.msra.gmra.mrb[38].mxu1 %v5938_v9  ;;  %v5940_v58 = vmax.f32 %v5936_v47, 0.0  ;;  %6858 = vmatprep.mubr.f32.mxu0 %v12113_v7  ;;  %v6778_v47 = vrot.slane %v15126_v29, 2  ;;  %v6043_v29 = vld [vmem:[%s16464_s7] sm:$0x1f]  ;;  %v11383_v61 = vpack.c.bf16 %v9441_v40, %v9440_v35  ;;  %v6121_v42 = vld [vmem:[%s16466_s9 + $0x8] sm:$0xff]  ;;  %v9463_v40 = vld [vmem:[%s16466_s9 + $0xf0] sm:$0xff] }
 0xe67   : > { %v5941_v23 = vmax.f32 %v5937_v53, 0.0  ;;  %v6777_v9 = vsel %vm735_vm3, %v6774_v19, %v6776_v30  ;;  %11484 = vmatpush1.bf16.msra.mxu0 %v11483_v34  ;;  %v11489_v53 = vpack.c.bf16 %v9532_v46, %v9530_v43  ;;  %v6120_v32 = vld [vmem:[%s16466_s9] sm:$0xff] }
 0xe68   : > { %11486 = vmatprep.subr.bf16.mxu0 %v11485_v31  ;;  %v11398_v46 = vpack.c.bf16 %v6121_v42, %v6120_v32  ;;  %v9475_v32 = vld [vmem:[%s16466_s9 + $0x148] sm:$0xff] }
 0xe69   : > { %9437 = vmatprep.mubr.msk.f32.mxu1 %vm531_vm1, %v5941_v23  ;;  %9514 = vmatmul.mubr.msk.f32.gmra.mrb[46].mxu0 %vm531_vm1, %v6777_v9  ;;  %v6779_v23 = vsel %vm735_vm3, %v6776_v30, %v6778_v47 }
 0xe6a   : > { %6038 = vmatmul.mubr.f32.gmra.mrb[40].mxu1 %v5940_v58  ;;  %6864 = vmatprep.mubr.f32.mxu0 %v12113_v7  ;;  %v6893_v58 = vrot.slane %v15100_v6, 3 }
 0xe6b   : > { %10281 = vmatprep.mubr.msk.f32.mxu1 %vm12116_vm10, %v12113_v7  ;;  %11488 = vmatpush1.bf16.msra.mxu0 %v11487_v52  ;;  %v6122_v52 = vld [vmem:[%s16466_s9 + $0x10] sm:$0xff] }
 0xe6c   : > { %11490 = vmatprep.subr.bf16.mxu0 %v11489_v53  ;;  %v6895_v22 = vsel %vm857_vm4, %v6893_v58, %v6894_v14  ;;  %v6123_v53 = vld [vmem:[%s16466_s9 + $0x18] sm:$0xff]  ;;  %v6124_v58 = vld [vmem:[%s16466_s9 + $0x20] sm:$0xff]  ;;  %v6125_v14 = vld [vmem:[%s16466_s9 + $0x28] sm:$0xff] }
 0xe6d   : > { %9515 = vmatmul.mubr.msk.f32.gmra.mrb[48].mxu0 %vm531_vm1, %v6779_v23  ;;  %v11401_v23 = vpack.c.bf16 %v6123_v53, %v6122_v52  ;;  %v11404_v60 = vpack.c.bf16 %v6125_v14, %v6124_v58  ;;  %v9478_v53 = vld [vmem:[%s16466_s9 + $0x160] sm:$0xff]  ;;  %v9480_v14 = vld [vmem:[%s16466_s9 + $0x170] sm:$0xff] }
 0xe6e   : > { %6870 = vmatprep.mubr.f32.mxu0 %v12113_v7 }
 0xe71   : > { %9516 = vmatmul.mubr.msk.f32.gmra.mrb[50].mxu0 %vm531_vm1, %v6778_v47 }
 0xe72   : > { %6972 = vmatprep.mubr.f32.mxu0 %v12113_v7 }
 0xe75   : > { %9525 = vmatmul.mubr.msk.f32.vlgmr.msra.gmra.mrb[44].mxu0 %vm531_vm1, %v6895_v22  ;;  %v6128_v22 = vld [vmem:[%s16466_s9 + $0x40] sm:$0xff] }
 0xe76   : > { %6978 = vmatprep.mubr.f32.mxu0 %v12113_v7  ;;  %11492 = vmatpush1.bf16.msra.mxu0 %v11491_v56  ;;  %v11410_v56 = vpack.c.bf16 %v6129_v36, %v6128_v22  ;;  %v9483_v22 = vld [vmem:[%s16466_s9 + $0x188] sm:$0xff]  ;;  %v15518_v36 = vrot.slane %v7125_v37, %v12549_v3 }
 0xe77   : > { %11494 = vmatprep.subr.bf16.mxu0 %v11493_v38  ;;  %v9452_v38 = vld [vmem:[%s16466_s9 + $0xa0] sm:$0xff] }
 0xe78   : > { %v11413_v33 = vpack.c.bf16 %v9453_v41, %v9452_v38  ;;  %v7153_v38 = vld [vmem:[%s16461_s4] sm:$0xff]  ;;  %v7154_v41 = vld [vmem:[%s16461_s4 + $0x8] sm:$0xff] }
 0xe79   : > { %9526 = vmatmul.mubr.msk.f32.gmra.mrb[46].mxu0 %vm531_vm1, %v6897_v62  ;;  %v9454_v62 = vld [vmem:[%s16466_s9 + $0xb0] sm:$0xff] }
 0xe7a   : > { %6984 = vmatprep.mubr.f32.mxu0 %v12113_v7  ;;  %11496 = vmatpush1.bf16.msra.mxu0 %v11495_v59 }
 0xe7d   : > { %9527 = vmatmul.mubr.msk.f32.gmra.mrb[48].mxu0 %vm531_vm1, %v6899_v8  ;;  %v9456_v8 = vld [vmem:[%s16466_s9 + $0xc0] sm:$0xff] }
 0xe7e   : > { %6990 = vmatprep.mubr.f32.mxu0 %v12113_v7  ;;  %v11419_v44 = vpack.c.bf16 %v9457_v10, %v9456_v8  ;;  %v7156_v8 = vld [vmem:[%s16461_s4 + $0x18] sm:$0xff] }
 0xe81   : > { %9528 = vmatmul.mubr.msk.f32.gmra.mrb[50].mxu0 %vm531_vm1, %v6898_v49  ;;  %v9455_v49 = vld [vmem:[%s16466_s9 + $0xb8] sm:$0xff] }
 0xe82   : > { %7092 = vmatprep.mubr.f32.mxu0 %v12113_v7  ;;  %v11416_v59 = vpack.c.bf16 %v9455_v49, %v9454_v62  ;;  %v11498_v62 = vpack.c.bf16 %v7154_v41, %v7153_v38  ;;  %v9552_v41 = vld [vmem:[%s16462_s5 + $0xd0] sm:$0xff] }
 0xe85   : > { %9537 = vmatmul.mubr.msk.f32.vlgmr.msra.gmra.mrb[44].mxu0 %vm531_vm1, %v7015_v11  ;;  %v9458_v11 = vld [vmem:[%s16466_s9 + $0xd0] sm:$0xff] }
 0xe86   : > { %7098 = vmatprep.mubr.f32.mxu0 %v12113_v7 }
 0xe89   : > { %9538 = vmatmul.mubr.msk.f32.gmra.mrb[46].mxu0 %vm531_vm1, %v7017_v12  ;;  %v9459_v12 = vld [vmem:[%s16466_s9 + $0xd8] sm:$0xff] }
 0xe8a   : > { %7104 = vmatprep.mubr.f32.mxu0 %v12113_v7 }
 0xe8d   : > { %9539 = vmatmul.mubr.msk.f32.gmra.mrb[48].mxu0 %vm531_vm1, %v15201_v2  ;;  %v9448_v2 = vld [vmem:[%s16466_s9 + $0x90] sm:$0xff] }
 0xe8e   : > { %7110 = vmatprep.mubr.f32.mxu0 %v12113_v7  ;;  %v11395_v19 = vpack.c.bf16 %v9449_v1, %v9448_v2  ;;  %v9472_v2 = vld [vmem:[%s16466_s9 + $0x138] sm:$0xff] }
 0xe91   : > { %9540 = vmatmul.mubr.msk.f32.gmra.mrb[50].mxu0 %vm531_vm1, %v7018_v51  ;;  %v11392_v51 = vpack.c.bf16 %v9447_v28, %v9446_v39  ;;  %v9470_v39 = vld [vmem:[%s16466_s9 + $0x128] sm:$0xff] }
 0xf39   : > { %v6034_v6 = vpop.f32.mrb[38].mxu1 }
 0xf3a   : > { %v6036_v63 = vpop.f32.mrb[39].mxu1 }
 0xf3b   : > { %v9460_v63 = vld [vmem:[%s16466_s9 + $0xe0] sm:$0xff] }
 0xf3d   : > { %v6039_v13 = vpop.f32.mrb[40].mxu1 }
 0xf3e   : > { %v11379_v0 = vpack.c.bf16 %v6039_v13, %v6034_v6  ;;  %v6041_v54 = vpop.f32.mrb[41].mxu1  ;;  %v11422_v6 = vpack.c.bf16 %v9459_v12, %v9458_v11  ;;  %v9461_v13 = vld [vmem:[%s16466_s9 + $0xe8] sm:$0xff]  ;;  %v7159_v12 = vld [vmem:[%s16461_s4 + $0x30] sm:$0xff] }
 0xf3f   : > { %v11425_v35 = vpack.c.bf16 %v9461_v13, %v9460_v63  ;;  %v7161_v13 = vld [vmem:[%s16461_s4 + $0x40] sm:$0xff] }
 0xf40   : > { %11381 = vmatpush3.bf16.msk.msra.mxu1 %vm13262_vm12, %v11379_v0  ;;  %v9464_v0 = vld [vmem:[%s16466_s9 + $0xf8] sm:$0xff] }
 0xf41   : > { %11382 = vmatprep.subr.bf16.mxu1 %v12114_v15  ;;  %v11428_v54 = vpack.c.bf16 %v9464_v0, %v9463_v40  ;;  %v7163_v0 = vld [vmem:[%s16461_s4 + $0x50] sm:$0xff] }
 0xf43   : > { %10282 = vmatmul.mubr.msk.f32.vlgmr.msra.gmra.mrb[42].mxu1 %vm2024_vm13, %v6043_v29 }
 0xf44   : > { %11384 = vmatpush3.bf16.msra.mxu1 %v11383_v61  ;;  %10304 = vmatprep.mubr.msk.f32.mxu1 %vm12116_vm10, %v12113_v7  ;;  %v9465_v61 = vld [vmem:[%s16466_s9 + $0x100] sm:$0xff] }
 0xf45   : > { %11385 = vmatprep.subr.bf16.mxu1 %v12114_v15  ;;  %v11431_v16 = vpack.c.bf16 %v9466_v50, %v9465_v61  ;;  %v7165_v61 = vld [vmem:[%s16461_s4 + $0x60] sm:$0xff]  ;;  %v7166_v50 = vld [vmem:[%s16461_s4 + $0x68] sm:$0xff] }
 0xf48   : > { %11387 = vmatpush3.bf16.msra.mxu1 %v11386_v17  ;;  %v9467_v17 = vld [vmem:[%s16466_s9 + $0x110] sm:$0xff] }
 0xf49   : > { %11388 = vmatprep.subr.bf16.mxu1 %v12114_v15  ;;  %v11434_v5 = vpack.c.bf16 %v9468_v18, %v9467_v17  ;;  %v7167_v17 = vld [vmem:[%s16461_s4 + $0x70] sm:$0xff]  ;;  %v7168_v18 = vld [vmem:[%s16461_s4 + $0x78] sm:$0xff] }
 0xf4c   : > { %11390 = vmatpush3.bf16.msra.mxu1 %v11389_v55  ;;  %v9469_v55 = vld [vmem:[%s16466_s9 + $0x120] sm:$0xff] }
 0xf4d   : > { %11391 = vmatprep.subr.bf16.mxu1 %v12114_v15  ;;  %v11437_v28 = vpack.c.bf16 %v9470_v39, %v9469_v55  ;;  %v7169_v55 = vld [vmem:[%s16461_s4 + $0x80] sm:$0xff]  ;;  %v7170_v39 = vld [vmem:[%s16461_s4 + $0x88] sm:$0xff] }
 0xf50   : > { %11393 = vmatpush3.bf16.msra.mxu1 %v11392_v51  ;;  %v9471_v51 = vld [vmem:[%s16466_s9 + $0x130] sm:$0xff] }
 0xf51   : > { %11394 = vmatprep.subr.bf16.mxu1 %v12114_v15  ;;  %v11440_v1 = vpack.c.bf16 %v9472_v2, %v9471_v51  ;;  %v7171_v51 = vld [vmem:[%s16461_s4 + $0x90] sm:$0xff]  ;;  %v7172_v2 = vld [vmem:[%s16461_s4 + $0x98] sm:$0xff] }
 0xf54   : > { %11396 = vmatpush3.bf16.msra.mxu1 %v11395_v19  ;;  %v9474_v19 = vld [vmem:[%s16466_s9 + $0x140] sm:$0xff] }
 0xf55   : > { %11397 = vmatprep.subr.bf16.mxu1 %v12114_v15  ;;  %v11443_v42 = vpack.c.bf16 %v9475_v32, %v9474_v19  ;;  %v11525_v19 = vpack.c.bf16 %v7172_v2, %v7171_v51 }
 0xf58   : > { %v15342_v27 = vpop.f32.mrb[44].mxu0 }
 0xf59   : > { %v15344_v20 = vpop.f32.mrb[45].mxu0 }
 0xf5c   : > { %v15346_v24 = vpop.f32.mrb[46].mxu0 }
 0xf5d   : > { %v15348_v25 = vpop.f32.mrb[47].mxu0 }
 0xf60   : > { %v15350_v4 = vpop.f32.mrb[48].mxu0 }
 0xf61   : > { %v15352_v30 = vpop.f32.mrb[49].mxu0 }
 0xf64   : > { %v15354_v34 = vpop.f32.mrb[50].mxu0 }
 0xf65   : > { %v15356_v31 = vpop.f32.mrb[51].mxu0 }
0x1016   : > { %v15364_v43 = vpop.f32.mrb[42].mxu1 }
0x1017   : > { %v6141_v9 = vrot.slane %v15364_v43, 1  ;;  %v10283_v47 = vpop.f32.mrb[43].mxu1  ;;  %v6296_v29 = vrot.slane %v15364_v43, 2  ;;  %v6464_v49 = vrot.slane %v15364_v43, 4 }
0x1018   : > { %v9477_v47 = vld [vmem:[%s16466_s9 + $0x158] sm:$0xff] }
0x1019   : > { %10305 = vmatmul.mubr.msk.f32.vlgmr.msra.gmra.mrb[44].mxu1 %vm2125_vm14, %v6141_v9  ;;  %v9476_v9 = vld [vmem:[%s16466_s9 + $0x150] sm:$0xff] }
0x101a   : > { %11399 = vmatpush3.bf16.msra.mxu1 %v11398_v46  ;;  %10327 = vmatprep.mubr.msk.f32.mxu1 %vm12116_vm10, %v12113_v7  ;;  %v6380_v46 = vrot.slane %v15364_v43, 3  ;;  %v11446_v52 = vpack.c.bf16 %v9477_v47, %v9476_v9 }
0x101b   : > { %11400 = vmatprep.subr.bf16.mxu1 %v12114_v15 }
0x101e   : > { %11402 = vmatpush3.bf16.msra.mxu1 %v11401_v23  ;;  %v9479_v23 = vld [vmem:[%s16466_s9 + $0x168] sm:$0xff] }
0x101f   : > { %11403 = vmatprep.subr.bf16.mxu1 %v12114_v15  ;;  %v11449_v58 = vpack.c.bf16 %v9479_v23, %v9478_v53  ;;  %v7142_v53 = vadd.f32 %v15518_v36, %v15352_v30 }
0x1021   : > { %v7150_v23 = vmax.f32 %v7142_v53, 0.0  ;;  %v7949_v53 = vld [vmem:[%s16465_s8 + $0x8] sm:$0xff] }
0x1022   : > { %11405 = vmatpush3.bf16.msra.mxu1 %v11404_v60  ;;  %v9481_v60 = vld [vmem:[%s16466_s9 + $0x178] sm:$0xff] }
0x1023   : > { %11406 = vmatprep.subr.bf16.mxu1 %v12114_v15  ;;  %v11452_v21 = vpack.c.bf16 %v9481_v60, %v9480_v14 }
0x1026   : > { %11408 = vmatpush3.bf16.msra.mxu1 %v11407_v26  ;;  %v9482_v26 = vld [vmem:[%s16466_s9 + $0x180] sm:$0xff] }
0x1027   : > { %11409 = vmatprep.subr.bf16.mxu1 %v12114_v15 }
0x102a   : > { %11411 = vmatpush3.bf16.msra.mxu1 %v11410_v56  ;;  %v11455_v56 = vpack.c.bf16 %v9483_v22, %v9482_v26  ;;  %v9550_v26 = vld [vmem:[%s16462_s5 + $0xc0] sm:$0xff]  ;;  %v9553_v22 = vld [vmem:[%s16462_s5 + $0xd8] sm:$0xff] }
0x102b   : > { %11412 = vmatprep.subr.bf16.mxu1 %v12114_v15 }
0x102d   : > { %10328 = vmatmul.mubr.msk.f32.vlgmr.msra.gmra.mrb[44].mxu1 %vm2125_vm14, %v15364_v43  ;;  %v7157_v43 = vld [vmem:[%s16461_s4 + $0x20] sm:$0xff] }
0x102e   : > { %11414 = vmatpush3.bf16.msra.mxu1 %v11413_v33  ;;  %10350 = vmatprep.mubr.msk.f32.mxu1 %vm12116_vm10, %v12113_v7  ;;  %v7138_v33 = vadd.f32 %v15518_v36, %v15344_v20 }
0x102f   : > { %11415 = vmatprep.subr.bf16.mxu1 %v12114_v15 }
0x1030   : > { %v7146_v10 = vmax.f32 %v7138_v33, 0.0  ;;  %v9554_v33 = vld [vmem:[%s16462_s5 + $0xe0] sm:$0xff] }
0x1032   : > { %11417 = vmatpush3.bf16.msra.mxu1 %v11416_v59  ;;  %v7155_v59 = vld [vmem:[%s16461_s4 + $0x10] sm:$0xff] }
0x1033   : > { %11418 = vmatprep.subr.bf16.mxu1 %v12114_v15  ;;  %v11501_v20 = vpack.c.bf16 %v7156_v8, %v7155_v59  ;;  %v11543_v59 = vpack.c.bf16 %v9554_v33, %v9552_v41  ;;  %v7962_v33 = vld [vmem:[%s16465_s8 + $0x70] sm:$0xff] }
0x1036   : > { %11420 = vmatpush3.bf16.msra.mxu1 %v11419_v44  ;;  %v7158_v44 = vld [vmem:[%s16461_s4 + $0x28] sm:$0xff] }
0x1037   : > { %11421 = vmatprep.subr.bf16.mxu1 %v12114_v15  ;;  %v11504_v11 = vpack.c.bf16 %v7158_v44, %v7157_v43  ;;  %v9561_v43 = vld [vmem:[%s16462_s5 + $0x118] sm:$0xff]  ;;  %v9563_v44 = vld [vmem:[%s16462_s5 + $0x128] sm:$0xff] }
0x103a   : > { %11423 = vmatpush3.bf16.msra.mxu1 %v11422_v6  ;;  %v7160_v6 = vld [vmem:[%s16461_s4 + $0x38] sm:$0xff] }
0x103b   : > { %11424 = vmatprep.subr.bf16.mxu1 %v12114_v15  ;;  %v11507_v63 = vpack.c.bf16 %v7160_v6, %v7159_v12  ;;  %v11549_v12 = vpack.c.bf16 %v9563_v44, %v9561_v43  ;;  %v9560_v6 = vld [vmem:[%s16462_s5 + $0x110] sm:$0xff]  ;;  %v7362_v43 = vld [vmem:[%s16462_s5 + $0x28] sm:$0xff]  ;;  %v7364_v44 = vld [vmem:[%s16462_s5 + $0x38] sm:$0xff] }
0x103e   : > { %11426 = vmatpush3.bf16.msra.mxu1 %v11425_v35  ;;  %v7162_v35 = vld [vmem:[%s16461_s4 + $0x48] sm:$0xff] }
0x103f   : > { %11427 = vmatprep.subr.bf16.mxu1 %v12114_v15  ;;  %v11510_v40 = vpack.c.bf16 %v7162_v35, %v7161_v13  ;;  %v9565_v13 = vld [vmem:[%s16462_s5 + $0x138] sm:$0xff]  ;;  %v9567_v35 = vld [vmem:[%s16462_s5 + $0x148] sm:$0xff] }
0x1041   : > { %10351 = vmatmul.mubr.msk.f32.vlgmr.msra.gmra.mrb[44].mxu1 %vm2125_vm14, %v6296_v29 }
0x1042   : > { %11429 = vmatpush3.bf16.msra.mxu1 %v11428_v54  ;;  %10373 = vmatprep.mubr.msk.f32.mxu1 %vm12116_vm10, %v12113_v7  ;;  %v7164_v54 = vld [vmem:[%s16461_s4 + $0x58] sm:$0xff] }
0x1043   : > { %11430 = vmatprep.subr.bf16.mxu1 %v12114_v15  ;;  %v11513_v29 = vpack.c.bf16 %v7164_v54, %v7163_v0  ;;  %v11553_v0 = vpack.c.bf16 %v9567_v35, %v9565_v13  ;;  %v9564_v54 = vld [vmem:[%s16462_s5 + $0x130] sm:$0xff] }
0x1046   : > { %11432 = vmatpush3.bf16.msra.mxu1 %v11431_v16  ;;  %v11516_v16 = vpack.c.bf16 %v7166_v50, %v7165_v61 }
0x1047   : > { %11433 = vmatprep.subr.bf16.mxu1 %v12114_v15 }
0x104a   : > { %11435 = vmatpush3.bf16.msra.mxu1 %v11434_v5  ;;  %v11519_v5 = vpack.c.bf16 %v7168_v18, %v7167_v17 }
0x104b   : > { %11436 = vmatprep.subr.bf16.mxu1 %v12114_v15 }
0x104e   : > { %11438 = vmatpush3.bf16.msra.mxu1 %v11437_v28  ;;  %v11522_v28 = vpack.c.bf16 %v7170_v39, %v7169_v55 }
0x104f   : > { %11439 = vmatprep.subr.bf16.mxu1 %v12114_v15 }
0x1052   : > { %11441 = vmatpush3.bf16.msra.mxu1 %v11440_v1  ;;  %v7130_v1 = vrot.slane %v7125_v37, %v12544_v45  ;;  %v9548_v37 = vld [vmem:[%s16462_s5 + $0xb0] sm:$0xff] }
0x1053   : > { %11442 = vmatprep.subr.bf16.mxu1 %v12114_v15 }
0x1054   : > { %v7137_v32 = vadd.f32 %v7130_v1, %v15342_v27  ;;  %v7139_v47 = vadd.f32 %v7130_v1, %v15346_v24  ;;  %v7143_v24 = vadd.f32 %v7130_v1, %v15354_v34  ;;  %v9551_v34 = vld [vmem:[%s16462_s5 + $0xc8] sm:$0xff] }
0x1055   : > { %10374 = vmatmul.mubr.msk.f32.vlgmr.msra.gmra.mrb[44].mxu1 %vm2125_vm14, %v6380_v46  ;;  %v7173_v46 = vld [vmem:[%s16461_s4 + $0xa0] sm:$0xff] }
0x1056   : > { %11444 = vmatpush3.bf16.msra.mxu1 %v11443_v42  ;;  %10396 = vmatprep.mubr.msk.f32.mxu1 %vm12116_vm10, %v12113_v7  ;;  %v7140_v42 = vadd.f32 %v15518_v36, %v15348_v25  ;;  %v7145_v9 = vmax.f32 %v7137_v32, 0.0  ;;  %v7147_v27 = vmax.f32 %v7139_v47, 0.0  ;;  %v7141_v25 = vadd.f32 %v7130_v1, %v15350_v4  ;;  %v7271_v4 = vld [vmem:[%s16460_s3] sm:$0xff]  ;;  %v7272_v32 = vld [vmem:[%s16460_s3 + $0x8] sm:$0x3f] }
0x1057   : > { %11445 = vmatprep.subr.bf16.mxu1 %v12114_v15  ;;  %v7151_v30 = vmax.f32 %v7143_v24, 0.0  ;;  %10407 = vmatprep.mubr.msk.f32.mxu0 %vm1241_vm6, %v7271_v4  ;;  %v7953_v24 = vld [vmem:[%s16465_s8 + $0x28] sm:$0xff]  ;;  %v7955_v4 = vld [vmem:[%s16465_s8 + $0x38] sm:$0xff] }
0x1058   : > { %v7149_v14 = vmax.f32 %v7141_v25, 0.0 }
0x105a   : > { %11447 = vmatpush3.bf16.msra.mxu1 %v11446_v52  ;;  %v7148_v52 = vmax.f32 %v7140_v42, 0.0  ;;  %v9569_v42 = vld [vmem:[%s16462_s5 + $0x158] sm:$0xf] }
0x105b   : > { %11448 = vmatprep.subr.bf16.mxu1 %v12114_v15 }
0x105e   : > { %11450 = vmatpush3.bf16.msra.mxu1 %v11449_v58  ;;  %v7144_v58 = vadd.f32 %v15518_v36, %v15356_v31  ;;  %v9549_v31 = vld [vmem:[%s16462_s5 + $0xb8] sm:$0xff]  ;;  %v9555_v36 = vld [vmem:[%s16462_s5 + $0xe8] sm:$0xff] }
0x105f   : > { %11451 = vmatprep.subr.bf16.mxu1 %v12114_v15  ;;  %v11541_v38 = vpack.c.bf16 %v9555_v36, %v9553_v22  ;;  %v7959_v22 = vld [vmem:[%s16465_s8 + $0x58] sm:$0xff] }
0x1060   : > { %v7152_v60 = vmax.f32 %v7144_v58, 0.0 }
0x1062   : > { %11453 = vmatpush3.bf16.msra.mxu1 %v11452_v21  ;;  %v11537_v21 = vpack.c.bf16 %v9551_v34, %v9549_v31  ;;  %v7956_v34 = vld [vmem:[%s16465_s8 + $0x40] sm:$0xff] }
0x1063   : > { %11454 = vmatprep.subr.bf16.mxu1 %v12114_v15 }
0x1066   : > { %11456 = vmatpush3.bf16.msra.mxu1 %v11455_v56  ;;  %v11539_v56 = vpack.c.bf16 %v9550_v26, %v9548_v37  ;;  %v7957_v37 = vld [vmem:[%s16465_s8 + $0x48] sm:$0xff]  ;;  %v7958_v26 = vld [vmem:[%s16465_s8 + $0x50] sm:$0xff] }
0x1067   : > { %11497 = vmatprep.subr.bf16.mxu1 %v12114_v15  ;;  %v11653_v36 = vpack.c.bf16 %v7959_v22, %v7958_v26 }
0x1069   : > { %10397 = vmatmul.mubr.msk.f32.vlgmr.msra.gmra.mrb[44].mxu1 %vm2125_vm14, %v6464_v49  ;;  %v9559_v49 = vld [vmem:[%s16462_s5 + $0x108] sm:$0xff] }
0x106a   : > { %11499 = vmatpush1.bf16.msra.mxu1 %v11498_v62  ;;  %9541 = vmatprep.mubr.msk.f32.mxu1 %vm1141_vm5, %v7146_v10  ;;  %v9557_v62 = vld [vmem:[%s16462_s5 + $0xf8] sm:$0xff]  ;;  %v9556_v10 = vld [vmem:[%s16462_s5 + $0xf0] sm:$0xff] }
0x106b   : > { %11500 = vmatprep.subr.bf16.mxu1 %v12114_v15  ;;  %v11545_v8 = vpack.c.bf16 %v9559_v49, %v9557_v62  ;;  %v7963_v62 = vld [vmem:[%s16465_s8 + $0x78] sm:$0xff] }
0x106c   : > { %v11659_v49 = vpack.c.bf16 %v7963_v62, %v7962_v33 }
0x106e   : > { %11502 = vmatpush1.bf16.msra.mxu1 %v11501_v20  ;;  %v9558_v20 = vld [vmem:[%s16462_s5 + $0x100] sm:$0xff] }
0x106f   : > { %11503 = vmatprep.subr.bf16.mxu1 %v12114_v15 }
0x1072   : > { %11505 = vmatpush1.bf16.msra.mxu1 %v11504_v11  ;;  %v11547_v11 = vpack.c.bf16 %v9558_v20, %v9556_v10 }
0x1073   : > { %11506 = vmatprep.subr.bf16.mxu1 %v12114_v15 }
0x1076   : > { %11508 = vmatpush1.bf16.msra.mxu1 %v11507_v63  ;;  %v9562_v63 = vld [vmem:[%s16462_s5 + $0x120] sm:$0xff] }
0x1077   : > { %11509 = vmatprep.subr.bf16.mxu1 %v12114_v15 }
0x107a   : > { %11511 = vmatpush1.bf16.msra.mxu1 %v11510_v40  ;;  %v11551_v40 = vpack.c.bf16 %v9562_v63, %v9560_v6 }
0x107b   : > { %11512 = vmatprep.subr.bf16.mxu1 %v12114_v15 }
0x107e   : > { %11514 = vmatpush1.bf16.msra.mxu1 %v11513_v29  ;;  %v9566_v29 = vld [vmem:[%s16462_s5 + $0x140] sm:$0xff] }
0x107f   : > { %11515 = vmatprep.subr.bf16.mxu1 %v12114_v15  ;;  %v11555_v61 = vpack.c.bf16 %v9566_v29, %v9564_v54  ;;  %v11561_v29 = vpack.c.bf16 %v7364_v44, %v7362_v43 }
0x1082   : > { %11517 = vmatpush1.bf16.msra.mxu1 %v11516_v16 }
0x1083   : > { %11518 = vmatprep.subr.bf16.mxu1 %v12114_v15 }
0x1086   : > { %11520 = vmatpush1.bf16.msra.mxu1 %v11519_v5 }
0x1087   : > { %11521 = vmatprep.subr.bf16.mxu1 %v12114_v15 }
0x108a   : > { %11523 = vmatpush1.bf16.msra.mxu1 %v11522_v28 }
0x108b   : > { %11524 = vmatprep.subr.bf16.mxu1 %v12114_v15 }
0x108e   : > { %11526 = vmatpush1.bf16.msra.mxu1 %v11525_v19 }
0x108f   : > { %7226 = vmatprep.subr.mxu1 %v12113_v7 }
0x1092   : > { %7227 = vmatpush1.msra.mxu1 %v7173_v46  ;;  %v7358_v46 = vld [vmem:[%s16462_s5 + $0x8] sm:$0xff] }
0x1093   : > { %7251 = vmatmul.mubr.f32.vlgmr.msra.gmra.mrb[46].mxu1 %v7145_v9  ;;  %11538 = vmatprep.subr.bf16.mxu1 %v11537_v21  ;;  %v9568_v9 = vld [vmem:[%s16462_s5 + $0x150] sm:$0xf]  ;;  %v11557_v47 = vpack.c.bf16 %v7360_v48, %v7358_v46  ;;  %v11650_v21 = vpack.c.bf16 %v7957_v37, %v7956_v34  ;;  %v7369_v48 = vld [vmem:[%s16462_s5 + $0x60] sm:$0xff]  ;;  %v9585_v34 = vld [vmem:[%s16462_s5 + $0x198] sm:$0xff] }
0x1094   : > { %9542 = vmatprep.mubr.msk.f32.mxu1 %vm1141_vm5, %v7148_v52  ;;  %11540 = vmatpush1.bf16.msra.mxu1 %v11539_v56  ;;  %v7948_v52 = vld [vmem:[%s16465_s8] sm:$0xff] }
0x1095   : > { %11542 = vmatprep.subr.bf16.mxu1 %v11541_v38  ;;  %v11638_v25 = vpack.c.bf16 %v7949_v53, %v7948_v52  ;;  %v7960_v56 = vld [vmem:[%s16465_s8 + $0x60] sm:$0xff]  ;;  %v7961_v38 = vld [vmem:[%s16465_s8 + $0x68] sm:$0xff]  ;;  %v7376_v52 = vld [vmem:[%s16462_s5 + $0x98] sm:$0xff] }
0x1096   : > { %v11656_v41 = vpack.c.bf16 %v7961_v38, %v7960_v56  ;;  %v7377_v37 = vld [vmem:[%s16462_s5 + $0xa0] sm:$0xf]  ;;  %v9584_v56 = vld [vmem:[%s16462_s5 + $0x190] sm:$0xff]  ;;  %v9587_v38 = vld [vmem:[%s16462_s5 + $0x1a8] sm:$0xff] }
0x1097   : > { %7256 = vmatmul.mubr.f32.gmra.mrb[48].mxu1 %v7147_v27  ;;  %v7950_v27 = vld [vmem:[%s16465_s8 + $0x10] sm:$0xff] }
0x1098   : > { %9543 = vmatprep.mubr.msk.f32.mxu1 %vm1141_vm5, %v7150_v23  ;;  %11544 = vmatpush1.bf16.msra.mxu1 %v11543_v59  ;;  %v7951_v23 = vld [vmem:[%s16465_s8 + $0x18] sm:$0xff]  ;;  %v7357_v59 = vld [vmem:[%s16462_s5] sm:$0xff] }
0x1099   : > { %11546 = vmatprep.subr.bf16.mxu1 %v11545_v8  ;;  %v11641_v58 = vpack.c.bf16 %v7951_v23, %v7950_v27  ;;  %v7359_v8 = vld [vmem:[%s16462_s5 + $0x10] sm:$0xff] }
0x109a   : > { %v11559_v20 = vpack.c.bf16 %v7359_v8, %v7357_v59  ;;  %v7375_v23 = vld [vmem:[%s16462_s5 + $0x90] sm:$0xff]  ;;  %v9591_v8 = vld [vmem:[%s16462_s5 + $0x1c8] sm:$0xff] }
0x109b   : > { %7261 = vmatmul.mubr.f32.gmra.mrb[50].mxu1 %v7149_v14  ;;  %v7952_v14 = vld [vmem:[%s16465_s8 + $0x20] sm:$0xff]  ;;  %v9588_v59 = vld [vmem:[%s16462_s5 + $0x1b0] sm:$0xff] }
0x109c   : > { %9544 = vmatprep.mubr.msk.f32.mxu1 %vm1141_vm5, %v7152_v60  ;;  %11548 = vmatpush1.bf16.msra.mxu1 %v11547_v11  ;;  %v11644_v60 = vpack.c.bf16 %v7953_v24, %v7952_v14  ;;  %v7378_v14 = vld [vmem:[%s16462_s5 + $0xa8] sm:$0xf] }
0x109d   : > { %11550 = vmatprep.subr.bf16.mxu1 %v11549_v12  ;;  %v9579_v24 = vld [vmem:[%s16462_s5 + $0x168] sm:$0xff] }
0x109f   : > { %7266 = vmatmul.mubr.f32.gmra.mrb[52].mxu1 %v7151_v30  ;;  %v7954_v30 = vld [vmem:[%s16465_s8 + $0x30] sm:$0xff] }
0x10a0   : > { %7480 = vmatprep.mubr.f32.mxu1 %v12113_v7  ;;  %11552 = vmatpush1.bf16.msra.mxu1 %v11551_v40  ;;  %v11647_v31 = vpack.c.bf16 %v7955_v4, %v7954_v30  ;;  %v9578_v30 = vld [vmem:[%s16462_s5 + $0x160] sm:$0xff]  ;;  %v9580_v4 = vld [vmem:[%s16462_s5 + $0x170] sm:$0xff] }
0x10a1   : > { %11554 = vmatprep.subr.bf16.mxu1 %v11553_v0  ;;  %v11579_v26 = vpack.c.bf16 %v9580_v4, %v9578_v30  ;;  %v9618_v30 = vld [vmem:[%s16462_s5 + $0x280] sm:$0xff]  ;;  %v9621_v4 = vld [vmem:[%s16462_s5 + $0x298] sm:$0xff] }
0x10a4   : > { %11556 = vmatpush1.bf16.msra.mxu1 %v11555_v61  ;;  %v7361_v61 = vld [vmem:[%s16462_s5 + $0x20] sm:$0xff] }
0x10a5   : > { %9570 = vmatprep.subr.msk.mxu1 %vm979_vm2, %v9569_v42 }
0x10a8   : > { %9571 = vmatpush1.msk.msra.mxu1 %vm979_vm2, %v9568_v9  ;;  %v7371_v9 = vld [vmem:[%s16462_s5 + $0x70] sm:$0xff] }
0x10a9   : > { %11558 = vmatprep.subr.bf16.mxu1 %v11557_v47  ;;  %v7374_v47 = vld [vmem:[%s16462_s5 + $0x88] sm:$0xff]  ;;  %v11571_v53 = vpack.c.bf16 %v7371_v9, %v7369_v48  ;;  %v9608_v48 = vld [vmem:[%s16462_s5 + $0x230] sm:$0xff]  ;;  %v9610_v9 = vld [vmem:[%s16462_s5 + $0x240] sm:$0xff] }
0x10aa   : > { %v11573_v27 = vpack.c.bf16 %v7376_v52, %v7374_v47  ;;  %v9613_v47 = vld [vmem:[%s16462_s5 + $0x258] sm:$0xff]  ;;  %v9615_v52 = vld [vmem:[%s16462_s5 + $0x268] sm:$0xff] }
0x113c   : > { %v6533_v50 = vpop.f32.mrb[44].mxu1 }
0x113d   : > { %6538 = vst.msk [vmem:[#allocation2 + $0x2] sm:$0x1] %vm2525_vm15, %v6533_v50  ;;  %v10398_v16 = vpop.f32.mrb[45].mxu1  ;;  %v7363_v50 = vld [vmem:[%s16462_s5 + $0x30] sm:$0xff] }
0x1166   : > { %v7252_v17 = vpop.f32.mrb[46].mxu1 }
0x1167   : > { %v7254_v18 = vpop.f32.mrb[47].mxu1 }
0x1168   : > { %v7368_v18 = vld [vmem:[%s16462_s5 + $0x58] sm:$0xff] }
0x116a   : > { %v7257_v5 = vpop.f32.mrb[48].mxu1 }
0x116b   : > { %v11527_v55 = vpack.c.bf16 %v7257_v5, %v7252_v17  ;;  %v7259_v39 = vpop.f32.mrb[49].mxu1  ;;  %v7366_v17 = vld [vmem:[%s16462_s5 + $0x48] sm:$0xff] }
0x116d   : > { %11528 = vmatprep.subr.bf16.mxu0 %v11527_v55 }
0x116e   : > { %v7262_v28 = vpop.f32.mrb[50].mxu1  ;;  %11530 = vmatpush3.bf16.msra.mxu0 %v11527_v55 }
0x116f   : > { %v7264_v51 = vpop.f32.mrb[51].mxu1 }
0x1170   : > { %v11565_v51 = vpack.c.bf16 %v7368_v18, %v7366_v17  ;;  %v9605_v17 = vld [vmem:[%s16462_s5 + $0x218] sm:$0xff]  ;;  %v9607_v18 = vld [vmem:[%s16462_s5 + $0x228] sm:$0xff] }
0x1172   : > { %v7267_v2 = vpop.f32.mrb[52].mxu1 }
0x1173   : > { %v11531_v1 = vpack.c.bf16 %v7267_v2, %v7262_v28  ;;  %v7269_v19 = vpop.f32.mrb[53].mxu1  ;;  %v11563_v28 = vpack.c.bf16 %v7363_v50, %v7361_v61  ;;  %v7365_v2 = vld [vmem:[%s16462_s5 + $0x40] sm:$0xff]  ;;  %v9596_v61 = vld [vmem:[%s16462_s5 + $0x1f0] sm:$0xff] }
0x1174   : > { %v7370_v19 = vld [vmem:[%s16462_s5 + $0x68] sm:$0xff] }
0x1175   : > { %11533 = vmatprep.subr.msk.bf16.mxu0 %vm12569_vm8, %v11531_v1 }
0x1176   : > { %11536 = vmatpush3.bf16.msk.msra.mxu0 %vm12569_vm8, %v11531_v1  ;;  %v7367_v1 = vld [vmem:[%s16462_s5 + $0x50] sm:$0xff] }
0x1177   : > { %11637 = vmatprep.subr.bf16.mxu0 %v12114_v15  ;;  %v11567_v42 = vpack.c.bf16 %v7367_v1, %v7365_v2  ;;  %v9609_v2 = vld [vmem:[%s16462_s5 + $0x238] sm:$0xff]  ;;  %v9611_v1 = vld [vmem:[%s16462_s5 + $0x248] sm:$0xff] }
0x1179   : > { %10408 = vmatmul.mubr.msk.f32.vlgmr.msra.gmra.mrb[52].mxu0 %vm1241_vm6, %v7272_v32  ;;  %v7372_v32 = vld [vmem:[%s16462_s5 + $0x78] sm:$0xff] }
0x117a   : > { %11639 = vmatpush1.bf16.msra.mxu0 %v11638_v25  ;;  %v11569_v46 = vpack.c.bf16 %v7372_v32, %v7370_v19  ;;  %v7373_v25 = vld [vmem:[%s16462_s5 + $0x80] sm:$0xff]  ;;  %v11597_v32 = vpack.c.bf16 %v9607_v18, %v9605_v17  ;;  %v9644_v17 = vld [vmem:[%s16462_s5 + $0x330] sm:$0xff]  ;;  %v9647_v18 = vld [vmem:[%s16462_s5 + $0x348] sm:$0xff] }
0x117b   : > { %11640 = vmatprep.subr.bf16.mxu0 %v12114_v15  ;;  %v9598_v19 = vld [vmem:[%s16462_s5 + $0x200] sm:$0xf] }
0x117e   : > { %11642 = vmatpush1.bf16.msra.mxu0 %v11641_v58  ;;  %v11575_v58 = vpack.c.bf16 %v7375_v23, %v7373_v25  ;;  %v9612_v25 = vld [vmem:[%s16462_s5 + $0x250] sm:$0xff]  ;;  %v9614_v23 = vld [vmem:[%s16462_s5 + $0x260] sm:$0xff] }
0x117f   : > { %11643 = vmatprep.subr.bf16.mxu0 %v12114_v15 }
0x1182   : > { %11645 = vmatpush1.bf16.msra.mxu0 %v11644_v60  ;;  %v9581_v60 = vld [vmem:[%s16462_s5 + $0x178] sm:$0xff] }
0x1183   : > { %11646 = vmatprep.subr.bf16.mxu0 %v12114_v15 }
0x1186   : > { %11648 = vmatpush1.bf16.msra.mxu0 %v11647_v31  ;;  %v9583_v31 = vld [vmem:[%s16462_s5 + $0x188] sm:$0xff] }
0x1187   : > { %11649 = vmatprep.subr.bf16.mxu0 %v12114_v15  ;;  %v11581_v22 = vpack.c.bf16 %v9585_v34, %v9583_v31 }
0x118a   : > { %11651 = vmatpush1.bf16.msra.mxu0 %v11650_v21  ;;  %v11577_v21 = vpack.c.bf16 %v9581_v60, %v9579_v24  ;;  %v9616_v60 = vld [vmem:[%s16462_s5 + $0x270] sm:$0xff] }
0x118b   : > { %11652 = vmatprep.subr.bf16.mxu0 %v12114_v15  ;;  %v11611_v31 = vpack.c.bf16 %v9618_v30, %v9616_v60 }
0x118e   : > { %11654 = vmatpush1.bf16.msra.mxu0 %v11653_v36  ;;  %v9582_v36 = vld [vmem:[%s16462_s5 + $0x180] sm:$0xff] }
0x118f   : > { %11655 = vmatprep.subr.bf16.mxu0 %v12114_v15  ;;  %v11583_v33 = vpack.c.bf16 %v9584_v56, %v9582_v36  ;;  %v9631_v36 = vld [vmem:[%s16462_s5 + $0x2c8] sm:$0xff]  ;;  %v9633_v56 = vld [vmem:[%s16462_s5 + $0x2d8] sm:$0xff] }
0x1192   : > { %11657 = vmatpush1.bf16.msra.mxu0 %v11656_v41  ;;  %v9589_v41 = vld [vmem:[%s16462_s5 + $0x1b8] sm:$0xff] }
0x1193   : > { %11658 = vmatprep.subr.bf16.mxu0 %v12114_v15  ;;  %v11585_v62 = vpack.c.bf16 %v9589_v41, %v9587_v38  ;;  %v9630_v38 = vld [vmem:[%s16462_s5 + $0x2c0] sm:$0xff]  ;;  %v9632_v41 = vld [vmem:[%s16462_s5 + $0x2d0] sm:$0xff] }
0x1196   : > { %11660 = vmatpush1.bf16.msra.mxu0 %v11659_v49  ;;  %v9586_v49 = vld [vmem:[%s16462_s5 + $0x1a0] sm:$0xff] }
0x1197   : > { %11661 = vmatprep.subr.bf16.mxu0 %v12114_v15  ;;  %v11587_v43 = vpack.c.bf16 %v9588_v59, %v9586_v49  ;;  %v9624_v49 = vld [vmem:[%s16462_s5 + $0x2b0] sm:$0xf]  ;;  %v11617_v59 = vpack.c.bf16 %v9633_v56, %v9631_v36  ;;  %v8049_v36 = vld [vmem:[%s16464_s7] sm:$0x1f] }
0x124c   : > { %v15764_v10 = vpop.f32.mrb[52].mxu0 }
0x124d   : > { %v7404_v11 = vrot.slane %v15764_v10, 1  ;;  %v7603_v12 = vrot.slane %v15764_v10, 2  ;;  %v7719_v6 = vrot.slane %v15764_v10, 3  ;;  %v7835_v63 = vrot.slane %v15764_v10, 4  ;;  %v7348_v13 = vpop.f32.mrb[53].mxu0 }
0x124e   : > { %v7403_v35 = vrot.slane %v7348_v13, 1  ;;  %v7602_v40 = vrot.slane %v7348_v13, 2  ;;  %v7718_v0 = vrot.slane %v7348_v13, 3  ;;  %v7834_v54 = vrot.slane %v7348_v13, 4 }
0x1250   : > { %v7405_v16 = vsel %vm523_vm0, %v7403_v35, %v7404_v11  ;;  %v15793_v5 = vsel %vm735_vm3, %v7602_v40, %v7603_v12  ;;  %v15798_v55 = vsel %vm857_vm4, %v7718_v0, %v7719_v6  ;;  %v15803_v39 = vsel %vm979_vm2, %v7834_v54, %v7835_v63  ;;  %v9595_v35 = vld [vmem:[%s16462_s5 + $0x1e8] sm:$0xff]  ;;  %v9597_v40 = vld [vmem:[%s16462_s5 + $0x1f8] sm:$0xff] }
0x1251   : > { %9572 = vmatmul.mubr.msk.f32.vlgmr.msra.gmra.mrb[54].mxu1 %vm1376_vm9, %v7405_v16  ;;  %v11593_v54 = vpack.c.bf16 %v9597_v40, %v9595_v35  ;;  %v9599_v16 = vld [vmem:[%s16462_s5 + $0x208] sm:$0xf]  ;;  %vm8577_vm0 = vcmask 982016  }
0x1252   : > { %11560 = vmatpush1.bf16.msra.mxu1 %v11559_v20  ;;  %7486 = vmatprep.mubr.f32.mxu1 %v12113_v7  ;;  %v9593_v20 = vld [vmem:[%s16462_s5 + $0x1d8] sm:$0xff] }
0x1253   : > { %11562 = vmatprep.subr.bf16.mxu1 %v11561_v29  ;;  %v11589_v44 = vpack.c.bf16 %v9593_v20, %v9591_v8  ;;  %v9594_v29 = vld [vmem:[%s16462_s5 + $0x1e0] sm:$0xff]  ;;  %v11619_v8 = vpack.c.bf16 %v9632_v41, %v9630_v38  ;;  %v9663_v41 = vld [vmem:[%s16466_s9 + $0x68] sm:$0xff] }
0x1254   : > { %v11595_v50 = vpack.c.bf16 %v9596_v61, %v9594_v29  ;;  %v9643_v29 = vld [vmem:[%s16462_s5 + $0x328] sm:$0xff]  ;;  %v9662_v38 = vld [vmem:[%s16466_s9 + $0x60] sm:$0xff] }
0x1255   : > { %9573 = vmatmul.mubr.msk.f32.gmra.mrb[56].mxu1 %vm1376_vm9, %v7404_v11  ;;  %v9590_v11 = vld [vmem:[%s16462_s5 + $0x1c0] sm:$0xff]  ;;  %v11675_v57 = vpack.c.bf16 %v9663_v41, %v9662_v38  ;;  %v9686_v38 = vld [vmem:[%s16466_s9 + $0x108] sm:$0xff] }
0x1256   : > { %11564 = vmatpush1.bf16.msra.mxu1 %v11563_v28  ;;  %7567 = vmatprep.mubr.f32.mxu1 %v12113_v7  ;;  %v9604_v28 = vld [vmem:[%s16462_s5 + $0x210] sm:$0xff] }
0x1257   : > { %11566 = vmatprep.subr.bf16.mxu1 %v11565_v51  ;;  %v9606_v51 = vld [vmem:[%s16462_s5 + $0x220] sm:$0xff] }
0x125a   : > { %11568 = vmatpush1.bf16.msra.mxu1 %v11567_v42  ;;  %v11599_v42 = vpack.c.bf16 %v9606_v51, %v9604_v28 }
0x125b   : > { %11570 = vmatprep.subr.bf16.mxu1 %v11569_v46  ;;  %v11601_v46 = vpack.c.bf16 %v9611_v1, %v9609_v2  ;;  %v9646_v2 = vld [vmem:[%s16462_s5 + $0x340] sm:$0xff]  ;;  %v9648_v1 = vld [vmem:[%s16462_s5 + $0x350] sm:$0xff] }
0x125e   : > { %11572 = vmatpush1.bf16.msra.mxu1 %v11571_v53  ;;  %v11603_v53 = vpack.c.bf16 %v9610_v9, %v9608_v48  ;;  %v7965_v48 = vld [vmem:[%s16465_s8 + $0x88] sm:$0xff] }
0x125f   : > { %11574 = vmatprep.subr.bf16.mxu1 %v11573_v27  ;;  %v11605_v27 = vpack.c.bf16 %v9615_v52, %v9613_v47  ;;  %v7928_v47 = vld [vmem:[%s16463_s6] sm:$0x3] }
0x1260   : > { %v7933_v52 = vrot.slane %v7928_v47, %v12544_v45 }
0x1262   : > { %11576 = vmatpush1.bf16.msra.mxu1 %v11575_v58  ;;  %v9617_v58 = vld [vmem:[%s16462_s5 + $0x278] sm:$0xff] }
0x1263   : > { %9574 = vmatprep.subr.msk.mxu1 %vm979_vm2, %v7378_v14  ;;  %v11607_v14 = vpack.c.bf16 %v9614_v23, %v9612_v25 }
0x1266   : > { %9575 = vmatpush1.msk.msra.mxu1 %vm979_vm2, %v7377_v37  ;;  %v9620_v37 = vld [vmem:[%s16462_s5 + $0x290] sm:$0xff] }
0x1267   : > { %9576 = vmatmul.mubr.msk.f32.vlgmr.msra.gmra.mrb[54].mxu1 %vm1376_vm9, %v7348_v13  ;;  %11578 = vmatprep.subr.bf16.mxu1 %v11577_v21  ;;  %v9592_v13 = vld [vmem:[%s16462_s5 + $0x1d0] sm:$0xff]  ;;  %v9622_v21 = vld [vmem:[%s16462_s5 + $0x2a0] sm:$0xff] }
0x1268   : > { %11580 = vmatpush1.bf16.msra.mxu1 %v11579_v26  ;;  %7573 = vmatprep.mubr.f32.mxu1 %v12113_v7  ;;  %v11591_v0 = vpack.c.bf16 %v9592_v13, %v9590_v11  ;;  %v11615_v26 = vpack.c.bf16 %v9622_v21, %v9620_v37  ;;  %v9639_v11 = vld [vmem:[%s16462_s5 + $0x308] sm:$0xff]  ;;  %v9641_v13 = vld [vmem:[%s16462_s5 + $0x318] sm:$0xff]  ;;  %v9660_v37 = vld [vmem:[%s16466_s9 + $0x50] sm:$0xff] }
0x1269   : > { %11582 = vmatprep.subr.bf16.mxu1 %v11581_v22  ;;  %v9625_v22 = vld [vmem:[%s16462_s5 + $0x2b8] sm:$0xf]  ;;  %v11625_v40 = vpack.c.bf16 %v9641_v13, %v9639_v11  ;;  %v8555_v13 = vld [vmem:[%s16468_s11] sm:$0xff] }
0x126a   : > { %v9661_v21 = vld [vmem:[%s16466_s9 + $0x58] sm:$0xff] }
0x126b   : > { %9577 = vmatmul.mubr.msk.f32.gmra.mrb[56].mxu1 %vm1376_vm9, %v15764_v10  ;;  %v7966_v10 = vld [vmem:[%s16465_s8 + $0x90] sm:$0xff]  ;;  %v11672_v56 = vpack.c.bf16 %v9661_v21, %v9660_v37 }
0x126c   : > { %11584 = vmatpush1.bf16.msra.mxu1 %v11583_v33  ;;  %7679 = vmatprep.mubr.f32.mxu1 %v12113_v7  ;;  %v9635_v33 = vld [vmem:[%s16462_s5 + $0x2e8] sm:$0xff]  ;;  %v9683_v21 = vld [vmem:[%s16466_s9 + $0xf0] sm:$0xff] }
0x126d   : > { %11586 = vmatprep.subr.bf16.mxu1 %v11585_v62  ;;  %v9637_v62 = vld [vmem:[%s16462_s5 + $0x2f8] sm:$0xff] }
0x126e   : > { %v11621_v20 = vpack.c.bf16 %v9637_v62, %v9635_v33  ;;  %v9664_v33 = vld [vmem:[%s16466_s9 + $0x70] sm:$0xff]  ;;  %v9665_v62 = vld [vmem:[%s16466_s9 + $0x78] sm:$0xff] }
0x1270   : > { %11588 = vmatpush1.bf16.msra.mxu1 %v11587_v43  ;;  %v9634_v43 = vld [vmem:[%s16462_s5 + $0x2e0] sm:$0xff] }
0x1271   : > { %11590 = vmatprep.subr.bf16.mxu1 %v11589_v44  ;;  %v9636_v44 = vld [vmem:[%s16462_s5 + $0x2f0] sm:$0xff] }
0x1272   : > { %v11623_v35 = vpack.c.bf16 %v9636_v44, %v9634_v43  ;;  %v9668_v43 = vld [vmem:[%s16466_s9 + $0x90] sm:$0xff]  ;;  %v9669_v44 = vld [vmem:[%s16466_s9 + $0x98] sm:$0xff] }
0x1273   : > { %v11684_v11 = vpack.c.bf16 %v9669_v44, %v9668_v43  ;;  %v9692_v43 = vld [vmem:[%s16466_s9 + $0x138] sm:$0xff] }
0x1274   : > { %11592 = vmatpush1.bf16.msra.mxu1 %v11591_v0  ;;  %v9638_v0 = vld [vmem:[%s16462_s5 + $0x300] sm:$0xff] }
0x1275   : > { %11594 = vmatprep.subr.bf16.mxu1 %v11593_v54  ;;  %v9640_v54 = vld [vmem:[%s16462_s5 + $0x310] sm:$0xff] }
0x1276   : > { %v11627_v61 = vpack.c.bf16 %v9640_v54, %v9638_v0  ;;  %v8558_v54 = vld [vmem:[%s16468_s11 + $0x18] sm:$0xff] }
0x1278   : > { %11596 = vmatpush1.bf16.msra.mxu1 %v11595_v50 }
0x1279   : > { %9600 = vmatprep.subr.msk.mxu1 %vm979_vm2, %v9599_v16  ;;  %v9642_v16 = vld [vmem:[%s16462_s5 + $0x320] sm:$0xff] }
0x127a   : > { %v11631_v28 = vpack.c.bf16 %v9644_v17, %v9642_v16  ;;  %v8561_v16 = vld [vmem:[%s16468_s11 + $0x30] sm:$0xff]  ;;  %v8562_v17 = vld [vmem:[%s16468_s11 + $0x38] sm:$0xff] }
0x127c   : > { %9601 = vmatpush1.msk.msra.mxu1 %vm979_vm2, %v9598_v19  ;;  %v11635_v19 = vpack.c.bf16 %v9648_v1, %v9646_v2 }
0x127d   : > { %9602 = vmatmul.mubr.msk.f32.vlgmr.msra.gmra.mrb[54].mxu1 %vm1376_vm9, %v15793_v5  ;;  %11598 = vmatprep.subr.bf16.mxu1 %v11597_v32  ;;  %v9619_v5 = vld [vmem:[%s16462_s5 + $0x288] sm:$0xff] }
0x127e   : > { %11600 = vmatpush1.bf16.msra.mxu1 %v11599_v42  ;;  %7685 = vmatprep.mubr.f32.mxu1 %v12113_v7  ;;  %v11609_v24 = vpack.c.bf16 %v9619_v5, %v9617_v58  ;;  %v9651_v32 = vld [vmem:[%s16462_s5 + $0x368] sm:$0xf]  ;;  %v9650_v42 = vld [vmem:[%s16462_s5 + $0x360] sm:$0xf] }
0x127f   : > { %11602 = vmatprep.subr.bf16.mxu1 %v11601_v46  ;;  %v7964_v46 = vld [vmem:[%s16465_s8 + $0x80] sm:$0xff] }
0x1281   : > { %9603 = vmatmul.mubr.msk.f32.gmra.mrb[56].mxu1 %vm1376_vm9, %v7603_v12  ;;  %v9623_v12 = vld [vmem:[%s16462_s5 + $0x2a8] sm:$0xff] }
0x1282   : > { %11604 = vmatpush1.bf16.msra.mxu1 %v11603_v53  ;;  %7795 = vmatprep.mubr.f32.mxu1 %v12113_v7  ;;  %v11613_v34 = vpack.c.bf16 %v9623_v12, %v9621_v4  ;;  %v7937_v53 = vrot.slane %v7928_v47, %v12549_v3 }
0x1283   : > { %11606 = vmatprep.subr.bf16.mxu1 %v11605_v27 }
0x1286   : > { %11608 = vmatpush1.bf16.msra.mxu1 %v11607_v14 }
0x1287   : > { %11610 = vmatprep.subr.bf16.mxu1 %v11609_v24 }
0x128a   : > { %11612 = vmatpush1.bf16.msra.mxu1 %v11611_v31 }
0x128b   : > { %11614 = vmatprep.subr.bf16.mxu1 %v11613_v34 }
0x128e   : > { %11616 = vmatpush1.bf16.msra.mxu1 %v11615_v26 }
0x128f   : > { %9626 = vmatprep.subr.msk.mxu1 %vm979_vm2, %v9625_v22 }
0x1292   : > { %9627 = vmatpush1.msk.msra.mxu1 %vm979_vm2, %v9624_v49  ;;  %v11678_v49 = vpack.c.bf16 %v9665_v62, %v9664_v33  ;;  %v9688_v33 = vld [vmem:[%s16466_s9 + $0x118] sm:$0xff] }
0x1293   : > { %9628 = vmatmul.mubr.msk.f32.vlgmr.msra.gmra.mrb[54].mxu1 %vm1376_vm9, %v15798_v55  ;;  %11618 = vmatprep.subr.bf16.mxu1 %v11617_v59  ;;  %v9645_v55 = vld [vmem:[%s16462_s5 + $0x338] sm:$0xff]  ;;  %v9666_v59 = vld [vmem:[%s16466_s9 + $0x80] sm:$0xff] }
0x1294   : > { %11620 = vmatpush1.bf16.msra.mxu1 %v11619_v8  ;;  %7801 = vmatprep.mubr.f32.mxu1 %v12113_v7  ;;  %v11629_v50 = vpack.c.bf16 %v9645_v55, %v9643_v29  ;;  %v9667_v8 = vld [vmem:[%s16466_s9 + $0x88] sm:$0xff]  ;;  %v8559_v55 = vld [vmem:[%s16468_s11 + $0x20] sm:$0xff] }
0x1295   : > { %11622 = vmatprep.subr.bf16.mxu1 %v11621_v20  ;;  %v11681_v20 = vpack.c.bf16 %v9667_v8, %v9666_v59  ;;  %v9690_v59 = vld [vmem:[%s16466_s9 + $0x128] sm:$0xff] }
0x1297   : > { %9629 = vmatmul.mubr.msk.f32.gmra.mrb[56].mxu1 %vm1376_vm9, %v7719_v6  ;;  %v9649_v6 = vld [vmem:[%s16462_s5 + $0x358] sm:$0xff] }
0x1298   : > { %11624 = vmatpush1.bf16.msra.mxu1 %v11623_v35  ;;  %7911 = vmatprep.mubr.f32.mxu1 %v12113_v7  ;;  %v11633_v51 = vpack.c.bf16 %v9649_v6, %v9647_v18  ;;  %v8556_v35 = vld [vmem:[%s16468_s11 + $0x8] sm:$0xff]  ;;  %v11756_v18 = vpack.c.bf16 %v8562_v17, %v8561_v16  ;;  %v8126_v6 = vld [vmem:[%s16466_s9] sm:$0xff]  ;;  %v9700_v16 = vld [vmem:[%s16466_s9 + $0x170] sm:$0xff] }
0x1299   : > { %11626 = vmatprep.subr.bf16.mxu1 %v11625_v40  ;;  %v8557_v40 = vld [vmem:[%s16468_s11 + $0x10] sm:$0xff]  ;;  %v11747_v0 = vpack.c.bf16 %v8556_v35, %v8555_v13  ;;  %v9695_v13 = vld [vmem:[%s16466_s9 + $0x148] sm:$0xff]  ;;  %v9701_v17 = vld [vmem:[%s16466_s9 + $0x178] sm:$0xff] }
0x129a   : > { %v11750_v29 = vpack.c.bf16 %v8558_v54, %v8557_v40  ;;  %v9697_v54 = vld [vmem:[%s16466_s9 + $0x158] sm:$0xff] }
0x129c   : > { %11628 = vmatpush1.bf16.msra.mxu1 %v11627_v61  ;;  %v8560_v61 = vld [vmem:[%s16468_s11 + $0x28] sm:$0xff] }
0x129d   : > { %11630 = vmatprep.subr.bf16.mxu1 %v11629_v50  ;;  %v11753_v50 = vpack.c.bf16 %v8560_v61, %v8559_v55  ;;  %v9698_v55 = vld [vmem:[%s16466_s9 + $0x160] sm:$0xff]  ;;  %v9699_v61 = vld [vmem:[%s16466_s9 + $0x168] sm:$0xff] }
0x12a0   : > { %11632 = vmatpush1.bf16.msra.mxu1 %v11631_v28  ;;  %v8127_v28 = vld [vmem:[%s16466_s9 + $0x8] sm:$0xff] }
0x12a1   : > { %11634 = vmatprep.subr.bf16.mxu1 %v11633_v51  ;;  %v11687_v2 = vpack.c.bf16 %v8127_v28, %v8126_v6  ;;  %v9702_v6 = vld [vmem:[%s16466_s9 + $0x180] sm:$0xff]  ;;  %v9703_v28 = vld [vmem:[%s16466_s9 + $0x188] sm:$0xff] }
0x12a4   : > { %11636 = vmatpush1.bf16.msra.mxu1 %v11635_v19 }
0x12a5   : > { %9652 = vmatprep.subr.msk.mxu1 %vm979_vm2, %v9651_v32  ;;  %v8128_v32 = vld [vmem:[%s16466_s9 + $0x10] sm:$0xff] }
0x12a8   : > { %9653 = vmatpush1.msk.msra.mxu1 %vm979_vm2, %v9650_v42  ;;  %v8129_v42 = vld [vmem:[%s16466_s9 + $0x18] sm:$0xff] }
0x12a9   : > { %9654 = vmatmul.mubr.msk.f32.vlgmr.msra.gmra.mrb[54].mxu1 %vm1376_vm9, %v15803_v39  ;;  %11746 = vmatprep.subr.bf16.mxu1 %v12114_v15  ;;  %v11662_v39 = vpack.c.bf16 %v7965_v48, %v7964_v46  ;;  %v11690_v46 = vpack.c.bf16 %v8129_v42, %v8128_v32  ;;  %v8130_v48 = vld [vmem:[%s16466_s9 + $0x20] sm:$0xff]  ;;  %v8564_v32 = vld [vmem:[%s16468_s11 + $0x48] sm:$0xff] }
0x12aa   : > { %7917 = vmatprep.mubr.f32.mxu1 %v12113_v7  ;;  %11748 = vmatpush3.bf16.msra.mxu1 %v11747_v0  ;;  %v9696_v0 = vld [vmem:[%s16466_s9 + $0x150] sm:$0xff] }
0x12ab   : > { %11663 = vmatpush1.bf16.msra.mxu0 %v11662_v39  ;;  %11749 = vmatprep.subr.bf16.mxu1 %v12114_v15  ;;  %v8131_v39 = vld [vmem:[%s16466_s9 + $0x28] sm:$0xff] }
0x12ac   : > { %11664 = vmatprep.subr.bf16.mxu0 %v12114_v15 }
0x12ad   : > { %9655 = vmatmul.mubr.msk.f32.gmra.mrb[56].mxu1 %vm1376_vm9, %v7835_v63  ;;  %v7967_v63 = vld [vmem:[%s16465_s8 + $0x98] sm:$0xff] }
0x12ae   : > { %10562 = vmatprep.mubr.msk.f32.mxu1 %vm12116_vm10, %v12113_v7  ;;  %v11665_v9 = vpack.c.bf16 %v7967_v63, %v7966_v10  ;;  %11751 = vmatpush3.bf16.msra.mxu1 %v11750_v29  ;;  %v11693_v10 = vpack.c.bf16 %v8131_v39, %v8130_v48  ;;  %v8132_v63 = vld [vmem:[%s16466_s9 + $0x30] sm:$0xff]  ;;  %v11735_v29 = vpack.c.bf16 %v9697_v54, %v9696_v0  ;;  %v8567_v48 = vld [vmem:[%s16468_s11 + $0x60] sm:$0xff] }
0x12af   : > { %11752 = vmatprep.subr.bf16.mxu1 %v12114_v15 }
0x12b0   : > { %11666 = vmatpush1.bf16.msra.mxu0 %v11665_v9  ;;  %v8133_v9 = vld [vmem:[%s16466_s9 + $0x38] sm:$0xff] }
0x12b1   : > { %11667 = vmatprep.subr.bf16.mxu0 %v12114_v15  ;;  %v11696_v47 = vpack.c.bf16 %v8133_v9, %v8132_v63  ;;  %v8569_v9 = vld [vmem:[%s16468_s11 + $0x70] sm:$0xff] }
0x12b2   : > { %11754 = vmatpush3.bf16.msra.mxu1 %v11753_v50  ;;  %v11738_v50 = vpack.c.bf16 %v9699_v61, %v9698_v55 }
0x12b3   : > { %11755 = vmatprep.subr.bf16.mxu1 %v12114_v15 }
0x12b6   : > { %11757 = vmatpush3.bf16.msra.mxu1 %v11756_v18  ;;  %v11741_v18 = vpack.c.bf16 %v9701_v17, %v9700_v16 }
0x12b7   : > { %11758 = vmatprep.subr.bf16.mxu1 %v12114_v15 }
0x137c   : > { %v7913_v27 = vpop.f32.mrb[54].mxu1 }
0x137d   : > { %v7940_v25 = vadd.f32 %v7933_v52, %v7913_v27  ;;  %v7915_v23 = vpop.f32.mrb[55].mxu1 }
0x137e   : > { %v7941_v58 = vadd.f32 %v7937_v53, %v7915_v23  ;;  %v9673_v23 = vld [vmem:[%s16466_s9 + $0xa8] sm:$0xff] }
0x137f   : > { %v7944_v24 = vmax.f32 %v7940_v25, 0.0  ;;  %v9672_v25 = vld [vmem:[%s16466_s9 + $0xa0] sm:$0xff] }
0x1380   : > { %v7945_v5 = vmax.f32 %v7941_v58, 0.0  ;;  %v7919_v14 = vpop.f32.mrb[56].mxu1  ;;  %v11702_v58 = vpack.c.bf16 %v9673_v23, %v9672_v25  ;;  %v8653_v25 = vld [vmem:[%s16470_s13 + $0x8] sm:$0xff] }
0x1381   : > { %v7942_v60 = vadd.f32 %v7933_v52, %v7919_v14  ;;  %v7921_v30 = vpop.f32.mrb[57].mxu1  ;;  %v8134_v52 = vld [vmem:[%s16466_s9 + $0x40] sm:$0xff]  ;;  %v9675_v14 = vld [vmem:[%s16466_s9 + $0xb8] sm:$0xff] }
0x1382   : > { %v7943_v4 = vadd.f32 %v7937_v53, %v7921_v30  ;;  %9656 = vmatprep.mubr.msk.f32.mxu0 %vm531_vm1, %v7945_v5  ;;  %v8135_v53 = vld [vmem:[%s16466_s9 + $0x48] sm:$0xff]  ;;  %v9674_v5 = vld [vmem:[%s16466_s9 + $0xb0] sm:$0xff] }
0x1383   : > { %8039 = vmatmul.mubr.f32.vlgmr.msra.gmra.mrb[54].mxu0 %v7944_v24  ;;  %v7946_v31 = vmax.f32 %v7942_v60, 0.0  ;;  %v11699_v27 = vpack.c.bf16 %v8135_v53, %v8134_v52  ;;  %v11705_v24 = vpack.c.bf16 %v9675_v14, %v9674_v5  ;;  %v9676_v60 = vld [vmem:[%s16466_s9 + $0xc0] sm:$0xff]  ;;  %v9677_v30 = vld [vmem:[%s16466_s9 + $0xc8] sm:$0xff] }
0x1384   : > { %v7947_v12 = vmax.f32 %v7943_v4, 0.0  ;;  %v11708_v4 = vpack.c.bf16 %v9677_v30, %v9676_v60  ;;  %v9705_v53 = vld [vmem:[%s16467_s10] ss:$0 sm:$0xff]  ;;  %v8655_v60 = vld [vmem:[%s16470_s13 + $0x18] sm:$0xff] }
0x1386   : > { %9657 = vmatprep.mubr.msk.f32.mxu0 %vm531_vm1, %v7947_v12  ;;  %v9678_v12 = vld [vmem:[%s16466_s9 + $0xd0] sm:$0xff]  ;;  %vm8746_vm1 = vcmask 76800  }
0x1387   : > { %8044 = vmatmul.mubr.f32.gmra.mrb[56].mxu0 %v7946_v31  ;;  %v9679_v31 = vld [vmem:[%s16466_s9 + $0xd8] sm:$0xff] }
0x1388   : > { %10414 = vmatprep.mubr.msk.f32.mxu0 %vm12116_vm10, %v12113_v7 }
0x1456   : > { %v8040_v45 = vpop.f32.mrb[54].mxu0 }
0x1457   : > { %v8042_v3 = vpop.f32.mrb[55].mxu0 }
0x1458   : > { %v9680_v3 = vld [vmem:[%s16466_s9 + $0xe0] sm:$0xff] }
0x145a   : > { %v8045_v34 = vpop.f32.mrb[56].mxu0 }
0x145b   : > { %v11668_v26 = vpack.c.bf16 %v8045_v34, %v8040_v45  ;;  %v8047_v22 = vpop.f32.mrb[57].mxu0  ;;  %v11711_v45 = vpack.c.bf16 %v9679_v31, %v9678_v12  ;;  %v9681_v34 = vld [vmem:[%s16466_s9 + $0xe8] sm:$0xff] }
0x145c   : > { %v11714_v37 = vpack.c.bf16 %v9681_v34, %v9680_v3  ;;  %v8657_v12 = vld [vmem:[%s16470_s13 + $0x28] sm:$0xff]  ;;  %v8659_v3 = vld [vmem:[%s16470_s13 + $0x38] sm:$0xff] }
0x145d   : > { %11670 = vmatpush3.bf16.msk.msra.mxu0 %vm13262_vm12, %v11668_v26  ;;  %v9684_v26 = vld [vmem:[%s16466_s9 + $0xf8] sm:$0xff] }
0x145e   : > { %11671 = vmatprep.subr.bf16.mxu0 %v12114_v15  ;;  %v11717_v22 = vpack.c.bf16 %v9684_v26, %v9683_v21  ;;  %v8661_v21 = vld [vmem:[%s16470_s13 + $0x48] sm:$0xff] }
0x1460   : > { %10415 = vmatmul.mubr.msk.f32.vlgmr.msra.gmra.mrb[58].mxu0 %vm2024_vm13, %v8049_v36 }
0x1461   : > { %11673 = vmatpush3.bf16.msra.mxu0 %v11672_v56  ;;  %10437 = vmatprep.mubr.msk.f32.mxu0 %vm12116_vm10, %v12113_v7  ;;  %v9685_v56 = vld [vmem:[%s16466_s9 + $0x100] sm:$0xff] }
0x1462   : > { %11674 = vmatprep.subr.bf16.mxu0 %v12114_v15  ;;  %v11720_v41 = vpack.c.bf16 %v9686_v38, %v9685_v56 }
0x1465   : > { %11676 = vmatpush3.bf16.msra.mxu0 %v11675_v57  ;;  %v9687_v57 = vld [vmem:[%s16466_s9 + $0x110] sm:$0xff] }
0x1466   : > { %11677 = vmatprep.subr.bf16.mxu0 %v12114_v15  ;;  %v11723_v62 = vpack.c.bf16 %v9688_v33, %v9687_v57 }
0x1469   : > { %11679 = vmatpush3.bf16.msra.mxu0 %v11678_v49  ;;  %v9689_v49 = vld [vmem:[%s16466_s9 + $0x120] sm:$0xff] }
0x146a   : > { %11680 = vmatprep.subr.bf16.mxu0 %v12114_v15  ;;  %v11726_v8 = vpack.c.bf16 %v9690_v59, %v9689_v49 }
0x146d   : > { %11682 = vmatpush3.bf16.msra.mxu0 %v11681_v20  ;;  %v9691_v20 = vld [vmem:[%s16466_s9 + $0x130] sm:$0xff] }
0x146e   : > { %11683 = vmatprep.subr.bf16.mxu0 %v12114_v15  ;;  %v11729_v44 = vpack.c.bf16 %v9692_v43, %v9691_v20 }
0x1471   : > { %11685 = vmatpush3.bf16.msra.mxu0 %v11684_v11  ;;  %v9694_v11 = vld [vmem:[%s16466_s9 + $0x140] sm:$0xff] }
0x1472   : > { %11686 = vmatprep.subr.bf16.mxu0 %v12114_v15  ;;  %v11732_v35 = vpack.c.bf16 %v9695_v13, %v9694_v11 }
0x1533   : > { %v16180_v51 = vpop.f32.mrb[58].mxu0 }
0x1534   : > { %v8147_v1 = vrot.slane %v16180_v51, 1  ;;  %v10416_v19 = vpop.f32.mrb[59].mxu0  ;;  %v8302_v36 = vrot.slane %v16180_v51, 2  ;;  %v8386_v40 = vrot.slane %v16180_v51, 3 }
0x1535   : > { %v8563_v19 = vld [vmem:[%s16468_s11 + $0x40] sm:$0xff] }
0x1536   : > { %10438 = vmatmul.mubr.msk.f32.vlgmr.msra.gmra.mrb[60].mxu0 %vm2125_vm14, %v8147_v1  ;;  %v8470_v1 = vrot.slane %v16180_v51, 4  ;;  %v11759_v42 = vpack.c.bf16 %v8564_v32, %v8563_v19 }
0x1537   : > { %11688 = vmatpush3.bf16.msra.mxu0 %v11687_v2  ;;  %10460 = vmatprep.mubr.msk.f32.mxu0 %vm12116_vm10, %v12113_v7  ;;  %v11744_v2 = vpack.c.bf16 %v9703_v28, %v9702_v6 }
0x1538   : > { %11689 = vmatprep.subr.bf16.mxu0 %v12114_v15  ;;  %11760 = vmatpush3.bf16.msra.mxu1 %v11759_v42 }
0x1539   : > { %11761 = vmatprep.subr.bf16.mxu1 %v12114_v15 }
0x153b   : > { %11691 = vmatpush3.bf16.msra.mxu0 %v11690_v46  ;;  %v8565_v46 = vld [vmem:[%s16468_s11 + $0x50] sm:$0xff] }
0x153c   : > { %11692 = vmatprep.subr.bf16.mxu0 %v12114_v15 }
0x153f   : > { %11694 = vmatpush3.bf16.msra.mxu0 %v11693_v10  ;;  %v8568_v10 = vld [vmem:[%s16468_s11 + $0x68] sm:$0xff] }
0x1540   : > { %11695 = vmatprep.subr.bf16.mxu0 %v12114_v15  ;;  %v11765_v63 = vpack.c.bf16 %v8568_v10, %v8567_v48 }
0x1543   : > { %11697 = vmatpush3.bf16.msra.mxu0 %v11696_v47 }
0x1544   : > { %11698 = vmatprep.subr.bf16.mxu0 %v12114_v15 }
0x1547   : > { %11700 = vmatpush3.bf16.msra.mxu0 %v11699_v27  ;;  %v8652_v27 = vld [vmem:[%s16470_s13] sm:$0xff] }
0x1548   : > { %11701 = vmatprep.subr.bf16.mxu0 %v12114_v15  ;;  %v11768_v5 = vpack.c.bf16 %v8653_v25, %v8652_v27 }
0x154a   : > { %10461 = vmatmul.mubr.msk.f32.vlgmr.msra.gmra.mrb[60].mxu0 %vm2125_vm14, %v16180_v51  ;;  %v8566_v51 = vld [vmem:[%s16468_s11 + $0x58] sm:$0xff] }
0x154b   : > { %11703 = vmatpush3.bf16.msra.mxu0 %v11702_v58  ;;  %10483 = vmatprep.mubr.msk.f32.mxu0 %vm12116_vm10, %v12113_v7  ;;  %v11762_v39 = vpack.c.bf16 %v8566_v51, %v8565_v46 }
0x154c   : > { %11704 = vmatprep.subr.bf16.mxu0 %v12114_v15 }
0x154d   : > { %11763 = vmatpush3.bf16.msra.mxu1 %v11762_v39 }
0x154e   : > { %11764 = vmatprep.subr.bf16.mxu1 %v12114_v15 }
0x154f   : > { %11706 = vmatpush3.bf16.msra.mxu0 %v11705_v24  ;;  %v8654_v24 = vld [vmem:[%s16470_s13 + $0x10] sm:$0xff] }
0x1550   : > { %11707 = vmatprep.subr.bf16.mxu0 %v12114_v15  ;;  %v11771_v30 = vpack.c.bf16 %v8655_v60, %v8654_v24 }
0x1551   : > { %11766 = vmatpush3.bf16.msra.mxu1 %v11765_v63 }
0x1552   : > { %10560 = vmatprep.subr.mxu1 %v12113_v7 }
0x1553   : > { %11709 = vmatpush3.bf16.msra.mxu0 %v11708_v4  ;;  %v8656_v4 = vld [vmem:[%s16470_s13 + $0x20] sm:$0xff] }
0x1554   : > { %11710 = vmatprep.subr.bf16.mxu0 %v12114_v15  ;;  %v11774_v31 = vpack.c.bf16 %v8657_v12, %v8656_v4 }
0x1555   : > { %10561 = vmatpush3.msra.mxu1 %v8569_v9 }
0x1556   : > { %11767 = vmatprep.subr.bf16.mxu1 %v12114_v15 }
0x1557   : > { %11712 = vmatpush3.bf16.msra.mxu0 %v11711_v45  ;;  %v8658_v45 = vld [vmem:[%s16470_s13 + $0x30] sm:$0xff] }
0x1558   : > { %11713 = vmatprep.subr.bf16.mxu0 %v12114_v15  ;;  %v11777_v34 = vpack.c.bf16 %v8659_v3, %v8658_v45 }
0x155b   : > { %11715 = vmatpush3.bf16.msra.mxu0 %v11714_v37  ;;  %v8660_v37 = vld [vmem:[%s16470_s13 + $0x40] sm:$0xff] }
0x155c   : > { %11716 = vmatprep.subr.bf16.mxu0 %v12114_v15  ;;  %v11780_v26 = vpack.c.bf16 %v8661_v21, %v8660_v37 }
0x155e   : > { %10484 = vmatmul.mubr.msk.f32.vlgmr.msra.gmra.mrb[60].mxu0 %vm2125_vm14, %v8302_v36 }
0x155f   : > { %11718 = vmatpush3.bf16.msra.mxu0 %v11717_v22  ;;  %10506 = vmatprep.mubr.msk.f32.mxu0 %vm12116_vm10, %v12113_v7  ;;  %v8662_v22 = vld [vmem:[%s16470_s13 + $0x50] sm:$0xf] }
0x1560   : > { %11719 = vmatprep.subr.bf16.mxu0 %v12114_v15 }
0x1563   : > { %11721 = vmatpush3.bf16.msra.mxu0 %v11720_v41 }
0x1564   : > { %11722 = vmatprep.subr.bf16.mxu0 %v12114_v15 }
0x1567   : > { %11724 = vmatpush3.bf16.msra.mxu0 %v11723_v62 }
0x1568   : > { %11725 = vmatprep.subr.bf16.mxu0 %v12114_v15 }
0x156b   : > { %11727 = vmatpush3.bf16.msra.mxu0 %v11726_v8 }
0x156c   : > { %11728 = vmatprep.subr.bf16.mxu0 %v12114_v15 }
0x156f   : > { %11730 = vmatpush3.bf16.msra.mxu0 %v11729_v44 }
0x1570   : > { %11731 = vmatprep.subr.bf16.mxu0 %v12114_v15 }
0x1572   : > { %10507 = vmatmul.mubr.msk.f32.vlgmr.msra.gmra.mrb[60].mxu0 %vm2125_vm14, %v8386_v40 }
0x1573   : > { %11733 = vmatpush3.bf16.msra.mxu0 %v11732_v35  ;;  %10529 = vmatprep.mubr.msk.f32.mxu0 %vm12116_vm10, %v12113_v7 }
0x1574   : > { %11734 = vmatprep.subr.bf16.mxu0 %v12114_v15 }
0x1577   : > { %11736 = vmatpush3.bf16.msra.mxu0 %v11735_v29 }
0x1578   : > { %11737 = vmatprep.subr.bf16.mxu0 %v12114_v15 }
0x157b   : > { %11739 = vmatpush3.bf16.msra.mxu0 %v11738_v50 }
0x157c   : > { %11740 = vmatprep.subr.bf16.mxu0 %v12114_v15 }
0x157f   : > { %11742 = vmatpush3.bf16.msra.mxu0 %v11741_v18 }
0x1580   : > { %11743 = vmatprep.subr.bf16.mxu0 %v12114_v15 }
0x1583   : > { %11745 = vmatpush3.bf16.msra.mxu0 %v11744_v2 }
0x1586   : > { %10530 = vmatmul.mubr.msk.f32.vlgmr.msra.gmra.mrb[60].mxu0 %vm2125_vm14, %v8470_v1 }
0x1659   : > { %v8539_v47 = vpop.f32.mrb[60].mxu0 }
0x165a   : > { %8544 = vst.msk [vmem:[#allocation2 + $0x3] sm:$0x1] %vm2525_vm15, %v8539_v47  ;;  %v10531_v52 = vpop.f32.mrb[61].mxu0 }
0x1661   : > { %v8545_v23 = vld [vmem:[#allocation2] sm:$0xf] }
0x1662   : > { %v8553_v58 = vadd.f32 %v9705_v53, %v8545_v23 }
0x1664   : > { %v8554_v14 = vmax.f32 %v8553_v58, 0.0 }
0x1666   : > { %10563 = vmatmul.mubr.msk.f32.vlgmr.msra.gmra.mrb[58].mxu1 %vm8577_vm0, %v8554_v14 }
0x1667   : > { %11769 = vmatpush3.bf16.msra.mxu1 %v11768_v5  ;;  %10587 = vmatprep.mubr.msk.f32.mxu1 %vm12116_vm10, %v12113_v7 }
0x1668   : > { %11770 = vmatprep.subr.bf16.mxu1 %v12114_v15 }
0x166b   : > { %11772 = vmatpush3.bf16.msra.mxu1 %v11771_v30 }
0x166c   : > { %11773 = vmatprep.subr.bf16.mxu1 %v12114_v15 }
0x166f   : > { %11775 = vmatpush3.bf16.msra.mxu1 %v11774_v31 }
0x1670   : > { %11776 = vmatprep.subr.bf16.mxu1 %v12114_v15 }
0x1673   : > { %11778 = vmatpush3.bf16.msra.mxu1 %v11777_v34 }
0x1674   : > { %11779 = vmatprep.subr.bf16.mxu1 %v12114_v15  ;;  %v9706_v15 = vld [vmem:[%s16469_s12] ss:$0 sm:$0xff] }
0x1677   : > { %11781 = vmatpush3.bf16.msra.mxu1 %v11780_v26 }
0x1678   : > { %10585 = vmatprep.subr.mxu1 %v12113_v7  ;;  %v9708_v7 = vld [vmem:[%s16471_s14] ss:$0 sm:$0xff] }
0x167b   : > { %10586 = vmatpush3.msk.msra.mxu1 %vm979_vm2, %v8662_v22 }
0x1739   : > { %v8647_v36 = vpop.f32.mrb[58].mxu1 }
0x173a   : > { %v8648_v56 = vadd.f32 %v9706_v15, %v8647_v36  ;;  %v10564_v38 = vpop.f32.mrb[59].mxu1 }
0x173c   : > { %v8651_v41 = vmax.f32 %v8648_v56, 0.0 }
0x173e   : > { %10588 = vmatmul.mubr.msk.f32.vlgmr.msra.gmra.mrb[60].mxu1 %vm1376_vm9, %v8651_v41 }
0x1811   : > { %v8742_v57 = vpop.f32.mrb[60].mxu1 }
0x1812   : > { %v8743_v33 = vadd.f32 %v9708_v7, %v8742_v57  ;;  %v10589_v62 = vpop.f32.mrb[61].mxu1 }
0x1814   : > { %8747 = vst.msk [vmem:[%s490_s0] sm:$0xf] %vm8746_vm1, %v8743_v33 }
0x1815   : > { %12062 = shalt.err (!%p12059_p3)
}
0x1816   : > { %s12063_s18 = scalar_lea.hbm %s16415_s23, 64  ;;  %s12067_s16 = scalar_lea.hbm %s16472_s15, 128 }
0x1817   : > { %p12064_p4 = scmp.ne.s32.totalorder %s16415_s23, %s12063_s18  ;;  %p12068_p9 = scmp.lt.u32.totalorder %s16415_s23, %s16472_s15 }
0x1818   : > { %p12069_p10 = scmp.lt.u32.totalorder %s12067_s16, %s12063_s18  ;;  %p12071_p12 = scmp.lt.u32.totalorder %s12063_s18, %s16415_s23 }
0x1819   : > { %p12065_p7 = pnand %p12064_p4, %p12236_p5 }
0x181a   : > { %p12070_p11 = por %p12069_p10, %p12068_p9 }
0x181b   : > { %p12066_p8 = pneg %p12065_p7 }
0x181c   : > { %p12072_p13 = por %p12071_p12, %p12070_p11 }
0x181e   : > { %p12073_p0 = pnand %p12072_p13, %p12066_p8 }
0x1820   : > { %12076 = shalt.err (!%p12073_p0)
}
0x1821   : > { %12006 = dma.vmem_to_hbm [thread:$0]  (%p12236_p5), %s16417_s21, 64, %s16415_s23, %s8749_s29  }
0x1822 PF: > { %s16493_s17 = sld [smem:[#allocation8_spill]]  ;;  %s16494_s20 = sld [smem:[#allocation6_spill]] }
0x1828   : > { %p12012_p1 = scmp.ge.s32.totalorder %s16493_s17, 2  ;;  %s8774_s24 = sand.u32 1, %s16494_s20  }
0x1829   : > { %s8775_s25 = scalar_lea.sflag [#allocation4], %s8774_s24 }
0x182a   : > { %p12009_p2 = pnand %p12012_p1, %p12240_p6 }
0x182c   : > { %12094 = dma.done.wait (!%p12009_p2), %s8775_s25, 64  }
0x182d   : > { %12096 = vsyncadd (!%p12009_p2), %s8775_s25, 4294967232  ;;  %s16496_s21 = sld [smem:[#allocation9_spill]]  ;;  %s16497_s26 = sld [smem:[#allocation7_spill]] }
0x182e   : > { %s16498_s20 = sld [smem:[#allocation10_spill]]  ;;  %s16499_s18 = smov %s12103_s19 }
0x1833   : > { %p25_p3 = scmp.ge.s32.totalorder %s16496_s21, 4   ;;  %s16500_s19 = smov %s16497_s26 }
0x1835   :  { %27 = sbr.rel (!%p25_p3) target bundleno = 5 (0x5), region = 130 }
0x183c   :  { %8780 = vsyncpa [#allocation4], 1 }
0x183d   :  { %8782 = vsyncpa [#allocation4 + $0x1], 1 }

</bundles_post_ra>
